<compile_context>
chip_gen: v7x
topology: tpu7x:2x2x1
jax: 0.10.0
libtpu: 0.0.40
codegen_flags: <defaults>
</compile_context>

<pallas_src>
import numpy as np
import jax
import jax.numpy as jnp
from jax.experimental import pallas as pl
from jax.experimental.pallas import tpu as pltpu
from jax.tree_util import register_pytree_node_class

EPS = 1e-5
BN_SCALE = float(1.0 / np.sqrt(1.0 + EPS))
PRELU_ALPHA = 0.25


def _round_up(x, m):
    return (x + m - 1) // m * m


def _pair(v):
    return (v, v) if isinstance(v, int) else tuple(v)


# ----------------------------------------------------------------------------
# Packed weight container (arrays are pytree children, metadata is static)
# ----------------------------------------------------------------------------
@register_pytree_node_class
class PackedW:
    """Conv weight pre-packed to (Kp, Np) bf16 matmul form, BN scale folded."""

    def __init__(self, B, bias, K, O, kh, kw):
        self.B = B          # (Kp, Np) bfloat16
        self.bias = bias    # (1, Np)  float32
        self.K = K          # true reduction size (Cin * kh * kw)
        self.O = O          # true number of output columns
        self.kh = kh
        self.kw = kw

    def tree_flatten(self):
        return (self.B, self.bias), (self.K, self.O, self.kh, self.kw)

    @classmethod
    def tree_unflatten(cls, aux, children):
        return cls(children[0], children[1], *aux)


def _pack_conv(w, *, bn=True, bias=None):
    """w: (O, C, kh, kw) f32, PyTorch layout -> PackedW (im2col column order)."""
    O, C, kh, kw = w.shape
    K = C * kh * kw
    Kp = _round_up(K, 128)
    Np = _round_up(O, 128)
    # im2col columns are ordered (tap a, tap b, channel c): (a*kw + b)*C + c
    B = jnp.transpose(w, (2, 3, 1, 0)).reshape(K, O)
    if bn:
        B = B * BN_SCALE
    Bp = jnp.zeros((Kp, Np), jnp.bfloat16).at[:K, :O].set(B.astype(jnp.bfloat16))
    bvec = jnp.zeros((1, Np), jnp.float32)
    if bias is not None:
        bvec = bvec.at[0, :O].set(bias)
    return PackedW(Bp, bvec, K, O, kh, kw)


def _pack_tconv2x2(wt):
    """wt: (Cin, Cout, 2, 2) ConvTranspose2d(k=2, s=2) weight (+ folded BN)."""
    Cin, Cout = wt.shape[0], wt.shape[1]
    K, O = Cin, Cout * 4
    Kp = _round_up(K, 128)
    Np = _round_up(O, 128)
    B = wt.reshape(Cin, O) * BN_SCALE          # column = cout*4 + a*2 + b
    Bp = jnp.zeros((Kp, Np), jnp.bfloat16).at[:K, :O].set(B.astype(jnp.bfloat16))
    return PackedW(Bp, jnp.zeros((1, Np), jnp.float32), K, O, 1, 1)


# ----------------------------------------------------------------------------
# Pallas matmul kernels: act(A@B + bias) and act(act(A@B + bias) + residual)
# ----------------------------------------------------------------------------
def _apply_act(y, act):
    if act == "relu":
        return jnp.maximum(y, 0.0)
    if act == "prelu":
        return jnp.where(y > 0, y, PRELU_ALPHA * y)
    return y


def _mm_kernel_factory(act, has_res):
    if has_res:
        def kernel(a_ref, b_ref, c_ref, r_ref, o_ref):
            y = jnp.dot(a_ref[...], b_ref[...], preferred_element_type=jnp.float32)
            y = _apply_act(y + c_ref[...], act)          # conv + BN + act
            o_ref[...] = _apply_act(y + r_ref[...], act)  # + main, out_activation
    else:
        def kernel(a_ref, b_ref, c_ref, o_ref):
            y = jnp.dot(a_ref[...], b_ref[...], preferred_element_type=jnp.float32)
            o_ref[...] = _apply_act(y + c_ref[...], act)
    return kernel


_MM_KERNELS = {(a, r): _mm_kernel_factory(a, r)
               for a in (None, "relu", "prelu") for r in (False, True)}


def matmul_bias_act(A, Bp, bias_p, Nc, act, residual=None):
    """out[:M,:Nc] = act((A @ Bp) + bias) [optionally act(. + residual)]."""
    M, K = A.shape
    Kp, Np = Bp.shape

    # M tiling: single full tile for small M, 512-row tiles otherwise.
    if M <= 512:
        TM = _round_up(M, 8)
        Mp = TM
    else:
        TM = 512
        Mp = _round_up(M, TM)

    A = A.astype(jnp.bfloat16)
    if (Mp, Kp) != (M, K):
        A = jnp.pad(A, ((0, Mp - M), (0, Kp - K)))

    inputs = [A, Bp, bias_p]
    in_specs = [
        pl.BlockSpec((TM, Kp), lambda i: (i, 0)),
        pl.BlockSpec((Kp, Np), lambda i: (0, 0)),   # resident across M tiles
        pl.BlockSpec((1, Np), lambda i: (0, 0)),    # resident across M tiles
    ]

    has_res = residual is not None
    if has_res:
        R = residual.astype(jnp.float32)
        mr, nr = R.shape
        if (Mp, Np) != (mr, nr):
            R = jnp.pad(R, ((0, Mp - mr), (0, Np - nr)))
        inputs.append(R)
        in_specs.append(pl.BlockSpec((TM, Np), lambda i: (i, 0)))

    out = pl.pallas_call(
        _MM_KERNELS[(act, has_res)],
        out_shape=jax.ShapeDtypeStruct((Mp, Np), jnp.float32),
        grid=(Mp // TM,),
        in_specs=in_specs,
        out_specs=pl.BlockSpec((TM, Np), lambda i: (i, 0)),
        compiler_params=pltpu.CompilerParams(dimension_semantics=("parallel",)),
    )(*inputs)

    if (Mp, Np) != (M, Nc):
        out = out[:M, :Nc]
    return out


# ----------------------------------------------------------------------------
# Conv / pooling glue (NHWC; 1x1 convs skip im2col)
# ----------------------------------------------------------------------------
def _im2col_nhwc(x, kh, kw, stride, padding, dilation):
    N, H, W, C = x.shape
    sh, sw = stride
    ph, pw = padding
    dh, dw = dilation
    xp = jnp.pad(x, ((0, 0), (ph, ph), (pw, pw), (0, 0)))
    Hp, Wp = H + 2 * ph, W + 2 * pw
    Hout = (Hp - dh * (kh - 1) - 1) // sh + 1
    Wout = (Wp - dw * (kw - 1) - 1) // sw + 1
    cols = []
    for a in range(kh):
        for b in range(kw):
            cols.append(xp[:, a * dh: a * dh + sh * (Hout - 1) + 1: sh,
                              b * dw: b * dw + sw * (Wout - 1) + 1: sw, :])
    A = jnp.concatenate(cols, axis=-1).reshape(N * Hout * Wout, C * kh * kw)
    return A, Hout, Wout


def conv2d_nhwc(x, pk, act, stride=1, padding=0, dilation=1, residual=None):
    """Conv (+BN, folded) (+act) (+fused residual add + act).  x: NHWC."""
    N, H, W, C = x.shape
    sh, sw = _pair(stride)
    ph, pw = _pair(padding)
    dh, dw = _pair(dilation)
    if (pk.kh, pk.kw) == (1, 1) and (sh, sw) == (1, 1) and (ph, pw) == (0, 0):
        A = x.reshape(N * H * W, C)
        Hout, Wout = H, W
    else:
        A, Hout, Wout = _im2col_nhwc(x, pk.kh, pk.kw, (sh, sw), (ph, pw), (dh, dw))
    R = None
    if residual is not None:
        R = residual.reshape(N * Hout * Wout, residual.shape[-1])
    out = matmul_bias_act(A, pk.B, pk.bias, pk.O, act, residual=R)
    return out.reshape(N, Hout, Wout, pk.O)


def tconv2x2_nhwc(x, pk, act):
    """ConvTranspose2d(k=2, s=2, bias=False) + BN + act as one Pallas matmul."""
    N, H, W, Cin = x.shape
    A = x.reshape(N * H * W, Cin)
    out = matmul_bias_act(A, pk.B, pk.bias, pk.O, act)
    Cout = pk.O // 4
    out = (out.reshape(N, H, W, Cout, 2, 2)
              .transpose(0, 1, 4, 2, 5, 3)
              .reshape(N, 2 * H, 2 * W, Cout))
    return out


def final_tconv_nhwc(x, pk, out_hw):
    """ConvTranspose2d(16, nc, k=3, s=2, p=1, bias=True) with output_size."""
    N, H, W, Cin = x.shape
    Ho, Wo = out_hw
    op_h = Ho - ((H - 1) * 2 - 2 + 3)
    op_w = Wo - ((W - 1) * 2 - 2 + 3)
    xd = jnp.zeros((N, 2 * H - 1, 2 * W - 1, Cin), jnp.float32).at[:, ::2, ::2, :].set(x)
    xd = jnp.pad(xd, ((0, 0), (1, 1 + op_h), (1, 1 + op_w), (0, 0)))
    return conv2d_nhwc(xd, pk, None)


def maxpool2x2_nhwc(x):
    N, H, W, C = x.shape
    return x.reshape(N, H // 2, 2, W // 2, 2, C).max(axis=(2, 4))


def maxpool2x2_indices_nhwc(x):
    # TODO(synk): argmax / index extraction stays in plain JAX (data-dependent).
    N, H, W, C = x.shape
    xr = (x.reshape(N, H // 2, 2, W // 2, 2, C)
           .transpose(0, 1, 3, 2, 4, 5)
           .reshape(N, H // 2, W // 2, 4, C))
    vals = xr.max(axis=3)
    arg = jnp.argmax(xr, axis=3)
    di = arg // 2
    dj = arg % 2
    i_idx = jnp.arange(H // 2)[None, :, None, None]
    j_idx = jnp.arange(W // 2)[None, None, :, None]
    flat_idx = (2 * i_idx + di) * W + (2 * j_idx + dj)   # flat index in H*W per (n,c)
    return vals, flat_idx


def maxunpool2x2_nhwc(x, indices, out_hw):
    """Scatter-free MaxUnpool2d: compare the stored flat index against each of
    the 4 candidate output positions (pure elementwise compare/select)."""
    N, H, W, C = x.shape
    Ho, Wo = out_hw
    base = (2 * jnp.arange(H)[:, None] * Wo + 2 * jnp.arange(W)[None, :])
    base = base[None, :, :, None]                         # (1, H, W, 1)
    vals = []
    for di in range(2):
        for dj in range(2):
            mask = indices == (base + di * Wo + dj)
            vals.append(jnp.where(mask, x, 0.0))
    out = jnp.stack(vals, axis=3)                         # (N, H, W, 4, C)
    out = out.reshape(N, H, W, 2, 2, C)
    out = out.transpose(0, 1, 3, 2, 4, 5).reshape(N, Ho, Wo, C)
    return out


# ----------------------------------------------------------------------------
# ENet blocks (NHWC)
# ----------------------------------------------------------------------------
def initial_block(x, p):
    x1 = conv2d_nhwc(x, p["conv"], None, stride=2, padding=1)   # no BN / no act
    x2 = maxpool2x2_nhwc(x)
    dh = x2.shape[1] - x1.shape[1]
    dw = x2.shape[2] - x1.shape[2]
    x1 = jnp.pad(x1, ((0, 0), (dh // 2, dh - dh // 2), (dw // 2, dw - dw // 2), (0, 0)))
    return jnp.concatenate([x1, x2], axis=-1)


def downsample_bottleneck(x, p, act):
    main, idx = maxpool2x2_indices_nhwc(x)
    ext = conv2d_nhwc(x, p["w1"], act, stride=2)       # 2x2 stride-2 conv + BN + act
    ext = conv2d_nhwc(ext, p["w2"], act, padding=1)    # 3x3 conv + BN + act
    # 1x1 conv + BN + act, with zero-channel-padded main branch add and
    # out_activation fused into the matmul epilogue.
    out = conv2d_nhwc(ext, p["w3"], act, residual=main)
    return out, idx


def normal_bottleneck(x, p, act, padding=0, dilation=1, asymmetric=False):
    out = conv2d_nhwc(x, p["w1"], act)                 # 1x1
    if asymmetric:
        out = conv2d_nhwc(out, p["w2a"], act, padding=(padding, 0), dilation=dilation)
        out = conv2d_nhwc(out, p["w2b"], act, padding=(0, padding), dilation=dilation)
    else:
        out = conv2d_nhwc(out, p["w2"], act, padding=padding, dilation=dilation)
    # last 1x1 conv with residual add + out_activation fused in the epilogue
    return conv2d_nhwc(out, p["w3"], act, residual=x)


def upsample_bottleneck(x, max_indices, out_hw, p, act):
    main = conv2d_nhwc(x, p["main"], None)             # 1x1 conv + BN, no act
    main = maxunpool2x2_nhwc(main, max_indices, out_hw)
    ext = conv2d_nhwc(x, p["w1"], act)                 # 1x1
    ext = tconv2x2_nhwc(ext, p["wt"], act)             # tconv 2x2 s2 + BN + act
    # last 1x1 conv with unpooled main add + out_activation fused
    return conv2d_nhwc(ext, p["w2"], act, residual=main)


# ----------------------------------------------------------------------------
# Parameters (deterministic synthetic init, packed once at creation)
# ----------------------------------------------------------------------------
def init_params(key, num_classes=7):
    keys = iter(jax.random.split(key, 256))

    def cw(o, c, kh, kw, *, bn=True, bias=None):
        fan_in = c * kh * kw
        w = jax.random.normal(next(keys), (o, c, kh, kw), jnp.float32) / np.sqrt(fan_in)
        return _pack_conv(w, bn=bn, bias=bias)

    def down(in_ch, out_ch):
        ic = in_ch // 4
        return {"w1": cw(ic, in_ch, 2, 2), "w2": cw(ic, ic, 3, 3),
                "w3": cw(out_ch, ic, 1, 1)}

    def normal(in_ch, k=3, asym=False):
        ic = in_ch // 4
        p = {"w1": cw(ic, in_ch, 1, 1)}
        if asym:
            p["w2a"] = cw(ic, ic, k, 1)
            p["w2b"] = cw(ic, ic, 1, k)
        else:
            p["w2"] = cw(ic, ic, k, k)
        p["w3"] = cw(in_ch, ic, 1, 1)
        return p

    def up(in_ch, out_ch):
        ic = in_ch // 4
        wt = jax.random.normal(next(keys), (ic, ic, 2, 2), jnp.float32) / np.sqrt(ic * 4)
        return {"main": cw(out_ch, in_ch, 1, 1), "w1": cw(ic, in_ch, 1, 1),
                "wt": _pack_tconv2x2(wt), "w2": cw(out_ch, ic, 1, 1)}

    params = {"initial": {"conv": cw(13, 3, 3, 3, bn=False)}}
    params["down1"] = down(16, 64)
    for i in range(1, 5):
        params[f"reg1_{i}"] = normal(64)
    params["down2"] = down(64, 128)
    params["reg2_1"] = normal(128)
    params["dil2_2"] = normal(128)
    params["asym2_3"] = normal(128, k=5, asym=True)
    params["dil2_4"] = normal(128)
    params["reg2_5"] = normal(128)
    params["dil2_6"] = normal(128)
    params["asym2_7"] = normal(128, k=5, asym=True)
    params["dil2_8"] = normal(128)
    params["reg3_0"] = normal(128)
    params["dil3_1"] = normal(128)
    params["asym3_2"] = normal(128, k=5, asym=True)
    params["dil3_3"] = normal(128)
    params["reg3_4"] = normal(128)
    params["dil3_5"] = normal(128)
    params["asym3_6"] = normal(128, k=5, asym=True)
    params["dil3_7"] = normal(128)
    params["up4_0"] = up(128, 64)
    params["reg4_1"] = normal(64)
    params["reg4_2"] = normal(64)
    params["up5_0"] = up(64, 16)
    params["reg5_1"] = normal(16)
    # ConvTranspose2d(16, nc, 3, s=2, p=1, bias=True): pack the equivalent
    # forward conv (flip + swap in/out) applied to the dilated input.
    wt = jax.random.normal(next(keys), (16, num_classes, 3, 3), jnp.float32) / np.sqrt(16 * 9)
    b = jax.random.normal(next(keys), (num_classes,), jnp.float32) * 0.01
    w_conv = jnp.transpose(jnp.flip(wt, (2, 3)), (1, 0, 2, 3))   # (nc, 16, 3, 3)
    params["final"] = _pack_conv(w_conv, bn=False, bias=b)
    return params


# ----------------------------------------------------------------------------
# Full ENet forward (NCHW in/out at the boundary; NHWC inside)
# ----------------------------------------------------------------------------
def enet_forward(x_nchw, params):
    enc, dec = "prelu", "relu"   # encoder_relu=False -> PReLU, decoder_relu=True -> ReLU
    x = jnp.transpose(x_nchw, (0, 2, 3, 1))
    in_hw = (x.shape[1], x.shape[2])

    x = initial_block(x, params["initial"])
    s1_hw = (x.shape[1], x.shape[2])
    x, idx1 = downsample_bottleneck(x, params["down1"], enc)
    for i in range(1, 5):
        x = normal_bottleneck(x, params[f"reg1_{i}"], enc, padding=1)

    s2_hw = (x.shape[1], x.shape[2])
    x, idx2 = downsample_bottleneck(x, params["down2"], enc)
    x = normal_bottleneck(x, params["reg2_1"], enc, padding=1)
    x = normal_bottleneck(x, params["dil2_2"], enc, padding=2, dilation=2)
    x = normal_bottleneck(x, params["asym2_3"], enc, padding=2, asymmetric=True)
    x = normal_bottleneck(x, params["dil2_4"], enc, padding=4, dilation=4)
    x = normal_bottleneck(x, params["reg2_5"], enc, padding=1)
    x = normal_bottleneck(x, params["dil2_6"], enc, padding=8, dilation=8)
    x = normal_bottleneck(x, params["asym2_7"], enc, padding=2, asymmetric=True)
    x = normal_bottleneck(x, params["dil2_8"], enc, padding=16, dilation=16)

    x = normal_bottleneck(x, params["reg3_0"], enc, padding=1)
    x = normal_bottleneck(x, params["dil3_1"], enc, padding=2, dilation=2)
    x = normal_bottleneck(x, params["asym3_2"], enc, padding=2, asymmetric=True)
    x = normal_bottleneck(x, params["dil3_3"], enc, padding=4, dilation=4)
    x = normal_bottleneck(x, params["reg3_4"], enc, padding=1)
    x = normal_bottleneck(x, params["dil3_5"], enc, padding=8, dilation=8)
    x = normal_bottleneck(x, params["asym3_6"], enc, padding=2, asymmetric=True)
    x = normal_bottleneck(x, params["dil3_7"], enc, padding=16, dilation=16)

    x = upsample_bottleneck(x, idx2, s2_hw, params["up4_0"], dec)
    x = normal_bottleneck(x, params["reg4_1"], dec, padding=1)
    x = normal_bottleneck(x, params["reg4_2"], dec, padding=1)
    x = upsample_bottleneck(x, idx1, s1_hw, params["up5_0"], dec)
    x = normal_bottleneck(x, params["reg5_1"], dec, padding=1)

    x = final_tconv_nhwc(x, params["final"], in_hw)
    return jnp.transpose(x, (0, 3, 1, 2))


if __name__ == "__main__":
    key = jax.random.PRNGKey(0)
    k_in, k_par = jax.random.split(key)
    # Small but ENet-consistent input (spatial divisible by 8): NCHW
    x = jax.random.normal(k_in, (2, 3, 32, 32), jnp.float32)
    params = init_params(k_par, num_classes=7)

    fwd = jax.jit(enet_forward)
    out = fwd(x, params)
    jax.block_until_ready(out)
    assert out.shape == (2, 7, 32, 32), out.shape
    assert bool(jnp.all(jnp.isfinite(out)))
    print("KERNEL_OK")
</pallas_src>

<mosaic_0001>
module attributes {stable_mosaic.version = 11 : i64} {
  func.func @kernel(%arg0: i32, %arg1: memref<512x128xbf16, #tpu.memory_space<vmem>>, %arg2: memref<128x128xbf16, #tpu.memory_space<vmem>>, %arg3: memref<1x128xf32, #tpu.memory_space<vmem>>, %arg4: memref<512x128xf32, #tpu.memory_space<vmem>>) attributes {dimension_semantics = [#tpu.dimension_semantics<parallel>], iteration_bounds = array<i64: 1>, scalar_prefetch = 0 : i64, scratch_operands = 0 : i64, tpu.core_type = #tpu.core_type<tc>, window_params = [{transform_indices = @transform_0, window_bounds = array<i64: 512, 128>}, {pipeline_mode = #tpu.pipeline_mode<synchronous>, transform_indices = @transform_1, window_bounds = array<i64: 128, 128>}, {pipeline_mode = #tpu.pipeline_mode<synchronous>, transform_indices = @transform_2, window_bounds = array<i64: 1, 128>}, {transform_indices = @transform_3, window_bounds = array<i64: 512, 128>}]} {
    %c0 = arith.constant 0 : index
    %c0_0 = arith.constant 0 : index
    %0 = vector.load %arg1[%c0, %c0_0] : memref<512x128xbf16, #tpu.memory_space<vmem>>, vector<512x128xbf16>
    %c0_1 = arith.constant 0 : index
    %c0_2 = arith.constant 0 : index
    %1 = vector.load %arg2[%c0_1, %c0_2] : memref<128x128xbf16, #tpu.memory_space<vmem>>, vector<128x128xbf16>
    %cst = arith.constant dense<0.000000e+00> : vector<512x128xf32>
    %2 = tpu.matmul %0, %1, %cst {dimension_numbers = #tpu.dot_dimension_numbers<[1], [0], [0], [1], [0, 0, 1, 1], [], []>} : vector<512x128xbf16>, vector<128x128xbf16>, vector<512x128xf32> -> vector<512x128xf32>
    %c0_3 = arith.constant 0 : index
    %c0_4 = arith.constant 0 : index
    %3 = vector.load %arg3[%c0_3, %c0_4] : memref<1x128xf32, #tpu.memory_space<vmem>>, vector<1x128xf32>
    %4 = vector.broadcast %3 : vector<1x128xf32> to vector<512x128xf32>
    %5 = arith.addf %2, %4 : vector<512x128xf32>
    %c0_5 = arith.constant 0 : index
    %c0_6 = arith.constant 0 : index
    %6 = vector.load %arg4[%c0_5, %c0_6] : memref<512x128xf32, #tpu.memory_space<vmem>>, vector<512x128xf32>
    tpu.vector_store %arg4[%c0_5, %c0_6], %5 {strides = array<i32>} : memref<512x128xf32, #tpu.memory_space<vmem>>, vector<512x128xf32>,
    return
  }
  func.func @transform_0(%arg0: i32) -> (i32, i32) {
    %c0_i32 = arith.constant 0 : i32
    %c0_i32_0 = arith.constant 0 : i32
    return %arg0, %c0_i32 : i32, i32
  }
  func.func @transform_1(%arg0: i32) -> (i32, i32) {
    %c0_i32 = arith.constant 0 : i32
    %c0_i32_0 = arith.constant 0 : i32
    %c0_i32_1 = arith.constant 0 : i32
    return %c0_i32, %c0_i32_0 : i32, i32
  }
  func.func @transform_2(%arg0: i32) -> (i32, i32) {
    %c0_i32 = arith.constant 0 : i32
    %c0_i32_0 = arith.constant 0 : i32
    %c0_i32_1 = arith.constant 0 : i32
    return %c0_i32, %c0_i32_0 : i32, i32
  }
  func.func @transform_3(%arg0: i32) -> (i32, i32) {
    %c0_i32 = arith.constant 0 : i32
    %c0_i32_0 = arith.constant 0 : i32
    return %arg0, %c0_i32 : i32, i32
  }
}

module attributes {stable_mosaic.version = 11 : i64} {
  func.func @kernel(%arg0: i32, %arg1: memref<128x128xbf16, #tpu.memory_space<vmem>>, %arg2: memref<128x128xbf16, #tpu.memory_space<vmem>>, %arg3: memref<1x128xf32, #tpu.memory_space<vmem>>, %arg4: memref<128x128xf32, #tpu.memory_space<vmem>>) attributes {dimension_semantics = [#tpu.dimension_semantics<parallel>], iteration_bounds = array<i64: 1>, scalar_prefetch = 0 : i64, scratch_operands = 0 : i64, tpu.core_type = #tpu.core_type<tc>, window_params = [{transform_indices = @transform_0, window_bounds = array<i64: 128, 128>}, {pipeline_mode = #tpu.pipeline_mode<synchronous>, transform_indices = @transform_1, window_bounds = array<i64: 128, 128>}, {pipeline_mode = #tpu.pipeline_mode<synchronous>, transform_indices = @transform_2, window_bounds = array<i64: 1, 128>}, {transform_indices = @transform_3, window_bounds = array<i64: 128, 128>}]} {
    %c0 = arith.constant 0 : index
    %c0_0 = arith.constant 0 : index
    %0 = vector.load %arg1[%c0, %c0_0] : memref<128x128xbf16, #tpu.memory_space<vmem>>, vector<128x128xbf16>
    %c0_1 = arith.constant 0 : index
    %c0_2 = arith.constant 0 : index
    %1 = vector.load %arg2[%c0_1, %c0_2] : memref<128x128xbf16, #tpu.memory_space<vmem>>, vector<128x128xbf16>
    %cst = arith.constant dense<0.000000e+00> : vector<128x128xf32>
    %2 = tpu.matmul %0, %1, %cst {dimension_numbers = #tpu.dot_dimension_numbers<[1], [0], [0], [1], [0, 0, 1, 1], [], []>} : vector<128x128xbf16>, vector<128x128xbf16>, vector<128x128xf32> -> vector<128x128xf32>
    %c0_3 = arith.constant 0 : index
    %c0_4 = arith.constant 0 : index
    %3 = vector.load %arg3[%c0_3, %c0_4] : memref<1x128xf32, #tpu.memory_space<vmem>>, vector<1x128xf32>
    %4 = vector.broadcast %3 : vector<1x128xf32> to vector<128x128xf32>
    %5 = arith.addf %2, %4 : vector<128x128xf32>
    %cst_5 = arith.constant 0.000000e+00 : f32
    %6 = vector.broadcast %cst_5 : f32 to vector<128x128xf32>
    %7 = arith.cmpf ogt, %5, %6 : vector<128x128xf32>
    %cst_6 = arith.constant 2.500000e-01 : f32
    %8 = vector.broadcast %cst_6 : f32 to vector<128x128xf32>
    %9 = arith.mulf %8, %5 : vector<128x128xf32>
    %10 = arith.select %7, %5, %9 : vector<128x128xi1>, vector<128x128xf32>
    %c0_7 = arith.constant 0 : index
    %c0_8 = arith.constant 0 : index
    %11 = vector.load %arg4[%c0_7, %c0_8] : memref<128x128xf32, #tpu.memory_space<vmem>>, vector<128x128xf32>
    tpu.vector_store %arg4[%c0_7, %c0_8], %10 {strides = array<i32>} : memref<128x128xf32, #tpu.memory_space<vmem>>, vector<128x128xf32>,
    return
  }
  func.func @transform_0(%arg0: i32) -> (i32, i32) {
    %c0_i32 = arith.constant 0 : i32
    %c0_i32_0 = arith.constant 0 : i32
    return %arg0, %c0_i32 : i32, i32
  }
  func.func @transform_1(%arg0: i32) -> (i32, i32) {
    %c0_i32 = arith.constant 0 : i32
    %c0_i32_0 = arith.constant 0 : i32
    %c0_i32_1 = arith.constant 0 : i32
    return %c0_i32, %c0_i32_0 : i32, i32
  }
  func.func @transform_2(%arg0: i32) -> (i32, i32) {
    %c0_i32 = arith.constant 0 : i32
    %c0_i32_0 = arith.constant 0 : i32
    %c0_i32_1 = arith.constant 0 : i32
    return %c0_i32, %c0_i32_0 : i32, i32
  }
  func.func @transform_3(%arg0: i32) -> (i32, i32) {
    %c0_i32 = arith.constant 0 : i32
    %c0_i32_0 = arith.constant 0 : i32
    return %arg0, %c0_i32 : i32, i32
  }
}

module attributes {stable_mosaic.version = 11 : i64} {
  func.func @kernel(%arg0: i32, %arg1: memref<128x128xbf16, #tpu.memory_space<vmem>>, %arg2: memref<128x128xbf16, #tpu.memory_space<vmem>>, %arg3: memref<1x128xf32, #tpu.memory_space<vmem>>, %arg4: memref<128x128xf32, #tpu.memory_space<vmem>>, %arg5: memref<128x128xf32, #tpu.memory_space<vmem>>) attributes {dimension_semantics = [#tpu.dimension_semantics<parallel>], iteration_bounds = array<i64: 1>, scalar_prefetch = 0 : i64, scratch_operands = 0 : i64, tpu.core_type = #tpu.core_type<tc>, window_params = [{transform_indices = @transform_0, window_bounds = array<i64: 128, 128>}, {pipeline_mode = #tpu.pipeline_mode<synchronous>, transform_indices = @transform_1, window_bounds = array<i64: 128, 128>}, {pipeline_mode = #tpu.pipeline_mode<synchronous>, transform_indices = @transform_2, window_bounds = array<i64: 1, 128>}, {transform_indices = @transform_3, window_bounds = array<i64: 128, 128>}, {transform_indices = @transform_4, window_bounds = array<i64: 128, 128>}]} {
    %c0 = arith.constant 0 : index
    %c0_0 = arith.constant 0 : index
    %0 = vector.load %arg1[%c0, %c0_0] : memref<128x128xbf16, #tpu.memory_space<vmem>>, vector<128x128xbf16>
    %c0_1 = arith.constant 0 : index
    %c0_2 = arith.constant 0 : index
    %1 = vector.load %arg2[%c0_1, %c0_2] : memref<128x128xbf16, #tpu.memory_space<vmem>>, vector<128x128xbf16>
    %cst = arith.constant dense<0.000000e+00> : vector<128x128xf32>
    %2 = tpu.matmul %0, %1, %cst {dimension_numbers = #tpu.dot_dimension_numbers<[1], [0], [0], [1], [0, 0, 1, 1], [], []>} : vector<128x128xbf16>, vector<128x128xbf16>, vector<128x128xf32> -> vector<128x128xf32>
    %c0_3 = arith.constant 0 : index
    %c0_4 = arith.constant 0 : index
    %3 = vector.load %arg3[%c0_3, %c0_4] : memref<1x128xf32, #tpu.memory_space<vmem>>, vector<1x128xf32>
    %4 = vector.broadcast %3 : vector<1x128xf32> to vector<128x128xf32>
    %5 = arith.addf %2, %4 : vector<128x128xf32>
    %cst_5 = arith.constant 0.000000e+00 : f32
    %6 = vector.broadcast %cst_5 : f32 to vector<128x128xf32>
    %7 = arith.cmpf ogt, %5, %6 : vector<128x128xf32>
    %cst_6 = arith.constant 2.500000e-01 : f32
    %8 = vector.broadcast %cst_6 : f32 to vector<128x128xf32>
    %9 = arith.mulf %8, %5 : vector<128x128xf32>
    %10 = arith.select %7, %5, %9 : vector<128x128xi1>, vector<128x128xf32>
    %c0_7 = arith.constant 0 : index
    %c0_8 = arith.constant 0 : index
    %11 = vector.load %arg4[%c0_7, %c0_8] : memref<128x128xf32, #tpu.memory_space<vmem>>, vector<128x128xf32>
    %12 = arith.addf %10, %11 : vector<128x128xf32>
    %cst_9 = arith.constant 0.000000e+00 : f32
    %13 = vector.broadcast %cst_9 : f32 to vector<128x128xf32>
    %14 = arith.cmpf ogt, %12, %13 : vector<128x128xf32>
    %cst_10 = arith.constant 2.500000e-01 : f32
    %15 = vector.broadcast %cst_10 : f32 to vector<128x128xf32>
    %16 = arith.mulf %15, %12 : vector<128x128xf32>
    %17 = arith.select %14, %12, %16 : vector<128x128xi1>, vector<128x128xf32>
    %c0_11 = arith.constant 0 : index
    %c0_12 = arith.constant 0 : index
    %18 = vector.load %arg5[%c0_11, %c0_12] : memref<128x128xf32, #tpu.memory_space<vmem>>, vector<128x128xf32>
    tpu.vector_store %arg5[%c0_11, %c0_12], %17 {strides = array<i32>} : memref<128x128xf32, #tpu.memory_space<vmem>>, vector<128x128xf32>,
    return
  }
  func.func @transform_0(%arg0: i32) -> (i32, i32) {
    %c0_i32 = arith.constant 0 : i32
    %c0_i32_0 = arith.constant 0 : i32
    return %arg0, %c0_i32 : i32, i32
  }
  func.func @transform_1(%arg0: i32) -> (i32, i32) {
    %c0_i32 = arith.constant 0 : i32
    %c0_i32_0 = arith.constant 0 : i32
    %c0_i32_1 = arith.constant 0 : i32
    return %c0_i32, %c0_i32_0 : i32, i32
  }
  func.func @transform_2(%arg0: i32) -> (i32, i32) {
    %c0_i32 = arith.constant 0 : i32
    %c0_i32_0 = arith.constant 0 : i32
    %c0_i32_1 = arith.constant 0 : i32
    return %c0_i32, %c0_i32_0 : i32, i32
  }
  func.func @transform_3(%arg0: i32) -> (i32, i32) {
    %c0_i32 = arith.constant 0 : i32
    %c0_i32_0 = arith.constant 0 : i32
    return %arg0, %c0_i32 : i32, i32
  }
  func.func @transform_4(%arg0: i32) -> (i32, i32) {
    %c0_i32 = arith.constant 0 : i32
    %c0_i32_0 = arith.constant 0 : i32
    return %arg0, %c0_i32 : i32, i32
  }
}

module attributes {stable_mosaic.version = 11 : i64} {
  func.func @kernel(%arg0: i32, %arg1: memref<128x256xbf16, #tpu.memory_space<vmem>>, %arg2: memref<256x128xbf16, #tpu.memory_space<vmem>>, %arg3: memref<1x128xf32, #tpu.memory_space<vmem>>, %arg4: memref<128x128xf32, #tpu.memory_space<vmem>>) attributes {dimension_semantics = [#tpu.dimension_semantics<parallel>], iteration_bounds = array<i64: 1>, scalar_prefetch = 0 : i64, scratch_operands = 0 : i64, tpu.core_type = #tpu.core_type<tc>, window_params = [{transform_indices = @transform_0, window_bounds = array<i64: 128, 256>}, {pipeline_mode = #tpu.pipeline_mode<synchronous>, transform_indices = @transform_1, window_bounds = array<i64: 256, 128>}, {pipeline_mode = #tpu.pipeline_mode<synchronous>, transform_indices = @transform_2, window_bounds = array<i64: 1, 128>}, {transform_indices = @transform_3, window_bounds = array<i64: 128, 128>}]} {
    %c0 = arith.constant 0 : index
    %c0_0 = arith.constant 0 : index
    %0 = vector.load %arg1[%c0, %c0_0] : memref<128x256xbf16, #tpu.memory_space<vmem>>, vector<128x256xbf16>
    %c0_1 = arith.constant 0 : index
    %c0_2 = arith.constant 0 : index
    %1 = vector.load %arg2[%c0_1, %c0_2] : memref<256x128xbf16, #tpu.memory_space<vmem>>, vector<256x128xbf16>
    %cst = arith.constant dense<0.000000e+00> : vector<128x128xf32>
    %2 = tpu.matmul %0, %1, %cst {dimension_numbers = #tpu.dot_dimension_numbers<[1], [0], [0], [1], [0, 0, 1, 1], [], []>} : vector<128x256xbf16>, vector<256x128xbf16>, vector<128x128xf32> -> vector<128x128xf32>
    %c0_3 = arith.constant 0 : index
    %c0_4 = arith.constant 0 : index
    %3 = vector.load %arg3[%c0_3, %c0_4] : memref<1x128xf32, #tpu.memory_space<vmem>>, vector<1x128xf32>
    %4 = vector.broadcast %3 : vector<1x128xf32> to vector<128x128xf32>
    %5 = arith.addf %2, %4 : vector<128x128xf32>
    %cst_5 = arith.constant 0.000000e+00 : f32
    %6 = vector.broadcast %cst_5 : f32 to vector<128x128xf32>
    %7 = arith.cmpf ogt, %5, %6 : vector<128x128xf32>
    %cst_6 = arith.constant 2.500000e-01 : f32
    %8 = vector.broadcast %cst_6 : f32 to vector<128x128xf32>
    %9 = arith.mulf %8, %5 : vector<128x128xf32>
    %10 = arith.select %7, %5, %9 : vector<128x128xi1>, vector<128x128xf32>
    %c0_7 = arith.constant 0 : index
    %c0_8 = arith.constant 0 : index
    %11 = vector.load %arg4[%c0_7, %c0_8] : memref<128x128xf32, #tpu.memory_space<vmem>>, vector<128x128xf32>
    tpu.vector_store %arg4[%c0_7, %c0_8], %10 {strides = array<i32>} : memref<128x128xf32, #tpu.memory_space<vmem>>, vector<128x128xf32>,
    return
  }
  func.func @transform_0(%arg0: i32) -> (i32, i32) {
    %c0_i32 = arith.constant 0 : i32
    %c0_i32_0 = arith.constant 0 : i32
    return %arg0, %c0_i32 : i32, i32
  }
  func.func @transform_1(%arg0: i32) -> (i32, i32) {
    %c0_i32 = arith.constant 0 : i32
    %c0_i32_0 = arith.constant 0 : i32
    %c0_i32_1 = arith.constant 0 : i32
    return %c0_i32, %c0_i32_0 : i32, i32
  }
  func.func @transform_2(%arg0: i32) -> (i32, i32) {
    %c0_i32 = arith.constant 0 : i32
    %c0_i32_0 = arith.constant 0 : i32
    %c0_i32_1 = arith.constant 0 : i32
    return %c0_i32, %c0_i32_0 : i32, i32
  }
  func.func @transform_3(%arg0: i32) -> (i32, i32) {
    %c0_i32 = arith.constant 0 : i32
    %c0_i32_0 = arith.constant 0 : i32
    return %arg0, %c0_i32 : i32, i32
  }
}

module attributes {stable_mosaic.version = 11 : i64} {
  func.func @kernel(%arg0: i32, %arg1: memref<32x256xbf16, #tpu.memory_space<vmem>>, %arg2: memref<256x128xbf16, #tpu.memory_space<vmem>>, %arg3: memref<1x128xf32, #tpu.memory_space<vmem>>, %arg4: memref<32x128xf32, #tpu.memory_space<vmem>>) attributes {dimension_semantics = [#tpu.dimension_semantics<parallel>], iteration_bounds = array<i64: 1>, scalar_prefetch = 0 : i64, scratch_operands = 0 : i64, tpu.core_type = #tpu.core_type<tc>, window_params = [{transform_indices = @transform_0, window_bounds = array<i64: 32, 256>}, {pipeline_mode = #tpu.pipeline_mode<synchronous>, transform_indices = @transform_1, window_bounds = array<i64: 256, 128>}, {pipeline_mode = #tpu.pipeline_mode<synchronous>, transform_indices = @transform_2, window_bounds = array<i64: 1, 128>}, {transform_indices = @transform_3, window_bounds = array<i64: 32, 128>}]} {
    %c0 = arith.constant 0 : index
    %c0_0 = arith.constant 0 : index
    %0 = vector.load %arg1[%c0, %c0_0] : memref<32x256xbf16, #tpu.memory_space<vmem>>, vector<32x256xbf16>
    %c0_1 = arith.constant 0 : index
    %c0_2 = arith.constant 0 : index
    %1 = vector.load %arg2[%c0_1, %c0_2] : memref<256x128xbf16, #tpu.memory_space<vmem>>, vector<256x128xbf16>
    %cst = arith.constant dense<0.000000e+00> : vector<32x128xf32>
    %2 = tpu.matmul %0, %1, %cst {dimension_numbers = #tpu.dot_dimension_numbers<[1], [0], [0], [1], [0, 0, 1, 1], [], []>} : vector<32x256xbf16>, vector<256x128xbf16>, vector<32x128xf32> -> vector<32x128xf32>
    %c0_3 = arith.constant 0 : index
    %c0_4 = arith.constant 0 : index
    %3 = vector.load %arg3[%c0_3, %c0_4] : memref<1x128xf32, #tpu.memory_space<vmem>>, vector<1x128xf32>
    %4 = vector.broadcast %3 : vector<1x128xf32> to vector<32x128xf32>
    %5 = arith.addf %2, %4 : vector<32x128xf32>
    %cst_5 = arith.constant 0.000000e+00 : f32
    %6 = vector.broadcast %cst_5 : f32 to vector<32x128xf32>
    %7 = arith.cmpf ogt, %5, %6 : vector<32x128xf32>
    %cst_6 = arith.constant 2.500000e-01 : f32
    %8 = vector.broadcast %cst_6 : f32 to vector<32x128xf32>
    %9 = arith.mulf %8, %5 : vector<32x128xf32>
    %10 = arith.select %7, %5, %9 : vector<32x128xi1>, vector<32x128xf32>
    %c0_7 = arith.constant 0 : index
    %c0_8 = arith.constant 0 : index
    %11 = vector.load %arg4[%c0_7, %c0_8] : memref<32x128xf32, #tpu.memory_space<vmem>>, vector<32x128xf32>
    tpu.vector_store %arg4[%c0_7, %c0_8], %10 {strides = array<i32>} : memref<32x128xf32, #tpu.memory_space<vmem>>, vector<32x128xf32>,
    return
  }
  func.func @transform_0(%arg0: i32) -> (i32, i32) {
    %c0_i32 = arith.constant 0 : i32
    %c0_i32_0 = arith.constant 0 : i32
    return %arg0, %c0_i32 : i32, i32
  }
  func.func @transform_1(%arg0: i32) -> (i32, i32) {
    %c0_i32 = arith.constant 0 : i32
    %c0_i32_0 = arith.constant 0 : i32
    %c0_i32_1 = arith.constant 0 : i32
    return %c0_i32, %c0_i32_0 : i32, i32
  }
  func.func @transform_2(%arg0: i32) -> (i32, i32) {
    %c0_i32 = arith.constant 0 : i32
    %c0_i32_0 = arith.constant 0 : i32
    %c0_i32_1 = arith.constant 0 : i32
    return %c0_i32, %c0_i32_0 : i32, i32
  }
  func.func @transform_3(%arg0: i32) -> (i32, i32) {
    %c0_i32 = arith.constant 0 : i32
    %c0_i32_0 = arith.constant 0 : i32
    return %arg0, %c0_i32 : i32, i32
  }
}

module attributes {stable_mosaic.version = 11 : i64} {
  func.func @kernel(%arg0: i32, %arg1: memref<32x128xbf16, #tpu.memory_space<vmem>>, %arg2: memref<128x128xbf16, #tpu.memory_space<vmem>>, %arg3: memref<1x128xf32, #tpu.memory_space<vmem>>, %arg4: memref<32x128xf32, #tpu.memory_space<vmem>>, %arg5: memref<32x128xf32, #tpu.memory_space<vmem>>) attributes {dimension_semantics = [#tpu.dimension_semantics<parallel>], iteration_bounds = array<i64: 1>, scalar_prefetch = 0 : i64, scratch_operands = 0 : i64, tpu.core_type = #tpu.core_type<tc>, window_params = [{transform_indices = @transform_0, window_bounds = array<i64: 32, 128>}, {pipeline_mode = #tpu.pipeline_mode<synchronous>, transform_indices = @transform_1, window_bounds = array<i64: 128, 128>}, {pipeline_mode = #tpu.pipeline_mode<synchronous>, transform_indices = @transform_2, window_bounds = array<i64: 1, 128>}, {transform_indices = @transform_3, window_bounds = array<i64: 32, 128>}, {transform_indices = @transform_4, window_bounds = array<i64: 32, 128>}]} {
    %c0 = arith.constant 0 : index
    %c0_0 = arith.constant 0 : index
    %0 = vector.load %arg1[%c0, %c0_0] : memref<32x128xbf16, #tpu.memory_space<vmem>>, vector<32x128xbf16>
    %c0_1 = arith.constant 0 : index
    %c0_2 = arith.constant 0 : index
    %1 = vector.load %arg2[%c0_1, %c0_2] : memref<128x128xbf16, #tpu.memory_space<vmem>>, vector<128x128xbf16>
    %cst = arith.constant dense<0.000000e+00> : vector<32x128xf32>
    %2 = tpu.matmul %0, %1, %cst {dimension_numbers = #tpu.dot_dimension_numbers<[1], [0], [0], [1], [0, 0, 1, 1], [], []>} : vector<32x128xbf16>, vector<128x128xbf16>, vector<32x128xf32> -> vector<32x128xf32>
    %c0_3 = arith.constant 0 : index
    %c0_4 = arith.constant 0 : index
    %3 = vector.load %arg3[%c0_3, %c0_4] : memref<1x128xf32, #tpu.memory_space<vmem>>, vector<1x128xf32>
    %4 = vector.broadcast %3 : vector<1x128xf32> to vector<32x128xf32>
    %5 = arith.addf %2, %4 : vector<32x128xf32>
    %cst_5 = arith.constant 0.000000e+00 : f32
    %6 = vector.broadcast %cst_5 : f32 to vector<32x128xf32>
    %7 = arith.cmpf ogt, %5, %6 : vector<32x128xf32>
    %cst_6 = arith.constant 2.500000e-01 : f32
    %8 = vector.broadcast %cst_6 : f32 to vector<32x128xf32>
    %9 = arith.mulf %8, %5 : vector<32x128xf32>
    %10 = arith.select %7, %5, %9 : vector<32x128xi1>, vector<32x128xf32>
    %c0_7 = arith.constant 0 : index
    %c0_8 = arith.constant 0 : index
    %11 = vector.load %arg4[%c0_7, %c0_8] : memref<32x128xf32, #tpu.memory_space<vmem>>, vector<32x128xf32>
    %12 = arith.addf %10, %11 : vector<32x128xf32>
    %cst_9 = arith.constant 0.000000e+00 : f32
    %13 = vector.broadcast %cst_9 : f32 to vector<32x128xf32>
    %14 = arith.cmpf ogt, %12, %13 : vector<32x128xf32>
    %cst_10 = arith.constant 2.500000e-01 : f32
    %15 = vector.broadcast %cst_10 : f32 to vector<32x128xf32>
    %16 = arith.mulf %15, %12 : vector<32x128xf32>
    %17 = arith.select %14, %12, %16 : vector<32x128xi1>, vector<32x128xf32>
    %c0_11 = arith.constant 0 : index
    %c0_12 = arith.constant 0 : index
    %18 = vector.load %arg5[%c0_11, %c0_12] : memref<32x128xf32, #tpu.memory_space<vmem>>, vector<32x128xf32>
    tpu.vector_store %arg5[%c0_11, %c0_12], %17 {strides = array<i32>} : memref<32x128xf32, #tpu.memory_space<vmem>>, vector<32x128xf32>,
    return
  }
  func.func @transform_0(%arg0: i32) -> (i32, i32) {
    %c0_i32 = arith.constant 0 : i32
    %c0_i32_0 = arith.constant 0 : i32
    return %arg0, %c0_i32 : i32, i32
  }
  func.func @transform_1(%arg0: i32) -> (i32, i32) {
    %c0_i32 = arith.constant 0 : i32
    %c0_i32_0 = arith.constant 0 : i32
    %c0_i32_1 = arith.constant 0 : i32
    return %c0_i32, %c0_i32_0 : i32, i32
  }
  func.func @transform_2(%arg0: i32) -> (i32, i32) {
    %c0_i32 = arith.constant 0 : i32
    %c0_i32_0 = arith.constant 0 : i32
    %c0_i32_1 = arith.constant 0 : i32
    return %c0_i32, %c0_i32_0 : i32, i32
  }
  func.func @transform_3(%arg0: i32) -> (i32, i32) {
    %c0_i32 = arith.constant 0 : i32
    %c0_i32_0 = arith.constant 0 : i32
    return %arg0, %c0_i32 : i32, i32
  }
  func.func @transform_4(%arg0: i32) -> (i32, i32) {
    %c0_i32 = arith.constant 0 : i32
    %c0_i32_0 = arith.constant 0 : i32
    return %arg0, %c0_i32 : i32, i32
  }
}

module attributes {stable_mosaic.version = 11 : i64} {
  func.func @kernel(%arg0: i32, %arg1: memref<32x128xbf16, #tpu.memory_space<vmem>>, %arg2: memref<128x128xbf16, #tpu.memory_space<vmem>>, %arg3: memref<1x128xf32, #tpu.memory_space<vmem>>, %arg4: memref<32x128xf32, #tpu.memory_space<vmem>>) attributes {dimension_semantics = [#tpu.dimension_semantics<parallel>], iteration_bounds = array<i64: 1>, scalar_prefetch = 0 : i64, scratch_operands = 0 : i64, tpu.core_type = #tpu.core_type<tc>, window_params = [{transform_indices = @transform_0, window_bounds = array<i64: 32, 128>}, {pipeline_mode = #tpu.pipeline_mode<synchronous>, transform_indices = @transform_1, window_bounds = array<i64: 128, 128>}, {pipeline_mode = #tpu.pipeline_mode<synchronous>, transform_indices = @transform_2, window_bounds = array<i64: 1, 128>}, {transform_indices = @transform_3, window_bounds = array<i64: 32, 128>}]} {
    %c0 = arith.constant 0 : index
    %c0_0 = arith.constant 0 : index
    %0 = vector.load %arg1[%c0, %c0_0] : memref<32x128xbf16, #tpu.memory_space<vmem>>, vector<32x128xbf16>
    %c0_1 = arith.constant 0 : index
    %c0_2 = arith.constant 0 : index
    %1 = vector.load %arg2[%c0_1, %c0_2] : memref<128x128xbf16, #tpu.memory_space<vmem>>, vector<128x128xbf16>
    %cst = arith.constant dense<0.000000e+00> : vector<32x128xf32>
    %2 = tpu.matmul %0, %1, %cst {dimension_numbers = #tpu.dot_dimension_numbers<[1], [0], [0], [1], [0, 0, 1, 1], [], []>} : vector<32x128xbf16>, vector<128x128xbf16>, vector<32x128xf32> -> vector<32x128xf32>
    %c0_3 = arith.constant 0 : index
    %c0_4 = arith.constant 0 : index
    %3 = vector.load %arg3[%c0_3, %c0_4] : memref<1x128xf32, #tpu.memory_space<vmem>>, vector<1x128xf32>
    %4 = vector.broadcast %3 : vector<1x128xf32> to vector<32x128xf32>
    %5 = arith.addf %2, %4 : vector<32x128xf32>
    %cst_5 = arith.constant 0.000000e+00 : f32
    %6 = vector.broadcast %cst_5 : f32 to vector<32x128xf32>
    %7 = arith.cmpf ogt, %5, %6 : vector<32x128xf32>
    %cst_6 = arith.constant 2.500000e-01 : f32
    %8 = vector.broadcast %cst_6 : f32 to vector<32x128xf32>
    %9 = arith.mulf %8, %5 : vector<32x128xf32>
    %10 = arith.select %7, %5, %9 : vector<32x128xi1>, vector<32x128xf32>
    %c0_7 = arith.constant 0 : index
    %c0_8 = arith.constant 0 : index
    %11 = vector.load %arg4[%c0_7, %c0_8] : memref<32x128xf32, #tpu.memory_space<vmem>>, vector<32x128xf32>
    tpu.vector_store %arg4[%c0_7, %c0_8], %10 {strides = array<i32>} : memref<32x128xf32, #tpu.memory_space<vmem>>, vector<32x128xf32>,
    return
  }
  func.func @transform_0(%arg0: i32) -> (i32, i32) {
    %c0_i32 = arith.constant 0 : i32
    %c0_i32_0 = arith.constant 0 : i32
    return %arg0, %c0_i32 : i32, i32
  }
  func.func @transform_1(%arg0: i32) -> (i32, i32) {
    %c0_i32 = arith.constant 0 : i32
    %c0_i32_0 = arith.constant 0 : i32
    %c0_i32_1 = arith.constant 0 : i32
    return %c0_i32, %c0_i32_0 : i32, i32
  }
  func.func @transform_2(%arg0: i32) -> (i32, i32) {
    %c0_i32 = arith.constant 0 : i32
    %c0_i32_0 = arith.constant 0 : i32
    %c0_i32_1 = arith.constant 0 : i32
    return %c0_i32, %c0_i32_0 : i32, i32
  }
  func.func @transform_3(%arg0: i32) -> (i32, i32) {
    %c0_i32 = arith.constant 0 : i32
    %c0_i32_0 = arith.constant 0 : i32
    return %arg0, %c0_i32 : i32, i32
  }
}

module attributes {stable_mosaic.version = 11 : i64} {
  func.func @kernel(%arg0: i32, %arg1: memref<32x128xbf16, #tpu.memory_space<vmem>>, %arg2: memref<128x128xbf16, #tpu.memory_space<vmem>>, %arg3: memref<1x128xf32, #tpu.memory_space<vmem>>, %arg4: memref<32x128xf32, #tpu.memory_space<vmem>>) attributes {dimension_semantics = [#tpu.dimension_semantics<parallel>], iteration_bounds = array<i64: 1>, scalar_prefetch = 0 : i64, scratch_operands = 0 : i64, tpu.core_type = #tpu.core_type<tc>, window_params = [{transform_indices = @transform_0, window_bounds = array<i64: 32, 128>}, {pipeline_mode = #tpu.pipeline_mode<synchronous>, transform_indices = @transform_1, window_bounds = array<i64: 128, 128>}, {pipeline_mode = #tpu.pipeline_mode<synchronous>, transform_indices = @transform_2, window_bounds = array<i64: 1, 128>}, {transform_indices = @transform_3, window_bounds = array<i64: 32, 128>}]} {
    %c0 = arith.constant 0 : index
    %c0_0 = arith.constant 0 : index
    %0 = vector.load %arg1[%c0, %c0_0] : memref<32x128xbf16, #tpu.memory_space<vmem>>, vector<32x128xbf16>
    %c0_1 = arith.constant 0 : index
    %c0_2 = arith.constant 0 : index
    %1 = vector.load %arg2[%c0_1, %c0_2] : memref<128x128xbf16, #tpu.memory_space<vmem>>, vector<128x128xbf16>
    %cst = arith.constant dense<0.000000e+00> : vector<32x128xf32>
    %2 = tpu.matmul %0, %1, %cst {dimension_numbers = #tpu.dot_dimension_numbers<[1], [0], [0], [1], [0, 0, 1, 1], [], []>} : vector<32x128xbf16>, vector<128x128xbf16>, vector<32x128xf32> -> vector<32x128xf32>
    %c0_3 = arith.constant 0 : index
    %c0_4 = arith.constant 0 : index
    %3 = vector.load %arg3[%c0_3, %c0_4] : memref<1x128xf32, #tpu.memory_space<vmem>>, vector<1x128xf32>
    %4 = vector.broadcast %3 : vector<1x128xf32> to vector<32x128xf32>
    %5 = arith.addf %2, %4 : vector<32x128xf32>
    %c0_5 = arith.constant 0 : index
    %c0_6 = arith.constant 0 : index
    %6 = vector.load %arg4[%c0_5, %c0_6] : memref<32x128xf32, #tpu.memory_space<vmem>>, vector<32x128xf32>
    tpu.vector_store %arg4[%c0_5, %c0_6], %5 {strides = array<i32>} : memref<32x128xf32, #tpu.memory_space<vmem>>, vector<32x128xf32>,
    return
  }
  func.func @transform_0(%arg0: i32) -> (i32, i32) {
    %c0_i32 = arith.constant 0 : i32
    %c0_i32_0 = arith.constant 0 : i32
    return %arg0, %c0_i32 : i32, i32
  }
  func.func @transform_1(%arg0: i32) -> (i32, i32) {
    %c0_i32 = arith.constant 0 : i32
    %c0_i32_0 = arith.constant 0 : i32
    %c0_i32_1 = arith.constant 0 : i32
    return %c0_i32, %c0_i32_0 : i32, i32
  }
  func.func @transform_2(%arg0: i32) -> (i32, i32) {
    %c0_i32 = arith.constant 0 : i32
    %c0_i32_0 = arith.constant 0 : i32
    %c0_i32_1 = arith.constant 0 : i32
    return %c0_i32, %c0_i32_0 : i32, i32
  }
  func.func @transform_3(%arg0: i32) -> (i32, i32) {
    %c0_i32 = arith.constant 0 : i32
    %c0_i32_0 = arith.constant 0 : i32
    return %arg0, %c0_i32 : i32, i32
  }
}

module attributes {stable_mosaic.version = 11 : i64} {
  func.func @kernel(%arg0: i32, %arg1: memref<32x384xbf16, #tpu.memory_space<vmem>>, %arg2: memref<384x128xbf16, #tpu.memory_space<vmem>>, %arg3: memref<1x128xf32, #tpu.memory_space<vmem>>, %arg4: memref<32x128xf32, #tpu.memory_space<vmem>>) attributes {dimension_semantics = [#tpu.dimension_semantics<parallel>], iteration_bounds = array<i64: 1>, scalar_prefetch = 0 : i64, scratch_operands = 0 : i64, tpu.core_type = #tpu.core_type<tc>, window_params = [{transform_indices = @transform_0, window_bounds = array<i64: 32, 384>}, {pipeline_mode = #tpu.pipeline_mode<synchronous>, transform_indices = @transform_1, window_bounds = array<i64: 384, 128>}, {pipeline_mode = #tpu.pipeline_mode<synchronous>, transform_indices = @transform_2, window_bounds = array<i64: 1, 128>}, {transform_indices = @transform_3, window_bounds = array<i64: 32, 128>}]} {
    %c0 = arith.constant 0 : index
    %c0_0 = arith.constant 0 : index
    %0 = vector.load %arg1[%c0, %c0_0] : memref<32x384xbf16, #tpu.memory_space<vmem>>, vector<32x384xbf16>
    %c0_1 = arith.constant 0 : index
    %c0_2 = arith.constant 0 : index
    %1 = vector.load %arg2[%c0_1, %c0_2] : memref<384x128xbf16, #tpu.memory_space<vmem>>, vector<384x128xbf16>
    %cst = arith.constant dense<0.000000e+00> : vector<32x128xf32>
    %2 = tpu.matmul %0, %1, %cst {dimension_numbers = #tpu.dot_dimension_numbers<[1], [0], [0], [1], [0, 0, 1, 1], [], []>} : vector<32x384xbf16>, vector<384x128xbf16>, vector<32x128xf32> -> vector<32x128xf32>
    %c0_3 = arith.constant 0 : index
    %c0_4 = arith.constant 0 : index
    %3 = vector.load %arg3[%c0_3, %c0_4] : memref<1x128xf32, #tpu.memory_space<vmem>>, vector<1x128xf32>
    %4 = vector.broadcast %3 : vector<1x128xf32> to vector<32x128xf32>
    %5 = arith.addf %2, %4 : vector<32x128xf32>
    %cst_5 = arith.constant 0.000000e+00 : f32
    %6 = vector.broadcast %cst_5 : f32 to vector<32x128xf32>
    %7 = arith.cmpf ogt, %5, %6 : vector<32x128xf32>
    %cst_6 = arith.constant 2.500000e-01 : f32
    %8 = vector.broadcast %cst_6 : f32 to vector<32x128xf32>
    %9 = arith.mulf %8, %5 : vector<32x128xf32>
    %10 = arith.select %7, %5, %9 : vector<32x128xi1>, vector<32x128xf32>
    %c0_7 = arith.constant 0 : index
    %c0_8 = arith.constant 0 : index
    %11 = vector.load %arg4[%c0_7, %c0_8] : memref<32x128xf32, #tpu.memory_space<vmem>>, vector<32x128xf32>
    tpu.vector_store %arg4[%c0_7, %c0_8], %10 {strides = array<i32>} : memref<32x128xf32, #tpu.memory_space<vmem>>, vector<32x128xf32>,
    return
  }
  func.func @transform_0(%arg0: i32) -> (i32, i32) {
    %c0_i32 = arith.constant 0 : i32
    %c0_i32_0 = arith.constant 0 : i32
    return %arg0, %c0_i32 : i32, i32
  }
  func.func @transform_1(%arg0: i32) -> (i32, i32) {
    %c0_i32 = arith.constant 0 : i32
    %c0_i32_0 = arith.constant 0 : i32
    %c0_i32_1 = arith.constant 0 : i32
    return %c0_i32, %c0_i32_0 : i32, i32
  }
  func.func @transform_2(%arg0: i32) -> (i32, i32) {
    %c0_i32 = arith.constant 0 : i32
    %c0_i32_0 = arith.constant 0 : i32
    %c0_i32_1 = arith.constant 0 : i32
    return %c0_i32, %c0_i32_0 : i32, i32
  }
  func.func @transform_3(%arg0: i32) -> (i32, i32) {
    %c0_i32 = arith.constant 0 : i32
    %c0_i32_0 = arith.constant 0 : i32
    return %arg0, %c0_i32 : i32, i32
  }
}

module attributes {stable_mosaic.version = 11 : i64} {
  func.func @kernel(%arg0: i32, %arg1: memref<32x128xbf16, #tpu.memory_space<vmem>>, %arg2: memref<128x128xbf16, #tpu.memory_space<vmem>>, %arg3: memref<1x128xf32, #tpu.memory_space<vmem>>, %arg4: memref<32x128xf32, #tpu.memory_space<vmem>>) attributes {dimension_semantics = [#tpu.dimension_semantics<parallel>], iteration_bounds = array<i64: 1>, scalar_prefetch = 0 : i64, scratch_operands = 0 : i64, tpu.core_type = #tpu.core_type<tc>, window_params = [{transform_indices = @transform_0, window_bounds = array<i64: 32, 128>}, {pipeline_mode = #tpu.pipeline_mode<synchronous>, transform_indices = @transform_1, window_bounds = array<i64: 128, 128>}, {pipeline_mode = #tpu.pipeline_mode<synchronous>, transform_indices = @transform_2, window_bounds = array<i64: 1, 128>}, {transform_indices = @transform_3, window_bounds = array<i64: 32, 128>}]} {
    %c0 = arith.constant 0 : index
    %c0_0 = arith.constant 0 : index
    %0 = vector.load %arg1[%c0, %c0_0] : memref<32x128xbf16, #tpu.memory_space<vmem>>, vector<32x128xbf16>
    %c0_1 = arith.constant 0 : index
    %c0_2 = arith.constant 0 : index
    %1 = vector.load %arg2[%c0_1, %c0_2] : memref<128x128xbf16, #tpu.memory_space<vmem>>, vector<128x128xbf16>
    %cst = arith.constant dense<0.000000e+00> : vector<32x128xf32>
    %2 = tpu.matmul %0, %1, %cst {dimension_numbers = #tpu.dot_dimension_numbers<[1], [0], [0], [1], [0, 0, 1, 1], [], []>} : vector<32x128xbf16>, vector<128x128xbf16>, vector<32x128xf32> -> vector<32x128xf32>
    %c0_3 = arith.constant 0 : index
    %c0_4 = arith.constant 0 : index
    %3 = vector.load %arg3[%c0_3, %c0_4] : memref<1x128xf32, #tpu.memory_space<vmem>>, vector<1x128xf32>
    %4 = vector.broadcast %3 : vector<1x128xf32> to vector<32x128xf32>
    %5 = arith.addf %2, %4 : vector<32x128xf32>
    %cst_5 = arith.constant 0.000000e+00 : f32
    %6 = vector.broadcast %cst_5 : f32 to vector<32x128xf32>
    %7 = arith.maximumf %5, %6 : vector<32x128xf32>
    %c0_6 = arith.constant 0 : index
    %c0_7 = arith.constant 0 : index
    %8 = vector.load %arg4[%c0_6, %c0_7] : memref<32x128xf32, #tpu.memory_space<vmem>>, vector<32x128xf32>
    tpu.vector_store %arg4[%c0_6, %c0_7], %7 {strides = array<i32>} : memref<32x128xf32, #tpu.memory_space<vmem>>, vector<32x128xf32>,
    return
  }
  func.func @transform_0(%arg0: i32) -> (i32, i32) {
    %c0_i32 = arith.constant 0 : i32
    %c0_i32_0 = arith.constant 0 : i32
    return %arg0, %c0_i32 : i32, i32
  }
  func.func @transform_1(%arg0: i32) -> (i32, i32) {
    %c0_i32 = arith.constant 0 : i32
    %c0_i32_0 = arith.constant 0 : i32
    %c0_i32_1 = arith.constant 0 : i32
    return %c0_i32, %c0_i32_0 : i32, i32
  }
  func.func @transform_2(%arg0: i32) -> (i32, i32) {
    %c0_i32 = arith.constant 0 : i32
    %c0_i32_0 = arith.constant 0 : i32
    %c0_i32_1 = arith.constant 0 : i32
    return %c0_i32, %c0_i32_0 : i32, i32
  }
  func.func @transform_3(%arg0: i32) -> (i32, i32) {
    %c0_i32 = arith.constant 0 : i32
    %c0_i32_0 = arith.constant 0 : i32
    return %arg0, %c0_i32 : i32, i32
  }
}

module attributes {stable_mosaic.version = 11 : i64} {
  func.func @kernel(%arg0: i32, %arg1: memref<128x128xbf16, #tpu.memory_space<vmem>>, %arg2: memref<128x128xbf16, #tpu.memory_space<vmem>>, %arg3: memref<1x128xf32, #tpu.memory_space<vmem>>, %arg4: memref<128x128xf32, #tpu.memory_space<vmem>>, %arg5: memref<128x128xf32, #tpu.memory_space<vmem>>) attributes {dimension_semantics = [#tpu.dimension_semantics<parallel>], iteration_bounds = array<i64: 1>, scalar_prefetch = 0 : i64, scratch_operands = 0 : i64, tpu.core_type = #tpu.core_type<tc>, window_params = [{transform_indices = @transform_0, window_bounds = array<i64: 128, 128>}, {pipeline_mode = #tpu.pipeline_mode<synchronous>, transform_indices = @transform_1, window_bounds = array<i64: 128, 128>}, {pipeline_mode = #tpu.pipeline_mode<synchronous>, transform_indices = @transform_2, window_bounds = array<i64: 1, 128>}, {transform_indices = @transform_3, window_bounds = array<i64: 128, 128>}, {transform_indices = @transform_4, window_bounds = array<i64: 128, 128>}]} {
    %c0 = arith.constant 0 : index
    %c0_0 = arith.constant 0 : index
    %0 = vector.load %arg1[%c0, %c0_0] : memref<128x128xbf16, #tpu.memory_space<vmem>>, vector<128x128xbf16>
    %c0_1 = arith.constant 0 : index
    %c0_2 = arith.constant 0 : index
    %1 = vector.load %arg2[%c0_1, %c0_2] : memref<128x128xbf16, #tpu.memory_space<vmem>>, vector<128x128xbf16>
    %cst = arith.constant dense<0.000000e+00> : vector<128x128xf32>
    %2 = tpu.matmul %0, %1, %cst {dimension_numbers = #tpu.dot_dimension_numbers<[1], [0], [0], [1], [0, 0, 1, 1], [], []>} : vector<128x128xbf16>, vector<128x128xbf16>, vector<128x128xf32> -> vector<128x128xf32>
    %c0_3 = arith.constant 0 : index
    %c0_4 = arith.constant 0 : index
    %3 = vector.load %arg3[%c0_3, %c0_4] : memref<1x128xf32, #tpu.memory_space<vmem>>, vector<1x128xf32>
    %4 = vector.broadcast %3 : vector<1x128xf32> to vector<128x128xf32>
    %5 = arith.addf %2, %4 : vector<128x128xf32>
    %cst_5 = arith.constant 0.000000e+00 : f32
    %6 = vector.broadcast %cst_5 : f32 to vector<128x128xf32>
    %7 = arith.maximumf %5, %6 : vector<128x128xf32>
    %c0_6 = arith.constant 0 : index
    %c0_7 = arith.constant 0 : index
    %8 = vector.load %arg4[%c0_6, %c0_7] : memref<128x128xf32, #tpu.memory_space<vmem>>, vector<128x128xf32>
    %9 = arith.addf %7, %8 : vector<128x128xf32>
    %cst_8 = arith.constant 0.000000e+00 : f32
    %10 = vector.broadcast %cst_8 : f32 to vector<128x128xf32>
    %11 = arith.maximumf %9, %10 : vector<128x128xf32>
    %c0_9 = arith.constant 0 : index
    %c0_10 = arith.constant 0 : index
    %12 = vector.load %arg5[%c0_9, %c0_10] : memref<128x128xf32, #tpu.memory_space<vmem>>, vector<128x128xf32>
    tpu.vector_store %arg5[%c0_9, %c0_10], %11 {strides = array<i32>} : memref<128x128xf32, #tpu.memory_space<vmem>>, vector<128x128xf32>,
    return
  }
  func.func @transform_0(%arg0: i32) -> (i32, i32) {
    %c0_i32 = arith.constant 0 : i32
    %c0_i32_0 = arith.constant 0 : i32
    return %arg0, %c0_i32 : i32, i32
  }
  func.func @transform_1(%arg0: i32) -> (i32, i32) {
    %c0_i32 = arith.constant 0 : i32
    %c0_i32_0 = arith.constant 0 : i32
    %c0_i32_1 = arith.constant 0 : i32
    return %c0_i32, %c0_i32_0 : i32, i32
  }
  func.func @transform_2(%arg0: i32) -> (i32, i32) {
    %c0_i32 = arith.constant 0 : i32
    %c0_i32_0 = arith.constant 0 : i32
    %c0_i32_1 = arith.constant 0 : i32
    return %c0_i32, %c0_i32_0 : i32, i32
  }
  func.func @transform_3(%arg0: i32) -> (i32, i32) {
    %c0_i32 = arith.constant 0 : i32
    %c0_i32_0 = arith.constant 0 : i32
    return %arg0, %c0_i32 : i32, i32
  }
  func.func @transform_4(%arg0: i32) -> (i32, i32) {
    %c0_i32 = arith.constant 0 : i32
    %c0_i32_0 = arith.constant 0 : i32
    return %arg0, %c0_i32 : i32, i32
  }
}

module attributes {stable_mosaic.version = 11 : i64} {
  func.func @kernel(%arg0: i32, %arg1: memref<128x128xbf16, #tpu.memory_space<vmem>>, %arg2: memref<128x128xbf16, #tpu.memory_space<vmem>>, %arg3: memref<1x128xf32, #tpu.memory_space<vmem>>, %arg4: memref<128x128xf32, #tpu.memory_space<vmem>>) attributes {dimension_semantics = [#tpu.dimension_semantics<parallel>], iteration_bounds = array<i64: 1>, scalar_prefetch = 0 : i64, scratch_operands = 0 : i64, tpu.core_type = #tpu.core_type<tc>, window_params = [{transform_indices = @transform_0, window_bounds = array<i64: 128, 128>}, {pipeline_mode = #tpu.pipeline_mode<synchronous>, transform_indices = @transform_1, window_bounds = array<i64: 128, 128>}, {pipeline_mode = #tpu.pipeline_mode<synchronous>, transform_indices = @transform_2, window_bounds = array<i64: 1, 128>}, {transform_indices = @transform_3, window_bounds = array<i64: 128, 128>}]} {
    %c0 = arith.constant 0 : index
    %c0_0 = arith.constant 0 : index
    %0 = vector.load %arg1[%c0, %c0_0] : memref<128x128xbf16, #tpu.memory_space<vmem>>, vector<128x128xbf16>
    %c0_1 = arith.constant 0 : index
    %c0_2 = arith.constant 0 : index
    %1 = vector.load %arg2[%c0_1, %c0_2] : memref<128x128xbf16, #tpu.memory_space<vmem>>, vector<128x128xbf16>
    %cst = arith.constant dense<0.000000e+00> : vector<128x128xf32>
    %2 = tpu.matmul %0, %1, %cst {dimension_numbers = #tpu.dot_dimension_numbers<[1], [0], [0], [1], [0, 0, 1, 1], [], []>} : vector<128x128xbf16>, vector<128x128xbf16>, vector<128x128xf32> -> vector<128x128xf32>
    %c0_3 = arith.constant 0 : index
    %c0_4 = arith.constant 0 : index
    %3 = vector.load %arg3[%c0_3, %c0_4] : memref<1x128xf32, #tpu.memory_space<vmem>>, vector<1x128xf32>
    %4 = vector.broadcast %3 : vector<1x128xf32> to vector<128x128xf32>
    %5 = arith.addf %2, %4 : vector<128x128xf32>
    %cst_5 = arith.constant 0.000000e+00 : f32
    %6 = vector.broadcast %cst_5 : f32 to vector<128x128xf32>
    %7 = arith.maximumf %5, %6 : vector<128x128xf32>
    %c0_6 = arith.constant 0 : index
    %c0_7 = arith.constant 0 : index
    %8 = vector.load %arg4[%c0_6, %c0_7] : memref<128x128xf32, #tpu.memory_space<vmem>>, vector<128x128xf32>
    tpu.vector_store %arg4[%c0_6, %c0_7], %7 {strides = array<i32>} : memref<128x128xf32, #tpu.memory_space<vmem>>, vector<128x128xf32>,
    return
  }
  func.func @transform_0(%arg0: i32) -> (i32, i32) {
    %c0_i32 = arith.constant 0 : i32
    %c0_i32_0 = arith.constant 0 : i32
    return %arg0, %c0_i32 : i32, i32
  }
  func.func @transform_1(%arg0: i32) -> (i32, i32) {
    %c0_i32 = arith.constant 0 : i32
    %c0_i32_0 = arith.constant 0 : i32
    %c0_i32_1 = arith.constant 0 : i32
    return %c0_i32, %c0_i32_0 : i32, i32
  }
  func.func @transform_2(%arg0: i32) -> (i32, i32) {
    %c0_i32 = arith.constant 0 : i32
    %c0_i32_0 = arith.constant 0 : i32
    %c0_i32_1 = arith.constant 0 : i32
    return %c0_i32, %c0_i32_0 : i32, i32
  }
  func.func @transform_3(%arg0: i32) -> (i32, i32) {
    %c0_i32 = arith.constant 0 : i32
    %c0_i32_0 = arith.constant 0 : i32
    return %arg0, %c0_i32 : i32, i32
  }
}

module attributes {stable_mosaic.version = 11 : i64} {
  func.func @kernel(%arg0: i32, %arg1: memref<128x256xbf16, #tpu.memory_space<vmem>>, %arg2: memref<256x128xbf16, #tpu.memory_space<vmem>>, %arg3: memref<1x128xf32, #tpu.memory_space<vmem>>, %arg4: memref<128x128xf32, #tpu.memory_space<vmem>>) attributes {dimension_semantics = [#tpu.dimension_semantics<parallel>], iteration_bounds = array<i64: 1>, scalar_prefetch = 0 : i64, scratch_operands = 0 : i64, tpu.core_type = #tpu.core_type<tc>, window_params = [{transform_indices = @transform_0, window_bounds = array<i64: 128, 256>}, {pipeline_mode = #tpu.pipeline_mode<synchronous>, transform_indices = @transform_1, window_bounds = array<i64: 256, 128>}, {pipeline_mode = #tpu.pipeline_mode<synchronous>, transform_indices = @transform_2, window_bounds = array<i64: 1, 128>}, {transform_indices = @transform_3, window_bounds = array<i64: 128, 128>}]} {
    %c0 = arith.constant 0 : index
    %c0_0 = arith.constant 0 : index
    %0 = vector.load %arg1[%c0, %c0_0] : memref<128x256xbf16, #tpu.memory_space<vmem>>, vector<128x256xbf16>
    %c0_1 = arith.constant 0 : index
    %c0_2 = arith.constant 0 : index
    %1 = vector.load %arg2[%c0_1, %c0_2] : memref<256x128xbf16, #tpu.memory_space<vmem>>, vector<256x128xbf16>
    %cst = arith.constant dense<0.000000e+00> : vector<128x128xf32>
    %2 = tpu.matmul %0, %1, %cst {dimension_numbers = #tpu.dot_dimension_numbers<[1], [0], [0], [1], [0, 0, 1, 1], [], []>} : vector<128x256xbf16>, vector<256x128xbf16>, vector<128x128xf32> -> vector<128x128xf32>
    %c0_3 = arith.constant 0 : index
    %c0_4 = arith.constant 0 : index
    %3 = vector.load %arg3[%c0_3, %c0_4] : memref<1x128xf32, #tpu.memory_space<vmem>>, vector<1x128xf32>
    %4 = vector.broadcast %3 : vector<1x128xf32> to vector<128x128xf32>
    %5 = arith.addf %2, %4 : vector<128x128xf32>
    %cst_5 = arith.constant 0.000000e+00 : f32
    %6 = vector.broadcast %cst_5 : f32 to vector<128x128xf32>
    %7 = arith.maximumf %5, %6 : vector<128x128xf32>
    %c0_6 = arith.constant 0 : index
    %c0_7 = arith.constant 0 : index
    %8 = vector.load %arg4[%c0_6, %c0_7] : memref<128x128xf32, #tpu.memory_space<vmem>>, vector<128x128xf32>
    tpu.vector_store %arg4[%c0_6, %c0_7], %7 {strides = array<i32>} : memref<128x128xf32, #tpu.memory_space<vmem>>, vector<128x128xf32>,
    return
  }
  func.func @transform_0(%arg0: i32) -> (i32, i32) {
    %c0_i32 = arith.constant 0 : i32
    %c0_i32_0 = arith.constant 0 : i32
    return %arg0, %c0_i32 : i32, i32
  }
  func.func @transform_1(%arg0: i32) -> (i32, i32) {
    %c0_i32 = arith.constant 0 : i32
    %c0_i32_0 = arith.constant 0 : i32
    %c0_i32_1 = arith.constant 0 : i32
    return %c0_i32, %c0_i32_0 : i32, i32
  }
  func.func @transform_2(%arg0: i32) -> (i32, i32) {
    %c0_i32 = arith.constant 0 : i32
    %c0_i32_0 = arith.constant 0 : i32
    %c0_i32_1 = arith.constant 0 : i32
    return %c0_i32, %c0_i32_0 : i32, i32
  }
  func.func @transform_3(%arg0: i32) -> (i32, i32) {
    %c0_i32 = arith.constant 0 : i32
    %c0_i32_0 = arith.constant 0 : i32
    return %arg0, %c0_i32 : i32, i32
  }
}

module attributes {stable_mosaic.version = 11 : i64} {
  func.func @kernel(%arg0: i32, %arg1: memref<128x128xbf16, #tpu.memory_space<vmem>>, %arg2: memref<128x128xbf16, #tpu.memory_space<vmem>>, %arg3: memref<1x128xf32, #tpu.memory_space<vmem>>, %arg4: memref<128x128xf32, #tpu.memory_space<vmem>>) attributes {dimension_semantics = [#tpu.dimension_semantics<parallel>], iteration_bounds = array<i64: 1>, scalar_prefetch = 0 : i64, scratch_operands = 0 : i64, tpu.core_type = #tpu.core_type<tc>, window_params = [{transform_indices = @transform_0, window_bounds = array<i64: 128, 128>}, {pipeline_mode = #tpu.pipeline_mode<synchronous>, transform_indices = @transform_1, window_bounds = array<i64: 128, 128>}, {pipeline_mode = #tpu.pipeline_mode<synchronous>, transform_indices = @transform_2, window_bounds = array<i64: 1, 128>}, {transform_indices = @transform_3, window_bounds = array<i64: 128, 128>}]} {
    %c0 = arith.constant 0 : index
    %c0_0 = arith.constant 0 : index
    %0 = vector.load %arg1[%c0, %c0_0] : memref<128x128xbf16, #tpu.memory_space<vmem>>, vector<128x128xbf16>
    %c0_1 = arith.constant 0 : index
    %c0_2 = arith.constant 0 : index
    %1 = vector.load %arg2[%c0_1, %c0_2] : memref<128x128xbf16, #tpu.memory_space<vmem>>, vector<128x128xbf16>
    %cst = arith.constant dense<0.000000e+00> : vector<128x128xf32>
    %2 = tpu.matmul %0, %1, %cst {dimension_numbers = #tpu.dot_dimension_numbers<[1], [0], [0], [1], [0, 0, 1, 1], [], []>} : vector<128x128xbf16>, vector<128x128xbf16>, vector<128x128xf32> -> vector<128x128xf32>
    %c0_3 = arith.constant 0 : index
    %c0_4 = arith.constant 0 : index
    %3 = vector.load %arg3[%c0_3, %c0_4] : memref<1x128xf32, #tpu.memory_space<vmem>>, vector<1x128xf32>
    %4 = vector.broadcast %3 : vector<1x128xf32> to vector<128x128xf32>
    %5 = arith.addf %2, %4 : vector<128x128xf32>
    %c0_5 = arith.constant 0 : index
    %c0_6 = arith.constant 0 : index
    %6 = vector.load %arg4[%c0_5, %c0_6] : memref<128x128xf32, #tpu.memory_space<vmem>>, vector<128x128xf32>
    tpu.vector_store %arg4[%c0_5, %c0_6], %5 {strides = array<i32>} : memref<128x128xf32, #tpu.memory_space<vmem>>, vector<128x128xf32>,
    return
  }
  func.func @transform_0(%arg0: i32) -> (i32, i32) {
    %c0_i32 = arith.constant 0 : i32
    %c0_i32_0 = arith.constant 0 : i32
    return %arg0, %c0_i32 : i32, i32
  }
  func.func @transform_1(%arg0: i32) -> (i32, i32) {
    %c0_i32 = arith.constant 0 : i32
    %c0_i32_0 = arith.constant 0 : i32
    %c0_i32_1 = arith.constant 0 : i32
    return %c0_i32, %c0_i32_0 : i32, i32
  }
  func.func @transform_2(%arg0: i32) -> (i32, i32) {
    %c0_i32 = arith.constant 0 : i32
    %c0_i32_0 = arith.constant 0 : i32
    %c0_i32_1 = arith.constant 0 : i32
    return %c0_i32, %c0_i32_0 : i32, i32
  }
  func.func @transform_3(%arg0: i32) -> (i32, i32) {
    %c0_i32 = arith.constant 0 : i32
    %c0_i32_0 = arith.constant 0 : i32
    return %arg0, %c0_i32 : i32, i32
  }
}

module attributes {stable_mosaic.version = 11 : i64} {
  func.func @kernel(%arg0: i32, %arg1: memref<512x128xbf16, #tpu.memory_space<vmem>>, %arg2: memref<128x128xbf16, #tpu.memory_space<vmem>>, %arg3: memref<1x128xf32, #tpu.memory_space<vmem>>, %arg4: memref<512x128xf32, #tpu.memory_space<vmem>>, %arg5: memref<512x128xf32, #tpu.memory_space<vmem>>) attributes {dimension_semantics = [#tpu.dimension_semantics<parallel>], iteration_bounds = array<i64: 1>, scalar_prefetch = 0 : i64, scratch_operands = 0 : i64, tpu.core_type = #tpu.core_type<tc>, window_params = [{transform_indices = @transform_0, window_bounds = array<i64: 512, 128>}, {pipeline_mode = #tpu.pipeline_mode<synchronous>, transform_indices = @transform_1, window_bounds = array<i64: 128, 128>}, {pipeline_mode = #tpu.pipeline_mode<synchronous>, transform_indices = @transform_2, window_bounds = array<i64: 1, 128>}, {transform_indices = @transform_3, window_bounds = array<i64: 512, 128>}, {transform_indices = @transform_4, window_bounds = array<i64: 512, 128>}]} {
    %c0 = arith.constant 0 : index
    %c0_0 = arith.constant 0 : index
    %0 = vector.load %arg1[%c0, %c0_0] : memref<512x128xbf16, #tpu.memory_space<vmem>>, vector<512x128xbf16>
    %c0_1 = arith.constant 0 : index
    %c0_2 = arith.constant 0 : index
    %1 = vector.load %arg2[%c0_1, %c0_2] : memref<128x128xbf16, #tpu.memory_space<vmem>>, vector<128x128xbf16>
    %cst = arith.constant dense<0.000000e+00> : vector<512x128xf32>
    %2 = tpu.matmul %0, %1, %cst {dimension_numbers = #tpu.dot_dimension_numbers<[1], [0], [0], [1], [0, 0, 1, 1], [], []>} : vector<512x128xbf16>, vector<128x128xbf16>, vector<512x128xf32> -> vector<512x128xf32>
    %c0_3 = arith.constant 0 : index
    %c0_4 = arith.constant 0 : index
    %3 = vector.load %arg3[%c0_3, %c0_4] : memref<1x128xf32, #tpu.memory_space<vmem>>, vector<1x128xf32>
    %4 = vector.broadcast %3 : vector<1x128xf32> to vector<512x128xf32>
    %5 = arith.addf %2, %4 : vector<512x128xf32>
    %cst_5 = arith.constant 0.000000e+00 : f32
    %6 = vector.broadcast %cst_5 : f32 to vector<512x128xf32>
    %7 = arith.maximumf %5, %6 : vector<512x128xf32>
    %c0_6 = arith.constant 0 : index
    %c0_7 = arith.constant 0 : index
    %8 = vector.load %arg4[%c0_6, %c0_7] : memref<512x128xf32, #tpu.memory_space<vmem>>, vector<512x128xf32>
    %9 = arith.addf %7, %8 : vector<512x128xf32>
    %cst_8 = arith.constant 0.000000e+00 : f32
    %10 = vector.broadcast %cst_8 : f32 to vector<512x128xf32>
    %11 = arith.maximumf %9, %10 : vector<512x128xf32>
    %c0_9 = arith.constant 0 : index
    %c0_10 = arith.constant 0 : index
    %12 = vector.load %arg5[%c0_9, %c0_10] : memref<512x128xf32, #tpu.memory_space<vmem>>, vector<512x128xf32>
    tpu.vector_store %arg5[%c0_9, %c0_10], %11 {strides = array<i32>} : memref<512x128xf32, #tpu.memory_space<vmem>>, vector<512x128xf32>,
    return
  }
  func.func @transform_0(%arg0: i32) -> (i32, i32) {
    %c0_i32 = arith.constant 0 : i32
    %c0_i32_0 = arith.constant 0 : i32
    return %arg0, %c0_i32 : i32, i32
  }
  func.func @transform_1(%arg0: i32) -> (i32, i32) {
    %c0_i32 = arith.constant 0 : i32
    %c0_i32_0 = arith.constant 0 : i32
    %c0_i32_1 = arith.constant 0 : i32
    return %c0_i32, %c0_i32_0 : i32, i32
  }
  func.func @transform_2(%arg0: i32) -> (i32, i32) {
    %c0_i32 = arith.constant 0 : i32
    %c0_i32_0 = arith.constant 0 : i32
    %c0_i32_1 = arith.constant 0 : i32
    return %c0_i32, %c0_i32_0 : i32, i32
  }
  func.func @transform_3(%arg0: i32) -> (i32, i32) {
    %c0_i32 = arith.constant 0 : i32
    %c0_i32_0 = arith.constant 0 : i32
    return %arg0, %c0_i32 : i32, i32
  }
  func.func @transform_4(%arg0: i32) -> (i32, i32) {
    %c0_i32 = arith.constant 0 : i32
    %c0_i32_0 = arith.constant 0 : i32
    return %arg0, %c0_i32 : i32, i32
  }
}

module attributes {stable_mosaic.version = 11 : i64} {
  func.func @kernel(%arg0: i32, %arg1: memref<512x128xbf16, #tpu.memory_space<vmem>>, %arg2: memref<128x128xbf16, #tpu.memory_space<vmem>>, %arg3: memref<1x128xf32, #tpu.memory_space<vmem>>, %arg4: memref<512x128xf32, #tpu.memory_space<vmem>>) attributes {dimension_semantics = [#tpu.dimension_semantics<parallel>], iteration_bounds = array<i64: 1>, scalar_prefetch = 0 : i64, scratch_operands = 0 : i64, tpu.core_type = #tpu.core_type<tc>, window_params = [{transform_indices = @transform_0, window_bounds = array<i64: 512, 128>}, {pipeline_mode = #tpu.pipeline_mode<synchronous>, transform_indices = @transform_1, window_bounds = array<i64: 128, 128>}, {pipeline_mode = #tpu.pipeline_mode<synchronous>, transform_indices = @transform_2, window_bounds = array<i64: 1, 128>}, {transform_indices = @transform_3, window_bounds = array<i64: 512, 128>}]} {
    %c0 = arith.constant 0 : index
    %c0_0 = arith.constant 0 : index
    %0 = vector.load %arg1[%c0, %c0_0] : memref<512x128xbf16, #tpu.memory_space<vmem>>, vector<512x128xbf16>
    %c0_1 = arith.constant 0 : index
    %c0_2 = arith.constant 0 : index
    %1 = vector.load %arg2[%c0_1, %c0_2] : memref<128x128xbf16, #tpu.memory_space<vmem>>, vector<128x128xbf16>
    %cst = arith.constant dense<0.000000e+00> : vector<512x128xf32>
    %2 = tpu.matmul %0, %1, %cst {dimension_numbers = #tpu.dot_dimension_numbers<[1], [0], [0], [1], [0, 0, 1, 1], [], []>} : vector<512x128xbf16>, vector<128x128xbf16>, vector<512x128xf32> -> vector<512x128xf32>
    %c0_3 = arith.constant 0 : index
    %c0_4 = arith.constant 0 : index
    %3 = vector.load %arg3[%c0_3, %c0_4] : memref<1x128xf32, #tpu.memory_space<vmem>>, vector<1x128xf32>
    %4 = vector.broadcast %3 : vector<1x128xf32> to vector<512x128xf32>
    %5 = arith.addf %2, %4 : vector<512x128xf32>
    %cst_5 = arith.constant 0.000000e+00 : f32
    %6 = vector.broadcast %cst_5 : f32 to vector<512x128xf32>
    %7 = arith.maximumf %5, %6 : vector<512x128xf32>
    %c0_6 = arith.constant 0 : index
    %c0_7 = arith.constant 0 : index
    %8 = vector.load %arg4[%c0_6, %c0_7] : memref<512x128xf32, #tpu.memory_space<vmem>>, vector<512x128xf32>
    tpu.vector_store %arg4[%c0_6, %c0_7], %7 {strides = array<i32>} : memref<512x128xf32, #tpu.memory_space<vmem>>, vector<512x128xf32>,
    return
  }
  func.func @transform_0(%arg0: i32) -> (i32, i32) {
    %c0_i32 = arith.constant 0 : i32
    %c0_i32_0 = arith.constant 0 : i32
    return %arg0, %c0_i32 : i32, i32
  }
  func.func @transform_1(%arg0: i32) -> (i32, i32) {
    %c0_i32 = arith.constant 0 : i32
    %c0_i32_0 = arith.constant 0 : i32
    %c0_i32_1 = arith.constant 0 : i32
    return %c0_i32, %c0_i32_0 : i32, i32
  }
  func.func @transform_2(%arg0: i32) -> (i32, i32) {
    %c0_i32 = arith.constant 0 : i32
    %c0_i32_0 = arith.constant 0 : i32
    %c0_i32_1 = arith.constant 0 : i32
    return %c0_i32, %c0_i32_0 : i32, i32
  }
  func.func @transform_3(%arg0: i32) -> (i32, i32) {
    %c0_i32 = arith.constant 0 : i32
    %c0_i32_0 = arith.constant 0 : i32
    return %arg0, %c0_i32 : i32, i32
  }
}

module attributes {stable_mosaic.version = 11 : i64} {
  func.func @kernel(%arg0: i32, %arg1: memref<512x256xbf16, #tpu.memory_space<vmem>>, %arg2: memref<256x128xbf16, #tpu.memory_space<vmem>>, %arg3: memref<1x128xf32, #tpu.memory_space<vmem>>, %arg4: memref<512x128xf32, #tpu.memory_space<vmem>>) attributes {dimension_semantics = [#tpu.dimension_semantics<parallel>], iteration_bounds = array<i64: 4>, scalar_prefetch = 0 : i64, scratch_operands = 0 : i64, tpu.core_type = #tpu.core_type<tc>, window_params = [{transform_indices = @transform_0, window_bounds = array<i64: 512, 256>}, {pipeline_mode = #tpu.pipeline_mode<synchronous>, transform_indices = @transform_1, window_bounds = array<i64: 256, 128>}, {pipeline_mode = #tpu.pipeline_mode<synchronous>, transform_indices = @transform_2, window_bounds = array<i64: 1, 128>}, {transform_indices = @transform_3, window_bounds = array<i64: 512, 128>}]} {
    %c0 = arith.constant 0 : index
    %c0_0 = arith.constant 0 : index
    %0 = vector.load %arg1[%c0, %c0_0] : memref<512x256xbf16, #tpu.memory_space<vmem>>, vector<512x256xbf16>
    %c0_1 = arith.constant 0 : index
    %c0_2 = arith.constant 0 : index
    %1 = vector.load %arg2[%c0_1, %c0_2] : memref<256x128xbf16, #tpu.memory_space<vmem>>, vector<256x128xbf16>
    %cst = arith.constant dense<0.000000e+00> : vector<512x128xf32>
    %2 = tpu.matmul %0, %1, %cst {dimension_numbers = #tpu.dot_dimension_numbers<[1], [0], [0], [1], [0, 0, 1, 1], [], []>} : vector<512x256xbf16>, vector<256x128xbf16>, vector<512x128xf32> -> vector<512x128xf32>
    %c0_3 = arith.constant 0 : index
    %c0_4 = arith.constant 0 : index
    %3 = vector.load %arg3[%c0_3, %c0_4] : memref<1x128xf32, #tpu.memory_space<vmem>>, vector<1x128xf32>
    %4 = vector.broadcast %3 : vector<1x128xf32> to vector<512x128xf32>
    %5 = arith.addf %2, %4 : vector<512x128xf32>
    %c0_5 = arith.constant 0 : index
    %c0_6 = arith.constant 0 : index
    %6 = vector.load %arg4[%c0_5, %c0_6] : memref<512x128xf32, #tpu.memory_space<vmem>>, vector<512x128xf32>
    tpu.vector_store %arg4[%c0_5, %c0_6], %5 {strides = array<i32>} : memref<512x128xf32, #tpu.memory_space<vmem>>, vector<512x128xf32>,
    return
  }
  func.func @transform_0(%arg0: i32) -> (i32, i32) {
    %c0_i32 = arith.constant 0 : i32
    %c0_i32_0 = arith.constant 0 : i32
    return %arg0, %c0_i32 : i32, i32
  }
  func.func @transform_1(%arg0: i32) -> (i32, i32) {
    %c0_i32 = arith.constant 0 : i32
    %c0_i32_0 = arith.constant 0 : i32
    %c0_i32_1 = arith.constant 0 : i32
    return %c0_i32, %c0_i32_0 : i32, i32
  }
  func.func @transform_2(%arg0: i32) -> (i32, i32) {
    %c0_i32 = arith.constant 0 : i32
    %c0_i32_0 = arith.constant 0 : i32
    %c0_i32_1 = arith.constant 0 : i32
    return %c0_i32, %c0_i32_0 : i32, i32
  }
  func.func @transform_3(%arg0: i32) -> (i32, i32) {
    %c0_i32 = arith.constant 0 : i32
    %c0_i32_0 = arith.constant 0 : i32
    return %arg0, %c0_i32 : i32, i32
  }
}

</mosaic_0001>

<bundles_post_ra>
// kernel: enet_forward.90
= control target key start
LH: loop header
LB: loop body
LE: loop exit
PB: predicated region body
PF: predicated region fallthrough
CT: control target
= control target key end

     0   :  { %s549_s1 = inlined_call_operand.vmem [shape: bf16[128,128], index: 1, kind: input, shape index: {}]   ;;  %s550_s0 = inlined_call_operand.vmem [shape: bf16[128,128], index: 0, kind: input, shape index: {}]   ;;  %s551_s2 = inlined_call_operand.vmem [shape: f32[1,128], index: 2, kind: input, shape index: {}]   ;;  %s552_s3 = inlined_call_operand.vmem [shape: f32[128,128], index: 3, kind: output, shape index: {}]  }
   0x1   :  { %v396_v0 = vld [vmem:[%s549_s1] sm:$0xff]   ;;  %v397_v1 = vld [vmem:[%s549_s1 + $0x8] sm:$0xff]   ;;  %v398_v2 = vld [vmem:[%s549_s1 + $0x10] sm:$0xff]  }
   0x2   :  { %348 = vmatprep.subr.bf16.mxu0 %v396_v0  ;;  %380 = vmatprep.subr.bf16.mxu1 %v396_v0  ;;  %v399_v3 = vld [vmem:[%s549_s1 + $0x18] sm:$0xff]   ;;  %v404_v4 = vld [vmem:[%s550_s0] sm:$0xff]   ;;  %v401_v7 = vld [vmem:[%s549_s1 + $0x28] sm:$0xff]  }
   0x3   :  { %349 = vmatpush3.bf16.msra.mxu0 %v396_v0  ;;  %388 = vmatpush3.bf16.msra.mxu1 %v396_v0  ;;  %v405_v5 = vld [vmem:[%s550_s0 + $0x20] sm:$0xff]   ;;  %v402_v8 = vld [vmem:[%s549_s1 + $0x30] sm:$0xff]   ;;  %v403_v9 = vld [vmem:[%s549_s1 + $0x38] sm:$0xff]  }
   0x4   :  { %350 = vmatprep.subr.bf16.mxu0 %v397_v1  ;;  %381 = vmatprep.subr.bf16.mxu1 %v397_v1  ;;  %v400_v6 = vld [vmem:[%s549_s1 + $0x20] sm:$0xff]   ;;  %v406_v10 = vld [vmem:[%s550_s0 + $0x8] sm:$0xff]   ;;  %v408_v12 = vld [vmem:[%s550_s0 + $0x10] sm:$0xff]  }
   0x5   :  { %364 = vmatprep.mubr.bf16.mxu0 %v404_v4  ;;  %372 = vmatprep.mubr.bf16.mxu1 %v405_v5  ;;  %v407_v11 = vld [vmem:[%s550_s0 + $0x28] sm:$0xff]   ;;  %v409_v13 = vld [vmem:[%s550_s0 + $0x30] sm:$0xff]   ;;  %v410_v14 = vld [vmem:[%s550_s0 + $0x18] sm:$0xff]  }
   0x6   :  { %v411_v15 = vld [vmem:[%s550_s0 + $0x38] sm:$0xff]   ;;  %v483_v16 = vld [vmem:[%s551_s2] ss:$0 sm:$0xff] }
   0x7   :  { %351 = vmatpush3.bf16.msra.mxu0 %v397_v1  ;;  %389 = vmatpush3.bf16.msra.mxu1 %v397_v1 }
   0x8   :  { %352 = vmatprep.subr.bf16.mxu0 %v398_v2  ;;  %382 = vmatprep.subr.bf16.mxu1 %v398_v2 }
   0xb   :  { %353 = vmatpush3.bf16.msra.mxu0 %v398_v2  ;;  %390 = vmatpush3.bf16.msra.mxu1 %v398_v2 }
   0xc   :  { %354 = vmatprep.subr.bf16.mxu0 %v399_v3  ;;  %383 = vmatprep.subr.bf16.mxu1 %v399_v3 }
   0xf   :  { %355 = vmatpush3.bf16.msra.mxu0 %v399_v3  ;;  %391 = vmatpush3.bf16.msra.mxu1 %v399_v3 }
  0x10   :  { %356 = vmatprep.subr.bf16.mxu0 %v400_v6  ;;  %384 = vmatprep.subr.bf16.mxu1 %v400_v6 }
  0x13   :  { %357 = vmatpush3.bf16.msra.mxu0 %v400_v6  ;;  %392 = vmatpush3.bf16.msra.mxu1 %v400_v6 }
  0x14   :  { %358 = vmatprep.subr.bf16.mxu0 %v401_v7  ;;  %385 = vmatprep.subr.bf16.mxu1 %v401_v7 }
  0x17   :  { %359 = vmatpush3.bf16.msra.mxu0 %v401_v7  ;;  %393 = vmatpush3.bf16.msra.mxu1 %v401_v7 }
  0x18   :  { %360 = vmatprep.subr.bf16.mxu0 %v402_v8  ;;  %386 = vmatprep.subr.bf16.mxu1 %v402_v8 }
  0x1b   :  { %361 = vmatpush3.bf16.msra.mxu0 %v402_v8  ;;  %394 = vmatpush3.bf16.msra.mxu1 %v402_v8 }
  0x1c   :  { %362 = vmatprep.subr.bf16.mxu0 %v403_v9  ;;  %387 = vmatprep.subr.bf16.mxu1 %v403_v9 }
  0x1f   :  { %363 = vmatpush3.bf16.msra.mxu0 %v403_v9  ;;  %395 = vmatpush3.bf16.msra.mxu1 %v403_v9 }
  0x22   :  { %365 = vmatmul.mubr.bf16.vlgmr.msra.gmra.mrb[0].mxu0 %v406_v10  ;;  %373 = vmatmul.mubr.bf16.vlgmr.msra.gmra.mrb[0].mxu1 %v407_v11 }
  0x23   :  { %368 = vmatprep.mubr.bf16.mxu0 %v408_v12  ;;  %376 = vmatprep.mubr.bf16.mxu1 %v409_v13 }
  0x2a   :  { %369 = vmatmul.mubr.bf16.gmra.mrb[4].mxu0 %v410_v14  ;;  %377 = vmatmul.mubr.bf16.gmra.mrb[4].mxu1 %v411_v15 }
  0xf5   :  { %v366_v17 = vpop.f32.mrb[0].mxu0  ;;  %v374_v18 = vpop.f32.mrb[0].mxu1 }
  0xf6   :  { %v193_v19 = vadd.f32 %v366_v17, %v483_v16  ;;  %v225_v20 = vadd.f32 %v374_v18, %v483_v16  ;;  %v184_v21 = vpop.f32.mrb[1].mxu0  ;;  %v216_v22 = vpop.f32.mrb[1].mxu1 }
  0xf7   :  { %v185_v23 = vadd.f32 %v483_v16, %v184_v21  ;;  %v217_v24 = vadd.f32 %v483_v16, %v216_v22  ;;  %v367_v25 = vpop.f32.mrb[2].mxu0  ;;  %v375_v26 = vpop.f32.mrb[2].mxu1 }
  0xf8   :  { %vm249_vm0 = vcmp.gt.f32.partialorder %v193_v19, 0.0  ;;  %v265_v27 = vmul.f32 0.25, %v193_v19  ;;  %vm257_vm1 = vcmp.gt.f32.partialorder %v225_v20, 0.0  ;;  %v273_v28 = vmul.f32 0.25, %v225_v20  ;;  %v187_v29 = vpop.f32.mrb[3].mxu0  ;;  %v219_v30 = vpop.f32.mrb[3].mxu1 }
  0xf9   :  { %vm247_vm2 = vcmp.gt.f32.partialorder %v185_v23, 0.0  ;;  %v263_v31 = vmul.f32 0.25, %v185_v23  ;;  %vm255_vm3 = vcmp.gt.f32.partialorder %v217_v24, 0.0  ;;  %v271_v32 = vmul.f32 0.25, %v217_v24 }
  0xfa   :  { %v281_v33 = vsel %vm249_vm0, %v193_v19, %v265_v27  ;;  %v289_v34 = vsel %vm257_vm1, %v225_v20, %v273_v28  ;;  %v196_v35 = vadd.f32 %v367_v25, %v483_v16  ;;  %v228_v36 = vadd.f32 %v375_v26, %v483_v16 }
  0xfb   :  { %297 = vst [vmem:[%s552_s3 + $0x10] sm:$0xff] %v281_v33  ;;  %305 = vst [vmem:[%s552_s3 + $0x50] sm:$0xff] %v289_v34  ;;  %v279_v37 = vsel %vm247_vm2, %v185_v23, %v263_v31  ;;  %v287_v38 = vsel %vm255_vm3, %v217_v24, %v271_v32  ;;  %v188_v39 = vadd.f32 %v483_v16, %v187_v29 }
  0xfc   :  { %v220_v40 = vadd.f32 %v483_v16, %v219_v30  ;;  %295 = vst [vmem:[%s552_s3] sm:$0xff] %v279_v37  ;;  %303 = vst [vmem:[%s552_s3 + $0x40] sm:$0xff] %v287_v38  ;;  %vm250_vm4 = vcmp.gt.f32.partialorder %v196_v35, 0.0  ;;  %v266_v41 = vmul.f32 0.25, %v196_v35  ;;  %vm258_vm5 = vcmp.gt.f32.partialorder %v228_v36, 0.0 }
  0xfd   :  { %v274_v42 = vmul.f32 0.25, %v228_v36  ;;  %vm248_vm6 = vcmp.gt.f32.partialorder %v188_v39, 0.0  ;;  %v264_v43 = vmul.f32 0.25, %v188_v39  ;;  %v370_v45 = vpop.f32.mrb[4].mxu0  ;;  %v378_v46 = vpop.f32.mrb[4].mxu1 }
  0xfe   :  { %vm256_vm7 = vcmp.gt.f32.partialorder %v220_v40, 0.0  ;;  %v272_v44 = vmul.f32 0.25, %v220_v40  ;;  %v282_v47 = vsel %vm250_vm4, %v196_v35, %v266_v41  ;;  %v209_v49 = vadd.f32 %v370_v45, %v483_v16  ;;  %v200_v51 = vpop.f32.mrb[5].mxu0  ;;  %v232_v52 = vpop.f32.mrb[5].mxu1 }
  0xff   :  { %v290_v48 = vsel %vm258_vm5, %v228_v36, %v274_v42  ;;  %v241_v50 = vadd.f32 %v378_v46, %v483_v16  ;;  %298 = vst [vmem:[%s552_s3 + $0x18] sm:$0xff] %v282_v47  ;;  %v280_v53 = vsel %vm248_vm6, %v188_v39, %v264_v43  ;;  %v201_v55 = vadd.f32 %v483_v16, %v200_v51  ;;  %v371_v57 = vpop.f32.mrb[6].mxu0  ;;  %v379_v58 = vpop.f32.mrb[6].mxu1 }
 0x100   :  { %306 = vst [vmem:[%s552_s3 + $0x58] sm:$0xff] %v290_v48  ;;  %v288_v54 = vsel %vm256_vm7, %v220_v40, %v272_v44  ;;  %v233_v56 = vadd.f32 %v483_v16, %v232_v52  ;;  %296 = vst [vmem:[%s552_s3 + $0x8] sm:$0xff] %v280_v53  ;;  %vm253_vm8 = vcmp.gt.f32.partialorder %v209_v49, 0.0  ;;  %v269_v59 = vmul.f32 0.25, %v209_v49  ;;  %v203_v61 = vpop.f32.mrb[7].mxu0  ;;  %v235_v62 = vpop.f32.mrb[7].mxu1 }
 0x101   :  { %304 = vst [vmem:[%s552_s3 + $0x48] sm:$0xff] %v288_v54  ;;  %vm261_vm9 = vcmp.gt.f32.partialorder %v241_v50, 0.0  ;;  %v277_v60 = vmul.f32 0.25, %v241_v50  ;;  %vm251_vm10 = vcmp.gt.f32.partialorder %v201_v55, 0.0  ;;  %v267_v63 = vmul.f32 0.25, %v201_v55 }
 0x102   :  { %vm259_vm11 = vcmp.gt.f32.partialorder %v233_v56, 0.0  ;;  %v275_v0 = vmul.f32 0.25, %v233_v56  ;;  %v285_v1 = vsel %vm253_vm8, %v209_v49, %v269_v59  ;;  %v212_v3 = vadd.f32 %v371_v57, %v483_v16 }
 0x103   :  { %v293_v2 = vsel %vm261_vm9, %v241_v50, %v277_v60  ;;  %v244_v4 = vadd.f32 %v379_v58, %v483_v16  ;;  %301 = vst [vmem:[%s552_s3 + $0x30] sm:$0xff] %v285_v1  ;;  %v283_v5 = vsel %vm251_vm10, %v201_v55, %v267_v63  ;;  %v204_v7 = vadd.f32 %v483_v16, %v203_v61 }
 0x104   :  { %309 = vst [vmem:[%s552_s3 + $0x70] sm:$0xff] %v293_v2  ;;  %v291_v6 = vsel %vm259_vm11, %v233_v56, %v275_v0  ;;  %v236_v8 = vadd.f32 %v483_v16, %v235_v62  ;;  %299 = vst [vmem:[%s552_s3 + $0x20] sm:$0xff] %v283_v5  ;;  %vm254_vm12 = vcmp.gt.f32.partialorder %v212_v3, 0.0  ;;  %v270_v9 = vmul.f32 0.25, %v212_v3 }
 0x105   :  { %307 = vst [vmem:[%s552_s3 + $0x60] sm:$0xff] %v291_v6  ;;  %vm262_vm13 = vcmp.gt.f32.partialorder %v244_v4, 0.0  ;;  %v278_v10 = vmul.f32 0.25, %v244_v4  ;;  %vm252_vm14 = vcmp.gt.f32.partialorder %v204_v7, 0.0  ;;  %v268_v11 = vmul.f32 0.25, %v204_v7 }
 0x106   :  { %vm260_vm15 = vcmp.gt.f32.partialorder %v236_v8, 0.0  ;;  %v276_v12 = vmul.f32 0.25, %v236_v8  ;;  %v286_v13 = vsel %vm254_vm12, %v212_v3, %v270_v9 }
 0x107   :  { %v294_v14 = vsel %vm262_vm13, %v244_v4, %v278_v10  ;;  %302 = vst [vmem:[%s552_s3 + $0x38] sm:$0xff] %v286_v13  ;;  %v284_v15 = vsel %vm252_vm14, %v204_v7, %v268_v11 }
 0x108   :  { %310 = vst [vmem:[%s552_s3 + $0x78] sm:$0xff] %v294_v14  ;;  %v292_v16 = vsel %vm260_vm15, %v236_v8, %v276_v12  ;;  %300 = vst [vmem:[%s552_s3 + $0x28] sm:$0xff] %v284_v15 }
 0x109   :  { %308 = vst [vmem:[%s552_s3 + $0x68] sm:$0xff] %v292_v16 }

// kernel: enet_forward.89
= control target key start
LH: loop header
LB: loop body
LE: loop exit
PB: predicated region body
PF: predicated region fallthrough
CT: control target
= control target key end

     0   :  { %s1317_s1 = inlined_call_operand.vmem [shape: bf16[128,128], index: 1, kind: input, shape index: {}]   ;;  %s1318_s0 = inlined_call_operand.vmem [shape: bf16[512,128], index: 0, kind: input, shape index: {}]   ;;  %s1319_s2 = inlined_call_operand.vmem [shape: f32[1,128], index: 2, kind: input, shape index: {}]   ;;  %s1320_s3 = inlined_call_operand.vmem [shape: f32[512,128], index: 3, kind: output, shape index: {}]  }
   0x1   :  { %v876_v0 = vld [vmem:[%s1317_s1] sm:$0xff]   ;;  %v877_v1 = vld [vmem:[%s1317_s1 + $0x8] sm:$0xff]   ;;  %v878_v2 = vld [vmem:[%s1317_s1 + $0x10] sm:$0xff]  }
   0x2   :  { %780 = vmatprep.subr.bf16.mxu0 %v876_v0  ;;  %860 = vmatprep.subr.bf16.mxu1 %v876_v0  ;;  %v879_v3 = vld [vmem:[%s1317_s1 + $0x18] sm:$0xff]   ;;  %v884_v4 = vld [vmem:[%s1318_s0] sm:$0xff]   ;;  %v881_v7 = vld [vmem:[%s1317_s1 + $0x28] sm:$0xff]  }
   0x3   :  { %781 = vmatpush3.bf16.msra.mxu0 %v876_v0  ;;  %868 = vmatpush3.bf16.msra.mxu1 %v876_v0  ;;  %v885_v5 = vld [vmem:[%s1318_s0 + $0x80] sm:$0xff]   ;;  %v882_v8 = vld [vmem:[%s1317_s1 + $0x30] sm:$0xff]   ;;  %v883_v9 = vld [vmem:[%s1317_s1 + $0x38] sm:$0xff]  }
   0x4   :  { %782 = vmatprep.subr.bf16.mxu0 %v877_v1  ;;  %861 = vmatprep.subr.bf16.mxu1 %v877_v1  ;;  %v880_v6 = vld [vmem:[%s1317_s1 + $0x20] sm:$0xff]   ;;  %v886_v10 = vld [vmem:[%s1318_s0 + $0x8] sm:$0xff]   ;;  %v888_v12 = vld [vmem:[%s1318_s0 + $0x10] sm:$0xff]  }
   0x5   :  { %796 = vmatprep.mubr.bf16.mxu0 %v884_v4  ;;  %828 = vmatprep.mubr.bf16.mxu1 %v885_v5  ;;  %v887_v11 = vld [vmem:[%s1318_s0 + $0x88] sm:$0xff]   ;;  %v889_v13 = vld [vmem:[%s1318_s0 + $0x90] sm:$0xff]   ;;  %v890_v14 = vld [vmem:[%s1318_s0 + $0x18] sm:$0xff]  }
   0x6   :  { %v891_v15 = vld [vmem:[%s1318_s0 + $0x98] sm:$0xff]   ;;  %v892_v16 = vld [vmem:[%s1318_s0 + $0x20] sm:$0xff]   ;;  %v894_v18 = vld [vmem:[%s1318_s0 + $0x28] sm:$0xff]  }
   0x7   :  { %783 = vmatpush3.bf16.msra.mxu0 %v877_v1  ;;  %869 = vmatpush3.bf16.msra.mxu1 %v877_v1  ;;  %v893_v17 = vld [vmem:[%s1318_s0 + $0xa0] sm:$0xff]   ;;  %v895_v19 = vld [vmem:[%s1318_s0 + $0xa8] sm:$0xff]   ;;  %v896_v20 = vld [vmem:[%s1318_s0 + $0x30] sm:$0xff]  }
   0x8   :  { %784 = vmatprep.subr.bf16.mxu0 %v878_v2  ;;  %862 = vmatprep.subr.bf16.mxu1 %v878_v2  ;;  %v897_v21 = vld [vmem:[%s1318_s0 + $0xb0] sm:$0xff]   ;;  %v898_v22 = vld [vmem:[%s1318_s0 + $0x38] sm:$0xff]   ;;  %v900_v24 = vld [vmem:[%s1318_s0 + $0x40] sm:$0xff]  }
   0x9   :  { %v899_v23 = vld [vmem:[%s1318_s0 + $0xb8] sm:$0xff]   ;;  %v901_v25 = vld [vmem:[%s1318_s0 + $0xc0] sm:$0xff]   ;;  %v902_v26 = vld [vmem:[%s1318_s0 + $0x48] sm:$0xff]  }
   0xa   :  { %v903_v27 = vld [vmem:[%s1318_s0 + $0xc8] sm:$0xff]   ;;  %v904_v28 = vld [vmem:[%s1318_s0 + $0x50] sm:$0xff]   ;;  %v906_v30 = vld [vmem:[%s1318_s0 + $0x58] sm:$0xff]  }
   0xb   :  { %785 = vmatpush3.bf16.msra.mxu0 %v878_v2  ;;  %870 = vmatpush3.bf16.msra.mxu1 %v878_v2  ;;  %v905_v29 = vld [vmem:[%s1318_s0 + $0xd0] sm:$0xff]   ;;  %v907_v31 = vld [vmem:[%s1318_s0 + $0xd8] sm:$0xff]   ;;  %v908_v32 = vld [vmem:[%s1318_s0 + $0x60] sm:$0xff]  }
   0xc   :  { %786 = vmatprep.subr.bf16.mxu0 %v879_v3  ;;  %863 = vmatprep.subr.bf16.mxu1 %v879_v3  ;;  %v909_v33 = vld [vmem:[%s1318_s0 + $0xe0] sm:$0xff]   ;;  %v910_v34 = vld [vmem:[%s1318_s0 + $0x68] sm:$0xff]   ;;  %v912_v36 = vld [vmem:[%s1318_s0 + $0x70] sm:$0xff]  }
   0xd   :  { %v911_v35 = vld [vmem:[%s1318_s0 + $0xe8] sm:$0xff]   ;;  %v913_v37 = vld [vmem:[%s1318_s0 + $0xf0] sm:$0xff]   ;;  %v914_v38 = vld [vmem:[%s1318_s0 + $0x78] sm:$0xff]  }
   0xe   :  { %v915_v39 = vld [vmem:[%s1318_s0 + $0xf8] sm:$0xff]   ;;  %v1059_v40 = vld [vmem:[%s1319_s2] ss:$0 sm:$0xff] }
   0xf   :  { %787 = vmatpush3.bf16.msra.mxu0 %v879_v3  ;;  %871 = vmatpush3.bf16.msra.mxu1 %v879_v3 }
  0x10   :  { %788 = vmatprep.subr.bf16.mxu0 %v880_v6  ;;  %864 = vmatprep.subr.bf16.mxu1 %v880_v6 }
  0x13   :  { %789 = vmatpush3.bf16.msra.mxu0 %v880_v6  ;;  %872 = vmatpush3.bf16.msra.mxu1 %v880_v6 }
  0x14   :  { %790 = vmatprep.subr.bf16.mxu0 %v881_v7  ;;  %865 = vmatprep.subr.bf16.mxu1 %v881_v7 }
  0x17   :  { %791 = vmatpush3.bf16.msra.mxu0 %v881_v7  ;;  %873 = vmatpush3.bf16.msra.mxu1 %v881_v7 }
  0x18   :  { %792 = vmatprep.subr.bf16.mxu0 %v882_v8  ;;  %866 = vmatprep.subr.bf16.mxu1 %v882_v8 }
  0x1b   :  { %793 = vmatpush3.bf16.msra.mxu0 %v882_v8  ;;  %874 = vmatpush3.bf16.msra.mxu1 %v882_v8 }
  0x1c   :  { %794 = vmatprep.subr.bf16.mxu0 %v883_v9  ;;  %867 = vmatprep.subr.bf16.mxu1 %v883_v9 }
  0x1f   :  { %795 = vmatpush3.bf16.msra.mxu0 %v883_v9  ;;  %875 = vmatpush3.bf16.msra.mxu1 %v883_v9 }
  0x22   :  { %797 = vmatmul.mubr.bf16.vlgmr.msra.gmra.mrb[0].mxu0 %v886_v10  ;;  %829 = vmatmul.mubr.bf16.vlgmr.msra.gmra.mrb[0].mxu1 %v887_v11 }
  0x23   :  { %800 = vmatprep.mubr.bf16.mxu0 %v888_v12  ;;  %832 = vmatprep.mubr.bf16.mxu1 %v889_v13 }
  0x2a   :  { %801 = vmatmul.mubr.bf16.gmra.mrb[4].mxu0 %v890_v14  ;;  %833 = vmatmul.mubr.bf16.gmra.mrb[4].mxu1 %v891_v15 }
  0x2b   :  { %804 = vmatprep.mubr.bf16.mxu0 %v892_v16  ;;  %836 = vmatprep.mubr.bf16.mxu1 %v893_v17 }
  0x32   :  { %805 = vmatmul.mubr.bf16.gmra.mrb[8].mxu0 %v894_v18  ;;  %837 = vmatmul.mubr.bf16.gmra.mrb[8].mxu1 %v895_v19 }
  0x33   :  { %808 = vmatprep.mubr.bf16.mxu0 %v896_v20  ;;  %840 = vmatprep.mubr.bf16.mxu1 %v897_v21 }
  0x3a   :  { %809 = vmatmul.mubr.bf16.gmra.mrb[12].mxu0 %v898_v22  ;;  %841 = vmatmul.mubr.bf16.gmra.mrb[12].mxu1 %v899_v23 }
  0x3b   :  { %812 = vmatprep.mubr.bf16.mxu0 %v900_v24  ;;  %844 = vmatprep.mubr.bf16.mxu1 %v901_v25 }
  0x42   :  { %813 = vmatmul.mubr.bf16.gmra.mrb[16].mxu0 %v902_v26  ;;  %845 = vmatmul.mubr.bf16.gmra.mrb[16].mxu1 %v903_v27 }
  0x43   :  { %816 = vmatprep.mubr.bf16.mxu0 %v904_v28  ;;  %848 = vmatprep.mubr.bf16.mxu1 %v905_v29 }
  0x4a   :  { %817 = vmatmul.mubr.bf16.gmra.mrb[20].mxu0 %v906_v30  ;;  %849 = vmatmul.mubr.bf16.gmra.mrb[20].mxu1 %v907_v31 }
  0x4b   :  { %820 = vmatprep.mubr.bf16.mxu0 %v908_v32  ;;  %852 = vmatprep.mubr.bf16.mxu1 %v909_v33 }
  0x52   :  { %821 = vmatmul.mubr.bf16.gmra.mrb[24].mxu0 %v910_v34  ;;  %853 = vmatmul.mubr.bf16.gmra.mrb[24].mxu1 %v911_v35 }
  0x53   :  { %824 = vmatprep.mubr.bf16.mxu0 %v912_v36  ;;  %856 = vmatprep.mubr.bf16.mxu1 %v913_v37 }
  0x5a   :  { %825 = vmatmul.mubr.bf16.gmra.mrb[28].mxu0 %v914_v38  ;;  %857 = vmatmul.mubr.bf16.gmra.mrb[28].mxu1 %v915_v39 }
  0xf5   :  { %v798_v41 = vpop.f32.mrb[0].mxu0  ;;  %v830_v42 = vpop.f32.mrb[0].mxu1 }
  0xf6   :  { %v385_v43 = vadd.f32 %v798_v41, %v1059_v40  ;;  %v513_v44 = vadd.f32 %v830_v42, %v1059_v40  ;;  %v376_v45 = vpop.f32.mrb[1].mxu0  ;;  %v504_v46 = vpop.f32.mrb[1].mxu1 }
  0xf7   :  { %v377_v47 = vadd.f32 %v1059_v40, %v376_v45  ;;  %v505_v48 = vadd.f32 %v1059_v40, %v504_v46  ;;  %v799_v49 = vpop.f32.mrb[2].mxu0  ;;  %v831_v50 = vpop.f32.mrb[2].mxu1 }
  0xf8   :  { %633 = vst [vmem:[%s1320_s3 + $0x10] sm:$0xff] %v385_v43  ;;  %665 = vst [vmem:[%s1320_s3 + $0x110] sm:$0xff] %v513_v44  ;;  %v388_v51 = vadd.f32 %v799_v49, %v1059_v40  ;;  %v516_v52 = vadd.f32 %v831_v50, %v1059_v40  ;;  %v379_v53 = vpop.f32.mrb[3].mxu0  ;;  %v507_v54 = vpop.f32.mrb[3].mxu1 }
  0xf9   :  { %631 = vst [vmem:[%s1320_s3] sm:$0xff] %v377_v47  ;;  %663 = vst [vmem:[%s1320_s3 + $0x100] sm:$0xff] %v505_v48  ;;  %v380_v55 = vadd.f32 %v1059_v40, %v379_v53  ;;  %v508_v56 = vadd.f32 %v1059_v40, %v507_v54 }
  0xfa   :  { %634 = vst [vmem:[%s1320_s3 + $0x18] sm:$0xff] %v388_v51  ;;  %666 = vst [vmem:[%s1320_s3 + $0x118] sm:$0xff] %v516_v52 }
  0xfb   :  { %632 = vst [vmem:[%s1320_s3 + $0x8] sm:$0xff] %v380_v55  ;;  %664 = vst [vmem:[%s1320_s3 + $0x108] sm:$0xff] %v508_v56 }
  0xfd   :  { %v802_v57 = vpop.f32.mrb[4].mxu0  ;;  %v834_v58 = vpop.f32.mrb[4].mxu1 }
  0xfe   :  { %v401_v59 = vadd.f32 %v802_v57, %v1059_v40  ;;  %v529_v60 = vadd.f32 %v834_v58, %v1059_v40  ;;  %v392_v61 = vpop.f32.mrb[5].mxu0  ;;  %v520_v62 = vpop.f32.mrb[5].mxu1 }
  0xff   :  { %v393_v63 = vadd.f32 %v1059_v40, %v392_v61  ;;  %v521_v0 = vadd.f32 %v1059_v40, %v520_v62  ;;  %v803_v1 = vpop.f32.mrb[6].mxu0  ;;  %v835_v2 = vpop.f32.mrb[6].mxu1 }
 0x100   :  { %637 = vst [vmem:[%s1320_s3 + $0x30] sm:$0xff] %v401_v59  ;;  %669 = vst [vmem:[%s1320_s3 + $0x130] sm:$0xff] %v529_v60  ;;  %v404_v3 = vadd.f32 %v803_v1, %v1059_v40  ;;  %v532_v4 = vadd.f32 %v835_v2, %v1059_v40  ;;  %v395_v5 = vpop.f32.mrb[7].mxu0  ;;  %v523_v6 = vpop.f32.mrb[7].mxu1 }
 0x101   :  { %635 = vst [vmem:[%s1320_s3 + $0x20] sm:$0xff] %v393_v63  ;;  %667 = vst [vmem:[%s1320_s3 + $0x120] sm:$0xff] %v521_v0  ;;  %v396_v7 = vadd.f32 %v1059_v40, %v395_v5  ;;  %v524_v8 = vadd.f32 %v1059_v40, %v523_v6 }
 0x102   :  { %638 = vst [vmem:[%s1320_s3 + $0x38] sm:$0xff] %v404_v3  ;;  %670 = vst [vmem:[%s1320_s3 + $0x138] sm:$0xff] %v532_v4 }
 0x103   :  { %636 = vst [vmem:[%s1320_s3 + $0x28] sm:$0xff] %v396_v7  ;;  %668 = vst [vmem:[%s1320_s3 + $0x128] sm:$0xff] %v524_v8 }
 0x105   :  { %v806_v9 = vpop.f32.mrb[8].mxu0  ;;  %v838_v10 = vpop.f32.mrb[8].mxu1 }
 0x106   :  { %v417_v11 = vadd.f32 %v806_v9, %v1059_v40  ;;  %v545_v12 = vadd.f32 %v838_v10, %v1059_v40  ;;  %v408_v13 = vpop.f32.mrb[9].mxu0  ;;  %v536_v14 = vpop.f32.mrb[9].mxu1 }
 0x107   :  { %v409_v15 = vadd.f32 %v1059_v40, %v408_v13  ;;  %v537_v16 = vadd.f32 %v1059_v40, %v536_v14  ;;  %v807_v17 = vpop.f32.mrb[10].mxu0  ;;  %v839_v18 = vpop.f32.mrb[10].mxu1 }
 0x108   :  { %641 = vst [vmem:[%s1320_s3 + $0x50] sm:$0xff] %v417_v11  ;;  %673 = vst [vmem:[%s1320_s3 + $0x150] sm:$0xff] %v545_v12  ;;  %v420_v19 = vadd.f32 %v807_v17, %v1059_v40  ;;  %v548_v20 = vadd.f32 %v839_v18, %v1059_v40  ;;  %v411_v21 = vpop.f32.mrb[11].mxu0  ;;  %v539_v22 = vpop.f32.mrb[11].mxu1 }
 0x109   :  { %639 = vst [vmem:[%s1320_s3 + $0x40] sm:$0xff] %v409_v15  ;;  %671 = vst [vmem:[%s1320_s3 + $0x140] sm:$0xff] %v537_v16  ;;  %v412_v23 = vadd.f32 %v1059_v40, %v411_v21  ;;  %v540_v24 = vadd.f32 %v1059_v40, %v539_v22 }
 0x10a   :  { %642 = vst [vmem:[%s1320_s3 + $0x58] sm:$0xff] %v420_v19  ;;  %674 = vst [vmem:[%s1320_s3 + $0x158] sm:$0xff] %v548_v20 }
 0x10b   :  { %640 = vst [vmem:[%s1320_s3 + $0x48] sm:$0xff] %v412_v23  ;;  %672 = vst [vmem:[%s1320_s3 + $0x148] sm:$0xff] %v540_v24 }
 0x10d   :  { %v810_v25 = vpop.f32.mrb[12].mxu0  ;;  %v842_v26 = vpop.f32.mrb[12].mxu1 }
 0x10e   :  { %v433_v27 = vadd.f32 %v810_v25, %v1059_v40  ;;  %v561_v28 = vadd.f32 %v842_v26, %v1059_v40  ;;  %v424_v29 = vpop.f32.mrb[13].mxu0  ;;  %v552_v30 = vpop.f32.mrb[13].mxu1 }
 0x10f   :  { %v425_v31 = vadd.f32 %v1059_v40, %v424_v29  ;;  %v553_v32 = vadd.f32 %v1059_v40, %v552_v30  ;;  %v811_v33 = vpop.f32.mrb[14].mxu0  ;;  %v843_v34 = vpop.f32.mrb[14].mxu1 }
 0x110   :  { %645 = vst [vmem:[%s1320_s3 + $0x70] sm:$0xff] %v433_v27  ;;  %677 = vst [vmem:[%s1320_s3 + $0x170] sm:$0xff] %v561_v28  ;;  %v436_v35 = vadd.f32 %v811_v33, %v1059_v40  ;;  %v564_v36 = vadd.f32 %v843_v34, %v1059_v40  ;;  %v427_v37 = vpop.f32.mrb[15].mxu0  ;;  %v555_v38 = vpop.f32.mrb[15].mxu1 }
 0x111   :  { %643 = vst [vmem:[%s1320_s3 + $0x60] sm:$0xff] %v425_v31  ;;  %675 = vst [vmem:[%s1320_s3 + $0x160] sm:$0xff] %v553_v32  ;;  %v428_v39 = vadd.f32 %v1059_v40, %v427_v37  ;;  %v556_v41 = vadd.f32 %v1059_v40, %v555_v38 }
 0x112   :  { %646 = vst [vmem:[%s1320_s3 + $0x78] sm:$0xff] %v436_v35  ;;  %678 = vst [vmem:[%s1320_s3 + $0x178] sm:$0xff] %v564_v36 }
 0x113   :  { %644 = vst [vmem:[%s1320_s3 + $0x68] sm:$0xff] %v428_v39  ;;  %676 = vst [vmem:[%s1320_s3 + $0x168] sm:$0xff] %v556_v41 }
 0x115   :  { %v814_v42 = vpop.f32.mrb[16].mxu0  ;;  %v846_v43 = vpop.f32.mrb[16].mxu1 }
 0x116   :  { %v449_v44 = vadd.f32 %v814_v42, %v1059_v40  ;;  %v577_v45 = vadd.f32 %v846_v43, %v1059_v40  ;;  %v440_v46 = vpop.f32.mrb[17].mxu0  ;;  %v568_v47 = vpop.f32.mrb[17].mxu1 }
 0x117   :  { %v441_v48 = vadd.f32 %v1059_v40, %v440_v46  ;;  %v569_v49 = vadd.f32 %v1059_v40, %v568_v47  ;;  %v815_v50 = vpop.f32.mrb[18].mxu0  ;;  %v847_v51 = vpop.f32.mrb[18].mxu1 }
 0x118   :  { %649 = vst [vmem:[%s1320_s3 + $0x90] sm:$0xff] %v449_v44  ;;  %681 = vst [vmem:[%s1320_s3 + $0x190] sm:$0xff] %v577_v45  ;;  %v452_v52 = vadd.f32 %v815_v50, %v1059_v40  ;;  %v580_v53 = vadd.f32 %v847_v51, %v1059_v40  ;;  %v443_v54 = vpop.f32.mrb[19].mxu0  ;;  %v571_v55 = vpop.f32.mrb[19].mxu1 }
 0x119   :  { %647 = vst [vmem:[%s1320_s3 + $0x80] sm:$0xff] %v441_v48  ;;  %679 = vst [vmem:[%s1320_s3 + $0x180] sm:$0xff] %v569_v49  ;;  %v444_v56 = vadd.f32 %v1059_v40, %v443_v54  ;;  %v572_v57 = vadd.f32 %v1059_v40, %v571_v55 }
 0x11a   :  { %650 = vst [vmem:[%s1320_s3 + $0x98] sm:$0xff] %v452_v52  ;;  %682 = vst [vmem:[%s1320_s3 + $0x198] sm:$0xff] %v580_v53 }
 0x11b   :  { %648 = vst [vmem:[%s1320_s3 + $0x88] sm:$0xff] %v444_v56  ;;  %680 = vst [vmem:[%s1320_s3 + $0x188] sm:$0xff] %v572_v57 }
 0x11d   :  { %v818_v58 = vpop.f32.mrb[20].mxu0  ;;  %v850_v59 = vpop.f32.mrb[20].mxu1 }
 0x11e   :  { %v465_v60 = vadd.f32 %v818_v58, %v1059_v40  ;;  %v593_v61 = vadd.f32 %v850_v59, %v1059_v40  ;;  %v456_v62 = vpop.f32.mrb[21].mxu0  ;;  %v584_v63 = vpop.f32.mrb[21].mxu1 }
 0x11f   :  { %v457_v0 = vadd.f32 %v1059_v40, %v456_v62  ;;  %v585_v1 = vadd.f32 %v1059_v40, %v584_v63  ;;  %v819_v2 = vpop.f32.mrb[22].mxu0  ;;  %v851_v3 = vpop.f32.mrb[22].mxu1 }
 0x120   :  { %653 = vst [vmem:[%s1320_s3 + $0xb0] sm:$0xff] %v465_v60  ;;  %685 = vst [vmem:[%s1320_s3 + $0x1b0] sm:$0xff] %v593_v61  ;;  %v468_v4 = vadd.f32 %v819_v2, %v1059_v40  ;;  %v596_v5 = vadd.f32 %v851_v3, %v1059_v40  ;;  %v459_v6 = vpop.f32.mrb[23].mxu0  ;;  %v587_v7 = vpop.f32.mrb[23].mxu1 }
 0x121   :  { %651 = vst [vmem:[%s1320_s3 + $0xa0] sm:$0xff] %v457_v0  ;;  %683 = vst [vmem:[%s1320_s3 + $0x1a0] sm:$0xff] %v585_v1  ;;  %v460_v8 = vadd.f32 %v1059_v40, %v459_v6  ;;  %v588_v9 = vadd.f32 %v1059_v40, %v587_v7 }
 0x122   :  { %654 = vst [vmem:[%s1320_s3 + $0xb8] sm:$0xff] %v468_v4  ;;  %686 = vst [vmem:[%s1320_s3 + $0x1b8] sm:$0xff] %v596_v5 }
 0x123   :  { %652 = vst [vmem:[%s1320_s3 + $0xa8] sm:$0xff] %v460_v8  ;;  %684 = vst [vmem:[%s1320_s3 + $0x1a8] sm:$0xff] %v588_v9 }
 0x125   :  { %v822_v10 = vpop.f32.mrb[24].mxu0  ;;  %v854_v11 = vpop.f32.mrb[24].mxu1 }
 0x126   :  { %v481_v12 = vadd.f32 %v822_v10, %v1059_v40  ;;  %v609_v13 = vadd.f32 %v854_v11, %v1059_v40  ;;  %v472_v14 = vpop.f32.mrb[25].mxu0  ;;  %v600_v15 = vpop.f32.mrb[25].mxu1 }
 0x127   :  { %v473_v16 = vadd.f32 %v1059_v40, %v472_v14  ;;  %v601_v17 = vadd.f32 %v1059_v40, %v600_v15  ;;  %v823_v18 = vpop.f32.mrb[26].mxu0  ;;  %v855_v19 = vpop.f32.mrb[26].mxu1 }
 0x128   :  { %657 = vst [vmem:[%s1320_s3 + $0xd0] sm:$0xff] %v481_v12  ;;  %689 = vst [vmem:[%s1320_s3 + $0x1d0] sm:$0xff] %v609_v13  ;;  %v484_v20 = vadd.f32 %v823_v18, %v1059_v40  ;;  %v612_v21 = vadd.f32 %v855_v19, %v1059_v40  ;;  %v475_v22 = vpop.f32.mrb[27].mxu0  ;;  %v603_v23 = vpop.f32.mrb[27].mxu1 }
 0x129   :  { %655 = vst [vmem:[%s1320_s3 + $0xc0] sm:$0xff] %v473_v16  ;;  %687 = vst [vmem:[%s1320_s3 + $0x1c0] sm:$0xff] %v601_v17  ;;  %v476_v24 = vadd.f32 %v1059_v40, %v475_v22  ;;  %v604_v25 = vadd.f32 %v1059_v40, %v603_v23 }
 0x12a   :  { %658 = vst [vmem:[%s1320_s3 + $0xd8] sm:$0xff] %v484_v20  ;;  %690 = vst [vmem:[%s1320_s3 + $0x1d8] sm:$0xff] %v612_v21 }
 0x12b   :  { %656 = vst [vmem:[%s1320_s3 + $0xc8] sm:$0xff] %v476_v24  ;;  %688 = vst [vmem:[%s1320_s3 + $0x1c8] sm:$0xff] %v604_v25 }
 0x12d   :  { %v826_v26 = vpop.f32.mrb[28].mxu0  ;;  %v858_v27 = vpop.f32.mrb[28].mxu1 }
 0x12e   :  { %v497_v28 = vadd.f32 %v826_v26, %v1059_v40  ;;  %v625_v29 = vadd.f32 %v858_v27, %v1059_v40  ;;  %v488_v30 = vpop.f32.mrb[29].mxu0  ;;  %v616_v31 = vpop.f32.mrb[29].mxu1 }
 0x12f   :  { %v489_v32 = vadd.f32 %v1059_v40, %v488_v30  ;;  %v617_v33 = vadd.f32 %v1059_v40, %v616_v31  ;;  %v827_v34 = vpop.f32.mrb[30].mxu0  ;;  %v859_v35 = vpop.f32.mrb[30].mxu1 }
 0x130   :  { %661 = vst [vmem:[%s1320_s3 + $0xf0] sm:$0xff] %v497_v28  ;;  %693 = vst [vmem:[%s1320_s3 + $0x1f0] sm:$0xff] %v625_v29  ;;  %v500_v36 = vadd.f32 %v827_v34, %v1059_v40  ;;  %v628_v37 = vadd.f32 %v859_v35, %v1059_v40  ;;  %v491_v38 = vpop.f32.mrb[31].mxu0  ;;  %v619_v39 = vpop.f32.mrb[31].mxu1 }
 0x131   :  { %659 = vst [vmem:[%s1320_s3 + $0xe0] sm:$0xff] %v489_v32  ;;  %691 = vst [vmem:[%s1320_s3 + $0x1e0] sm:$0xff] %v617_v33  ;;  %v492_v41 = vadd.f32 %v1059_v40, %v491_v38  ;;  %v620_v42 = vadd.f32 %v1059_v40, %v619_v39 }
 0x132   :  { %662 = vst [vmem:[%s1320_s3 + $0xf8] sm:$0xff] %v500_v36  ;;  %694 = vst [vmem:[%s1320_s3 + $0x1f8] sm:$0xff] %v628_v37 }
 0x133   :  { %660 = vst [vmem:[%s1320_s3 + $0xe8] sm:$0xff] %v492_v41  ;;  %692 = vst [vmem:[%s1320_s3 + $0x1e8] sm:$0xff] %v620_v42 }

// kernel: enet_forward.92
= control target key start
LH: loop header
LB: loop body
LE: loop exit
PB: predicated region body
PF: predicated region fallthrough
CT: control target
= control target key end

     0   :  { %s702_s1 = inlined_call_operand.vmem [shape: bf16[128,128], index: 1, kind: input, shape index: {}]   ;;  %s703_s0 = inlined_call_operand.vmem [shape: bf16[128,128], index: 0, kind: input, shape index: {}]   ;;  %s704_s2 = inlined_call_operand.vmem [shape: f32[1,128], index: 2, kind: input, shape index: {}]   ;;  %s705_s3 = inlined_call_operand.vmem [shape: f32[128,128], index: 3, kind: input, shape index: {}]   ;;  %s706_s4 = inlined_call_operand.vmem [shape: f32[128,128], index: 4, kind: output, shape index: {}]  }
   0x1   :  { %v479_v0 = vld [vmem:[%s702_s1] sm:$0xff]   ;;  %v480_v1 = vld [vmem:[%s702_s1 + $0x8] sm:$0xff]   ;;  %v481_v2 = vld [vmem:[%s702_s1 + $0x10] sm:$0xff]  }
   0x2   :  { %431 = vmatprep.subr.bf16.mxu0 %v479_v0  ;;  %463 = vmatprep.subr.bf16.mxu1 %v479_v0  ;;  %v482_v3 = vld [vmem:[%s702_s1 + $0x18] sm:$0xff]   ;;  %v487_v4 = vld [vmem:[%s703_s0] sm:$0xff]   ;;  %v484_v7 = vld [vmem:[%s702_s1 + $0x28] sm:$0xff]  }
   0x3   :  { %432 = vmatpush3.bf16.msra.mxu0 %v479_v0  ;;  %471 = vmatpush3.bf16.msra.mxu1 %v479_v0  ;;  %v488_v5 = vld [vmem:[%s703_s0 + $0x20] sm:$0xff]   ;;  %v485_v8 = vld [vmem:[%s702_s1 + $0x30] sm:$0xff]   ;;  %v486_v9 = vld [vmem:[%s702_s1 + $0x38] sm:$0xff]  }
   0x4   :  { %433 = vmatprep.subr.bf16.mxu0 %v480_v1  ;;  %464 = vmatprep.subr.bf16.mxu1 %v480_v1  ;;  %v483_v6 = vld [vmem:[%s702_s1 + $0x20] sm:$0xff]   ;;  %v489_v10 = vld [vmem:[%s703_s0 + $0x8] sm:$0xff]   ;;  %v491_v12 = vld [vmem:[%s703_s0 + $0x10] sm:$0xff]  }
   0x5   :  { %447 = vmatprep.mubr.bf16.mxu0 %v487_v4  ;;  %455 = vmatprep.mubr.bf16.mxu1 %v488_v5  ;;  %v490_v11 = vld [vmem:[%s703_s0 + $0x28] sm:$0xff]   ;;  %v492_v13 = vld [vmem:[%s703_s0 + $0x30] sm:$0xff]   ;;  %v493_v14 = vld [vmem:[%s703_s0 + $0x18] sm:$0xff]  }
   0x6   :  { %v494_v15 = vld [vmem:[%s703_s0 + $0x38] sm:$0xff]   ;;  %v571_v16 = vld [vmem:[%s704_s2] ss:$0 sm:$0xff]  ;;  %v300_v23 = vld [vmem:[%s705_s3 + $0x10] sm:$0xff] }
   0x7   :  { %434 = vmatpush3.bf16.msra.mxu0 %v480_v1  ;;  %472 = vmatpush3.bf16.msra.mxu1 %v480_v1  ;;  %v308_v24 = vld [vmem:[%s705_s3 + $0x50] sm:$0xff]  ;;  %v298_v34 = vld [vmem:[%s705_s3] sm:$0xff]  ;;  %v301_v48 = vld [vmem:[%s705_s3 + $0x18] sm:$0xff] }
   0x8   :  { %435 = vmatprep.subr.bf16.mxu0 %v481_v2  ;;  %465 = vmatprep.subr.bf16.mxu1 %v481_v2  ;;  %v306_v36 = vld [vmem:[%s705_s3 + $0x40] sm:$0xff] }
   0xb   :  { %436 = vmatpush3.bf16.msra.mxu0 %v481_v2  ;;  %473 = vmatpush3.bf16.msra.mxu1 %v481_v2  ;;  %v309_v2 = vld [vmem:[%s705_s3 + $0x58] sm:$0xff] }
   0xc   :  { %437 = vmatprep.subr.bf16.mxu0 %v482_v3  ;;  %466 = vmatprep.subr.bf16.mxu1 %v482_v3 }
   0xf   :  { %438 = vmatpush3.bf16.msra.mxu0 %v482_v3  ;;  %474 = vmatpush3.bf16.msra.mxu1 %v482_v3 }
  0x10   :  { %439 = vmatprep.subr.bf16.mxu0 %v483_v6  ;;  %467 = vmatprep.subr.bf16.mxu1 %v483_v6 }
  0x13   :  { %440 = vmatpush3.bf16.msra.mxu0 %v483_v6  ;;  %475 = vmatpush3.bf16.msra.mxu1 %v483_v6 }
  0x14   :  { %441 = vmatprep.subr.bf16.mxu0 %v484_v7  ;;  %468 = vmatprep.subr.bf16.mxu1 %v484_v7 }
  0x17   :  { %442 = vmatpush3.bf16.msra.mxu0 %v484_v7  ;;  %476 = vmatpush3.bf16.msra.mxu1 %v484_v7 }
  0x18   :  { %443 = vmatprep.subr.bf16.mxu0 %v485_v8  ;;  %469 = vmatprep.subr.bf16.mxu1 %v485_v8 }
  0x1b   :  { %444 = vmatpush3.bf16.msra.mxu0 %v485_v8  ;;  %477 = vmatpush3.bf16.msra.mxu1 %v485_v8 }
  0x1c   :  { %445 = vmatprep.subr.bf16.mxu0 %v486_v9  ;;  %470 = vmatprep.subr.bf16.mxu1 %v486_v9 }
  0x1f   :  { %446 = vmatpush3.bf16.msra.mxu0 %v486_v9  ;;  %478 = vmatpush3.bf16.msra.mxu1 %v486_v9 }
  0x22   :  { %448 = vmatmul.mubr.bf16.vlgmr.msra.gmra.mrb[0].mxu0 %v489_v10  ;;  %456 = vmatmul.mubr.bf16.vlgmr.msra.gmra.mrb[0].mxu1 %v490_v11 }
  0x23   :  { %451 = vmatprep.mubr.bf16.mxu0 %v491_v12  ;;  %459 = vmatprep.mubr.bf16.mxu1 %v492_v13 }
  0x2a   :  { %452 = vmatmul.mubr.bf16.gmra.mrb[4].mxu0 %v493_v14  ;;  %460 = vmatmul.mubr.bf16.gmra.mrb[4].mxu1 %v494_v15  ;;  %v299_v14 = vld [vmem:[%s705_s3 + $0x8] sm:$0xff] }
  0xf5   :  { %v449_v17 = vpop.f32.mrb[0].mxu0  ;;  %v457_v18 = vpop.f32.mrb[0].mxu1 }
  0xf6   :  { %v196_v19 = vadd.f32 %v449_v17, %v571_v16  ;;  %v228_v20 = vadd.f32 %v457_v18, %v571_v16  ;;  %v187_v21 = vpop.f32.mrb[1].mxu0  ;;  %v219_v22 = vpop.f32.mrb[1].mxu1  ;;  %v307_v18 = vld [vmem:[%s705_s3 + $0x48] sm:$0xff] }
  0xf7   :  { %v188_v25 = vadd.f32 %v571_v16, %v187_v21  ;;  %v220_v26 = vadd.f32 %v571_v16, %v219_v22  ;;  %v450_v27 = vpop.f32.mrb[2].mxu0  ;;  %v458_v28 = vpop.f32.mrb[2].mxu1 }
  0xf8   :  { %vm252_vm0 = vcmp.gt.f32.partialorder %v196_v19, 0.0  ;;  %v268_v29 = vmul.f32 0.25, %v196_v19  ;;  %vm260_vm1 = vcmp.gt.f32.partialorder %v228_v20, 0.0  ;;  %v276_v30 = vmul.f32 0.25, %v228_v20  ;;  %v190_v31 = vpop.f32.mrb[3].mxu0  ;;  %v222_v32 = vpop.f32.mrb[3].mxu1 }
  0xf9   :  { %vm250_vm2 = vcmp.gt.f32.partialorder %v188_v25, 0.0  ;;  %v266_v33 = vmul.f32 0.25, %v188_v25  ;;  %vm258_vm3 = vcmp.gt.f32.partialorder %v220_v26, 0.0  ;;  %v274_v35 = vmul.f32 0.25, %v220_v26 }
  0xfa   :  { %v284_v37 = vsel %vm252_vm0, %v196_v19, %v268_v29  ;;  %v292_v38 = vsel %vm260_vm1, %v228_v20, %v276_v30  ;;  %v199_v39 = vadd.f32 %v450_v27, %v571_v16  ;;  %v231_v40 = vadd.f32 %v458_v28, %v571_v16  ;;  %v304_v20 = vld [vmem:[%s705_s3 + $0x30] sm:$0xff] }
  0xfb   :  { %v316_v41 = vadd.f32 %v300_v23, %v284_v37  ;;  %v324_v42 = vadd.f32 %v308_v24, %v292_v38  ;;  %v282_v43 = vsel %vm250_vm2, %v188_v25, %v266_v33  ;;  %v290_v44 = vsel %vm258_vm3, %v220_v26, %v274_v35  ;;  %v312_v30 = vld [vmem:[%s705_s3 + $0x70] sm:$0xff] }
  0xfc   :  { %v314_v45 = vadd.f32 %v298_v34, %v282_v43  ;;  %v322_v46 = vadd.f32 %v306_v36, %v290_v44  ;;  %vm253_vm4 = vcmp.gt.f32.partialorder %v199_v39, 0.0  ;;  %v269_v47 = vmul.f32 0.25, %v199_v39  ;;  %v302_v34 = vld [vmem:[%s705_s3 + $0x20] sm:$0xff] }
  0xfd   :  { %vm332_vm5 = vcmp.gt.f32.partialorder %v316_v41, 0.0  ;;  %v348_v49 = vmul.f32 0.25, %v316_v41  ;;  %vm340_vm6 = vcmp.gt.f32.partialorder %v324_v42, 0.0  ;;  %v356_v50 = vmul.f32 0.25, %v324_v42  ;;  %v453_v51 = vpop.f32.mrb[4].mxu0  ;;  %v461_v52 = vpop.f32.mrb[4].mxu1 }
  0xfe   :  { %vm330_vm7 = vcmp.gt.f32.partialorder %v314_v45, 0.0  ;;  %v346_v53 = vmul.f32 0.25, %v314_v45  ;;  %vm338_vm8 = vcmp.gt.f32.partialorder %v322_v46, 0.0  ;;  %v354_v54 = vmul.f32 0.25, %v322_v46  ;;  %v203_v55 = vpop.f32.mrb[5].mxu0  ;;  %v594_v56 = vpop.f32.mrb[5].mxu1 }
  0xff   :  { %v364_v57 = vsel %vm332_vm5, %v316_v41, %v348_v49  ;;  %v372_v58 = vsel %vm340_vm6, %v324_v42, %v356_v50  ;;  %v285_v59 = vsel %vm253_vm4, %v199_v39, %v269_v47  ;;  %vm261_vm9 = vcmp.gt.f32.partialorder %v231_v40, 0.0  ;;  %v597_v60 = vpop.f32.mrb[6].mxu0  ;;  %v599_v61 = vpop.f32.mrb[6].mxu1  ;;  %v310_v47 = vld [vmem:[%s705_s3 + $0x60] sm:$0xff]  ;;  %v305_v50 = vld [vmem:[%s705_s3 + $0x38] sm:$0xff] }
 0x100   :  { %380 = vst [vmem:[%s706_s4 + $0x10] sm:$0xff] %v364_v57  ;;  %388 = vst [vmem:[%s706_s4 + $0x50] sm:$0xff] %v372_v58  ;;  %v362_v62 = vsel %vm330_vm7, %v314_v45, %v346_v53  ;;  %v370_v63 = vsel %vm338_vm8, %v322_v46, %v354_v54  ;;  %v317_v0 = vadd.f32 %v301_v48, %v285_v59  ;;  %v277_v1 = vmul.f32 0.25, %v231_v40  ;;  %v610_v3 = vpop.f32.mrb[7].mxu0  ;;  %v612_v4 = vpop.f32.mrb[7].mxu1 }
 0x101   :  { %378 = vst [vmem:[%s706_s4] sm:$0xff] %v362_v62  ;;  %386 = vst [vmem:[%s706_s4 + $0x40] sm:$0xff] %v370_v63  ;;  %v191_v5 = vadd.f32 %v571_v16, %v190_v31  ;;  %v223_v6 = vadd.f32 %v571_v16, %v222_v32  ;;  %v212_v7 = vadd.f32 %v453_v51, %v571_v16 }
 0x102   :  { %v244_v8 = vadd.f32 %v461_v52, %v571_v16  ;;  %vm333_vm10 = vcmp.gt.f32.partialorder %v317_v0, 0.0  ;;  %v349_v9 = vmul.f32 0.25, %v317_v0  ;;  %v293_v10 = vsel %vm261_vm9, %v231_v40, %v277_v1 }
 0x103   :  { %v204_v11 = vadd.f32 %v571_v16, %v203_v55  ;;  %v325_v12 = vadd.f32 %v309_v2, %v293_v10  ;;  %vm251_vm11 = vcmp.gt.f32.partialorder %v191_v5, 0.0  ;;  %v267_v13 = vmul.f32 0.25, %v191_v5 }
 0x104   :  { %vm259_vm12 = vcmp.gt.f32.partialorder %v223_v6, 0.0  ;;  %v365_v15 = vsel %vm333_vm10, %v317_v0, %v349_v9  ;;  %v275_v17 = vmul.f32 0.25, %v223_v6  ;;  %vm256_vm13 = vcmp.gt.f32.partialorder %v212_v7, 0.0  ;;  %v303_v0 = vld [vmem:[%s705_s3 + $0x28] sm:$0xff] }
 0x105   :  { %v272_v19 = vmul.f32 0.25, %v212_v7  ;;  %381 = vst [vmem:[%s706_s4 + $0x18] sm:$0xff] %v365_v15  ;;  %vm341_vm14 = vcmp.gt.f32.partialorder %v325_v12, 0.0  ;;  %v357_v21 = vmul.f32 0.25, %v325_v12  ;;  %v283_v22 = vsel %vm251_vm11, %v191_v5, %v267_v13 }
 0x106   :  { %vm264_vm15 = vcmp.gt.f32.partialorder %v244_v8, 0.0  ;;  %v315_v23 = vadd.f32 %v299_v14, %v283_v22  ;;  %v291_v24 = vsel %vm259_vm12, %v223_v6, %v275_v17  ;;  %v280_v26 = vmul.f32 0.25, %v244_v8 }
 0x107   :  { %v288_v25 = vsel %vm256_vm13, %v212_v7, %v272_v19  ;;  %v373_v27 = vsel %vm341_vm14, %v325_v12, %v357_v21  ;;  %v323_v28 = vadd.f32 %v307_v18, %v291_v24  ;;  %vm254_vm0 = vcmp.gt.f32.partialorder %v204_v11, 0.0 }
 0x108   :  { %v320_v29 = vadd.f32 %v304_v20, %v288_v25  ;;  %389 = vst [vmem:[%s706_s4 + $0x58] sm:$0xff] %v373_v27  ;;  %vm331_vm1 = vcmp.gt.f32.partialorder %v315_v23, 0.0  ;;  %v347_v31 = vmul.f32 0.25, %v315_v23  ;;  %v296_v32 = vsel %vm264_vm15, %v244_v8, %v280_v26 }
 0x109   :  { %v270_v33 = vmul.f32 0.25, %v204_v11  ;;  %vm339_vm2 = vcmp.gt.f32.partialorder %v323_v28, 0.0  ;;  %v355_v35 = vmul.f32 0.25, %v323_v28  ;;  %v328_v38 = vadd.f32 %v312_v30, %v296_v32 }
 0x10a   :  { %vm336_vm3 = vcmp.gt.f32.partialorder %v320_v29, 0.0  ;;  %v352_v36 = vmul.f32 0.25, %v320_v29  ;;  %v363_v37 = vsel %vm331_vm1, %v315_v23, %v347_v31  ;;  %v236_v40 = vadd.f32 %v571_v16, %v594_v56 }
 0x10b   :  { %v286_v39 = vsel %vm254_vm0, %v204_v11, %v270_v33  ;;  %379 = vst [vmem:[%s706_s4 + $0x8] sm:$0xff] %v363_v37  ;;  %v371_v41 = vsel %vm339_vm2, %v323_v28, %v355_v35  ;;  %v215_v44 = vadd.f32 %v597_v60, %v571_v16  ;;  %vm344_vm4 = vcmp.gt.f32.partialorder %v328_v38, 0.0 }
 0x10c   :  { %v368_v42 = vsel %vm336_vm3, %v320_v29, %v352_v36  ;;  %v318_v43 = vadd.f32 %v302_v34, %v286_v39  ;;  %387 = vst [vmem:[%s706_s4 + $0x48] sm:$0xff] %v371_v41  ;;  %v360_v45 = vmul.f32 0.25, %v328_v38  ;;  %vm262_vm5 = vcmp.gt.f32.partialorder %v236_v40, 0.0 }
 0x10d   :  { %384 = vst [vmem:[%s706_s4 + $0x30] sm:$0xff] %v368_v42  ;;  %v278_v46 = vmul.f32 0.25, %v236_v40  ;;  %vm257_vm7 = vcmp.gt.f32.partialorder %v215_v44, 0.0  ;;  %v273_v49 = vmul.f32 0.25, %v215_v44  ;;  %v247_v53 = vadd.f32 %v599_v61, %v571_v16  ;;  %v313_v61 = vld [vmem:[%s705_s3 + $0x78] sm:$0xff] }
 0x10e   :  { %vm334_vm6 = vcmp.gt.f32.partialorder %v318_v43, 0.0  ;;  %v350_v48 = vmul.f32 0.25, %v318_v43  ;;  %v376_v51 = vsel %vm344_vm4, %v328_v38, %v360_v45  ;;  %v207_v54 = vadd.f32 %v571_v16, %v610_v3  ;;  %v311_v3 = vld [vmem:[%s705_s3 + $0x68] sm:$0xff] }
 0x10f   :  { %v294_v52 = vsel %vm262_vm5, %v236_v40, %v278_v46  ;;  %392 = vst [vmem:[%s706_s4 + $0x70] sm:$0xff] %v376_v51  ;;  %v289_v57 = vsel %vm257_vm7, %v215_v44, %v273_v49  ;;  %v239_v58 = vadd.f32 %v571_v16, %v612_v4  ;;  %vm265_vm8 = vcmp.gt.f32.partialorder %v247_v53, 0.0 }
 0x110   :  { %v366_v55 = vsel %vm334_vm6, %v318_v43, %v350_v48  ;;  %v326_v56 = vadd.f32 %v310_v47, %v294_v52  ;;  %v321_v59 = vadd.f32 %v305_v50, %v289_v57  ;;  %v281_v60 = vmul.f32 0.25, %v247_v53 }
 0x111   :  { %382 = vst [vmem:[%s706_s4 + $0x20] sm:$0xff] %v366_v55  ;;  %vm255_vm9 = vcmp.gt.f32.partialorder %v207_v54, 0.0  ;;  %v271_v63 = vmul.f32 0.25, %v207_v54  ;;  %vm263_vm11 = vcmp.gt.f32.partialorder %v239_v58, 0.0  ;;  %v279_v2 = vmul.f32 0.25, %v239_v58 }
 0x112   :  { %vm342_vm10 = vcmp.gt.f32.partialorder %v326_v56, 0.0  ;;  %v358_v62 = vmul.f32 0.25, %v326_v56  ;;  %vm337_vm12 = vcmp.gt.f32.partialorder %v321_v59, 0.0  ;;  %v353_v16 = vmul.f32 0.25, %v321_v59 }
 0x113   :  { %v297_v1 = vsel %vm265_vm8, %v247_v53, %v281_v60  ;;  %v287_v6 = vsel %vm255_vm9, %v207_v54, %v271_v63  ;;  %v295_v9 = vsel %vm263_vm11, %v239_v58, %v279_v2 }
 0x114   :  { %v374_v4 = vsel %vm342_vm10, %v326_v56, %v358_v62  ;;  %v329_v5 = vadd.f32 %v313_v61, %v297_v1  ;;  %v369_v7 = vsel %vm337_vm12, %v321_v59, %v353_v16  ;;  %v319_v8 = vadd.f32 %v303_v0, %v287_v6 }
 0x115   :  { %390 = vst [vmem:[%s706_s4 + $0x60] sm:$0xff] %v374_v4  ;;  %385 = vst [vmem:[%s706_s4 + $0x38] sm:$0xff] %v369_v7  ;;  %v327_v11 = vadd.f32 %v311_v3, %v295_v9 }
 0x116   :  { %vm345_vm13 = vcmp.gt.f32.partialorder %v329_v5, 0.0  ;;  %v361_v10 = vmul.f32 0.25, %v329_v5  ;;  %vm335_vm14 = vcmp.gt.f32.partialorder %v319_v8, 0.0  ;;  %v351_v12 = vmul.f32 0.25, %v319_v8 }
 0x117   :  { %vm343_vm15 = vcmp.gt.f32.partialorder %v327_v11, 0.0  ;;  %v359_v14 = vmul.f32 0.25, %v327_v11 }
 0x118   :  { %v377_v13 = vsel %vm345_vm13, %v329_v5, %v361_v10  ;;  %v367_v15 = vsel %vm335_vm14, %v319_v8, %v351_v12 }
 0x119   :  { %393 = vst [vmem:[%s706_s4 + $0x78] sm:$0xff] %v377_v13  ;;  %383 = vst [vmem:[%s706_s4 + $0x28] sm:$0xff] %v367_v15  ;;  %v375_v17 = vsel %vm343_vm15, %v327_v11, %v359_v14 }
 0x11a   :  { %391 = vst [vmem:[%s706_s4 + $0x68] sm:$0xff] %v375_v17 }

// kernel: enet_forward.94
= control target key start
LH: loop header
LB: loop body
LE: loop exit
PB: predicated region body
PF: predicated region fallthrough
CT: control target
= control target key end

     0   :  { %s749_s1 = inlined_call_operand.vmem [shape: bf16[256,128], index: 1, kind: input, shape index: {}]   ;;  %s750_s0 = inlined_call_operand.vmem [shape: bf16[128,256], index: 0, kind: input, shape index: {}]   ;;  %s751_s2 = inlined_call_operand.vmem [shape: f32[1,128], index: 2, kind: input, shape index: {}]   ;;  %s752_s3 = inlined_call_operand.vmem [shape: f32[128,128], index: 3, kind: output, shape index: {}]  }
   0x1   :  { %v524_v0 = vld [vmem:[%s749_s1 + $0x40] sm:$0xff]   ;;  %v526_v2 = vld [vmem:[%s749_s1 + $0x48] sm:$0xff]   ;;  %v528_v4 = vld [vmem:[%s749_s1 + $0x50] sm:$0xff]  }
   0x2   :  { %v525_v1 = vld [vmem:[%s749_s1] sm:$0xff]   ;;  %444 = vmatprep.subr.bf16.mxu0 %v524_v0  ;;  %508 = vmatprep.subr.bf16.mxu1 %v524_v0  ;;  %v527_v3 = vld [vmem:[%s749_s1 + $0x8] sm:$0xff]   ;;  %v529_v5 = vld [vmem:[%s749_s1 + $0x10] sm:$0xff]  }
   0x3   :  { %445 = vmatpush3.bf16.msra.mxu0 %v525_v1  ;;  %516 = vmatpush3.bf16.msra.mxu1 %v525_v1  ;;  %v530_v6 = vld [vmem:[%s749_s1 + $0x58] sm:$0xff]   ;;  %v532_v8 = vld [vmem:[%s749_s1 + $0x60] sm:$0xff]   ;;  %v534_v10 = vld [vmem:[%s749_s1 + $0x68] sm:$0xff]  }
   0x4   :  { %446 = vmatprep.subr.bf16.mxu0 %v526_v2  ;;  %509 = vmatprep.subr.bf16.mxu1 %v526_v2  ;;  %v531_v7 = vld [vmem:[%s749_s1 + $0x18] sm:$0xff]   ;;  %v533_v9 = vld [vmem:[%s749_s1 + $0x20] sm:$0xff]   ;;  %v535_v13 = vld [vmem:[%s749_s1 + $0x28] sm:$0xff]  }
   0x5   :  { %v542_v11 = vld [vmem:[%s750_s0 + $0x4] ss:$8 sps:$4 sm:$0xff]   ;;  %v536_v14 = vld [vmem:[%s749_s1 + $0x70] sm:$0xff]   ;;  %v538_v16 = vld [vmem:[%s749_s1 + $0x78] sm:$0xff]  }
   0x6   :  { %v545_v12 = vld [vmem:[%s750_s0 + $0x44] ss:$8 sps:$4 sm:$0xff]   ;;  %278 = vmatprep.mubr.bf16.mxu0 %v542_v11  ;;  %v537_v15 = vld [vmem:[%s749_s1 + $0x30] sm:$0xff]   ;;  %v539_v17 = vld [vmem:[%s749_s1 + $0x38] sm:$0xff]  }
   0x7   :  { %447 = vmatpush3.bf16.msra.mxu0 %v527_v3  ;;  %517 = vmatpush3.bf16.msra.mxu1 %v527_v3  ;;  %v540_v18 = vld [vmem:[%s750_s0] ss:$8 sps:$4 sm:$0xff]   ;;  %v546_v20 = vld [vmem:[%s750_s0 + $0x14] ss:$8 sps:$4 sm:$0xff]   ;;  %v550_v22 = vld [vmem:[%s750_s0 + $0x10] ss:$8 sps:$4 sm:$0xff]  }
   0x8   :  { %448 = vmatprep.subr.bf16.mxu0 %v528_v4  ;;  %510 = vmatprep.subr.bf16.mxu1 %v528_v4  ;;  %v543_v19 = vld [vmem:[%s750_s0 + $0x40] ss:$8 sps:$4 sm:$0xff]   ;;  %v548_v21 = vld [vmem:[%s750_s0 + $0x54] ss:$8 sps:$4 sm:$0xff]   ;;  %v551_v23 = vld [vmem:[%s750_s0 + $0x50] ss:$8 sps:$4 sm:$0xff]  }
   0x9   :  { %310 = vmatprep.mubr.bf16.mxu1 %v545_v12  ;;  %v552_v24 = vld [vmem:[%s750_s0 + $0x24] ss:$8 sps:$4 sm:$0xff]   ;;  %v556_v26 = vld [vmem:[%s750_s0 + $0x20] ss:$8 sps:$4 sm:$0xff]   ;;  %v558_v28 = vld [vmem:[%s750_s0 + $0x34] ss:$8 sps:$4 sm:$0xff]  }
   0xa   :  { %v554_v25 = vld [vmem:[%s750_s0 + $0x64] ss:$8 sps:$4 sm:$0xff]   ;;  %v557_v27 = vld [vmem:[%s750_s0 + $0x60] ss:$8 sps:$4 sm:$0xff]   ;;  %v560_v29 = vld [vmem:[%s750_s0 + $0x74] ss:$8 sps:$4 sm:$0xff]  }
   0xb   :  { %449 = vmatpush3.bf16.msra.mxu0 %v529_v5  ;;  %518 = vmatpush3.bf16.msra.mxu1 %v529_v5  ;;  %v562_v30 = vld [vmem:[%s750_s0 + $0x30] ss:$8 sps:$4 sm:$0xff]   ;;  %v683_v34 = vld [vmem:[%s751_s2] ss:$0 sm:$0xff] }
   0xc   :  { %450 = vmatprep.subr.bf16.mxu0 %v530_v6  ;;  %511 = vmatprep.subr.bf16.mxu1 %v530_v6  ;;  %v563_v31 = vld [vmem:[%s750_s0 + $0x70] ss:$8 sps:$4 sm:$0xff]  }
   0xf   :  { %451 = vmatpush3.bf16.msra.mxu0 %v531_v7  ;;  %519 = vmatpush3.bf16.msra.mxu1 %v531_v7 }
  0x10   :  { %452 = vmatprep.subr.bf16.mxu0 %v532_v8  ;;  %512 = vmatprep.subr.bf16.mxu1 %v532_v8 }
  0x13   :  { %453 = vmatpush3.bf16.msra.mxu0 %v533_v9  ;;  %520 = vmatpush3.bf16.msra.mxu1 %v533_v9 }
  0x14   :  { %454 = vmatprep.subr.bf16.mxu0 %v534_v10  ;;  %513 = vmatprep.subr.bf16.mxu1 %v534_v10 }
  0x17   :  { %455 = vmatpush3.bf16.msra.mxu0 %v535_v13  ;;  %521 = vmatpush3.bf16.msra.mxu1 %v535_v13 }
  0x18   :  { %456 = vmatprep.subr.bf16.mxu0 %v536_v14  ;;  %514 = vmatprep.subr.bf16.mxu1 %v536_v14 }
  0x1b   :  { %457 = vmatpush3.bf16.msra.mxu0 %v537_v15  ;;  %522 = vmatpush3.bf16.msra.mxu1 %v537_v15 }
  0x1c   :  { %458 = vmatprep.subr.bf16.mxu0 %v538_v16  ;;  %515 = vmatprep.subr.bf16.mxu1 %v538_v16 }
  0x1f   :  { %459 = vmatpush3.bf16.msra.mxu0 %v539_v17  ;;  %523 = vmatpush3.bf16.msra.mxu1 %v539_v17 }
  0x22   :  { %279 = vmatmul.mubr.bf16.vlgmr.msra.gmra.mrb[0].mxu0 %v540_v18  ;;  %311 = vmatmul.mubr.bf16.vlgmr.msra.gmra.mrb[0].mxu1 %v543_v19 }
  0x23   :  { %286 = vmatprep.mubr.bf16.mxu0 %v546_v20  ;;  %318 = vmatprep.mubr.bf16.mxu1 %v548_v21 }
  0x2a   :  { %287 = vmatmul.mubr.bf16.gmra.mrb[4].mxu0 %v550_v22  ;;  %319 = vmatmul.mubr.bf16.gmra.mrb[4].mxu1 %v551_v23 }
  0x2b   :  { %294 = vmatprep.mubr.bf16.mxu0 %v552_v24  ;;  %326 = vmatprep.mubr.bf16.mxu1 %v554_v25 }
  0x32   :  { %295 = vmatmul.mubr.bf16.gmra.mrb[8].mxu0 %v556_v26  ;;  %327 = vmatmul.mubr.bf16.gmra.mrb[8].mxu1 %v557_v27 }
  0x33   :  { %302 = vmatprep.mubr.bf16.mxu0 %v558_v28  ;;  %334 = vmatprep.mubr.bf16.mxu1 %v560_v29 }
  0x3a   :  { %303 = vmatmul.mubr.bf16.gmra.mrb[12].mxu0 %v562_v30  ;;  %335 = vmatmul.mubr.bf16.gmra.mrb[12].mxu1 %v563_v31 }
  0xf5   :  { %v460_v32 = vpop.f32.mrb[0].mxu0  ;;  %v484_v33 = vpop.f32.mrb[0].mxu1 }
  0xf6   :  { %v461_v35 = vpop.f32.mrb[1].mxu0  ;;  %v485_v36 = vpop.f32.mrb[1].mxu1 }
  0xf7   :  { %v462_v37 = vadd.f32 %v461_v35, %v460_v32  ;;  %v486_v38 = vadd.f32 %v485_v36, %v484_v33  ;;  %v463_v39 = vpop.f32.mrb[2].mxu0  ;;  %v487_v40 = vpop.f32.mrb[2].mxu1 }
  0xf8   :  { %v464_v41 = vpop.f32.mrb[3].mxu0  ;;  %v488_v42 = vpop.f32.mrb[3].mxu1 }
  0xf9   :  { %v281_v43 = vadd.f32 %v462_v37, %v683_v34  ;;  %v313_v44 = vadd.f32 %v486_v38, %v683_v34  ;;  %v465_v45 = vadd.f32 %v464_v41, %v463_v39  ;;  %v489_v46 = vadd.f32 %v488_v42, %v487_v40 }
  0xfb   :  { %vm343_vm0 = vcmp.gt.f32.partialorder %v281_v43, 0.0  ;;  %v359_v47 = vmul.f32 0.25, %v281_v43  ;;  %vm351_vm1 = vcmp.gt.f32.partialorder %v313_v44, 0.0  ;;  %v367_v48 = vmul.f32 0.25, %v313_v44 }
  0xfc   :  { %v284_v49 = vadd.f32 %v465_v45, %v683_v34  ;;  %v316_v50 = vadd.f32 %v489_v46, %v683_v34 }
  0xfd   :  { %v375_v51 = vsel %vm343_vm0, %v281_v43, %v359_v47  ;;  %v383_v52 = vsel %vm351_vm1, %v313_v44, %v367_v48  ;;  %v466_v53 = vpop.f32.mrb[4].mxu0  ;;  %v490_v54 = vpop.f32.mrb[4].mxu1 }
  0xfe   :  { %391 = vst [vmem:[%s752_s3] sm:$0xff] %v375_v51  ;;  %399 = vst [vmem:[%s752_s3 + $0x40] sm:$0xff] %v383_v52  ;;  %vm344_vm2 = vcmp.gt.f32.partialorder %v284_v49, 0.0  ;;  %v360_v55 = vmul.f32 0.25, %v284_v49  ;;  %vm352_vm3 = vcmp.gt.f32.partialorder %v316_v50, 0.0  ;;  %v368_v56 = vmul.f32 0.25, %v316_v50  ;;  %v467_v57 = vpop.f32.mrb[5].mxu0 }
  0xff   :  { %v491_v58 = vpop.f32.mrb[5].mxu1  ;;  %v468_v59 = vadd.f32 %v467_v57, %v466_v53  ;;  %v469_v61 = vpop.f32.mrb[6].mxu0 }
 0x100   :  { %v492_v60 = vadd.f32 %v491_v58, %v490_v54  ;;  %v493_v62 = vpop.f32.mrb[6].mxu1  ;;  %v376_v63 = vsel %vm344_vm2, %v284_v49, %v360_v55  ;;  %v384_v0 = vsel %vm352_vm3, %v316_v50, %v368_v56  ;;  %v470_v1 = vpop.f32.mrb[7].mxu0 }
 0x101   :  { %v494_v2 = vpop.f32.mrb[7].mxu1  ;;  %392 = vst [vmem:[%s752_s3 + $0x8] sm:$0xff] %v376_v63  ;;  %400 = vst [vmem:[%s752_s3 + $0x48] sm:$0xff] %v384_v0  ;;  %v289_v3 = vadd.f32 %v468_v59, %v683_v34  ;;  %v471_v5 = vadd.f32 %v470_v1, %v469_v61 }
 0x102   :  { %v321_v4 = vadd.f32 %v492_v60, %v683_v34  ;;  %v495_v6 = vadd.f32 %v494_v2, %v493_v62 }
 0x103   :  { %vm345_vm4 = vcmp.gt.f32.partialorder %v289_v3, 0.0  ;;  %v361_v7 = vmul.f32 0.25, %v289_v3  ;;  %v292_v9 = vadd.f32 %v471_v5, %v683_v34 }
 0x104   :  { %vm353_vm5 = vcmp.gt.f32.partialorder %v321_v4, 0.0  ;;  %v369_v8 = vmul.f32 0.25, %v321_v4  ;;  %v324_v10 = vadd.f32 %v495_v6, %v683_v34 }
 0x105   :  { %v377_v11 = vsel %vm345_vm4, %v289_v3, %v361_v7  ;;  %v472_v13 = vpop.f32.mrb[8].mxu0  ;;  %v496_v14 = vpop.f32.mrb[8].mxu1  ;;  %vm346_vm6 = vcmp.gt.f32.partialorder %v292_v9, 0.0  ;;  %v362_v15 = vmul.f32 0.25, %v292_v9 }
 0x106   :  { %v385_v12 = vsel %vm353_vm5, %v321_v4, %v369_v8  ;;  %393 = vst [vmem:[%s752_s3 + $0x10] sm:$0xff] %v377_v11  ;;  %vm354_vm7 = vcmp.gt.f32.partialorder %v324_v10, 0.0  ;;  %v370_v16 = vmul.f32 0.25, %v324_v10  ;;  %v473_v17 = vpop.f32.mrb[9].mxu0  ;;  %v497_v18 = vpop.f32.mrb[9].mxu1 }
 0x107   :  { %401 = vst [vmem:[%s752_s3 + $0x50] sm:$0xff] %v385_v12  ;;  %v474_v19 = vadd.f32 %v473_v17, %v472_v13  ;;  %v498_v20 = vadd.f32 %v497_v18, %v496_v14  ;;  %v475_v21 = vpop.f32.mrb[10].mxu0  ;;  %v499_v22 = vpop.f32.mrb[10].mxu1  ;;  %v378_v23 = vsel %vm346_vm6, %v292_v9, %v362_v15 }
 0x108   :  { %v386_v24 = vsel %vm354_vm7, %v324_v10, %v370_v16  ;;  %v476_v25 = vpop.f32.mrb[11].mxu0  ;;  %v500_v26 = vpop.f32.mrb[11].mxu1  ;;  %394 = vst [vmem:[%s752_s3 + $0x18] sm:$0xff] %v378_v23 }
 0x109   :  { %402 = vst [vmem:[%s752_s3 + $0x58] sm:$0xff] %v386_v24  ;;  %v297_v27 = vadd.f32 %v474_v19, %v683_v34  ;;  %v329_v28 = vadd.f32 %v498_v20, %v683_v34  ;;  %v477_v29 = vadd.f32 %v476_v25, %v475_v21  ;;  %v501_v30 = vadd.f32 %v500_v26, %v499_v22 }
 0x10b   :  { %vm347_vm8 = vcmp.gt.f32.partialorder %v297_v27, 0.0  ;;  %v363_v31 = vmul.f32 0.25, %v297_v27  ;;  %vm355_vm9 = vcmp.gt.f32.partialorder %v329_v28, 0.0  ;;  %v371_v32 = vmul.f32 0.25, %v329_v28 }
 0x10c   :  { %v300_v33 = vadd.f32 %v477_v29, %v683_v34  ;;  %v332_v35 = vadd.f32 %v501_v30, %v683_v34 }
 0x10d   :  { %v379_v36 = vsel %vm347_vm8, %v297_v27, %v363_v31  ;;  %v387_v37 = vsel %vm355_vm9, %v329_v28, %v371_v32  ;;  %v478_v38 = vpop.f32.mrb[12].mxu0  ;;  %v502_v39 = vpop.f32.mrb[12].mxu1 }
 0x10e   :  { %395 = vst [vmem:[%s752_s3 + $0x20] sm:$0xff] %v379_v36  ;;  %403 = vst [vmem:[%s752_s3 + $0x60] sm:$0xff] %v387_v37  ;;  %vm348_vm10 = vcmp.gt.f32.partialorder %v300_v33, 0.0  ;;  %v364_v40 = vmul.f32 0.25, %v300_v33  ;;  %vm356_vm11 = vcmp.gt.f32.partialorder %v332_v35, 0.0  ;;  %v372_v41 = vmul.f32 0.25, %v332_v35 }
 0x10f   :  { %v479_v42 = vpop.f32.mrb[13].mxu0  ;;  %v503_v43 = vpop.f32.mrb[13].mxu1 }
 0x110   :  { %v480_v44 = vadd.f32 %v479_v42, %v478_v38  ;;  %v504_v45 = vadd.f32 %v503_v43, %v502_v39  ;;  %v481_v46 = vpop.f32.mrb[14].mxu0  ;;  %v505_v47 = vpop.f32.mrb[14].mxu1  ;;  %v380_v48 = vsel %vm348_vm10, %v300_v33, %v364_v40  ;;  %v388_v49 = vsel %vm356_vm11, %v332_v35, %v372_v41 }
 0x111   :  { %v482_v50 = vpop.f32.mrb[15].mxu0  ;;  %v506_v51 = vpop.f32.mrb[15].mxu1  ;;  %396 = vst [vmem:[%s752_s3 + $0x28] sm:$0xff] %v380_v48  ;;  %404 = vst [vmem:[%s752_s3 + $0x68] sm:$0xff] %v388_v49 }
 0x112   :  { %v305_v52 = vadd.f32 %v480_v44, %v683_v34  ;;  %v337_v53 = vadd.f32 %v504_v45, %v683_v34  ;;  %v483_v54 = vadd.f32 %v482_v50, %v481_v46  ;;  %v507_v55 = vadd.f32 %v506_v51, %v505_v47 }
 0x114   :  { %vm349_vm12 = vcmp.gt.f32.partialorder %v305_v52, 0.0  ;;  %v365_v56 = vmul.f32 0.25, %v305_v52  ;;  %vm357_vm13 = vcmp.gt.f32.partialorder %v337_v53, 0.0  ;;  %v373_v57 = vmul.f32 0.25, %v337_v53 }
 0x115   :  { %v308_v58 = vadd.f32 %v483_v54, %v683_v34  ;;  %v340_v59 = vadd.f32 %v507_v55, %v683_v34 }
 0x116   :  { %v381_v60 = vsel %vm349_vm12, %v305_v52, %v365_v56  ;;  %v389_v61 = vsel %vm357_vm13, %v337_v53, %v373_v57 }
 0x117   :  { %397 = vst [vmem:[%s752_s3 + $0x30] sm:$0xff] %v381_v60  ;;  %405 = vst [vmem:[%s752_s3 + $0x70] sm:$0xff] %v389_v61  ;;  %vm350_vm14 = vcmp.gt.f32.partialorder %v308_v58, 0.0  ;;  %v366_v62 = vmul.f32 0.25, %v308_v58  ;;  %vm358_vm15 = vcmp.gt.f32.partialorder %v340_v59, 0.0  ;;  %v374_v63 = vmul.f32 0.25, %v340_v59 }
 0x119   :  { %v382_v0 = vsel %vm350_vm14, %v308_v58, %v366_v62  ;;  %v390_v1 = vsel %vm358_vm15, %v340_v59, %v374_v63 }
 0x11a   :  { %398 = vst [vmem:[%s752_s3 + $0x38] sm:$0xff] %v382_v0  ;;  %406 = vst [vmem:[%s752_s3 + $0x78] sm:$0xff] %v390_v1 }

// kernel: enet_forward.105
= control target key start
LH: loop header
LB: loop body
LE: loop exit
PB: predicated region body
PF: predicated region fallthrough
CT: control target
= control target key end

     0   :  { %s425_s1 = inlined_call_operand.vmem [shape: bf16[256,128], index: 1, kind: input, shape index: {}]   ;;  %s426_s0 = inlined_call_operand.vmem [shape: bf16[32,256], index: 0, kind: input, shape index: {}]   ;;  %s427_s2 = inlined_call_operand.vmem [shape: f32[1,128], index: 2, kind: input, shape index: {}]   ;;  %s428_s3 = inlined_call_operand.vmem [shape: f32[32,128], index: 3, kind: output, shape index: {}]  }
   0x1   :  { %v308_v0 = vld [vmem:[%s425_s1 + $0x40] sm:$0xff]   ;;  %v310_v2 = vld [vmem:[%s425_s1 + $0x48] sm:$0xff]   ;;  %v312_v4 = vld [vmem:[%s425_s1 + $0x50] sm:$0xff]  }
   0x2   :  { %v309_v1 = vld [vmem:[%s425_s1] sm:$0xff]   ;;  %264 = vmatprep.subr.bf16.mxu0 %v308_v0  ;;  %292 = vmatprep.subr.bf16.mxu1 %v308_v0  ;;  %v311_v3 = vld [vmem:[%s425_s1 + $0x8] sm:$0xff]   ;;  %v313_v5 = vld [vmem:[%s425_s1 + $0x10] sm:$0xff]  }
   0x3   :  { %265 = vmatpush3.bf16.msra.mxu0 %v309_v1  ;;  %300 = vmatpush3.bf16.msra.mxu1 %v309_v1  ;;  %v314_v6 = vld [vmem:[%s425_s1 + $0x58] sm:$0xff]   ;;  %v316_v8 = vld [vmem:[%s425_s1 + $0x60] sm:$0xff]   ;;  %v318_v10 = vld [vmem:[%s425_s1 + $0x68] sm:$0xff]  }
   0x4   :  { %266 = vmatprep.subr.bf16.mxu0 %v310_v2  ;;  %293 = vmatprep.subr.bf16.mxu1 %v310_v2  ;;  %v315_v7 = vld [vmem:[%s425_s1 + $0x18] sm:$0xff]   ;;  %v317_v9 = vld [vmem:[%s425_s1 + $0x20] sm:$0xff]   ;;  %v319_v13 = vld [vmem:[%s425_s1 + $0x28] sm:$0xff]  }
   0x5   :  { %v326_v11 = vld [vmem:[%s426_s0 + $0x4] ss:$8 sps:$4 sm:$0xff]   ;;  %v329_v12 = vld [vmem:[%s426_s0 + $0x14] ss:$8 sps:$4 sm:$0xff]   ;;  %v324_v18 = vld [vmem:[%s426_s0] ss:$8 sps:$4 sm:$0xff]  }
   0x6   :  { %v320_v14 = vld [vmem:[%s425_s1 + $0x70] sm:$0xff]   ;;  %206 = vmatprep.mubr.bf16.mxu0 %v326_v11  ;;  %214 = vmatprep.mubr.bf16.mxu1 %v329_v12  ;;  %v322_v16 = vld [vmem:[%s425_s1 + $0x78] sm:$0xff]   ;;  %v243_v22 = vld [vmem:[%s427_s2] ss:$0 sm:$0xff] }
   0x7   :  { %267 = vmatpush3.bf16.msra.mxu0 %v311_v3  ;;  %301 = vmatpush3.bf16.msra.mxu1 %v311_v3  ;;  %v321_v15 = vld [vmem:[%s425_s1 + $0x30] sm:$0xff]   ;;  %v323_v17 = vld [vmem:[%s425_s1 + $0x38] sm:$0xff]  }
   0x8   :  { %268 = vmatprep.subr.bf16.mxu0 %v312_v4  ;;  %294 = vmatprep.subr.bf16.mxu1 %v312_v4  ;;  %v327_v19 = vld [vmem:[%s426_s0 + $0x10] ss:$8 sps:$4 sm:$0xff]  }
   0xb   :  { %269 = vmatpush3.bf16.msra.mxu0 %v313_v5  ;;  %302 = vmatpush3.bf16.msra.mxu1 %v313_v5 }
   0xc   :  { %270 = vmatprep.subr.bf16.mxu0 %v314_v6  ;;  %295 = vmatprep.subr.bf16.mxu1 %v314_v6 }
   0xf   :  { %271 = vmatpush3.bf16.msra.mxu0 %v315_v7  ;;  %303 = vmatpush3.bf16.msra.mxu1 %v315_v7 }
  0x10   :  { %272 = vmatprep.subr.bf16.mxu0 %v316_v8  ;;  %296 = vmatprep.subr.bf16.mxu1 %v316_v8 }
  0x13   :  { %273 = vmatpush3.bf16.msra.mxu0 %v317_v9  ;;  %304 = vmatpush3.bf16.msra.mxu1 %v317_v9 }
  0x14   :  { %274 = vmatprep.subr.bf16.mxu0 %v318_v10  ;;  %297 = vmatprep.subr.bf16.mxu1 %v318_v10 }
  0x17   :  { %275 = vmatpush3.bf16.msra.mxu0 %v319_v13  ;;  %305 = vmatpush3.bf16.msra.mxu1 %v319_v13 }
  0x18   :  { %276 = vmatprep.subr.bf16.mxu0 %v320_v14  ;;  %298 = vmatprep.subr.bf16.mxu1 %v320_v14 }
  0x1b   :  { %277 = vmatpush3.bf16.msra.mxu0 %v321_v15  ;;  %306 = vmatpush3.bf16.msra.mxu1 %v321_v15 }
  0x1c   :  { %278 = vmatprep.subr.bf16.mxu0 %v322_v16  ;;  %299 = vmatprep.subr.bf16.mxu1 %v322_v16 }
  0x1f   :  { %279 = vmatpush3.bf16.msra.mxu0 %v323_v17  ;;  %307 = vmatpush3.bf16.msra.mxu1 %v323_v17 }
  0x22   :  { %207 = vmatmul.mubr.bf16.vlgmr.msra.gmra.mrb[0].mxu0 %v324_v18  ;;  %215 = vmatmul.mubr.bf16.vlgmr.msra.gmra.mrb[0].mxu1 %v327_v19 }
  0xf5   :  { %v280_v20 = vpop.f32.mrb[0].mxu0  ;;  %v286_v21 = vpop.f32.mrb[0].mxu1 }
  0xf6   :  { %v281_v23 = vpop.f32.mrb[1].mxu0  ;;  %v287_v24 = vpop.f32.mrb[1].mxu1 }
  0xf7   :  { %v282_v25 = vadd.f32 %v281_v23, %v280_v20  ;;  %v288_v26 = vadd.f32 %v287_v24, %v286_v21  ;;  %v283_v27 = vpop.f32.mrb[2].mxu0  ;;  %v289_v28 = vpop.f32.mrb[2].mxu1 }
  0xf8   :  { %v284_v29 = vpop.f32.mrb[3].mxu0  ;;  %v290_v30 = vpop.f32.mrb[3].mxu1 }
  0xf9   :  { %v209_v31 = vadd.f32 %v282_v25, %v243_v22  ;;  %v217_v32 = vadd.f32 %v288_v26, %v243_v22  ;;  %v285_v33 = vadd.f32 %v284_v29, %v283_v27  ;;  %v291_v34 = vadd.f32 %v290_v30, %v289_v28 }
  0xfb   :  { %vm223_vm0 = vcmp.gt.f32.partialorder %v209_v31, 0.0  ;;  %v227_v35 = vmul.f32 0.25, %v209_v31  ;;  %vm225_vm1 = vcmp.gt.f32.partialorder %v217_v32, 0.0  ;;  %v229_v36 = vmul.f32 0.25, %v217_v32 }
  0xfc   :  { %v212_v37 = vadd.f32 %v285_v33, %v243_v22  ;;  %v220_v38 = vadd.f32 %v291_v34, %v243_v22 }
  0xfd   :  { %v231_v39 = vsel %vm223_vm0, %v209_v31, %v227_v35  ;;  %v233_v40 = vsel %vm225_vm1, %v217_v32, %v229_v36 }
  0xfe   :  { %235 = vst [vmem:[%s428_s3] sm:$0xff] %v231_v39  ;;  %237 = vst [vmem:[%s428_s3 + $0x10] sm:$0xff] %v233_v40  ;;  %vm224_vm2 = vcmp.gt.f32.partialorder %v212_v37, 0.0  ;;  %v228_v41 = vmul.f32 0.25, %v212_v37  ;;  %vm226_vm3 = vcmp.gt.f32.partialorder %v220_v38, 0.0  ;;  %v230_v42 = vmul.f32 0.25, %v220_v38 }
 0x100   :  { %v232_v43 = vsel %vm224_vm2, %v212_v37, %v228_v41  ;;  %v234_v44 = vsel %vm226_vm3, %v220_v38, %v230_v42 }
 0x101   :  { %236 = vst [vmem:[%s428_s3 + $0x8] sm:$0xff] %v232_v43  ;;  %238 = vst [vmem:[%s428_s3 + $0x18] sm:$0xff] %v234_v44 }

// kernel: enet_forward.108
= control target key start
LH: loop header
LB: loop body
LE: loop exit
PB: predicated region body
PF: predicated region fallthrough
CT: control target
= control target key end

     0   :  { %s287_s1 = inlined_call_operand.vmem [shape: bf16[128,128], index: 1, kind: input, shape index: {}]   ;;  %s288_s0 = inlined_call_operand.vmem [shape: bf16[32,128], index: 0, kind: input, shape index: {}]   ;;  %s289_s2 = inlined_call_operand.vmem [shape: f32[1,128], index: 2, kind: input, shape index: {}]   ;;  %s290_s3 = inlined_call_operand.vmem [shape: f32[32,128], index: 3, kind: output, shape index: {}]  }
   0x1   :  { %v212_v0 = vld [vmem:[%s287_s1] sm:$0xff]   ;;  %v213_v1 = vld [vmem:[%s287_s1 + $0x8] sm:$0xff]   ;;  %v214_v2 = vld [vmem:[%s287_s1 + $0x10] sm:$0xff]  }
   0x2   :  { %192 = vmatprep.subr.bf16.mxu0 %v212_v0  ;;  %v215_v3 = vld [vmem:[%s287_s1 + $0x18] sm:$0xff]   ;;  %v220_v4 = vld [vmem:[%s288_s0] sm:$0xff]   ;;  %v217_v6 = vld [vmem:[%s287_s1 + $0x28] sm:$0xff]  }
   0x3   :  { %193 = vmatpush3.bf16.msra.mxu0 %v212_v0  ;;  %208 = vmatprep.mubr.bf16.mxu0 %v220_v4  ;;  %v216_v5 = vld [vmem:[%s287_s1 + $0x20] sm:$0xff]   ;;  %v218_v7 = vld [vmem:[%s287_s1 + $0x30] sm:$0xff]   ;;  %v219_v8 = vld [vmem:[%s287_s1 + $0x38] sm:$0xff]  }
   0x4   :  { %194 = vmatprep.subr.bf16.mxu0 %v213_v1  ;;  %v221_v9 = vld [vmem:[%s288_s0 + $0x8] sm:$0xff]   ;;  %v171_v10 = vld [vmem:[%s289_s2] ss:$0 sm:$0xff] }
   0x7   :  { %195 = vmatpush3.bf16.msra.mxu0 %v213_v1 }
   0x8   :  { %196 = vmatprep.subr.bf16.mxu0 %v214_v2 }
   0xb   :  { %197 = vmatpush3.bf16.msra.mxu0 %v214_v2 }
   0xc   :  { %198 = vmatprep.subr.bf16.mxu0 %v215_v3 }
   0xf   :  { %199 = vmatpush3.bf16.msra.mxu0 %v215_v3 }
  0x10   :  { %200 = vmatprep.subr.bf16.mxu0 %v216_v5 }
  0x13   :  { %201 = vmatpush3.bf16.msra.mxu0 %v216_v5 }
  0x14   :  { %202 = vmatprep.subr.bf16.mxu0 %v217_v6 }
  0x17   :  { %203 = vmatpush3.bf16.msra.mxu0 %v217_v6 }
  0x18   :  { %204 = vmatprep.subr.bf16.mxu0 %v218_v7 }
  0x1b   :  { %205 = vmatpush3.bf16.msra.mxu0 %v218_v7 }
  0x1c   :  { %206 = vmatprep.subr.bf16.mxu0 %v219_v8 }
  0x1f   :  { %207 = vmatpush3.bf16.msra.mxu0 %v219_v8 }
  0x22   :  { %209 = vmatmul.mubr.bf16.vlgmr.msra.gmra.mrb[0].mxu0 %v221_v9 }
  0xf5   :  { %v210_v11 = vpop.f32.mrb[0].mxu0 }
  0xf6   :  { %v145_v12 = vadd.f32 %v210_v11, %v171_v10  ;;  %v136_v13 = vpop.f32.mrb[1].mxu0 }
  0xf7   :  { %v137_v14 = vadd.f32 %v171_v10, %v136_v13  ;;  %v211_v15 = vpop.f32.mrb[2].mxu0 }
  0xf8   :  { %vm153_vm0 = vcmp.gt.f32.partialorder %v145_v12, 0.0  ;;  %v157_v16 = vmul.f32 0.25, %v145_v12  ;;  %v148_v17 = vadd.f32 %v211_v15, %v171_v10  ;;  %v139_v18 = vpop.f32.mrb[3].mxu0 }
  0xf9   :  { %vm151_vm1 = vcmp.gt.f32.partialorder %v137_v14, 0.0  ;;  %v155_v19 = vmul.f32 0.25, %v137_v14  ;;  %v140_v20 = vadd.f32 %v171_v10, %v139_v18 }
  0xfa   :  { %v161_v21 = vsel %vm153_vm0, %v145_v12, %v157_v16  ;;  %vm154_vm2 = vcmp.gt.f32.partialorder %v148_v17, 0.0  ;;  %v158_v22 = vmul.f32 0.25, %v148_v17 }
  0xfb   :  { %165 = vst [vmem:[%s290_s3 + $0x10] sm:$0xff] %v161_v21  ;;  %v159_v23 = vsel %vm151_vm1, %v137_v14, %v155_v19  ;;  %vm152_vm3 = vcmp.gt.f32.partialorder %v140_v20, 0.0  ;;  %v156_v24 = vmul.f32 0.25, %v140_v20 }
  0xfc   :  { %163 = vst [vmem:[%s290_s3] sm:$0xff] %v159_v23  ;;  %v162_v25 = vsel %vm154_vm2, %v148_v17, %v158_v22 }
  0xfd   :  { %166 = vst [vmem:[%s290_s3 + $0x18] sm:$0xff] %v162_v25  ;;  %v160_v26 = vsel %vm152_vm3, %v140_v20, %v156_v24 }
  0xfe   :  { %164 = vst [vmem:[%s290_s3 + $0x8] sm:$0xff] %v160_v26 }

// kernel: enet_forward.107
= control target key start
LH: loop header
LB: loop body
LE: loop exit
PB: predicated region body
PF: predicated region fallthrough
CT: control target
= control target key end

     0   :  { %s327_s1 = inlined_call_operand.vmem [shape: bf16[128,128], index: 1, kind: input, shape index: {}]   ;;  %s328_s0 = inlined_call_operand.vmem [shape: bf16[32,128], index: 0, kind: input, shape index: {}]   ;;  %s329_s2 = inlined_call_operand.vmem [shape: f32[1,128], index: 2, kind: input, shape index: {}]   ;;  %s330_s3 = inlined_call_operand.vmem [shape: f32[32,128], index: 3, kind: input, shape index: {}]   ;;  %s331_s4 = inlined_call_operand.vmem [shape: f32[32,128], index: 4, kind: output, shape index: {}]  }
   0x1   :  { %v235_v0 = vld [vmem:[%s327_s1] sm:$0xff]   ;;  %v236_v1 = vld [vmem:[%s327_s1 + $0x8] sm:$0xff]   ;;  %v237_v2 = vld [vmem:[%s327_s1 + $0x10] sm:$0xff]  }
   0x2   :  { %215 = vmatprep.subr.bf16.mxu0 %v235_v0  ;;  %v238_v3 = vld [vmem:[%s327_s1 + $0x18] sm:$0xff]   ;;  %v243_v4 = vld [vmem:[%s328_s0] sm:$0xff]   ;;  %v240_v6 = vld [vmem:[%s327_s1 + $0x28] sm:$0xff]  }
   0x3   :  { %216 = vmatpush3.bf16.msra.mxu0 %v235_v0  ;;  %231 = vmatprep.mubr.bf16.mxu0 %v243_v4  ;;  %v239_v5 = vld [vmem:[%s327_s1 + $0x20] sm:$0xff]   ;;  %v241_v7 = vld [vmem:[%s327_s1 + $0x30] sm:$0xff]   ;;  %v242_v8 = vld [vmem:[%s327_s1 + $0x38] sm:$0xff]  }
   0x4   :  { %217 = vmatprep.subr.bf16.mxu0 %v236_v1  ;;  %v244_v9 = vld [vmem:[%s328_s0 + $0x8] sm:$0xff]   ;;  %v194_v10 = vld [vmem:[%s329_s2] ss:$0 sm:$0xff]  ;;  %v168_v17 = vld [vmem:[%s330_s3 + $0x10] sm:$0xff] }
   0x5   :  { %v166_v21 = vld [vmem:[%s330_s3] sm:$0xff]  ;;  %v169_v25 = vld [vmem:[%s330_s3 + $0x18] sm:$0xff]  ;;  %v167_v29 = vld [vmem:[%s330_s3 + $0x8] sm:$0xff] }
   0x7   :  { %218 = vmatpush3.bf16.msra.mxu0 %v236_v1 }
   0x8   :  { %219 = vmatprep.subr.bf16.mxu0 %v237_v2 }
   0xb   :  { %220 = vmatpush3.bf16.msra.mxu0 %v237_v2 }
   0xc   :  { %221 = vmatprep.subr.bf16.mxu0 %v238_v3 }
   0xf   :  { %222 = vmatpush3.bf16.msra.mxu0 %v238_v3 }
  0x10   :  { %223 = vmatprep.subr.bf16.mxu0 %v239_v5 }
  0x13   :  { %224 = vmatpush3.bf16.msra.mxu0 %v239_v5 }
  0x14   :  { %225 = vmatprep.subr.bf16.mxu0 %v240_v6 }
  0x17   :  { %226 = vmatpush3.bf16.msra.mxu0 %v240_v6 }
  0x18   :  { %227 = vmatprep.subr.bf16.mxu0 %v241_v7 }
  0x1b   :  { %228 = vmatpush3.bf16.msra.mxu0 %v241_v7 }
  0x1c   :  { %229 = vmatprep.subr.bf16.mxu0 %v242_v8 }
  0x1f   :  { %230 = vmatpush3.bf16.msra.mxu0 %v242_v8 }
  0x22   :  { %232 = vmatmul.mubr.bf16.vlgmr.msra.gmra.mrb[0].mxu0 %v244_v9 }
  0xf5   :  { %v233_v11 = vpop.f32.mrb[0].mxu0 }
  0xf6   :  { %v148_v12 = vadd.f32 %v233_v11, %v194_v10  ;;  %v139_v13 = vpop.f32.mrb[1].mxu0 }
  0xf7   :  { %v140_v14 = vadd.f32 %v194_v10, %v139_v13  ;;  %v234_v15 = vpop.f32.mrb[2].mxu0 }
  0xf8   :  { %vm156_vm0 = vcmp.gt.f32.partialorder %v148_v12, 0.0  ;;  %v160_v16 = vmul.f32 0.25, %v148_v12  ;;  %v151_v18 = vadd.f32 %v234_v15, %v194_v10  ;;  %v142_v19 = vpop.f32.mrb[3].mxu0 }
  0xf9   :  { %vm154_vm1 = vcmp.gt.f32.partialorder %v140_v14, 0.0  ;;  %v158_v20 = vmul.f32 0.25, %v140_v14  ;;  %v143_v22 = vadd.f32 %v194_v10, %v142_v19 }
  0xfa   :  { %v164_v23 = vsel %vm156_vm0, %v148_v12, %v160_v16  ;;  %vm157_vm2 = vcmp.gt.f32.partialorder %v151_v18, 0.0  ;;  %v161_v24 = vmul.f32 0.25, %v151_v18 }
  0xfb   :  { %v172_v26 = vadd.f32 %v168_v17, %v164_v23  ;;  %v162_v27 = vsel %vm154_vm1, %v140_v14, %v158_v20  ;;  %vm155_vm3 = vcmp.gt.f32.partialorder %v143_v22, 0.0  ;;  %v159_v28 = vmul.f32 0.25, %v143_v22 }
  0xfc   :  { %v170_v30 = vadd.f32 %v166_v21, %v162_v27  ;;  %v165_v31 = vsel %vm157_vm2, %v151_v18, %v161_v24 }
  0xfd   :  { %vm176_vm4 = vcmp.gt.f32.partialorder %v172_v26, 0.0  ;;  %v180_v32 = vmul.f32 0.25, %v172_v26  ;;  %v173_v33 = vadd.f32 %v169_v25, %v165_v31  ;;  %v163_v34 = vsel %vm155_vm3, %v143_v22, %v159_v28 }
  0xfe   :  { %vm174_vm5 = vcmp.gt.f32.partialorder %v170_v30, 0.0  ;;  %v178_v35 = vmul.f32 0.25, %v170_v30  ;;  %v171_v36 = vadd.f32 %v167_v29, %v163_v34 }
  0xff   :  { %v184_v37 = vsel %vm176_vm4, %v172_v26, %v180_v32  ;;  %vm177_vm6 = vcmp.gt.f32.partialorder %v173_v33, 0.0  ;;  %v181_v38 = vmul.f32 0.25, %v173_v33 }
 0x100   :  { %188 = vst [vmem:[%s331_s4 + $0x10] sm:$0xff] %v184_v37  ;;  %v182_v39 = vsel %vm174_vm5, %v170_v30, %v178_v35  ;;  %vm175_vm7 = vcmp.gt.f32.partialorder %v171_v36, 0.0  ;;  %v179_v40 = vmul.f32 0.25, %v171_v36 }
 0x101   :  { %186 = vst [vmem:[%s331_s4] sm:$0xff] %v182_v39  ;;  %v185_v41 = vsel %vm177_vm6, %v173_v33, %v181_v38 }
 0x102   :  { %189 = vst [vmem:[%s331_s4 + $0x18] sm:$0xff] %v185_v41  ;;  %v183_v42 = vsel %vm175_vm7, %v171_v36, %v179_v40 }
 0x103   :  { %187 = vst [vmem:[%s331_s4 + $0x8] sm:$0xff] %v183_v42 }

// kernel: enet_forward.160
= control target key start
LH: loop header
LB: loop body
LE: loop exit
PB: predicated region body
PF: predicated region fallthrough
CT: control target
= control target key end

     0   :  { %s275_s1 = inlined_call_operand.vmem [shape: bf16[128,128], index: 1, kind: input, shape index: {}]   ;;  %s276_s0 = inlined_call_operand.vmem [shape: bf16[32,128], index: 0, kind: input, shape index: {}]   ;;  %s277_s2 = inlined_call_operand.vmem [shape: f32[1,128], index: 2, kind: input, shape index: {}]   ;;  %s278_s3 = inlined_call_operand.vmem [shape: f32[32,128], index: 3, kind: output, shape index: {}]  }
   0x1   :  { %v200_v0 = vld [vmem:[%s275_s1] sm:$0xff]   ;;  %v201_v1 = vld [vmem:[%s275_s1 + $0x8] sm:$0xff]   ;;  %v202_v2 = vld [vmem:[%s275_s1 + $0x10] sm:$0xff]  }
   0x2   :  { %180 = vmatprep.subr.bf16.mxu0 %v200_v0  ;;  %v203_v3 = vld [vmem:[%s275_s1 + $0x18] sm:$0xff]   ;;  %v208_v4 = vld [vmem:[%s276_s0] sm:$0xff]   ;;  %v205_v6 = vld [vmem:[%s275_s1 + $0x28] sm:$0xff]  }
   0x3   :  { %181 = vmatpush3.bf16.msra.mxu0 %v200_v0  ;;  %196 = vmatprep.mubr.bf16.mxu0 %v208_v4  ;;  %v204_v5 = vld [vmem:[%s275_s1 + $0x20] sm:$0xff]   ;;  %v206_v7 = vld [vmem:[%s275_s1 + $0x30] sm:$0xff]   ;;  %v207_v8 = vld [vmem:[%s275_s1 + $0x38] sm:$0xff]  }
   0x4   :  { %182 = vmatprep.subr.bf16.mxu0 %v201_v1  ;;  %v209_v9 = vld [vmem:[%s276_s0 + $0x8] sm:$0xff]   ;;  %v159_v10 = vld [vmem:[%s277_s2] ss:$0 sm:$0xff] }
   0x7   :  { %183 = vmatpush3.bf16.msra.mxu0 %v201_v1 }
   0x8   :  { %184 = vmatprep.subr.bf16.mxu0 %v202_v2 }
   0xb   :  { %185 = vmatpush3.bf16.msra.mxu0 %v202_v2 }
   0xc   :  { %186 = vmatprep.subr.bf16.mxu0 %v203_v3 }
   0xf   :  { %187 = vmatpush3.bf16.msra.mxu0 %v203_v3 }
  0x10   :  { %188 = vmatprep.subr.bf16.mxu0 %v204_v5 }
  0x13   :  { %189 = vmatpush3.bf16.msra.mxu0 %v204_v5 }
  0x14   :  { %190 = vmatprep.subr.bf16.mxu0 %v205_v6 }
  0x17   :  { %191 = vmatpush3.bf16.msra.mxu0 %v205_v6 }
  0x18   :  { %192 = vmatprep.subr.bf16.mxu0 %v206_v7 }
  0x1b   :  { %193 = vmatpush3.bf16.msra.mxu0 %v206_v7 }
  0x1c   :  { %194 = vmatprep.subr.bf16.mxu0 %v207_v8 }
  0x1f   :  { %195 = vmatpush3.bf16.msra.mxu0 %v207_v8 }
  0x22   :  { %197 = vmatmul.mubr.bf16.vlgmr.msra.gmra.mrb[0].mxu0 %v209_v9 }
  0xf5   :  { %v198_v11 = vpop.f32.mrb[0].mxu0 }
  0xf6   :  { %v145_v12 = vadd.f32 %v198_v11, %v159_v10  ;;  %v136_v13 = vpop.f32.mrb[1].mxu0 }
  0xf7   :  { %v137_v14 = vadd.f32 %v159_v10, %v136_v13  ;;  %v199_v15 = vpop.f32.mrb[2].mxu0 }
  0xf8   :  { %153 = vst [vmem:[%s278_s3 + $0x10] sm:$0xff] %v145_v12  ;;  %v148_v16 = vadd.f32 %v199_v15, %v159_v10  ;;  %v139_v17 = vpop.f32.mrb[3].mxu0 }
  0xf9   :  { %151 = vst [vmem:[%s278_s3] sm:$0xff] %v137_v14  ;;  %v140_v18 = vadd.f32 %v159_v10, %v139_v17 }
  0xfa   :  { %154 = vst [vmem:[%s278_s3 + $0x18] sm:$0xff] %v148_v16 }
  0xfb   :  { %152 = vst [vmem:[%s278_s3 + $0x8] sm:$0xff] %v140_v18 }

// kernel: enet_forward.161
= control target key start
LH: loop header
LB: loop body
LE: loop exit
PB: predicated region body
PF: predicated region fallthrough
CT: control target
= control target key end

     0   :  { %s279_s1 = inlined_call_operand.vmem [shape: bf16[128,128], index: 1, kind: input, shape index: {}]   ;;  %s280_s0 = inlined_call_operand.vmem [shape: bf16[32,128], index: 0, kind: input, shape index: {}]   ;;  %s281_s2 = inlined_call_operand.vmem [shape: f32[1,128], index: 2, kind: input, shape index: {}]   ;;  %s282_s3 = inlined_call_operand.vmem [shape: f32[32,128], index: 3, kind: output, shape index: {}]  }
   0x1   :  { %v204_v0 = vld [vmem:[%s279_s1] sm:$0xff]   ;;  %v205_v1 = vld [vmem:[%s279_s1 + $0x8] sm:$0xff]   ;;  %v206_v2 = vld [vmem:[%s279_s1 + $0x10] sm:$0xff]  }
   0x2   :  { %184 = vmatprep.subr.bf16.mxu0 %v204_v0  ;;  %v207_v3 = vld [vmem:[%s279_s1 + $0x18] sm:$0xff]   ;;  %v212_v4 = vld [vmem:[%s280_s0] sm:$0xff]   ;;  %v209_v6 = vld [vmem:[%s279_s1 + $0x28] sm:$0xff]  }
   0x3   :  { %185 = vmatpush3.bf16.msra.mxu0 %v204_v0  ;;  %200 = vmatprep.mubr.bf16.mxu0 %v212_v4  ;;  %v208_v5 = vld [vmem:[%s279_s1 + $0x20] sm:$0xff]   ;;  %v210_v7 = vld [vmem:[%s279_s1 + $0x30] sm:$0xff]   ;;  %v211_v8 = vld [vmem:[%s279_s1 + $0x38] sm:$0xff]  }
   0x4   :  { %186 = vmatprep.subr.bf16.mxu0 %v205_v1  ;;  %v213_v9 = vld [vmem:[%s280_s0 + $0x8] sm:$0xff]   ;;  %v163_v10 = vld [vmem:[%s281_s2] ss:$0 sm:$0xff] }
   0x7   :  { %187 = vmatpush3.bf16.msra.mxu0 %v205_v1 }
   0x8   :  { %188 = vmatprep.subr.bf16.mxu0 %v206_v2 }
   0xb   :  { %189 = vmatpush3.bf16.msra.mxu0 %v206_v2 }
   0xc   :  { %190 = vmatprep.subr.bf16.mxu0 %v207_v3 }
   0xf   :  { %191 = vmatpush3.bf16.msra.mxu0 %v207_v3 }
  0x10   :  { %192 = vmatprep.subr.bf16.mxu0 %v208_v5 }
  0x13   :  { %193 = vmatpush3.bf16.msra.mxu0 %v208_v5 }
  0x14   :  { %194 = vmatprep.subr.bf16.mxu0 %v209_v6 }
  0x17   :  { %195 = vmatpush3.bf16.msra.mxu0 %v209_v6 }
  0x18   :  { %196 = vmatprep.subr.bf16.mxu0 %v210_v7 }
  0x1b   :  { %197 = vmatpush3.bf16.msra.mxu0 %v210_v7 }
  0x1c   :  { %198 = vmatprep.subr.bf16.mxu0 %v211_v8 }
  0x1f   :  { %199 = vmatpush3.bf16.msra.mxu0 %v211_v8 }
  0x22   :  { %201 = vmatmul.mubr.bf16.vlgmr.msra.gmra.mrb[0].mxu0 %v213_v9 }
  0xf5   :  { %v202_v11 = vpop.f32.mrb[0].mxu0 }
  0xf6   :  { %v145_v12 = vadd.f32 %v202_v11, %v163_v10  ;;  %v136_v13 = vpop.f32.mrb[1].mxu0 }
  0xf7   :  { %v137_v14 = vadd.f32 %v163_v10, %v136_v13  ;;  %v203_v15 = vpop.f32.mrb[2].mxu0 }
  0xf8   :  { %v153_v16 = vmax.f32 %v145_v12, 0.0  ;;  %v148_v17 = vadd.f32 %v203_v15, %v163_v10  ;;  %v139_v18 = vpop.f32.mrb[3].mxu0 }
  0xf9   :  { %v151_v19 = vmax.f32 %v137_v14, 0.0  ;;  %v140_v20 = vadd.f32 %v163_v10, %v139_v18 }
  0xfa   :  { %157 = vst [vmem:[%s282_s3 + $0x10] sm:$0xff] %v153_v16  ;;  %v154_v21 = vmax.f32 %v148_v17, 0.0 }
  0xfb   :  { %155 = vst [vmem:[%s282_s3] sm:$0xff] %v151_v19  ;;  %v152_v22 = vmax.f32 %v140_v20, 0.0 }
  0xfc   :  { %158 = vst [vmem:[%s282_s3 + $0x18] sm:$0xff] %v154_v21 }
  0xfd   :  { %156 = vst [vmem:[%s282_s3 + $0x8] sm:$0xff] %v152_v22 }

// kernel: enet_forward.109
= control target key start
LH: loop header
LB: loop body
LE: loop exit
PB: predicated region body
PF: predicated region fallthrough
CT: control target
= control target key end

     0   :  { %s618_s1 = inlined_call_operand.vmem [shape: bf16[384,128], index: 1, kind: input, shape index: {}]   ;;  %s619_s0 = inlined_call_operand.vmem [shape: bf16[32,384], index: 0, kind: input, shape index: {}]   ;;  %s620_s2 = inlined_call_operand.vmem [shape: f32[1,128], index: 2, kind: input, shape index: {}]   ;;  %s621_s3 = inlined_call_operand.vmem [shape: f32[32,128], index: 3, kind: output, shape index: {}]  }
   0x1   :  { %v461_v0 = vld [vmem:[%s618_s1 + $0x40] sm:$0xff]   ;;  %v463_v2 = vld [vmem:[%s618_s1 + $0x48] sm:$0xff]   ;;  %v466_v5 = vld [vmem:[%s618_s1 + $0x50] sm:$0xff]  }
   0x2   :  { %v462_v1 = vld [vmem:[%s618_s1] sm:$0xff]   ;;  %403 = vmatprep.subr.bf16.mxu0 %v461_v0  ;;  %v465_v4 = vld [vmem:[%s618_s1 + $0x8] sm:$0xff]   ;;  %v468_v7 = vld [vmem:[%s618_s1 + $0x10] sm:$0xff]  }
   0x3   :  { %404 = vmatpush3.bf16.msra.mxu0 %v462_v1  ;;  %v464_v3 = vld [vmem:[%s618_s1 + $0x80] sm:$0xff]   ;;  %v467_v6 = vld [vmem:[%s618_s1 + $0x88] sm:$0xff]   ;;  %v469_v8 = vld [vmem:[%s618_s1 + $0x58] sm:$0xff]  }
   0x4   :  { %405 = vmatprep.subr.bf16.mxu0 %v463_v2  ;;  %441 = vmatprep.subr.bf16.mxu1 %v464_v3  ;;  %v470_v9 = vld [vmem:[%s618_s1 + $0x90] sm:$0xff]   ;;  %v471_v10 = vld [vmem:[%s618_s1 + $0x18] sm:$0xff]   ;;  %v472_v11 = vld [vmem:[%s618_s1 + $0x60] sm:$0xff]  }
   0x5   :  { %442 = vmatpush3.bf16.msra.mxu1 %v464_v3  ;;  %v473_v12 = vld [vmem:[%s618_s1 + $0x98] sm:$0xff]   ;;  %v474_v13 = vld [vmem:[%s618_s1 + $0x20] sm:$0xff]   ;;  %v475_v15 = vld [vmem:[%s618_s1 + $0x68] sm:$0xff]  }
   0x6   :  { %443 = vmatprep.subr.bf16.mxu1 %v467_v6  ;;  %v476_v14 = vld [vmem:[%s618_s1 + $0xa0] sm:$0xff]   ;;  %v477_v16 = vld [vmem:[%s618_s1 + $0x28] sm:$0xff]   ;;  %v478_v18 = vld [vmem:[%s618_s1 + $0x70] sm:$0xff]  }
   0x7   :  { %406 = vmatpush3.bf16.msra.mxu0 %v465_v4  ;;  %v479_v17 = vld [vmem:[%s618_s1 + $0xa8] sm:$0xff]   ;;  %v480_v19 = vld [vmem:[%s618_s1 + $0x30] sm:$0xff]   ;;  %v481_v20 = vld [vmem:[%s618_s1 + $0x78] sm:$0xff]  }
   0x8   :  { %407 = vmatprep.subr.bf16.mxu0 %v466_v5  ;;  %v482_v21 = vld [vmem:[%s618_s1 + $0xb0] sm:$0xff]   ;;  %v483_v23 = vld [vmem:[%s618_s1 + $0x38] sm:$0xff]   ;;  %v484_v26 = vld [vmem:[%s619_s0] ss:$12 sps:$4 sm:$0xff]  }
   0x9   :  { %444 = vmatpush3.bf16.msra.mxu1 %v467_v6  ;;  %v486_v22 = vld [vmem:[%s619_s0 + $0x4] ss:$12 sps:$4 sm:$0xff]   ;;  %v488_v24 = vld [vmem:[%s619_s0 + $0x8] ss:$12 sps:$4 sm:$0xff]   ;;  %v487_v25 = vld [vmem:[%s618_s1 + $0xb8] sm:$0xff]  }
   0xa   :  { %445 = vmatprep.subr.bf16.mxu1 %v470_v9  ;;  %286 = vmatprep.mubr.bf16.mxu0 %v486_v22  ;;  %v490_v27 = vld [vmem:[%s619_s0 + $0x1c] ss:$12 sps:$4 sm:$0xff]   ;;  %v489_v28 = vld [vmem:[%s619_s0 + $0x20] ss:$12 sps:$4 sm:$0xff]   ;;  %v492_v29 = vld [vmem:[%s619_s0 + $0x18] ss:$12 sps:$4 sm:$0xff]  }
   0xb   :  { %408 = vmatpush3.bf16.msra.mxu0 %v468_v7  ;;  %457 = vmatprep.mubr.bf16.mxu1 %v488_v24  ;;  %v372_v32 = vld [vmem:[%s620_s2] ss:$0 sm:$0xff] }
   0xc   :  { %409 = vmatprep.subr.bf16.mxu0 %v469_v8 }
   0xd   :  { %446 = vmatpush3.bf16.msra.mxu1 %v470_v9 }
   0xe   :  { %447 = vmatprep.subr.bf16.mxu1 %v473_v12 }
   0xf   :  { %410 = vmatpush3.bf16.msra.mxu0 %v471_v10 }
  0x10   :  { %411 = vmatprep.subr.bf16.mxu0 %v472_v11 }
  0x11   :  { %448 = vmatpush3.bf16.msra.mxu1 %v473_v12 }
  0x12   :  { %449 = vmatprep.subr.bf16.mxu1 %v476_v14 }
  0x13   :  { %412 = vmatpush3.bf16.msra.mxu0 %v474_v13 }
  0x14   :  { %413 = vmatprep.subr.bf16.mxu0 %v475_v15 }
  0x15   :  { %450 = vmatpush3.bf16.msra.mxu1 %v476_v14 }
  0x16   :  { %451 = vmatprep.subr.bf16.mxu1 %v479_v17 }
  0x17   :  { %414 = vmatpush3.bf16.msra.mxu0 %v477_v16 }
  0x18   :  { %415 = vmatprep.subr.bf16.mxu0 %v478_v18 }
  0x19   :  { %452 = vmatpush3.bf16.msra.mxu1 %v479_v17 }
  0x1a   :  { %453 = vmatprep.subr.bf16.mxu1 %v482_v21 }
  0x1b   :  { %416 = vmatpush3.bf16.msra.mxu0 %v480_v19 }
  0x1c   :  { %417 = vmatprep.subr.bf16.mxu0 %v481_v20 }
  0x1d   :  { %454 = vmatpush3.bf16.msra.mxu1 %v482_v21 }
  0x1e   :  { %455 = vmatprep.subr.bf16.mxu1 %v487_v25 }
  0x1f   :  { %418 = vmatpush3.bf16.msra.mxu0 %v483_v23 }
  0x21   :  { %456 = vmatpush3.bf16.msra.mxu1 %v487_v25 }
  0x22   :  { %287 = vmatmul.mubr.bf16.vlgmr.msra.gmra.mrb[0].mxu0 %v484_v26 }
  0x23   :  { %294 = vmatprep.mubr.bf16.mxu0 %v490_v27 }
  0x24   :  { %458 = vmatmul.mubr.bf16.vlgmr.msra.gmra.mrb[0].mxu1 %v489_v28 }
  0x2a   :  { %295 = vmatmul.mubr.bf16.gmra.mrb[4].mxu0 %v492_v29 }
  0xf5   :  { %v419_v30 = vpop.f32.mrb[0].mxu0 }
  0xf6   :  { %v420_v31 = vpop.f32.mrb[1].mxu0 }
  0xf7   :  { %v421_v33 = vadd.f32 %v420_v31, %v419_v30  ;;  %v422_v34 = vpop.f32.mrb[2].mxu0  ;;  %v459_v36 = vpop.f32.mrb[0].mxu1 }
  0xf8   :  { %v423_v35 = vpop.f32.mrb[3].mxu0  ;;  %v337_v39 = vpop.f32.mrb[1].mxu1 }
  0xf9   :  { %v424_v37 = vadd.f32 %v423_v35, %v422_v34  ;;  %v289_v38 = vadd.f32 %v421_v33, %v372_v32  ;;  %v460_v40 = vpop.f32.mrb[2].mxu1 }
  0xfa   :  { %v340_v43 = vpop.f32.mrb[3].mxu1 }
  0xfb   :  { %v338_v41 = vadd.f32 %v337_v39, %v289_v38  ;;  %v292_v42 = vadd.f32 %v424_v37, %v372_v32 }
  0xfd   :  { %vm352_vm0 = vcmp.gt.f32.partialorder %v338_v41, 0.0  ;;  %v356_v44 = vmul.f32 0.25, %v338_v41  ;;  %v341_v45 = vadd.f32 %v340_v43, %v292_v42  ;;  %v425_v46 = vpop.f32.mrb[4].mxu0 }
  0xfe   :  { %v426_v47 = vpop.f32.mrb[5].mxu0 }
  0xff   :  { %v360_v48 = vsel %vm352_vm0, %v338_v41, %v356_v44  ;;  %vm353_vm1 = vcmp.gt.f32.partialorder %v341_v45, 0.0  ;;  %v357_v49 = vmul.f32 0.25, %v341_v45  ;;  %v427_v50 = vadd.f32 %v426_v47, %v425_v46  ;;  %v428_v51 = vpop.f32.mrb[6].mxu0 }
 0x100   :  { %364 = vst [vmem:[%s621_s3] sm:$0xff] %v360_v48  ;;  %v429_v52 = vpop.f32.mrb[7].mxu0 }
 0x101   :  { %v361_v53 = vsel %vm353_vm1, %v341_v45, %v357_v49  ;;  %v297_v54 = vadd.f32 %v427_v50, %v372_v32  ;;  %v430_v55 = vadd.f32 %v429_v52, %v428_v51 }
 0x102   :  { %365 = vst [vmem:[%s621_s3 + $0x8] sm:$0xff] %v361_v53 }
 0x103   :  { %v346_v56 = vadd.f32 %v459_v36, %v297_v54  ;;  %v300_v57 = vadd.f32 %v430_v55, %v372_v32 }
 0x105   :  { %vm354_vm2 = vcmp.gt.f32.partialorder %v346_v56, 0.0  ;;  %v358_v58 = vmul.f32 0.25, %v346_v56  ;;  %v349_v59 = vadd.f32 %v460_v40, %v300_v57 }
 0x107   :  { %v362_v60 = vsel %vm354_vm2, %v346_v56, %v358_v58  ;;  %vm355_vm3 = vcmp.gt.f32.partialorder %v349_v59, 0.0  ;;  %v359_v61 = vmul.f32 0.25, %v349_v59 }
 0x108   :  { %366 = vst [vmem:[%s621_s3 + $0x10] sm:$0xff] %v362_v60 }
 0x109   :  { %v363_v62 = vsel %vm355_vm3, %v349_v59, %v359_v61 }
 0x10a   :  { %367 = vst [vmem:[%s621_s3 + $0x18] sm:$0xff] %v363_v62 }

// kernel: enet_forward.163
= control target key start
LH: loop header
LB: loop body
LE: loop exit
PB: predicated region body
PF: predicated region fallthrough
CT: control target
= control target key end

     0   :  { %s621_s1 = inlined_call_operand.vmem [shape: bf16[128,128], index: 1, kind: input, shape index: {}]   ;;  %s622_s0 = inlined_call_operand.vmem [shape: bf16[128,128], index: 0, kind: input, shape index: {}]   ;;  %s623_s2 = inlined_call_operand.vmem [shape: f32[1,128], index: 2, kind: input, shape index: {}]   ;;  %s624_s3 = inlined_call_operand.vmem [shape: f32[128,128], index: 3, kind: input, shape index: {}]   ;;  %s625_s4 = inlined_call_operand.vmem [shape: f32[128,128], index: 4, kind: output, shape index: {}]  }
   0x1   :  { %v415_v0 = vld [vmem:[%s621_s1] sm:$0xff]   ;;  %v416_v1 = vld [vmem:[%s621_s1 + $0x8] sm:$0xff]   ;;  %v417_v2 = vld [vmem:[%s621_s1 + $0x10] sm:$0xff]  }
   0x2   :  { %367 = vmatprep.subr.bf16.mxu0 %v415_v0  ;;  %399 = vmatprep.subr.bf16.mxu1 %v415_v0  ;;  %v418_v3 = vld [vmem:[%s621_s1 + $0x18] sm:$0xff]   ;;  %v423_v4 = vld [vmem:[%s622_s0] sm:$0xff]   ;;  %v420_v7 = vld [vmem:[%s621_s1 + $0x28] sm:$0xff]  }
   0x3   :  { %368 = vmatpush3.bf16.msra.mxu0 %v415_v0  ;;  %407 = vmatpush3.bf16.msra.mxu1 %v415_v0  ;;  %v424_v5 = vld [vmem:[%s622_s0 + $0x20] sm:$0xff]   ;;  %v421_v8 = vld [vmem:[%s621_s1 + $0x30] sm:$0xff]   ;;  %v422_v9 = vld [vmem:[%s621_s1 + $0x38] sm:$0xff]  }
   0x4   :  { %369 = vmatprep.subr.bf16.mxu0 %v416_v1  ;;  %400 = vmatprep.subr.bf16.mxu1 %v416_v1  ;;  %v419_v6 = vld [vmem:[%s621_s1 + $0x20] sm:$0xff]   ;;  %v425_v10 = vld [vmem:[%s622_s0 + $0x8] sm:$0xff]   ;;  %v427_v12 = vld [vmem:[%s622_s0 + $0x10] sm:$0xff]  }
   0x5   :  { %383 = vmatprep.mubr.bf16.mxu0 %v423_v4  ;;  %391 = vmatprep.mubr.bf16.mxu1 %v424_v5  ;;  %v426_v11 = vld [vmem:[%s622_s0 + $0x28] sm:$0xff]   ;;  %v428_v13 = vld [vmem:[%s622_s0 + $0x30] sm:$0xff]   ;;  %v429_v14 = vld [vmem:[%s622_s0 + $0x18] sm:$0xff]  }
   0x6   :  { %v430_v15 = vld [vmem:[%s622_s0 + $0x38] sm:$0xff]   ;;  %v507_v16 = vld [vmem:[%s623_s2] ss:$0 sm:$0xff]  ;;  %v268_v23 = vld [vmem:[%s624_s3 + $0x10] sm:$0xff] }
   0x7   :  { %370 = vmatpush3.bf16.msra.mxu0 %v416_v1  ;;  %408 = vmatpush3.bf16.msra.mxu1 %v416_v1  ;;  %v276_v24 = vld [vmem:[%s624_s3 + $0x50] sm:$0xff]  ;;  %v266_v31 = vld [vmem:[%s624_s3] sm:$0xff]  ;;  %v269_v39 = vld [vmem:[%s624_s3 + $0x18] sm:$0xff] }
   0x8   :  { %371 = vmatprep.subr.bf16.mxu0 %v417_v2  ;;  %401 = vmatprep.subr.bf16.mxu1 %v417_v2  ;;  %v274_v32 = vld [vmem:[%s624_s3 + $0x40] sm:$0xff]  ;;  %v277_v40 = vld [vmem:[%s624_s3 + $0x58] sm:$0xff]  ;;  %v267_v47 = vld [vmem:[%s624_s3 + $0x8] sm:$0xff] }
   0x9   :  { %v275_v48 = vld [vmem:[%s624_s3 + $0x48] sm:$0xff] }
   0xb   :  { %372 = vmatpush3.bf16.msra.mxu0 %v417_v2  ;;  %409 = vmatpush3.bf16.msra.mxu1 %v417_v2 }
   0xc   :  { %373 = vmatprep.subr.bf16.mxu0 %v418_v3  ;;  %402 = vmatprep.subr.bf16.mxu1 %v418_v3 }
   0xf   :  { %374 = vmatpush3.bf16.msra.mxu0 %v418_v3  ;;  %410 = vmatpush3.bf16.msra.mxu1 %v418_v3 }
  0x10   :  { %375 = vmatprep.subr.bf16.mxu0 %v419_v6  ;;  %403 = vmatprep.subr.bf16.mxu1 %v419_v6 }
  0x13   :  { %376 = vmatpush3.bf16.msra.mxu0 %v419_v6  ;;  %411 = vmatpush3.bf16.msra.mxu1 %v419_v6 }
  0x14   :  { %377 = vmatprep.subr.bf16.mxu0 %v420_v7  ;;  %404 = vmatprep.subr.bf16.mxu1 %v420_v7 }
  0x17   :  { %378 = vmatpush3.bf16.msra.mxu0 %v420_v7  ;;  %412 = vmatpush3.bf16.msra.mxu1 %v420_v7  ;;  %v272_v7 = vld [vmem:[%s624_s3 + $0x30] sm:$0xff] }
  0x18   :  { %379 = vmatprep.subr.bf16.mxu0 %v421_v8  ;;  %405 = vmatprep.subr.bf16.mxu1 %v421_v8 }
  0x1b   :  { %380 = vmatpush3.bf16.msra.mxu0 %v421_v8  ;;  %413 = vmatpush3.bf16.msra.mxu1 %v421_v8  ;;  %v280_v8 = vld [vmem:[%s624_s3 + $0x70] sm:$0xff] }
  0x1c   :  { %381 = vmatprep.subr.bf16.mxu0 %v422_v9  ;;  %406 = vmatprep.subr.bf16.mxu1 %v422_v9 }
  0x1f   :  { %382 = vmatpush3.bf16.msra.mxu0 %v422_v9  ;;  %414 = vmatpush3.bf16.msra.mxu1 %v422_v9 }
  0x22   :  { %384 = vmatmul.mubr.bf16.vlgmr.msra.gmra.mrb[0].mxu0 %v425_v10  ;;  %392 = vmatmul.mubr.bf16.vlgmr.msra.gmra.mrb[0].mxu1 %v426_v11 }
  0x23   :  { %387 = vmatprep.mubr.bf16.mxu0 %v427_v12  ;;  %395 = vmatprep.mubr.bf16.mxu1 %v428_v13 }
  0x2a   :  { %388 = vmatmul.mubr.bf16.gmra.mrb[4].mxu0 %v429_v14  ;;  %396 = vmatmul.mubr.bf16.gmra.mrb[4].mxu1 %v430_v15  ;;  %v270_v15 = vld [vmem:[%s624_s3 + $0x20] sm:$0xff] }
  0xf5   :  { %v385_v17 = vpop.f32.mrb[0].mxu0  ;;  %v393_v18 = vpop.f32.mrb[0].mxu1 }
  0xf6   :  { %v196_v19 = vadd.f32 %v385_v17, %v507_v16  ;;  %v228_v20 = vadd.f32 %v393_v18, %v507_v16  ;;  %v187_v21 = vpop.f32.mrb[1].mxu0  ;;  %v219_v22 = vpop.f32.mrb[1].mxu1  ;;  %v278_v17 = vld [vmem:[%s624_s3 + $0x60] sm:$0xff] }
  0xf7   :  { %v188_v25 = vadd.f32 %v507_v16, %v187_v21  ;;  %v220_v26 = vadd.f32 %v507_v16, %v219_v22  ;;  %v386_v27 = vpop.f32.mrb[2].mxu0  ;;  %v394_v28 = vpop.f32.mrb[2].mxu1 }
  0xf8   :  { %v252_v29 = vmax.f32 %v196_v19, 0.0  ;;  %v260_v30 = vmax.f32 %v228_v20, 0.0  ;;  %v199_v33 = vadd.f32 %v386_v27, %v507_v16  ;;  %v231_v34 = vadd.f32 %v394_v28, %v507_v16  ;;  %v190_v35 = vpop.f32.mrb[3].mxu0  ;;  %v222_v36 = vpop.f32.mrb[3].mxu1 }
  0xf9   :  { %v250_v37 = vmax.f32 %v188_v25, 0.0  ;;  %v258_v38 = vmax.f32 %v220_v26, 0.0  ;;  %v191_v41 = vadd.f32 %v507_v16, %v190_v35  ;;  %v223_v42 = vadd.f32 %v507_v16, %v222_v36  ;;  %v281_v25 = vld [vmem:[%s624_s3 + $0x78] sm:$0xff] }
  0xfa   :  { %v284_v43 = vadd.f32 %v268_v23, %v252_v29  ;;  %v292_v44 = vadd.f32 %v276_v24, %v260_v30  ;;  %v253_v45 = vmax.f32 %v199_v33, 0.0  ;;  %v261_v46 = vmax.f32 %v231_v34, 0.0  ;;  %v273_v24 = vld [vmem:[%s624_s3 + $0x38] sm:$0xff]  ;;  %v279_v33 = vld [vmem:[%s624_s3 + $0x68] sm:$0xff] }
  0xfb   :  { %v282_v49 = vadd.f32 %v266_v31, %v250_v37  ;;  %v290_v50 = vadd.f32 %v274_v32, %v258_v38  ;;  %v251_v51 = vmax.f32 %v191_v41, 0.0  ;;  %v259_v52 = vmax.f32 %v223_v42, 0.0  ;;  %v271_v32 = vld [vmem:[%s624_s3 + $0x28] sm:$0xff] }
  0xfc   :  { %v300_v53 = vmax.f32 %v284_v43, 0.0  ;;  %v308_v54 = vmax.f32 %v292_v44, 0.0  ;;  %v285_v55 = vadd.f32 %v269_v39, %v253_v45  ;;  %v293_v56 = vadd.f32 %v277_v40, %v261_v46 }
  0xfd   :  { %v298_v57 = vmax.f32 %v282_v49, 0.0  ;;  %v306_v58 = vmax.f32 %v290_v50, 0.0  ;;  %v283_v59 = vadd.f32 %v267_v47, %v251_v51  ;;  %v291_v60 = vadd.f32 %v275_v48, %v259_v52  ;;  %v389_v61 = vpop.f32.mrb[4].mxu0  ;;  %v397_v62 = vpop.f32.mrb[4].mxu1 }
  0xfe   :  { %316 = vst [vmem:[%s625_s4 + $0x10] sm:$0xff] %v300_v53  ;;  %324 = vst [vmem:[%s625_s4 + $0x50] sm:$0xff] %v308_v54  ;;  %v301_v63 = vmax.f32 %v285_v55, 0.0  ;;  %v309_v0 = vmax.f32 %v293_v56, 0.0  ;;  %v212_v1 = vadd.f32 %v389_v61, %v507_v16  ;;  %v244_v2 = vadd.f32 %v397_v62, %v507_v16  ;;  %v203_v3 = vpop.f32.mrb[5].mxu0  ;;  %v235_v4 = vpop.f32.mrb[5].mxu1 }
  0xff   :  { %314 = vst [vmem:[%s625_s4] sm:$0xff] %v298_v57  ;;  %322 = vst [vmem:[%s625_s4 + $0x40] sm:$0xff] %v306_v58  ;;  %v299_v5 = vmax.f32 %v283_v59, 0.0  ;;  %v307_v6 = vmax.f32 %v291_v60, 0.0  ;;  %v204_v9 = vadd.f32 %v507_v16, %v203_v3  ;;  %v236_v10 = vadd.f32 %v507_v16, %v235_v4  ;;  %v390_v11 = vpop.f32.mrb[6].mxu0  ;;  %v398_v12 = vpop.f32.mrb[6].mxu1 }
 0x100   :  { %317 = vst [vmem:[%s625_s4 + $0x18] sm:$0xff] %v301_v63  ;;  %325 = vst [vmem:[%s625_s4 + $0x58] sm:$0xff] %v309_v0  ;;  %v256_v13 = vmax.f32 %v212_v1, 0.0  ;;  %v264_v14 = vmax.f32 %v244_v2, 0.0  ;;  %v215_v18 = vadd.f32 %v390_v11, %v507_v16  ;;  %v247_v19 = vadd.f32 %v398_v12, %v507_v16  ;;  %v206_v20 = vpop.f32.mrb[7].mxu0  ;;  %v238_v21 = vpop.f32.mrb[7].mxu1 }
 0x101   :  { %315 = vst [vmem:[%s625_s4 + $0x8] sm:$0xff] %v299_v5  ;;  %323 = vst [vmem:[%s625_s4 + $0x48] sm:$0xff] %v307_v6  ;;  %v254_v22 = vmax.f32 %v204_v9, 0.0  ;;  %v262_v23 = vmax.f32 %v236_v10, 0.0  ;;  %v207_v26 = vadd.f32 %v507_v16, %v206_v20  ;;  %v239_v27 = vadd.f32 %v507_v16, %v238_v21 }
 0x102   :  { %v288_v28 = vadd.f32 %v272_v7, %v256_v13  ;;  %v296_v29 = vadd.f32 %v280_v8, %v264_v14  ;;  %v257_v30 = vmax.f32 %v215_v18, 0.0  ;;  %v265_v31 = vmax.f32 %v247_v19, 0.0 }
 0x103   :  { %v286_v34 = vadd.f32 %v270_v15, %v254_v22  ;;  %v294_v35 = vadd.f32 %v278_v17, %v262_v23  ;;  %v255_v36 = vmax.f32 %v207_v26, 0.0  ;;  %v263_v37 = vmax.f32 %v239_v27, 0.0 }
 0x104   :  { %v304_v38 = vmax.f32 %v288_v28, 0.0  ;;  %v312_v39 = vmax.f32 %v296_v29, 0.0  ;;  %v289_v40 = vadd.f32 %v273_v24, %v257_v30  ;;  %v297_v16 = vadd.f32 %v281_v25, %v265_v31 }
 0x105   :  { %v302_v41 = vmax.f32 %v286_v34, 0.0  ;;  %v310_v42 = vmax.f32 %v294_v35, 0.0  ;;  %v287_v43 = vadd.f32 %v271_v32, %v255_v36  ;;  %v295_v44 = vadd.f32 %v279_v33, %v263_v37 }
 0x106   :  { %320 = vst [vmem:[%s625_s4 + $0x30] sm:$0xff] %v304_v38  ;;  %328 = vst [vmem:[%s625_s4 + $0x70] sm:$0xff] %v312_v39  ;;  %v305_v45 = vmax.f32 %v289_v40, 0.0  ;;  %v313_v46 = vmax.f32 %v297_v16, 0.0 }
 0x107   :  { %318 = vst [vmem:[%s625_s4 + $0x20] sm:$0xff] %v302_v41  ;;  %326 = vst [vmem:[%s625_s4 + $0x60] sm:$0xff] %v310_v42  ;;  %v303_v47 = vmax.f32 %v287_v43, 0.0  ;;  %v311_v48 = vmax.f32 %v295_v44, 0.0 }
 0x108   :  { %321 = vst [vmem:[%s625_s4 + $0x38] sm:$0xff] %v305_v45  ;;  %329 = vst [vmem:[%s625_s4 + $0x78] sm:$0xff] %v313_v46 }
 0x109   :  { %319 = vst [vmem:[%s625_s4 + $0x28] sm:$0xff] %v303_v47  ;;  %327 = vst [vmem:[%s625_s4 + $0x68] sm:$0xff] %v311_v48 }

// kernel: enet_forward.164
= control target key start
LH: loop header
LB: loop body
LE: loop exit
PB: predicated region body
PF: predicated region fallthrough
CT: control target
= control target key end

     0   :  { %s499_s1 = inlined_call_operand.vmem [shape: bf16[128,128], index: 1, kind: input, shape index: {}]   ;;  %s500_s0 = inlined_call_operand.vmem [shape: bf16[128,128], index: 0, kind: input, shape index: {}]   ;;  %s501_s2 = inlined_call_operand.vmem [shape: f32[1,128], index: 2, kind: input, shape index: {}]   ;;  %s502_s3 = inlined_call_operand.vmem [shape: f32[128,128], index: 3, kind: output, shape index: {}]  }
   0x1   :  { %v364_v0 = vld [vmem:[%s499_s1] sm:$0xff]   ;;  %v365_v1 = vld [vmem:[%s499_s1 + $0x8] sm:$0xff]   ;;  %v366_v2 = vld [vmem:[%s499_s1 + $0x10] sm:$0xff]  }
   0x2   :  { %316 = vmatprep.subr.bf16.mxu0 %v364_v0  ;;  %348 = vmatprep.subr.bf16.mxu1 %v364_v0  ;;  %v367_v3 = vld [vmem:[%s499_s1 + $0x18] sm:$0xff]   ;;  %v372_v4 = vld [vmem:[%s500_s0] sm:$0xff]   ;;  %v369_v7 = vld [vmem:[%s499_s1 + $0x28] sm:$0xff]  }
   0x3   :  { %317 = vmatpush3.bf16.msra.mxu0 %v364_v0  ;;  %356 = vmatpush3.bf16.msra.mxu1 %v364_v0  ;;  %v373_v5 = vld [vmem:[%s500_s0 + $0x20] sm:$0xff]   ;;  %v370_v8 = vld [vmem:[%s499_s1 + $0x30] sm:$0xff]   ;;  %v371_v9 = vld [vmem:[%s499_s1 + $0x38] sm:$0xff]  }
   0x4   :  { %318 = vmatprep.subr.bf16.mxu0 %v365_v1  ;;  %349 = vmatprep.subr.bf16.mxu1 %v365_v1  ;;  %v368_v6 = vld [vmem:[%s499_s1 + $0x20] sm:$0xff]   ;;  %v374_v10 = vld [vmem:[%s500_s0 + $0x8] sm:$0xff]   ;;  %v376_v12 = vld [vmem:[%s500_s0 + $0x10] sm:$0xff]  }
   0x5   :  { %332 = vmatprep.mubr.bf16.mxu0 %v372_v4  ;;  %340 = vmatprep.mubr.bf16.mxu1 %v373_v5  ;;  %v375_v11 = vld [vmem:[%s500_s0 + $0x28] sm:$0xff]   ;;  %v377_v13 = vld [vmem:[%s500_s0 + $0x30] sm:$0xff]   ;;  %v378_v14 = vld [vmem:[%s500_s0 + $0x18] sm:$0xff]  }
   0x6   :  { %v379_v15 = vld [vmem:[%s500_s0 + $0x38] sm:$0xff]   ;;  %v283_v16 = vld [vmem:[%s501_s2] ss:$0 sm:$0xff] }
   0x7   :  { %319 = vmatpush3.bf16.msra.mxu0 %v365_v1  ;;  %357 = vmatpush3.bf16.msra.mxu1 %v365_v1 }
   0x8   :  { %320 = vmatprep.subr.bf16.mxu0 %v366_v2  ;;  %350 = vmatprep.subr.bf16.mxu1 %v366_v2 }
   0xb   :  { %321 = vmatpush3.bf16.msra.mxu0 %v366_v2  ;;  %358 = vmatpush3.bf16.msra.mxu1 %v366_v2 }
   0xc   :  { %322 = vmatprep.subr.bf16.mxu0 %v367_v3  ;;  %351 = vmatprep.subr.bf16.mxu1 %v367_v3 }
   0xf   :  { %323 = vmatpush3.bf16.msra.mxu0 %v367_v3  ;;  %359 = vmatpush3.bf16.msra.mxu1 %v367_v3 }
  0x10   :  { %324 = vmatprep.subr.bf16.mxu0 %v368_v6  ;;  %352 = vmatprep.subr.bf16.mxu1 %v368_v6 }
  0x13   :  { %325 = vmatpush3.bf16.msra.mxu0 %v368_v6  ;;  %360 = vmatpush3.bf16.msra.mxu1 %v368_v6 }
  0x14   :  { %326 = vmatprep.subr.bf16.mxu0 %v369_v7  ;;  %353 = vmatprep.subr.bf16.mxu1 %v369_v7 }
  0x17   :  { %327 = vmatpush3.bf16.msra.mxu0 %v369_v7  ;;  %361 = vmatpush3.bf16.msra.mxu1 %v369_v7 }
  0x18   :  { %328 = vmatprep.subr.bf16.mxu0 %v370_v8  ;;  %354 = vmatprep.subr.bf16.mxu1 %v370_v8 }
  0x1b   :  { %329 = vmatpush3.bf16.msra.mxu0 %v370_v8  ;;  %362 = vmatpush3.bf16.msra.mxu1 %v370_v8 }
  0x1c   :  { %330 = vmatprep.subr.bf16.mxu0 %v371_v9  ;;  %355 = vmatprep.subr.bf16.mxu1 %v371_v9 }
  0x1f   :  { %331 = vmatpush3.bf16.msra.mxu0 %v371_v9  ;;  %363 = vmatpush3.bf16.msra.mxu1 %v371_v9 }
  0x22   :  { %333 = vmatmul.mubr.bf16.vlgmr.msra.gmra.mrb[0].mxu0 %v374_v10  ;;  %341 = vmatmul.mubr.bf16.vlgmr.msra.gmra.mrb[0].mxu1 %v375_v11 }
  0x23   :  { %336 = vmatprep.mubr.bf16.mxu0 %v376_v12  ;;  %344 = vmatprep.mubr.bf16.mxu1 %v377_v13 }
  0x2a   :  { %337 = vmatmul.mubr.bf16.gmra.mrb[4].mxu0 %v378_v14  ;;  %345 = vmatmul.mubr.bf16.gmra.mrb[4].mxu1 %v379_v15 }
  0xf5   :  { %v334_v17 = vpop.f32.mrb[0].mxu0  ;;  %v342_v18 = vpop.f32.mrb[0].mxu1 }
  0xf6   :  { %v193_v19 = vadd.f32 %v334_v17, %v283_v16  ;;  %v225_v20 = vadd.f32 %v342_v18, %v283_v16  ;;  %v184_v21 = vpop.f32.mrb[1].mxu0  ;;  %v216_v22 = vpop.f32.mrb[1].mxu1 }
  0xf7   :  { %v185_v23 = vadd.f32 %v283_v16, %v184_v21  ;;  %v217_v24 = vadd.f32 %v283_v16, %v216_v22  ;;  %v335_v25 = vpop.f32.mrb[2].mxu0  ;;  %v343_v26 = vpop.f32.mrb[2].mxu1 }
  0xf8   :  { %v249_v27 = vmax.f32 %v193_v19, 0.0  ;;  %v257_v28 = vmax.f32 %v225_v20, 0.0  ;;  %v196_v29 = vadd.f32 %v335_v25, %v283_v16  ;;  %v228_v30 = vadd.f32 %v343_v26, %v283_v16  ;;  %v187_v31 = vpop.f32.mrb[3].mxu0  ;;  %v219_v32 = vpop.f32.mrb[3].mxu1 }
  0xf9   :  { %v247_v33 = vmax.f32 %v185_v23, 0.0  ;;  %v255_v34 = vmax.f32 %v217_v24, 0.0  ;;  %v188_v35 = vadd.f32 %v283_v16, %v187_v31  ;;  %v220_v36 = vadd.f32 %v283_v16, %v219_v32 }
  0xfa   :  { %265 = vst [vmem:[%s502_s3 + $0x10] sm:$0xff] %v249_v27  ;;  %273 = vst [vmem:[%s502_s3 + $0x50] sm:$0xff] %v257_v28  ;;  %v250_v37 = vmax.f32 %v196_v29, 0.0  ;;  %v258_v38 = vmax.f32 %v228_v30, 0.0 }
  0xfb   :  { %263 = vst [vmem:[%s502_s3] sm:$0xff] %v247_v33  ;;  %271 = vst [vmem:[%s502_s3 + $0x40] sm:$0xff] %v255_v34  ;;  %v248_v39 = vmax.f32 %v188_v35, 0.0  ;;  %v256_v40 = vmax.f32 %v220_v36, 0.0 }
  0xfc   :  { %266 = vst [vmem:[%s502_s3 + $0x18] sm:$0xff] %v250_v37  ;;  %274 = vst [vmem:[%s502_s3 + $0x58] sm:$0xff] %v258_v38 }
  0xfd   :  { %264 = vst [vmem:[%s502_s3 + $0x8] sm:$0xff] %v248_v39  ;;  %272 = vst [vmem:[%s502_s3 + $0x48] sm:$0xff] %v256_v40  ;;  %v338_v41 = vpop.f32.mrb[4].mxu0  ;;  %v346_v42 = vpop.f32.mrb[4].mxu1 }
  0xfe   :  { %v209_v43 = vadd.f32 %v338_v41, %v283_v16  ;;  %v241_v44 = vadd.f32 %v346_v42, %v283_v16  ;;  %v200_v45 = vpop.f32.mrb[5].mxu0  ;;  %v232_v46 = vpop.f32.mrb[5].mxu1 }
  0xff   :  { %v201_v47 = vadd.f32 %v283_v16, %v200_v45  ;;  %v233_v48 = vadd.f32 %v283_v16, %v232_v46  ;;  %v339_v49 = vpop.f32.mrb[6].mxu0  ;;  %v347_v50 = vpop.f32.mrb[6].mxu1 }
 0x100   :  { %v253_v51 = vmax.f32 %v209_v43, 0.0  ;;  %v261_v52 = vmax.f32 %v241_v44, 0.0  ;;  %v212_v53 = vadd.f32 %v339_v49, %v283_v16  ;;  %v244_v54 = vadd.f32 %v347_v50, %v283_v16  ;;  %v203_v55 = vpop.f32.mrb[7].mxu0  ;;  %v235_v56 = vpop.f32.mrb[7].mxu1 }
 0x101   :  { %v251_v57 = vmax.f32 %v201_v47, 0.0  ;;  %v259_v58 = vmax.f32 %v233_v48, 0.0  ;;  %v204_v59 = vadd.f32 %v283_v16, %v203_v55  ;;  %v236_v60 = vadd.f32 %v283_v16, %v235_v56 }
 0x102   :  { %269 = vst [vmem:[%s502_s3 + $0x30] sm:$0xff] %v253_v51  ;;  %277 = vst [vmem:[%s502_s3 + $0x70] sm:$0xff] %v261_v52  ;;  %v254_v61 = vmax.f32 %v212_v53, 0.0  ;;  %v262_v62 = vmax.f32 %v244_v54, 0.0 }
 0x103   :  { %267 = vst [vmem:[%s502_s3 + $0x20] sm:$0xff] %v251_v57  ;;  %275 = vst [vmem:[%s502_s3 + $0x60] sm:$0xff] %v259_v58  ;;  %v252_v63 = vmax.f32 %v204_v59, 0.0  ;;  %v260_v0 = vmax.f32 %v236_v60, 0.0 }
 0x104   :  { %270 = vst [vmem:[%s502_s3 + $0x38] sm:$0xff] %v254_v61  ;;  %278 = vst [vmem:[%s502_s3 + $0x78] sm:$0xff] %v262_v62 }
 0x105   :  { %268 = vst [vmem:[%s502_s3 + $0x28] sm:$0xff] %v252_v63  ;;  %276 = vst [vmem:[%s502_s3 + $0x68] sm:$0xff] %v260_v0 }

// kernel: enet_forward.165
= control target key start
LH: loop header
LB: loop body
LE: loop exit
PB: predicated region body
PF: predicated region fallthrough
CT: control target
= control target key end

     0   :  { %s717_s1 = inlined_call_operand.vmem [shape: bf16[256,128], index: 1, kind: input, shape index: {}]   ;;  %s718_s0 = inlined_call_operand.vmem [shape: bf16[128,256], index: 0, kind: input, shape index: {}]   ;;  %s719_s2 = inlined_call_operand.vmem [shape: f32[1,128], index: 2, kind: input, shape index: {}]   ;;  %s720_s3 = inlined_call_operand.vmem [shape: f32[128,128], index: 3, kind: output, shape index: {}]  }
   0x1   :  { %v492_v0 = vld [vmem:[%s717_s1 + $0x40] sm:$0xff]   ;;  %v494_v2 = vld [vmem:[%s717_s1 + $0x48] sm:$0xff]   ;;  %v496_v4 = vld [vmem:[%s717_s1 + $0x50] sm:$0xff]  }
   0x2   :  { %v493_v1 = vld [vmem:[%s717_s1] sm:$0xff]   ;;  %412 = vmatprep.subr.bf16.mxu0 %v492_v0  ;;  %476 = vmatprep.subr.bf16.mxu1 %v492_v0  ;;  %v495_v3 = vld [vmem:[%s717_s1 + $0x8] sm:$0xff]   ;;  %v497_v5 = vld [vmem:[%s717_s1 + $0x10] sm:$0xff]  }
   0x3   :  { %413 = vmatpush3.bf16.msra.mxu0 %v493_v1  ;;  %484 = vmatpush3.bf16.msra.mxu1 %v493_v1  ;;  %v498_v6 = vld [vmem:[%s717_s1 + $0x58] sm:$0xff]   ;;  %v500_v8 = vld [vmem:[%s717_s1 + $0x60] sm:$0xff]   ;;  %v502_v10 = vld [vmem:[%s717_s1 + $0x68] sm:$0xff]  }
   0x4   :  { %414 = vmatprep.subr.bf16.mxu0 %v494_v2  ;;  %477 = vmatprep.subr.bf16.mxu1 %v494_v2  ;;  %v499_v7 = vld [vmem:[%s717_s1 + $0x18] sm:$0xff]   ;;  %v501_v9 = vld [vmem:[%s717_s1 + $0x20] sm:$0xff]   ;;  %v503_v13 = vld [vmem:[%s717_s1 + $0x28] sm:$0xff]  }
   0x5   :  { %v510_v11 = vld [vmem:[%s718_s0 + $0x4] ss:$8 sps:$4 sm:$0xff]   ;;  %v504_v14 = vld [vmem:[%s717_s1 + $0x70] sm:$0xff]   ;;  %v506_v16 = vld [vmem:[%s717_s1 + $0x78] sm:$0xff]  }
   0x6   :  { %v513_v12 = vld [vmem:[%s718_s0 + $0x44] ss:$8 sps:$4 sm:$0xff]   ;;  %278 = vmatprep.mubr.bf16.mxu0 %v510_v11  ;;  %v505_v15 = vld [vmem:[%s717_s1 + $0x30] sm:$0xff]   ;;  %v507_v17 = vld [vmem:[%s717_s1 + $0x38] sm:$0xff]  }
   0x7   :  { %415 = vmatpush3.bf16.msra.mxu0 %v495_v3  ;;  %485 = vmatpush3.bf16.msra.mxu1 %v495_v3  ;;  %v508_v18 = vld [vmem:[%s718_s0] ss:$8 sps:$4 sm:$0xff]   ;;  %v514_v20 = vld [vmem:[%s718_s0 + $0x14] ss:$8 sps:$4 sm:$0xff]   ;;  %v518_v22 = vld [vmem:[%s718_s0 + $0x10] ss:$8 sps:$4 sm:$0xff]  }
   0x8   :  { %416 = vmatprep.subr.bf16.mxu0 %v496_v4  ;;  %478 = vmatprep.subr.bf16.mxu1 %v496_v4  ;;  %v511_v19 = vld [vmem:[%s718_s0 + $0x40] ss:$8 sps:$4 sm:$0xff]   ;;  %v516_v21 = vld [vmem:[%s718_s0 + $0x54] ss:$8 sps:$4 sm:$0xff]   ;;  %v519_v23 = vld [vmem:[%s718_s0 + $0x50] ss:$8 sps:$4 sm:$0xff]  }
   0x9   :  { %310 = vmatprep.mubr.bf16.mxu1 %v513_v12  ;;  %v520_v24 = vld [vmem:[%s718_s0 + $0x24] ss:$8 sps:$4 sm:$0xff]   ;;  %v524_v26 = vld [vmem:[%s718_s0 + $0x20] ss:$8 sps:$4 sm:$0xff]   ;;  %v526_v28 = vld [vmem:[%s718_s0 + $0x34] ss:$8 sps:$4 sm:$0xff]  }
   0xa   :  { %v522_v25 = vld [vmem:[%s718_s0 + $0x64] ss:$8 sps:$4 sm:$0xff]   ;;  %v525_v27 = vld [vmem:[%s718_s0 + $0x60] ss:$8 sps:$4 sm:$0xff]   ;;  %v528_v29 = vld [vmem:[%s718_s0 + $0x74] ss:$8 sps:$4 sm:$0xff]  }
   0xb   :  { %417 = vmatpush3.bf16.msra.mxu0 %v497_v5  ;;  %486 = vmatpush3.bf16.msra.mxu1 %v497_v5  ;;  %v530_v30 = vld [vmem:[%s718_s0 + $0x30] ss:$8 sps:$4 sm:$0xff]   ;;  %v651_v34 = vld [vmem:[%s719_s2] ss:$0 sm:$0xff] }
   0xc   :  { %418 = vmatprep.subr.bf16.mxu0 %v498_v6  ;;  %479 = vmatprep.subr.bf16.mxu1 %v498_v6  ;;  %v531_v31 = vld [vmem:[%s718_s0 + $0x70] ss:$8 sps:$4 sm:$0xff]  }
   0xf   :  { %419 = vmatpush3.bf16.msra.mxu0 %v499_v7  ;;  %487 = vmatpush3.bf16.msra.mxu1 %v499_v7 }
  0x10   :  { %420 = vmatprep.subr.bf16.mxu0 %v500_v8  ;;  %480 = vmatprep.subr.bf16.mxu1 %v500_v8 }
  0x13   :  { %421 = vmatpush3.bf16.msra.mxu0 %v501_v9  ;;  %488 = vmatpush3.bf16.msra.mxu1 %v501_v9 }
  0x14   :  { %422 = vmatprep.subr.bf16.mxu0 %v502_v10  ;;  %481 = vmatprep.subr.bf16.mxu1 %v502_v10 }
  0x17   :  { %423 = vmatpush3.bf16.msra.mxu0 %v503_v13  ;;  %489 = vmatpush3.bf16.msra.mxu1 %v503_v13 }
  0x18   :  { %424 = vmatprep.subr.bf16.mxu0 %v504_v14  ;;  %482 = vmatprep.subr.bf16.mxu1 %v504_v14 }
  0x1b   :  { %425 = vmatpush3.bf16.msra.mxu0 %v505_v15  ;;  %490 = vmatpush3.bf16.msra.mxu1 %v505_v15 }
  0x1c   :  { %426 = vmatprep.subr.bf16.mxu0 %v506_v16  ;;  %483 = vmatprep.subr.bf16.mxu1 %v506_v16 }
  0x1f   :  { %427 = vmatpush3.bf16.msra.mxu0 %v507_v17  ;;  %491 = vmatpush3.bf16.msra.mxu1 %v507_v17 }
  0x22   :  { %279 = vmatmul.mubr.bf16.vlgmr.msra.gmra.mrb[0].mxu0 %v508_v18  ;;  %311 = vmatmul.mubr.bf16.vlgmr.msra.gmra.mrb[0].mxu1 %v511_v19 }
  0x23   :  { %286 = vmatprep.mubr.bf16.mxu0 %v514_v20  ;;  %318 = vmatprep.mubr.bf16.mxu1 %v516_v21 }
  0x2a   :  { %287 = vmatmul.mubr.bf16.gmra.mrb[4].mxu0 %v518_v22  ;;  %319 = vmatmul.mubr.bf16.gmra.mrb[4].mxu1 %v519_v23 }
  0x2b   :  { %294 = vmatprep.mubr.bf16.mxu0 %v520_v24  ;;  %326 = vmatprep.mubr.bf16.mxu1 %v522_v25 }
  0x32   :  { %295 = vmatmul.mubr.bf16.gmra.mrb[8].mxu0 %v524_v26  ;;  %327 = vmatmul.mubr.bf16.gmra.mrb[8].mxu1 %v525_v27 }
  0x33   :  { %302 = vmatprep.mubr.bf16.mxu0 %v526_v28  ;;  %334 = vmatprep.mubr.bf16.mxu1 %v528_v29 }
  0x3a   :  { %303 = vmatmul.mubr.bf16.gmra.mrb[12].mxu0 %v530_v30  ;;  %335 = vmatmul.mubr.bf16.gmra.mrb[12].mxu1 %v531_v31 }
  0xf5   :  { %v428_v32 = vpop.f32.mrb[0].mxu0  ;;  %v452_v33 = vpop.f32.mrb[0].mxu1 }
  0xf6   :  { %v429_v35 = vpop.f32.mrb[1].mxu0  ;;  %v453_v36 = vpop.f32.mrb[1].mxu1 }
  0xf7   :  { %v430_v37 = vadd.f32 %v429_v35, %v428_v32  ;;  %v454_v38 = vadd.f32 %v453_v36, %v452_v33  ;;  %v431_v39 = vpop.f32.mrb[2].mxu0  ;;  %v455_v40 = vpop.f32.mrb[2].mxu1 }
  0xf8   :  { %v432_v41 = vpop.f32.mrb[3].mxu0  ;;  %v456_v42 = vpop.f32.mrb[3].mxu1 }
  0xf9   :  { %v281_v43 = vadd.f32 %v430_v37, %v651_v34  ;;  %v313_v44 = vadd.f32 %v454_v38, %v651_v34  ;;  %v433_v45 = vadd.f32 %v432_v41, %v431_v39  ;;  %v457_v46 = vadd.f32 %v456_v42, %v455_v40 }
  0xfb   :  { %v343_v47 = vmax.f32 %v281_v43, 0.0  ;;  %v351_v48 = vmax.f32 %v313_v44, 0.0  ;;  %v284_v49 = vadd.f32 %v433_v45, %v651_v34  ;;  %v316_v50 = vadd.f32 %v457_v46, %v651_v34 }
  0xfd   :  { %359 = vst [vmem:[%s720_s3] sm:$0xff] %v343_v47  ;;  %367 = vst [vmem:[%s720_s3 + $0x40] sm:$0xff] %v351_v48  ;;  %v344_v51 = vmax.f32 %v284_v49, 0.0  ;;  %v352_v52 = vmax.f32 %v316_v50, 0.0  ;;  %v434_v53 = vpop.f32.mrb[4].mxu0  ;;  %v458_v54 = vpop.f32.mrb[4].mxu1 }
  0xfe   :  { %v435_v55 = vpop.f32.mrb[5].mxu0  ;;  %v459_v56 = vpop.f32.mrb[5].mxu1 }
  0xff   :  { %360 = vst [vmem:[%s720_s3 + $0x8] sm:$0xff] %v344_v51  ;;  %368 = vst [vmem:[%s720_s3 + $0x48] sm:$0xff] %v352_v52  ;;  %v436_v57 = vadd.f32 %v435_v55, %v434_v53  ;;  %v460_v58 = vadd.f32 %v459_v56, %v458_v54  ;;  %v437_v59 = vpop.f32.mrb[6].mxu0  ;;  %v461_v60 = vpop.f32.mrb[6].mxu1 }
 0x100   :  { %v438_v61 = vpop.f32.mrb[7].mxu0  ;;  %v462_v62 = vpop.f32.mrb[7].mxu1 }
 0x101   :  { %v289_v63 = vadd.f32 %v436_v57, %v651_v34  ;;  %v321_v0 = vadd.f32 %v460_v58, %v651_v34  ;;  %v439_v1 = vadd.f32 %v438_v61, %v437_v59  ;;  %v463_v2 = vadd.f32 %v462_v62, %v461_v60 }
 0x103   :  { %v345_v3 = vmax.f32 %v289_v63, 0.0  ;;  %v353_v4 = vmax.f32 %v321_v0, 0.0  ;;  %v292_v5 = vadd.f32 %v439_v1, %v651_v34  ;;  %v324_v6 = vadd.f32 %v463_v2, %v651_v34 }
 0x105   :  { %361 = vst [vmem:[%s720_s3 + $0x10] sm:$0xff] %v345_v3  ;;  %369 = vst [vmem:[%s720_s3 + $0x50] sm:$0xff] %v353_v4  ;;  %v346_v7 = vmax.f32 %v292_v5, 0.0  ;;  %v354_v8 = vmax.f32 %v324_v6, 0.0  ;;  %v440_v9 = vpop.f32.mrb[8].mxu0  ;;  %v464_v10 = vpop.f32.mrb[8].mxu1 }
 0x106   :  { %v441_v11 = vpop.f32.mrb[9].mxu0  ;;  %v465_v12 = vpop.f32.mrb[9].mxu1 }
 0x107   :  { %362 = vst [vmem:[%s720_s3 + $0x18] sm:$0xff] %v346_v7  ;;  %370 = vst [vmem:[%s720_s3 + $0x58] sm:$0xff] %v354_v8  ;;  %v442_v13 = vadd.f32 %v441_v11, %v440_v9  ;;  %v466_v14 = vadd.f32 %v465_v12, %v464_v10  ;;  %v443_v15 = vpop.f32.mrb[10].mxu0  ;;  %v467_v16 = vpop.f32.mrb[10].mxu1 }
 0x108   :  { %v444_v17 = vpop.f32.mrb[11].mxu0  ;;  %v468_v18 = vpop.f32.mrb[11].mxu1 }
 0x109   :  { %v297_v19 = vadd.f32 %v442_v13, %v651_v34  ;;  %v329_v20 = vadd.f32 %v466_v14, %v651_v34  ;;  %v445_v21 = vadd.f32 %v444_v17, %v443_v15  ;;  %v469_v22 = vadd.f32 %v468_v18, %v467_v16 }
 0x10b   :  { %v347_v23 = vmax.f32 %v297_v19, 0.0  ;;  %v355_v24 = vmax.f32 %v329_v20, 0.0  ;;  %v300_v25 = vadd.f32 %v445_v21, %v651_v34  ;;  %v332_v26 = vadd.f32 %v469_v22, %v651_v34 }
 0x10d   :  { %363 = vst [vmem:[%s720_s3 + $0x20] sm:$0xff] %v347_v23  ;;  %371 = vst [vmem:[%s720_s3 + $0x60] sm:$0xff] %v355_v24  ;;  %v348_v27 = vmax.f32 %v300_v25, 0.0  ;;  %v356_v28 = vmax.f32 %v332_v26, 0.0  ;;  %v446_v29 = vpop.f32.mrb[12].mxu0  ;;  %v470_v30 = vpop.f32.mrb[12].mxu1 }
 0x10e   :  { %v447_v31 = vpop.f32.mrb[13].mxu0  ;;  %v471_v32 = vpop.f32.mrb[13].mxu1 }
 0x10f   :  { %364 = vst [vmem:[%s720_s3 + $0x28] sm:$0xff] %v348_v27  ;;  %372 = vst [vmem:[%s720_s3 + $0x68] sm:$0xff] %v356_v28  ;;  %v448_v33 = vadd.f32 %v447_v31, %v446_v29  ;;  %v472_v35 = vadd.f32 %v471_v32, %v470_v30  ;;  %v449_v36 = vpop.f32.mrb[14].mxu0  ;;  %v473_v37 = vpop.f32.mrb[14].mxu1 }
 0x110   :  { %v450_v38 = vpop.f32.mrb[15].mxu0  ;;  %v474_v39 = vpop.f32.mrb[15].mxu1 }
 0x111   :  { %v305_v40 = vadd.f32 %v448_v33, %v651_v34  ;;  %v337_v41 = vadd.f32 %v472_v35, %v651_v34  ;;  %v451_v42 = vadd.f32 %v450_v38, %v449_v36  ;;  %v475_v43 = vadd.f32 %v474_v39, %v473_v37 }
 0x113   :  { %v349_v44 = vmax.f32 %v305_v40, 0.0  ;;  %v357_v45 = vmax.f32 %v337_v41, 0.0  ;;  %v308_v46 = vadd.f32 %v451_v42, %v651_v34  ;;  %v340_v47 = vadd.f32 %v475_v43, %v651_v34 }
 0x115   :  { %365 = vst [vmem:[%s720_s3 + $0x30] sm:$0xff] %v349_v44  ;;  %373 = vst [vmem:[%s720_s3 + $0x70] sm:$0xff] %v357_v45  ;;  %v350_v48 = vmax.f32 %v308_v46, 0.0  ;;  %v358_v49 = vmax.f32 %v340_v47, 0.0 }
 0x117   :  { %366 = vst [vmem:[%s720_s3 + $0x38] sm:$0xff] %v350_v48  ;;  %374 = vst [vmem:[%s720_s3 + $0x78] sm:$0xff] %v358_v49 }

// kernel: enet_forward.170
= control target key start
LH: loop header
LB: loop body
LE: loop exit
PB: predicated region body
PF: predicated region fallthrough
CT: control target
= control target key end

     0   :  { %s483_s1 = inlined_call_operand.vmem [shape: bf16[128,128], index: 1, kind: input, shape index: {}]   ;;  %s484_s0 = inlined_call_operand.vmem [shape: bf16[128,128], index: 0, kind: input, shape index: {}]   ;;  %s485_s2 = inlined_call_operand.vmem [shape: f32[1,128], index: 2, kind: input, shape index: {}]   ;;  %s486_s3 = inlined_call_operand.vmem [shape: f32[128,128], index: 3, kind: output, shape index: {}]  }
   0x1   :  { %v348_v0 = vld [vmem:[%s483_s1] sm:$0xff]   ;;  %v349_v1 = vld [vmem:[%s483_s1 + $0x8] sm:$0xff]   ;;  %v350_v2 = vld [vmem:[%s483_s1 + $0x10] sm:$0xff]  }
   0x2   :  { %300 = vmatprep.subr.bf16.mxu0 %v348_v0  ;;  %332 = vmatprep.subr.bf16.mxu1 %v348_v0  ;;  %v351_v3 = vld [vmem:[%s483_s1 + $0x18] sm:$0xff]   ;;  %v356_v4 = vld [vmem:[%s484_s0] sm:$0xff]   ;;  %v353_v7 = vld [vmem:[%s483_s1 + $0x28] sm:$0xff]  }
   0x3   :  { %301 = vmatpush3.bf16.msra.mxu0 %v348_v0  ;;  %340 = vmatpush3.bf16.msra.mxu1 %v348_v0  ;;  %v357_v5 = vld [vmem:[%s484_s0 + $0x20] sm:$0xff]   ;;  %v354_v8 = vld [vmem:[%s483_s1 + $0x30] sm:$0xff]   ;;  %v355_v9 = vld [vmem:[%s483_s1 + $0x38] sm:$0xff]  }
   0x4   :  { %302 = vmatprep.subr.bf16.mxu0 %v349_v1  ;;  %333 = vmatprep.subr.bf16.mxu1 %v349_v1  ;;  %v352_v6 = vld [vmem:[%s483_s1 + $0x20] sm:$0xff]   ;;  %v358_v10 = vld [vmem:[%s484_s0 + $0x8] sm:$0xff]   ;;  %v360_v12 = vld [vmem:[%s484_s0 + $0x10] sm:$0xff]  }
   0x5   :  { %316 = vmatprep.mubr.bf16.mxu0 %v356_v4  ;;  %324 = vmatprep.mubr.bf16.mxu1 %v357_v5  ;;  %v359_v11 = vld [vmem:[%s484_s0 + $0x28] sm:$0xff]   ;;  %v361_v13 = vld [vmem:[%s484_s0 + $0x30] sm:$0xff]   ;;  %v362_v14 = vld [vmem:[%s484_s0 + $0x18] sm:$0xff]  }
   0x6   :  { %v363_v15 = vld [vmem:[%s484_s0 + $0x38] sm:$0xff]   ;;  %v267_v16 = vld [vmem:[%s485_s2] ss:$0 sm:$0xff] }
   0x7   :  { %303 = vmatpush3.bf16.msra.mxu0 %v349_v1  ;;  %341 = vmatpush3.bf16.msra.mxu1 %v349_v1 }
   0x8   :  { %304 = vmatprep.subr.bf16.mxu0 %v350_v2  ;;  %334 = vmatprep.subr.bf16.mxu1 %v350_v2 }
   0xb   :  { %305 = vmatpush3.bf16.msra.mxu0 %v350_v2  ;;  %342 = vmatpush3.bf16.msra.mxu1 %v350_v2 }
   0xc   :  { %306 = vmatprep.subr.bf16.mxu0 %v351_v3  ;;  %335 = vmatprep.subr.bf16.mxu1 %v351_v3 }
   0xf   :  { %307 = vmatpush3.bf16.msra.mxu0 %v351_v3  ;;  %343 = vmatpush3.bf16.msra.mxu1 %v351_v3 }
  0x10   :  { %308 = vmatprep.subr.bf16.mxu0 %v352_v6  ;;  %336 = vmatprep.subr.bf16.mxu1 %v352_v6 }
  0x13   :  { %309 = vmatpush3.bf16.msra.mxu0 %v352_v6  ;;  %344 = vmatpush3.bf16.msra.mxu1 %v352_v6 }
  0x14   :  { %310 = vmatprep.subr.bf16.mxu0 %v353_v7  ;;  %337 = vmatprep.subr.bf16.mxu1 %v353_v7 }
  0x17   :  { %311 = vmatpush3.bf16.msra.mxu0 %v353_v7  ;;  %345 = vmatpush3.bf16.msra.mxu1 %v353_v7 }
  0x18   :  { %312 = vmatprep.subr.bf16.mxu0 %v354_v8  ;;  %338 = vmatprep.subr.bf16.mxu1 %v354_v8 }
  0x1b   :  { %313 = vmatpush3.bf16.msra.mxu0 %v354_v8  ;;  %346 = vmatpush3.bf16.msra.mxu1 %v354_v8 }
  0x1c   :  { %314 = vmatprep.subr.bf16.mxu0 %v355_v9  ;;  %339 = vmatprep.subr.bf16.mxu1 %v355_v9 }
  0x1f   :  { %315 = vmatpush3.bf16.msra.mxu0 %v355_v9  ;;  %347 = vmatpush3.bf16.msra.mxu1 %v355_v9 }
  0x22   :  { %317 = vmatmul.mubr.bf16.vlgmr.msra.gmra.mrb[0].mxu0 %v358_v10  ;;  %325 = vmatmul.mubr.bf16.vlgmr.msra.gmra.mrb[0].mxu1 %v359_v11 }
  0x23   :  { %320 = vmatprep.mubr.bf16.mxu0 %v360_v12  ;;  %328 = vmatprep.mubr.bf16.mxu1 %v361_v13 }
  0x2a   :  { %321 = vmatmul.mubr.bf16.gmra.mrb[4].mxu0 %v362_v14  ;;  %329 = vmatmul.mubr.bf16.gmra.mrb[4].mxu1 %v363_v15 }
  0xf5   :  { %v318_v17 = vpop.f32.mrb[0].mxu0  ;;  %v326_v18 = vpop.f32.mrb[0].mxu1 }
  0xf6   :  { %v193_v19 = vadd.f32 %v318_v17, %v267_v16  ;;  %v225_v20 = vadd.f32 %v326_v18, %v267_v16  ;;  %v184_v21 = vpop.f32.mrb[1].mxu0  ;;  %v216_v22 = vpop.f32.mrb[1].mxu1 }
  0xf7   :  { %v185_v23 = vadd.f32 %v267_v16, %v184_v21  ;;  %v217_v24 = vadd.f32 %v267_v16, %v216_v22  ;;  %v319_v25 = vpop.f32.mrb[2].mxu0  ;;  %v327_v26 = vpop.f32.mrb[2].mxu1 }
  0xf8   :  { %249 = vst [vmem:[%s486_s3 + $0x10] sm:$0xff] %v193_v19  ;;  %257 = vst [vmem:[%s486_s3 + $0x50] sm:$0xff] %v225_v20  ;;  %v196_v27 = vadd.f32 %v319_v25, %v267_v16  ;;  %v228_v28 = vadd.f32 %v327_v26, %v267_v16  ;;  %v187_v29 = vpop.f32.mrb[3].mxu0  ;;  %v219_v30 = vpop.f32.mrb[3].mxu1 }
  0xf9   :  { %247 = vst [vmem:[%s486_s3] sm:$0xff] %v185_v23  ;;  %255 = vst [vmem:[%s486_s3 + $0x40] sm:$0xff] %v217_v24  ;;  %v188_v31 = vadd.f32 %v267_v16, %v187_v29  ;;  %v220_v32 = vadd.f32 %v267_v16, %v219_v30 }
  0xfa   :  { %250 = vst [vmem:[%s486_s3 + $0x18] sm:$0xff] %v196_v27  ;;  %258 = vst [vmem:[%s486_s3 + $0x58] sm:$0xff] %v228_v28 }
  0xfb   :  { %248 = vst [vmem:[%s486_s3 + $0x8] sm:$0xff] %v188_v31  ;;  %256 = vst [vmem:[%s486_s3 + $0x48] sm:$0xff] %v220_v32 }
  0xfd   :  { %v322_v33 = vpop.f32.mrb[4].mxu0  ;;  %v330_v34 = vpop.f32.mrb[4].mxu1 }
  0xfe   :  { %v209_v35 = vadd.f32 %v322_v33, %v267_v16  ;;  %v241_v36 = vadd.f32 %v330_v34, %v267_v16  ;;  %v200_v37 = vpop.f32.mrb[5].mxu0  ;;  %v232_v38 = vpop.f32.mrb[5].mxu1 }
  0xff   :  { %v201_v39 = vadd.f32 %v267_v16, %v200_v37  ;;  %v233_v40 = vadd.f32 %v267_v16, %v232_v38  ;;  %v323_v41 = vpop.f32.mrb[6].mxu0  ;;  %v331_v42 = vpop.f32.mrb[6].mxu1 }
 0x100   :  { %253 = vst [vmem:[%s486_s3 + $0x30] sm:$0xff] %v209_v35  ;;  %261 = vst [vmem:[%s486_s3 + $0x70] sm:$0xff] %v241_v36  ;;  %v212_v43 = vadd.f32 %v323_v41, %v267_v16  ;;  %v244_v44 = vadd.f32 %v331_v42, %v267_v16  ;;  %v203_v45 = vpop.f32.mrb[7].mxu0  ;;  %v235_v46 = vpop.f32.mrb[7].mxu1 }
 0x101   :  { %251 = vst [vmem:[%s486_s3 + $0x20] sm:$0xff] %v201_v39  ;;  %259 = vst [vmem:[%s486_s3 + $0x60] sm:$0xff] %v233_v40  ;;  %v204_v47 = vadd.f32 %v267_v16, %v203_v45  ;;  %v236_v48 = vadd.f32 %v267_v16, %v235_v46 }
 0x102   :  { %254 = vst [vmem:[%s486_s3 + $0x38] sm:$0xff] %v212_v43  ;;  %262 = vst [vmem:[%s486_s3 + $0x78] sm:$0xff] %v244_v44 }
 0x103   :  { %252 = vst [vmem:[%s486_s3 + $0x28] sm:$0xff] %v204_v47  ;;  %260 = vst [vmem:[%s486_s3 + $0x68] sm:$0xff] %v236_v48 }

// kernel: enet_forward.173
= control target key start
LH: loop header
LB: loop body
LE: loop exit
PB: predicated region body
PF: predicated region fallthrough
CT: control target
= control target key end

     0   :  { %s1773_s1 = inlined_call_operand.vmem [shape: bf16[128,128], index: 1, kind: input, shape index: {}]   ;;  %s1774_s0 = inlined_call_operand.vmem [shape: bf16[512,128], index: 0, kind: input, shape index: {}]   ;;  %s1775_s2 = inlined_call_operand.vmem [shape: f32[1,128], index: 2, kind: input, shape index: {}]   ;;  %s1776_s3 = inlined_call_operand.vmem [shape: f32[512,128], index: 3, kind: input, shape index: {}]   ;;  %s1777_s4 = inlined_call_operand.vmem [shape: f32[512,128], index: 4, kind: output, shape index: {}]  }
   0x1   :  { %v1135_v0 = vld [vmem:[%s1773_s1] sm:$0xff]   ;;  %v1136_v1 = vld [vmem:[%s1773_s1 + $0x8] sm:$0xff]   ;;  %v1137_v2 = vld [vmem:[%s1773_s1 + $0x10] sm:$0xff]  }
   0x2   :  { %1039 = vmatprep.subr.bf16.mxu0 %v1135_v0  ;;  %1119 = vmatprep.subr.bf16.mxu1 %v1135_v0  ;;  %v1138_v3 = vld [vmem:[%s1773_s1 + $0x18] sm:$0xff]   ;;  %v1143_v4 = vld [vmem:[%s1774_s0] sm:$0xff]   ;;  %v1140_v7 = vld [vmem:[%s1773_s1 + $0x28] sm:$0xff]  }
   0x3   :  { %1040 = vmatpush3.bf16.msra.mxu0 %v1135_v0  ;;  %1127 = vmatpush3.bf16.msra.mxu1 %v1135_v0  ;;  %v1144_v5 = vld [vmem:[%s1774_s0 + $0x80] sm:$0xff]   ;;  %v1141_v8 = vld [vmem:[%s1773_s1 + $0x30] sm:$0xff]   ;;  %v1142_v9 = vld [vmem:[%s1773_s1 + $0x38] sm:$0xff]  }
   0x4   :  { %1041 = vmatprep.subr.bf16.mxu0 %v1136_v1  ;;  %1120 = vmatprep.subr.bf16.mxu1 %v1136_v1  ;;  %v1139_v6 = vld [vmem:[%s1773_s1 + $0x20] sm:$0xff]   ;;  %v1145_v10 = vld [vmem:[%s1774_s0 + $0x8] sm:$0xff]   ;;  %v1147_v12 = vld [vmem:[%s1774_s0 + $0x10] sm:$0xff]  }
   0x5   :  { %1055 = vmatprep.mubr.bf16.mxu0 %v1143_v4  ;;  %1087 = vmatprep.mubr.bf16.mxu1 %v1144_v5  ;;  %v1146_v11 = vld [vmem:[%s1774_s0 + $0x88] sm:$0xff]   ;;  %v1148_v13 = vld [vmem:[%s1774_s0 + $0x90] sm:$0xff]   ;;  %v1149_v14 = vld [vmem:[%s1774_s0 + $0x18] sm:$0xff]  }
   0x6   :  { %v1150_v15 = vld [vmem:[%s1774_s0 + $0x98] sm:$0xff]   ;;  %v1151_v16 = vld [vmem:[%s1774_s0 + $0x20] sm:$0xff]   ;;  %v1153_v18 = vld [vmem:[%s1774_s0 + $0x28] sm:$0xff]  }
   0x7   :  { %1042 = vmatpush3.bf16.msra.mxu0 %v1136_v1  ;;  %1128 = vmatpush3.bf16.msra.mxu1 %v1136_v1  ;;  %v1152_v17 = vld [vmem:[%s1774_s0 + $0xa0] sm:$0xff]   ;;  %v1154_v19 = vld [vmem:[%s1774_s0 + $0xa8] sm:$0xff]   ;;  %v1155_v20 = vld [vmem:[%s1774_s0 + $0x30] sm:$0xff]  }
   0x8   :  { %1043 = vmatprep.subr.bf16.mxu0 %v1137_v2  ;;  %1121 = vmatprep.subr.bf16.mxu1 %v1137_v2  ;;  %v1156_v21 = vld [vmem:[%s1774_s0 + $0xb0] sm:$0xff]   ;;  %v1157_v22 = vld [vmem:[%s1774_s0 + $0x38] sm:$0xff]   ;;  %v1159_v24 = vld [vmem:[%s1774_s0 + $0x40] sm:$0xff]  }
   0x9   :  { %v1158_v23 = vld [vmem:[%s1774_s0 + $0xb8] sm:$0xff]   ;;  %v1160_v25 = vld [vmem:[%s1774_s0 + $0xc0] sm:$0xff]   ;;  %v1161_v26 = vld [vmem:[%s1774_s0 + $0x48] sm:$0xff]  }
   0xa   :  { %v1162_v27 = vld [vmem:[%s1774_s0 + $0xc8] sm:$0xff]   ;;  %v1163_v28 = vld [vmem:[%s1774_s0 + $0x50] sm:$0xff]   ;;  %v1165_v30 = vld [vmem:[%s1774_s0 + $0x58] sm:$0xff]  }
   0xb   :  { %1044 = vmatpush3.bf16.msra.mxu0 %v1137_v2  ;;  %1129 = vmatpush3.bf16.msra.mxu1 %v1137_v2  ;;  %v1164_v29 = vld [vmem:[%s1774_s0 + $0xd0] sm:$0xff]   ;;  %v1166_v31 = vld [vmem:[%s1774_s0 + $0xd8] sm:$0xff]   ;;  %v1167_v32 = vld [vmem:[%s1774_s0 + $0x60] sm:$0xff]  }
   0xc   :  { %1045 = vmatprep.subr.bf16.mxu0 %v1138_v3  ;;  %1122 = vmatprep.subr.bf16.mxu1 %v1138_v3  ;;  %v1168_v33 = vld [vmem:[%s1774_s0 + $0xe0] sm:$0xff]   ;;  %v1169_v34 = vld [vmem:[%s1774_s0 + $0x68] sm:$0xff]   ;;  %v1171_v36 = vld [vmem:[%s1774_s0 + $0x70] sm:$0xff]  }
   0xd   :  { %v1170_v35 = vld [vmem:[%s1774_s0 + $0xe8] sm:$0xff]   ;;  %v1172_v37 = vld [vmem:[%s1774_s0 + $0xf0] sm:$0xff]   ;;  %v1173_v38 = vld [vmem:[%s1774_s0 + $0x78] sm:$0xff]  }
   0xe   :  { %v1174_v39 = vld [vmem:[%s1774_s0 + $0xf8] sm:$0xff]   ;;  %v1323_v40 = vld [vmem:[%s1775_s2] ss:$0 sm:$0xff]  ;;  %v700_v47 = vld [vmem:[%s1776_s3 + $0x10] sm:$0xff] }
   0xf   :  { %1046 = vmatpush3.bf16.msra.mxu0 %v1138_v3  ;;  %1130 = vmatpush3.bf16.msra.mxu1 %v1138_v3  ;;  %v732_v48 = vld [vmem:[%s1776_s3 + $0x110] sm:$0xff]  ;;  %v698_v55 = vld [vmem:[%s1776_s3] sm:$0xff]  ;;  %v701_v63 = vld [vmem:[%s1776_s3 + $0x18] sm:$0xff] }
  0x10   :  { %1047 = vmatprep.subr.bf16.mxu0 %v1139_v6  ;;  %1123 = vmatprep.subr.bf16.mxu1 %v1139_v6  ;;  %v730_v56 = vld [vmem:[%s1776_s3 + $0x100] sm:$0xff]  ;;  %v733_v0 = vld [vmem:[%s1776_s3 + $0x118] sm:$0xff] }
  0x13   :  { %1048 = vmatpush3.bf16.msra.mxu0 %v1139_v6  ;;  %1131 = vmatpush3.bf16.msra.mxu1 %v1139_v6 }
  0x14   :  { %1049 = vmatprep.subr.bf16.mxu0 %v1140_v7  ;;  %1124 = vmatprep.subr.bf16.mxu1 %v1140_v7 }
  0x17   :  { %1050 = vmatpush3.bf16.msra.mxu0 %v1140_v7  ;;  %1132 = vmatpush3.bf16.msra.mxu1 %v1140_v7  ;;  %v699_v7 = vld [vmem:[%s1776_s3 + $0x8] sm:$0xff] }
  0x18   :  { %1051 = vmatprep.subr.bf16.mxu0 %v1141_v8  ;;  %1125 = vmatprep.subr.bf16.mxu1 %v1141_v8 }
  0x1b   :  { %1052 = vmatpush3.bf16.msra.mxu0 %v1141_v8  ;;  %1133 = vmatpush3.bf16.msra.mxu1 %v1141_v8  ;;  %v731_v8 = vld [vmem:[%s1776_s3 + $0x108] sm:$0xff] }
  0x1c   :  { %1053 = vmatprep.subr.bf16.mxu0 %v1142_v9  ;;  %1126 = vmatprep.subr.bf16.mxu1 %v1142_v9 }
  0x1f   :  { %1054 = vmatpush3.bf16.msra.mxu0 %v1142_v9  ;;  %1134 = vmatpush3.bf16.msra.mxu1 %v1142_v9 }
  0x22   :  { %1056 = vmatmul.mubr.bf16.vlgmr.msra.gmra.mrb[0].mxu0 %v1145_v10  ;;  %1088 = vmatmul.mubr.bf16.vlgmr.msra.gmra.mrb[0].mxu1 %v1146_v11 }
  0x23   :  { %1059 = vmatprep.mubr.bf16.mxu0 %v1147_v12  ;;  %1091 = vmatprep.mubr.bf16.mxu1 %v1148_v13 }
  0x2a   :  { %1060 = vmatmul.mubr.bf16.gmra.mrb[4].mxu0 %v1149_v14  ;;  %1092 = vmatmul.mubr.bf16.gmra.mrb[4].mxu1 %v1150_v15 }
  0x2b   :  { %1063 = vmatprep.mubr.bf16.mxu0 %v1151_v16  ;;  %1095 = vmatprep.mubr.bf16.mxu1 %v1152_v17 }
  0x32   :  { %1064 = vmatmul.mubr.bf16.gmra.mrb[8].mxu0 %v1153_v18  ;;  %1096 = vmatmul.mubr.bf16.gmra.mrb[8].mxu1 %v1154_v19 }
  0x33   :  { %1067 = vmatprep.mubr.bf16.mxu0 %v1155_v20  ;;  %1099 = vmatprep.mubr.bf16.mxu1 %v1156_v21 }
  0x3a   :  { %1068 = vmatmul.mubr.bf16.gmra.mrb[12].mxu0 %v1157_v22  ;;  %1100 = vmatmul.mubr.bf16.gmra.mrb[12].mxu1 %v1158_v23 }
  0x3b   :  { %1071 = vmatprep.mubr.bf16.mxu0 %v1159_v24  ;;  %1103 = vmatprep.mubr.bf16.mxu1 %v1160_v25 }
  0x42   :  { %1072 = vmatmul.mubr.bf16.gmra.mrb[16].mxu0 %v1161_v26  ;;  %1104 = vmatmul.mubr.bf16.gmra.mrb[16].mxu1 %v1162_v27 }
  0x43   :  { %1075 = vmatprep.mubr.bf16.mxu0 %v1163_v28  ;;  %1107 = vmatprep.mubr.bf16.mxu1 %v1164_v29 }
  0x4a   :  { %1076 = vmatmul.mubr.bf16.gmra.mrb[20].mxu0 %v1165_v30  ;;  %1108 = vmatmul.mubr.bf16.gmra.mrb[20].mxu1 %v1166_v31  ;;  %v704_v31 = vld [vmem:[%s1776_s3 + $0x30] sm:$0xff] }
  0x4b   :  { %1079 = vmatprep.mubr.bf16.mxu0 %v1167_v32  ;;  %1111 = vmatprep.mubr.bf16.mxu1 %v1168_v33  ;;  %v736_v32 = vld [vmem:[%s1776_s3 + $0x130] sm:$0xff] }
  0x52   :  { %1080 = vmatmul.mubr.bf16.gmra.mrb[24].mxu0 %v1169_v34  ;;  %1112 = vmatmul.mubr.bf16.gmra.mrb[24].mxu1 %v1170_v35 }
  0x53   :  { %1083 = vmatprep.mubr.bf16.mxu0 %v1171_v36  ;;  %1115 = vmatprep.mubr.bf16.mxu1 %v1172_v37 }
  0x5a   :  { %1084 = vmatmul.mubr.bf16.gmra.mrb[28].mxu0 %v1173_v38  ;;  %1116 = vmatmul.mubr.bf16.gmra.mrb[28].mxu1 %v1174_v39  ;;  %v702_v39 = vld [vmem:[%s1776_s3 + $0x20] sm:$0xff] }
  0xf5   :  { %v1057_v41 = vpop.f32.mrb[0].mxu0  ;;  %v1089_v42 = vpop.f32.mrb[0].mxu1 }
  0xf6   :  { %v388_v43 = vadd.f32 %v1057_v41, %v1323_v40  ;;  %v516_v44 = vadd.f32 %v1089_v42, %v1323_v40  ;;  %v379_v45 = vpop.f32.mrb[1].mxu0  ;;  %v507_v46 = vpop.f32.mrb[1].mxu1  ;;  %v734_v41 = vld [vmem:[%s1776_s3 + $0x120] sm:$0xff] }
  0xf7   :  { %v380_v49 = vadd.f32 %v1323_v40, %v379_v45  ;;  %v508_v50 = vadd.f32 %v1323_v40, %v507_v46  ;;  %v1058_v51 = vpop.f32.mrb[2].mxu0  ;;  %v1090_v52 = vpop.f32.mrb[2].mxu1 }
  0xf8   :  { %v636_v53 = vmax.f32 %v388_v43, 0.0  ;;  %v668_v54 = vmax.f32 %v516_v44, 0.0  ;;  %v391_v57 = vadd.f32 %v1058_v51, %v1323_v40  ;;  %v519_v58 = vadd.f32 %v1090_v52, %v1323_v40  ;;  %v382_v59 = vpop.f32.mrb[3].mxu0  ;;  %v510_v60 = vpop.f32.mrb[3].mxu1 }
  0xf9   :  { %v634_v61 = vmax.f32 %v380_v49, 0.0  ;;  %v666_v62 = vmax.f32 %v508_v50, 0.0  ;;  %v383_v1 = vadd.f32 %v1323_v40, %v382_v59  ;;  %v511_v2 = vadd.f32 %v1323_v40, %v510_v60  ;;  %v737_v49 = vld [vmem:[%s1776_s3 + $0x138] sm:$0xff] }
  0xfa   :  { %v764_v3 = vadd.f32 %v700_v47, %v636_v53  ;;  %v796_v4 = vadd.f32 %v732_v48, %v668_v54  ;;  %v637_v5 = vmax.f32 %v391_v57, 0.0  ;;  %v669_v6 = vmax.f32 %v519_v58, 0.0  ;;  %v705_v48 = vld [vmem:[%s1776_s3 + $0x38] sm:$0xff]  ;;  %v735_v57 = vld [vmem:[%s1776_s3 + $0x128] sm:$0xff] }
  0xfb   :  { %v762_v9 = vadd.f32 %v698_v55, %v634_v61  ;;  %v794_v10 = vadd.f32 %v730_v56, %v666_v62  ;;  %v635_v11 = vmax.f32 %v383_v1, 0.0  ;;  %v667_v12 = vmax.f32 %v511_v2, 0.0  ;;  %v703_v56 = vld [vmem:[%s1776_s3 + $0x28] sm:$0xff] }
  0xfc   :  { %v828_v13 = vmax.f32 %v764_v3, 0.0  ;;  %v860_v14 = vmax.f32 %v796_v4, 0.0  ;;  %v765_v15 = vadd.f32 %v701_v63, %v637_v5  ;;  %v797_v16 = vadd.f32 %v733_v0, %v669_v6 }
  0xfd   :  { %v826_v17 = vmax.f32 %v762_v9, 0.0  ;;  %v858_v18 = vmax.f32 %v794_v10, 0.0  ;;  %v763_v19 = vadd.f32 %v699_v7, %v635_v11  ;;  %v795_v20 = vadd.f32 %v731_v8, %v667_v12  ;;  %v1061_v21 = vpop.f32.mrb[4].mxu0  ;;  %v1093_v22 = vpop.f32.mrb[4].mxu1 }
  0xfe   :  { %892 = vst [vmem:[%s1777_s4 + $0x10] sm:$0xff] %v828_v13  ;;  %924 = vst [vmem:[%s1777_s4 + $0x110] sm:$0xff] %v860_v14  ;;  %v829_v23 = vmax.f32 %v765_v15, 0.0  ;;  %v861_v24 = vmax.f32 %v797_v16, 0.0  ;;  %v404_v25 = vadd.f32 %v1061_v21, %v1323_v40  ;;  %v532_v26 = vadd.f32 %v1093_v22, %v1323_v40  ;;  %v395_v27 = vpop.f32.mrb[5].mxu0  ;;  %v523_v28 = vpop.f32.mrb[5].mxu1 }
  0xff   :  { %890 = vst [vmem:[%s1777_s4] sm:$0xff] %v826_v17  ;;  %922 = vst [vmem:[%s1777_s4 + $0x100] sm:$0xff] %v858_v18  ;;  %v827_v29 = vmax.f32 %v763_v19, 0.0  ;;  %v859_v30 = vmax.f32 %v795_v20, 0.0  ;;  %v396_v33 = vadd.f32 %v1323_v40, %v395_v27  ;;  %v524_v34 = vadd.f32 %v1323_v40, %v523_v28  ;;  %v1062_v35 = vpop.f32.mrb[6].mxu0  ;;  %v1094_v36 = vpop.f32.mrb[6].mxu1  ;;  %v708_v16 = vld [vmem:[%s1776_s3 + $0x50] sm:$0xff] }
 0x100   :  { %893 = vst [vmem:[%s1777_s4 + $0x18] sm:$0xff] %v829_v23  ;;  %925 = vst [vmem:[%s1777_s4 + $0x118] sm:$0xff] %v861_v24  ;;  %v640_v37 = vmax.f32 %v404_v25, 0.0  ;;  %v672_v38 = vmax.f32 %v532_v26, 0.0  ;;  %v407_v42 = vadd.f32 %v1062_v35, %v1323_v40  ;;  %v535_v43 = vadd.f32 %v1094_v36, %v1323_v40  ;;  %v398_v44 = vpop.f32.mrb[7].mxu0  ;;  %v526_v45 = vpop.f32.mrb[7].mxu1 }
 0x101   :  { %891 = vst [vmem:[%s1777_s4 + $0x8] sm:$0xff] %v827_v29  ;;  %923 = vst [vmem:[%s1777_s4 + $0x108] sm:$0xff] %v859_v30  ;;  %v638_v46 = vmax.f32 %v396_v33, 0.0  ;;  %v670_v47 = vmax.f32 %v524_v34, 0.0  ;;  %v399_v50 = vadd.f32 %v1323_v40, %v398_v44  ;;  %v527_v51 = vadd.f32 %v1323_v40, %v526_v45  ;;  %v740_v17 = vld [vmem:[%s1776_s3 + $0x150] sm:$0xff]  ;;  %v706_v24 = vld [vmem:[%s1776_s3 + $0x40] sm:$0xff] }
 0x102   :  { %v768_v52 = vadd.f32 %v704_v31, %v640_v37  ;;  %v800_v53 = vadd.f32 %v736_v32, %v672_v38  ;;  %v641_v54 = vmax.f32 %v407_v42, 0.0  ;;  %v673_v55 = vmax.f32 %v535_v43, 0.0  ;;  %v738_v25 = vld [vmem:[%s1776_s3 + $0x140] sm:$0xff]  ;;  %v709_v32 = vld [vmem:[%s1776_s3 + $0x58] sm:$0xff]  ;;  %v739_v42 = vld [vmem:[%s1776_s3 + $0x148] sm:$0xff] }
 0x103   :  { %v766_v58 = vadd.f32 %v702_v39, %v638_v46  ;;  %v798_v59 = vadd.f32 %v734_v41, %v670_v47  ;;  %v639_v60 = vmax.f32 %v399_v50, 0.0  ;;  %v671_v61 = vmax.f32 %v527_v51, 0.0  ;;  %v741_v33 = vld [vmem:[%s1776_s3 + $0x158] sm:$0xff]  ;;  %v707_v41 = vld [vmem:[%s1776_s3 + $0x48] sm:$0xff] }
 0x104   :  { %v832_v62 = vmax.f32 %v768_v52, 0.0  ;;  %v864_v63 = vmax.f32 %v800_v53, 0.0  ;;  %v769_v0 = vadd.f32 %v705_v48, %v641_v54  ;;  %v801_v1 = vadd.f32 %v737_v49, %v673_v55 }
 0x105   :  { %v830_v2 = vmax.f32 %v766_v58, 0.0  ;;  %v862_v3 = vmax.f32 %v798_v59, 0.0  ;;  %v767_v4 = vadd.f32 %v703_v56, %v639_v60  ;;  %v799_v5 = vadd.f32 %v735_v57, %v671_v61  ;;  %v1065_v6 = vpop.f32.mrb[8].mxu0  ;;  %v1097_v7 = vpop.f32.mrb[8].mxu1 }
 0x106   :  { %896 = vst [vmem:[%s1777_s4 + $0x30] sm:$0xff] %v832_v62  ;;  %928 = vst [vmem:[%s1777_s4 + $0x130] sm:$0xff] %v864_v63  ;;  %v833_v8 = vmax.f32 %v769_v0, 0.0  ;;  %v865_v9 = vmax.f32 %v801_v1, 0.0  ;;  %v420_v10 = vadd.f32 %v1065_v6, %v1323_v40  ;;  %v548_v11 = vadd.f32 %v1097_v7, %v1323_v40  ;;  %v411_v12 = vpop.f32.mrb[9].mxu0  ;;  %v539_v13 = vpop.f32.mrb[9].mxu1 }
 0x107   :  { %894 = vst [vmem:[%s1777_s4 + $0x20] sm:$0xff] %v830_v2  ;;  %926 = vst [vmem:[%s1777_s4 + $0x120] sm:$0xff] %v862_v3  ;;  %v831_v14 = vmax.f32 %v767_v4, 0.0  ;;  %v863_v15 = vmax.f32 %v799_v5, 0.0  ;;  %v412_v18 = vadd.f32 %v1323_v40, %v411_v12  ;;  %v540_v19 = vadd.f32 %v1323_v40, %v539_v13  ;;  %v1066_v20 = vpop.f32.mrb[10].mxu0  ;;  %v1098_v21 = vpop.f32.mrb[10].mxu1 }
 0x108   :  { %897 = vst [vmem:[%s1777_s4 + $0x38] sm:$0xff] %v833_v8  ;;  %929 = vst [vmem:[%s1777_s4 + $0x138] sm:$0xff] %v865_v9  ;;  %v644_v22 = vmax.f32 %v420_v10, 0.0  ;;  %v676_v23 = vmax.f32 %v548_v11, 0.0  ;;  %v423_v26 = vadd.f32 %v1066_v20, %v1323_v40  ;;  %v551_v27 = vadd.f32 %v1098_v21, %v1323_v40  ;;  %v414_v28 = vpop.f32.mrb[11].mxu0  ;;  %v542_v29 = vpop.f32.mrb[11].mxu1 }
 0x109   :  { %895 = vst [vmem:[%s1777_s4 + $0x28] sm:$0xff] %v831_v14  ;;  %927 = vst [vmem:[%s1777_s4 + $0x128] sm:$0xff] %v863_v15  ;;  %v642_v30 = vmax.f32 %v412_v18, 0.0  ;;  %v674_v31 = vmax.f32 %v540_v19, 0.0  ;;  %v415_v34 = vadd.f32 %v1323_v40, %v414_v28  ;;  %v543_v35 = vadd.f32 %v1323_v40, %v542_v29  ;;  %v712_v1 = vld [vmem:[%s1776_s3 + $0x70] sm:$0xff]  ;;  %v710_v9 = vld [vmem:[%s1776_s3 + $0x60] sm:$0xff] }
 0x10a   :  { %v772_v36 = vadd.f32 %v708_v16, %v644_v22  ;;  %v804_v37 = vadd.f32 %v740_v17, %v676_v23  ;;  %v645_v38 = vmax.f32 %v423_v26, 0.0  ;;  %v677_v39 = vmax.f32 %v551_v27, 0.0  ;;  %v744_v2 = vld [vmem:[%s1776_s3 + $0x170] sm:$0xff]  ;;  %v742_v10 = vld [vmem:[%s1776_s3 + $0x160] sm:$0xff]  ;;  %v713_v17 = vld [vmem:[%s1776_s3 + $0x78] sm:$0xff] }
 0x10b   :  { %v770_v43 = vadd.f32 %v706_v24, %v642_v30  ;;  %v802_v44 = vadd.f32 %v738_v25, %v674_v31  ;;  %v643_v45 = vmax.f32 %v415_v34, 0.0  ;;  %v675_v46 = vmax.f32 %v543_v35, 0.0  ;;  %v745_v18 = vld [vmem:[%s1776_s3 + $0x178] sm:$0xff]  ;;  %v711_v25 = vld [vmem:[%s1776_s3 + $0x68] sm:$0xff] }
 0x10c   :  { %v836_v47 = vmax.f32 %v772_v36, 0.0  ;;  %v868_v48 = vmax.f32 %v804_v37, 0.0  ;;  %v773_v49 = vadd.f32 %v709_v32, %v645_v38  ;;  %v805_v50 = vadd.f32 %v741_v33, %v677_v39  ;;  %v743_v26 = vld [vmem:[%s1776_s3 + $0x168] sm:$0xff] }
 0x10d   :  { %v834_v51 = vmax.f32 %v770_v43, 0.0  ;;  %v866_v52 = vmax.f32 %v802_v44, 0.0  ;;  %v771_v53 = vadd.f32 %v707_v41, %v643_v45  ;;  %v803_v54 = vadd.f32 %v739_v42, %v675_v46  ;;  %v1069_v55 = vpop.f32.mrb[12].mxu0  ;;  %v1101_v56 = vpop.f32.mrb[12].mxu1 }
 0x10e   :  { %900 = vst [vmem:[%s1777_s4 + $0x50] sm:$0xff] %v836_v47  ;;  %932 = vst [vmem:[%s1777_s4 + $0x150] sm:$0xff] %v868_v48  ;;  %v837_v57 = vmax.f32 %v773_v49, 0.0  ;;  %v869_v58 = vmax.f32 %v805_v50, 0.0  ;;  %v436_v59 = vadd.f32 %v1069_v55, %v1323_v40  ;;  %v564_v60 = vadd.f32 %v1101_v56, %v1323_v40  ;;  %v427_v61 = vpop.f32.mrb[13].mxu0  ;;  %v555_v62 = vpop.f32.mrb[13].mxu1 }
 0x10f   :  { %898 = vst [vmem:[%s1777_s4 + $0x40] sm:$0xff] %v834_v51  ;;  %930 = vst [vmem:[%s1777_s4 + $0x140] sm:$0xff] %v866_v52  ;;  %v835_v63 = vmax.f32 %v771_v53, 0.0  ;;  %v867_v0 = vmax.f32 %v803_v54, 0.0  ;;  %v428_v3 = vadd.f32 %v1323_v40, %v427_v61  ;;  %v556_v4 = vadd.f32 %v1323_v40, %v555_v62  ;;  %v1070_v5 = vpop.f32.mrb[14].mxu0  ;;  %v1102_v6 = vpop.f32.mrb[14].mxu1 }
 0x110   :  { %901 = vst [vmem:[%s1777_s4 + $0x58] sm:$0xff] %v837_v57  ;;  %933 = vst [vmem:[%s1777_s4 + $0x158] sm:$0xff] %v869_v58  ;;  %v648_v7 = vmax.f32 %v436_v59, 0.0  ;;  %v680_v8 = vmax.f32 %v564_v60, 0.0  ;;  %v439_v11 = vadd.f32 %v1070_v5, %v1323_v40  ;;  %v567_v12 = vadd.f32 %v1102_v6, %v1323_v40  ;;  %v430_v13 = vpop.f32.mrb[15].mxu0  ;;  %v558_v14 = vpop.f32.mrb[15].mxu1 }
 0x111   :  { %899 = vst [vmem:[%s1777_s4 + $0x48] sm:$0xff] %v835_v63  ;;  %931 = vst [vmem:[%s1777_s4 + $0x148] sm:$0xff] %v867_v0  ;;  %v646_v15 = vmax.f32 %v428_v3, 0.0  ;;  %v678_v16 = vmax.f32 %v556_v4, 0.0  ;;  %v431_v19 = vadd.f32 %v1323_v40, %v430_v13  ;;  %v559_v20 = vadd.f32 %v1323_v40, %v558_v14  ;;  %v716_v50 = vld [vmem:[%s1776_s3 + $0x90] sm:$0xff]  ;;  %v714_v58 = vld [vmem:[%s1776_s3 + $0x80] sm:$0xff] }
 0x112   :  { %v776_v21 = vadd.f32 %v712_v1, %v648_v7  ;;  %v808_v22 = vadd.f32 %v744_v2, %v680_v8  ;;  %v649_v23 = vmax.f32 %v439_v11, 0.0  ;;  %v681_v24 = vmax.f32 %v567_v12, 0.0  ;;  %v748_v51 = vld [vmem:[%s1776_s3 + $0x190] sm:$0xff]  ;;  %v746_v59 = vld [vmem:[%s1776_s3 + $0x180] sm:$0xff]  ;;  %v717_v2 = vld [vmem:[%s1776_s3 + $0x98] sm:$0xff] }
 0x113   :  { %v774_v27 = vadd.f32 %v710_v9, %v646_v15  ;;  %v806_v28 = vadd.f32 %v742_v10, %v678_v16  ;;  %v647_v29 = vmax.f32 %v431_v19, 0.0  ;;  %v679_v30 = vmax.f32 %v559_v20, 0.0  ;;  %v749_v3 = vld [vmem:[%s1776_s3 + $0x198] sm:$0xff]  ;;  %v715_v10 = vld [vmem:[%s1776_s3 + $0x88] sm:$0xff] }
 0x114   :  { %v840_v31 = vmax.f32 %v776_v21, 0.0  ;;  %v872_v32 = vmax.f32 %v808_v22, 0.0  ;;  %v777_v33 = vadd.f32 %v713_v17, %v649_v23  ;;  %v809_v34 = vadd.f32 %v745_v18, %v681_v24  ;;  %v747_v11 = vld [vmem:[%s1776_s3 + $0x188] sm:$0xff] }
 0x115   :  { %v838_v35 = vmax.f32 %v774_v27, 0.0  ;;  %v870_v36 = vmax.f32 %v806_v28, 0.0  ;;  %v775_v37 = vadd.f32 %v711_v25, %v647_v29  ;;  %v807_v38 = vadd.f32 %v743_v26, %v679_v30  ;;  %v1073_v39 = vpop.f32.mrb[16].mxu0  ;;  %v1105_v41 = vpop.f32.mrb[16].mxu1 }
 0x116   :  { %904 = vst [vmem:[%s1777_s4 + $0x70] sm:$0xff] %v840_v31  ;;  %936 = vst [vmem:[%s1777_s4 + $0x170] sm:$0xff] %v872_v32  ;;  %v841_v42 = vmax.f32 %v777_v33, 0.0  ;;  %v873_v43 = vmax.f32 %v809_v34, 0.0  ;;  %v452_v44 = vadd.f32 %v1073_v39, %v1323_v40  ;;  %v580_v45 = vadd.f32 %v1105_v41, %v1323_v40  ;;  %v443_v46 = vpop.f32.mrb[17].mxu0  ;;  %v571_v47 = vpop.f32.mrb[17].mxu1 }
 0x117   :  { %902 = vst [vmem:[%s1777_s4 + $0x60] sm:$0xff] %v838_v35  ;;  %934 = vst [vmem:[%s1777_s4 + $0x160] sm:$0xff] %v870_v36  ;;  %v839_v48 = vmax.f32 %v775_v37, 0.0  ;;  %v871_v49 = vmax.f32 %v807_v38, 0.0  ;;  %v444_v52 = vadd.f32 %v1323_v40, %v443_v46  ;;  %v572_v53 = vadd.f32 %v1323_v40, %v571_v47  ;;  %v1074_v54 = vpop.f32.mrb[18].mxu0  ;;  %v1106_v55 = vpop.f32.mrb[18].mxu1 }
 0x118   :  { %905 = vst [vmem:[%s1777_s4 + $0x78] sm:$0xff] %v841_v42  ;;  %937 = vst [vmem:[%s1777_s4 + $0x178] sm:$0xff] %v873_v43  ;;  %v652_v56 = vmax.f32 %v452_v44, 0.0  ;;  %v684_v57 = vmax.f32 %v580_v45, 0.0  ;;  %v455_v60 = vadd.f32 %v1074_v54, %v1323_v40  ;;  %v583_v61 = vadd.f32 %v1106_v55, %v1323_v40  ;;  %v446_v62 = vpop.f32.mrb[19].mxu0  ;;  %v574_v63 = vpop.f32.mrb[19].mxu1 }
 0x119   :  { %903 = vst [vmem:[%s1777_s4 + $0x68] sm:$0xff] %v839_v48  ;;  %935 = vst [vmem:[%s1777_s4 + $0x168] sm:$0xff] %v871_v49  ;;  %v650_v0 = vmax.f32 %v444_v52, 0.0  ;;  %v682_v1 = vmax.f32 %v572_v53, 0.0  ;;  %v447_v4 = vadd.f32 %v1323_v40, %v446_v62  ;;  %v575_v5 = vadd.f32 %v1323_v40, %v574_v63  ;;  %v720_v34 = vld [vmem:[%s1776_s3 + $0xb0] sm:$0xff]  ;;  %v718_v43 = vld [vmem:[%s1776_s3 + $0xa0] sm:$0xff] }
 0x11a   :  { %v780_v6 = vadd.f32 %v716_v50, %v652_v56  ;;  %v812_v7 = vadd.f32 %v748_v51, %v684_v57  ;;  %v653_v8 = vmax.f32 %v455_v60, 0.0  ;;  %v685_v9 = vmax.f32 %v583_v61, 0.0  ;;  %v752_v35 = vld [vmem:[%s1776_s3 + $0x1b0] sm:$0xff]  ;;  %v750_v44 = vld [vmem:[%s1776_s3 + $0x1a0] sm:$0xff]  ;;  %v721_v51 = vld [vmem:[%s1776_s3 + $0xb8] sm:$0xff] }
 0x11b   :  { %v778_v12 = vadd.f32 %v714_v58, %v650_v0  ;;  %v810_v13 = vadd.f32 %v746_v59, %v682_v1  ;;  %v651_v14 = vmax.f32 %v447_v4, 0.0  ;;  %v683_v15 = vmax.f32 %v575_v5, 0.0  ;;  %v753_v52 = vld [vmem:[%s1776_s3 + $0x1b8] sm:$0xff]  ;;  %v719_v59 = vld [vmem:[%s1776_s3 + $0xa8] sm:$0xff] }
 0x11c   :  { %v844_v16 = vmax.f32 %v780_v6, 0.0  ;;  %v876_v17 = vmax.f32 %v812_v7, 0.0  ;;  %v781_v18 = vadd.f32 %v717_v2, %v653_v8  ;;  %v813_v19 = vadd.f32 %v749_v3, %v685_v9  ;;  %v751_v60 = vld [vmem:[%s1776_s3 + $0x1a8] sm:$0xff] }
 0x11d   :  { %v842_v20 = vmax.f32 %v778_v12, 0.0  ;;  %v874_v21 = vmax.f32 %v810_v13, 0.0  ;;  %v779_v22 = vadd.f32 %v715_v10, %v651_v14  ;;  %v811_v23 = vadd.f32 %v747_v11, %v683_v15  ;;  %v1077_v24 = vpop.f32.mrb[20].mxu0  ;;  %v1109_v25 = vpop.f32.mrb[20].mxu1 }
 0x11e   :  { %908 = vst [vmem:[%s1777_s4 + $0x90] sm:$0xff] %v844_v16  ;;  %940 = vst [vmem:[%s1777_s4 + $0x190] sm:$0xff] %v876_v17  ;;  %v845_v26 = vmax.f32 %v781_v18, 0.0  ;;  %v877_v27 = vmax.f32 %v813_v19, 0.0  ;;  %v468_v28 = vadd.f32 %v1077_v24, %v1323_v40  ;;  %v596_v29 = vadd.f32 %v1109_v25, %v1323_v40  ;;  %v459_v30 = vpop.f32.mrb[21].mxu0  ;;  %v587_v31 = vpop.f32.mrb[21].mxu1 }
 0x11f   :  { %906 = vst [vmem:[%s1777_s4 + $0x80] sm:$0xff] %v842_v20  ;;  %938 = vst [vmem:[%s1777_s4 + $0x180] sm:$0xff] %v874_v21  ;;  %v843_v32 = vmax.f32 %v779_v22, 0.0  ;;  %v875_v33 = vmax.f32 %v811_v23, 0.0  ;;  %v460_v36 = vadd.f32 %v1323_v40, %v459_v30  ;;  %v588_v37 = vadd.f32 %v1323_v40, %v587_v31  ;;  %v1078_v38 = vpop.f32.mrb[22].mxu0  ;;  %v1110_v39 = vpop.f32.mrb[22].mxu1 }
 0x120   :  { %909 = vst [vmem:[%s1777_s4 + $0x98] sm:$0xff] %v845_v26  ;;  %941 = vst [vmem:[%s1777_s4 + $0x198] sm:$0xff] %v877_v27  ;;  %v656_v41 = vmax.f32 %v468_v28, 0.0  ;;  %v688_v42 = vmax.f32 %v596_v29, 0.0  ;;  %v471_v45 = vadd.f32 %v1078_v38, %v1323_v40  ;;  %v599_v46 = vadd.f32 %v1110_v39, %v1323_v40  ;;  %v462_v47 = vpop.f32.mrb[23].mxu0  ;;  %v590_v48 = vpop.f32.mrb[23].mxu1 }
 0x121   :  { %907 = vst [vmem:[%s1777_s4 + $0x88] sm:$0xff] %v843_v32  ;;  %939 = vst [vmem:[%s1777_s4 + $0x188] sm:$0xff] %v875_v33  ;;  %v654_v49 = vmax.f32 %v460_v36, 0.0  ;;  %v686_v50 = vmax.f32 %v588_v37, 0.0  ;;  %v463_v53 = vadd.f32 %v1323_v40, %v462_v47  ;;  %v591_v54 = vadd.f32 %v1323_v40, %v590_v48  ;;  %v724_v19 = vld [vmem:[%s1776_s3 + $0xd0] sm:$0xff]  ;;  %v722_v27 = vld [vmem:[%s1776_s3 + $0xc0] sm:$0xff] }
 0x122   :  { %v784_v55 = vadd.f32 %v720_v34, %v656_v41  ;;  %v816_v56 = vadd.f32 %v752_v35, %v688_v42  ;;  %v657_v57 = vmax.f32 %v471_v45, 0.0  ;;  %v689_v58 = vmax.f32 %v599_v46, 0.0  ;;  %v756_v20 = vld [vmem:[%s1776_s3 + $0x1d0] sm:$0xff]  ;;  %v754_v28 = vld [vmem:[%s1776_s3 + $0x1c0] sm:$0xff]  ;;  %v725_v35 = vld [vmem:[%s1776_s3 + $0xd8] sm:$0xff] }
 0x123   :  { %v782_v61 = vadd.f32 %v718_v43, %v654_v49  ;;  %v814_v62 = vadd.f32 %v750_v44, %v686_v50  ;;  %v655_v63 = vmax.f32 %v463_v53, 0.0  ;;  %v687_v0 = vmax.f32 %v591_v54, 0.0  ;;  %v757_v36 = vld [vmem:[%s1776_s3 + $0x1d8] sm:$0xff]  ;;  %v723_v44 = vld [vmem:[%s1776_s3 + $0xc8] sm:$0xff] }
 0x124   :  { %v848_v1 = vmax.f32 %v784_v55, 0.0  ;;  %v880_v2 = vmax.f32 %v816_v56, 0.0  ;;  %v785_v3 = vadd.f32 %v721_v51, %v657_v57  ;;  %v817_v4 = vadd.f32 %v753_v52, %v689_v58  ;;  %v755_v45 = vld [vmem:[%s1776_s3 + $0x1c8] sm:$0xff] }
 0x125   :  { %v846_v5 = vmax.f32 %v782_v61, 0.0  ;;  %v878_v6 = vmax.f32 %v814_v62, 0.0  ;;  %v783_v7 = vadd.f32 %v719_v59, %v655_v63  ;;  %v815_v8 = vadd.f32 %v751_v60, %v687_v0  ;;  %v1081_v9 = vpop.f32.mrb[24].mxu0  ;;  %v1113_v10 = vpop.f32.mrb[24].mxu1 }
 0x126   :  { %912 = vst [vmem:[%s1777_s4 + $0xb0] sm:$0xff] %v848_v1  ;;  %944 = vst [vmem:[%s1777_s4 + $0x1b0] sm:$0xff] %v880_v2  ;;  %v849_v11 = vmax.f32 %v785_v3, 0.0  ;;  %v881_v12 = vmax.f32 %v817_v4, 0.0  ;;  %v484_v13 = vadd.f32 %v1081_v9, %v1323_v40  ;;  %v612_v14 = vadd.f32 %v1113_v10, %v1323_v40  ;;  %v475_v15 = vpop.f32.mrb[25].mxu0  ;;  %v603_v16 = vpop.f32.mrb[25].mxu1 }
 0x127   :  { %910 = vst [vmem:[%s1777_s4 + $0xa0] sm:$0xff] %v846_v5  ;;  %942 = vst [vmem:[%s1777_s4 + $0x1a0] sm:$0xff] %v878_v6  ;;  %v847_v17 = vmax.f32 %v783_v7, 0.0  ;;  %v879_v18 = vmax.f32 %v815_v8, 0.0  ;;  %v476_v21 = vadd.f32 %v1323_v40, %v475_v15  ;;  %v604_v22 = vadd.f32 %v1323_v40, %v603_v16  ;;  %v1082_v23 = vpop.f32.mrb[26].mxu0  ;;  %v1114_v24 = vpop.f32.mrb[26].mxu1 }
 0x128   :  { %913 = vst [vmem:[%s1777_s4 + $0xb8] sm:$0xff] %v849_v11  ;;  %945 = vst [vmem:[%s1777_s4 + $0x1b8] sm:$0xff] %v881_v12  ;;  %v660_v25 = vmax.f32 %v484_v13, 0.0  ;;  %v692_v26 = vmax.f32 %v612_v14, 0.0  ;;  %v487_v29 = vadd.f32 %v1082_v23, %v1323_v40  ;;  %v615_v30 = vadd.f32 %v1114_v24, %v1323_v40  ;;  %v478_v31 = vpop.f32.mrb[27].mxu0  ;;  %v606_v32 = vpop.f32.mrb[27].mxu1 }
 0x129   :  { %911 = vst [vmem:[%s1777_s4 + $0xa8] sm:$0xff] %v847_v17  ;;  %943 = vst [vmem:[%s1777_s4 + $0x1a8] sm:$0xff] %v879_v18  ;;  %v658_v33 = vmax.f32 %v476_v21, 0.0  ;;  %v690_v34 = vmax.f32 %v604_v22, 0.0  ;;  %v479_v37 = vadd.f32 %v1323_v40, %v478_v31  ;;  %v607_v38 = vadd.f32 %v1323_v40, %v606_v32  ;;  %v728_v4 = vld [vmem:[%s1776_s3 + $0xf0] sm:$0xff]  ;;  %v726_v12 = vld [vmem:[%s1776_s3 + $0xe0] sm:$0xff] }
 0x12a   :  { %v788_v39 = vadd.f32 %v724_v19, %v660_v25  ;;  %v820_v41 = vadd.f32 %v756_v20, %v692_v26  ;;  %v661_v42 = vmax.f32 %v487_v29, 0.0  ;;  %v693_v43 = vmax.f32 %v615_v30, 0.0  ;;  %v760_v5 = vld [vmem:[%s1776_s3 + $0x1f0] sm:$0xff]  ;;  %v758_v13 = vld [vmem:[%s1776_s3 + $0x1e0] sm:$0xff]  ;;  %v729_v20 = vld [vmem:[%s1776_s3 + $0xf8] sm:$0xff] }
 0x12b   :  { %v786_v46 = vadd.f32 %v722_v27, %v658_v33  ;;  %v818_v47 = vadd.f32 %v754_v28, %v690_v34  ;;  %v659_v48 = vmax.f32 %v479_v37, 0.0  ;;  %v691_v49 = vmax.f32 %v607_v38, 0.0  ;;  %v761_v21 = vld [vmem:[%s1776_s3 + $0x1f8] sm:$0xff]  ;;  %v727_v28 = vld [vmem:[%s1776_s3 + $0xe8] sm:$0xff] }
 0x12c   :  { %v852_v50 = vmax.f32 %v788_v39, 0.0  ;;  %v884_v51 = vmax.f32 %v820_v41, 0.0  ;;  %v789_v52 = vadd.f32 %v725_v35, %v661_v42  ;;  %v821_v53 = vadd.f32 %v757_v36, %v693_v43  ;;  %v759_v29 = vld [vmem:[%s1776_s3 + $0x1e8] sm:$0xff] }
 0x12d   :  { %v850_v54 = vmax.f32 %v786_v46, 0.0  ;;  %v882_v55 = vmax.f32 %v818_v47, 0.0  ;;  %v787_v56 = vadd.f32 %v723_v44, %v659_v48  ;;  %v819_v57 = vadd.f32 %v755_v45, %v691_v49  ;;  %v1085_v58 = vpop.f32.mrb[28].mxu0  ;;  %v1117_v59 = vpop.f32.mrb[28].mxu1 }
 0x12e   :  { %916 = vst [vmem:[%s1777_s4 + $0xd0] sm:$0xff] %v852_v50  ;;  %948 = vst [vmem:[%s1777_s4 + $0x1d0] sm:$0xff] %v884_v51  ;;  %v853_v60 = vmax.f32 %v789_v52, 0.0  ;;  %v885_v61 = vmax.f32 %v821_v53, 0.0  ;;  %v500_v62 = vadd.f32 %v1085_v58, %v1323_v40  ;;  %v628_v63 = vadd.f32 %v1117_v59, %v1323_v40  ;;  %v491_v0 = vpop.f32.mrb[29].mxu0  ;;  %v619_v1 = vpop.f32.mrb[29].mxu1 }
 0x12f   :  { %914 = vst [vmem:[%s1777_s4 + $0xc0] sm:$0xff] %v850_v54  ;;  %946 = vst [vmem:[%s1777_s4 + $0x1c0] sm:$0xff] %v882_v55  ;;  %v851_v2 = vmax.f32 %v787_v56, 0.0  ;;  %v883_v3 = vmax.f32 %v819_v57, 0.0  ;;  %v492_v6 = vadd.f32 %v1323_v40, %v491_v0  ;;  %v620_v7 = vadd.f32 %v1323_v40, %v619_v1  ;;  %v1086_v8 = vpop.f32.mrb[30].mxu0  ;;  %v1118_v9 = vpop.f32.mrb[30].mxu1 }
 0x130   :  { %917 = vst [vmem:[%s1777_s4 + $0xd8] sm:$0xff] %v853_v60  ;;  %949 = vst [vmem:[%s1777_s4 + $0x1d8] sm:$0xff] %v885_v61  ;;  %v664_v10 = vmax.f32 %v500_v62, 0.0  ;;  %v696_v11 = vmax.f32 %v628_v63, 0.0  ;;  %v503_v14 = vadd.f32 %v1086_v8, %v1323_v40  ;;  %v631_v15 = vadd.f32 %v1118_v9, %v1323_v40  ;;  %v494_v16 = vpop.f32.mrb[31].mxu0  ;;  %v622_v17 = vpop.f32.mrb[31].mxu1 }
 0x131   :  { %915 = vst [vmem:[%s1777_s4 + $0xc8] sm:$0xff] %v851_v2  ;;  %947 = vst [vmem:[%s1777_s4 + $0x1c8] sm:$0xff] %v883_v3  ;;  %v662_v18 = vmax.f32 %v492_v6, 0.0  ;;  %v694_v19 = vmax.f32 %v620_v7, 0.0  ;;  %v495_v22 = vadd.f32 %v1323_v40, %v494_v16  ;;  %v623_v23 = vadd.f32 %v1323_v40, %v622_v17 }
 0x132   :  { %v792_v24 = vadd.f32 %v728_v4, %v664_v10  ;;  %v824_v25 = vadd.f32 %v760_v5, %v696_v11  ;;  %v665_v26 = vmax.f32 %v503_v14, 0.0  ;;  %v697_v27 = vmax.f32 %v631_v15, 0.0 }
 0x133   :  { %v790_v30 = vadd.f32 %v726_v12, %v662_v18  ;;  %v822_v31 = vadd.f32 %v758_v13, %v694_v19  ;;  %v663_v32 = vmax.f32 %v495_v22, 0.0  ;;  %v695_v33 = vmax.f32 %v623_v23, 0.0 }
 0x134   :  { %v856_v34 = vmax.f32 %v792_v24, 0.0  ;;  %v888_v35 = vmax.f32 %v824_v25, 0.0  ;;  %v793_v36 = vadd.f32 %v729_v20, %v665_v26  ;;  %v825_v40 = vadd.f32 %v761_v21, %v697_v27 }
 0x135   :  { %v854_v37 = vmax.f32 %v790_v30, 0.0  ;;  %v886_v38 = vmax.f32 %v822_v31, 0.0  ;;  %v791_v39 = vadd.f32 %v727_v28, %v663_v32  ;;  %v823_v41 = vadd.f32 %v759_v29, %v695_v33 }
 0x136   :  { %920 = vst [vmem:[%s1777_s4 + $0xf0] sm:$0xff] %v856_v34  ;;  %952 = vst [vmem:[%s1777_s4 + $0x1f0] sm:$0xff] %v888_v35  ;;  %v857_v42 = vmax.f32 %v793_v36, 0.0  ;;  %v889_v43 = vmax.f32 %v825_v40, 0.0 }
 0x137   :  { %918 = vst [vmem:[%s1777_s4 + $0xe0] sm:$0xff] %v854_v37  ;;  %950 = vst [vmem:[%s1777_s4 + $0x1e0] sm:$0xff] %v886_v38  ;;  %v855_v44 = vmax.f32 %v791_v39, 0.0  ;;  %v887_v45 = vmax.f32 %v823_v41, 0.0 }
 0x138   :  { %921 = vst [vmem:[%s1777_s4 + $0xf8] sm:$0xff] %v857_v42  ;;  %953 = vst [vmem:[%s1777_s4 + $0x1f8] sm:$0xff] %v889_v43 }
 0x139   :  { %919 = vst [vmem:[%s1777_s4 + $0xe8] sm:$0xff] %v855_v44  ;;  %951 = vst [vmem:[%s1777_s4 + $0x1e8] sm:$0xff] %v887_v45 }

// kernel: enet_forward.174
= control target key start
LH: loop header
LB: loop body
LE: loop exit
PB: predicated region body
PF: predicated region fallthrough
CT: control target
= control target key end

     0   :  { %s1381_s1 = inlined_call_operand.vmem [shape: bf16[128,128], index: 1, kind: input, shape index: {}]   ;;  %s1382_s0 = inlined_call_operand.vmem [shape: bf16[512,128], index: 0, kind: input, shape index: {}]   ;;  %s1383_s2 = inlined_call_operand.vmem [shape: f32[1,128], index: 2, kind: input, shape index: {}]   ;;  %s1384_s3 = inlined_call_operand.vmem [shape: f32[512,128], index: 3, kind: output, shape index: {}]  }
   0x1   :  { %v940_v0 = vld [vmem:[%s1381_s1] sm:$0xff]   ;;  %v941_v1 = vld [vmem:[%s1381_s1 + $0x8] sm:$0xff]   ;;  %v942_v2 = vld [vmem:[%s1381_s1 + $0x10] sm:$0xff]  }
   0x2   :  { %844 = vmatprep.subr.bf16.mxu0 %v940_v0  ;;  %924 = vmatprep.subr.bf16.mxu1 %v940_v0  ;;  %v943_v3 = vld [vmem:[%s1381_s1 + $0x18] sm:$0xff]   ;;  %v948_v4 = vld [vmem:[%s1382_s0] sm:$0xff]   ;;  %v945_v7 = vld [vmem:[%s1381_s1 + $0x28] sm:$0xff]  }
   0x3   :  { %845 = vmatpush3.bf16.msra.mxu0 %v940_v0  ;;  %932 = vmatpush3.bf16.msra.mxu1 %v940_v0  ;;  %v949_v5 = vld [vmem:[%s1382_s0 + $0x80] sm:$0xff]   ;;  %v946_v8 = vld [vmem:[%s1381_s1 + $0x30] sm:$0xff]   ;;  %v947_v9 = vld [vmem:[%s1381_s1 + $0x38] sm:$0xff]  }
   0x4   :  { %846 = vmatprep.subr.bf16.mxu0 %v941_v1  ;;  %925 = vmatprep.subr.bf16.mxu1 %v941_v1  ;;  %v944_v6 = vld [vmem:[%s1381_s1 + $0x20] sm:$0xff]   ;;  %v950_v10 = vld [vmem:[%s1382_s0 + $0x8] sm:$0xff]   ;;  %v952_v12 = vld [vmem:[%s1382_s0 + $0x10] sm:$0xff]  }
   0x5   :  { %860 = vmatprep.mubr.bf16.mxu0 %v948_v4  ;;  %892 = vmatprep.mubr.bf16.mxu1 %v949_v5  ;;  %v951_v11 = vld [vmem:[%s1382_s0 + $0x88] sm:$0xff]   ;;  %v953_v13 = vld [vmem:[%s1382_s0 + $0x90] sm:$0xff]   ;;  %v954_v14 = vld [vmem:[%s1382_s0 + $0x18] sm:$0xff]  }
   0x6   :  { %v955_v15 = vld [vmem:[%s1382_s0 + $0x98] sm:$0xff]   ;;  %v956_v16 = vld [vmem:[%s1382_s0 + $0x20] sm:$0xff]   ;;  %v958_v18 = vld [vmem:[%s1382_s0 + $0x28] sm:$0xff]  }
   0x7   :  { %847 = vmatpush3.bf16.msra.mxu0 %v941_v1  ;;  %933 = vmatpush3.bf16.msra.mxu1 %v941_v1  ;;  %v957_v17 = vld [vmem:[%s1382_s0 + $0xa0] sm:$0xff]   ;;  %v959_v19 = vld [vmem:[%s1382_s0 + $0xa8] sm:$0xff]   ;;  %v960_v20 = vld [vmem:[%s1382_s0 + $0x30] sm:$0xff]  }
   0x8   :  { %848 = vmatprep.subr.bf16.mxu0 %v942_v2  ;;  %926 = vmatprep.subr.bf16.mxu1 %v942_v2  ;;  %v961_v21 = vld [vmem:[%s1382_s0 + $0xb0] sm:$0xff]   ;;  %v962_v22 = vld [vmem:[%s1382_s0 + $0x38] sm:$0xff]   ;;  %v964_v24 = vld [vmem:[%s1382_s0 + $0x40] sm:$0xff]  }
   0x9   :  { %v963_v23 = vld [vmem:[%s1382_s0 + $0xb8] sm:$0xff]   ;;  %v965_v25 = vld [vmem:[%s1382_s0 + $0xc0] sm:$0xff]   ;;  %v966_v26 = vld [vmem:[%s1382_s0 + $0x48] sm:$0xff]  }
   0xa   :  { %v967_v27 = vld [vmem:[%s1382_s0 + $0xc8] sm:$0xff]   ;;  %v968_v28 = vld [vmem:[%s1382_s0 + $0x50] sm:$0xff]   ;;  %v970_v30 = vld [vmem:[%s1382_s0 + $0x58] sm:$0xff]  }
   0xb   :  { %849 = vmatpush3.bf16.msra.mxu0 %v942_v2  ;;  %934 = vmatpush3.bf16.msra.mxu1 %v942_v2  ;;  %v969_v29 = vld [vmem:[%s1382_s0 + $0xd0] sm:$0xff]   ;;  %v971_v31 = vld [vmem:[%s1382_s0 + $0xd8] sm:$0xff]   ;;  %v972_v32 = vld [vmem:[%s1382_s0 + $0x60] sm:$0xff]  }
   0xc   :  { %850 = vmatprep.subr.bf16.mxu0 %v943_v3  ;;  %927 = vmatprep.subr.bf16.mxu1 %v943_v3  ;;  %v973_v33 = vld [vmem:[%s1382_s0 + $0xe0] sm:$0xff]   ;;  %v974_v34 = vld [vmem:[%s1382_s0 + $0x68] sm:$0xff]   ;;  %v976_v36 = vld [vmem:[%s1382_s0 + $0x70] sm:$0xff]  }
   0xd   :  { %v975_v35 = vld [vmem:[%s1382_s0 + $0xe8] sm:$0xff]   ;;  %v977_v37 = vld [vmem:[%s1382_s0 + $0xf0] sm:$0xff]   ;;  %v978_v38 = vld [vmem:[%s1382_s0 + $0x78] sm:$0xff]  }
   0xe   :  { %v979_v39 = vld [vmem:[%s1382_s0 + $0xf8] sm:$0xff]   ;;  %v1123_v40 = vld [vmem:[%s1383_s2] ss:$0 sm:$0xff] }
   0xf   :  { %851 = vmatpush3.bf16.msra.mxu0 %v943_v3  ;;  %935 = vmatpush3.bf16.msra.mxu1 %v943_v3 }
  0x10   :  { %852 = vmatprep.subr.bf16.mxu0 %v944_v6  ;;  %928 = vmatprep.subr.bf16.mxu1 %v944_v6 }
  0x13   :  { %853 = vmatpush3.bf16.msra.mxu0 %v944_v6  ;;  %936 = vmatpush3.bf16.msra.mxu1 %v944_v6 }
  0x14   :  { %854 = vmatprep.subr.bf16.mxu0 %v945_v7  ;;  %929 = vmatprep.subr.bf16.mxu1 %v945_v7 }
  0x17   :  { %855 = vmatpush3.bf16.msra.mxu0 %v945_v7  ;;  %937 = vmatpush3.bf16.msra.mxu1 %v945_v7 }
  0x18   :  { %856 = vmatprep.subr.bf16.mxu0 %v946_v8  ;;  %930 = vmatprep.subr.bf16.mxu1 %v946_v8 }
  0x1b   :  { %857 = vmatpush3.bf16.msra.mxu0 %v946_v8  ;;  %938 = vmatpush3.bf16.msra.mxu1 %v946_v8 }
  0x1c   :  { %858 = vmatprep.subr.bf16.mxu0 %v947_v9  ;;  %931 = vmatprep.subr.bf16.mxu1 %v947_v9 }
  0x1f   :  { %859 = vmatpush3.bf16.msra.mxu0 %v947_v9  ;;  %939 = vmatpush3.bf16.msra.mxu1 %v947_v9 }
  0x22   :  { %861 = vmatmul.mubr.bf16.vlgmr.msra.gmra.mrb[0].mxu0 %v950_v10  ;;  %893 = vmatmul.mubr.bf16.vlgmr.msra.gmra.mrb[0].mxu1 %v951_v11 }
  0x23   :  { %864 = vmatprep.mubr.bf16.mxu0 %v952_v12  ;;  %896 = vmatprep.mubr.bf16.mxu1 %v953_v13 }
  0x2a   :  { %865 = vmatmul.mubr.bf16.gmra.mrb[4].mxu0 %v954_v14  ;;  %897 = vmatmul.mubr.bf16.gmra.mrb[4].mxu1 %v955_v15 }
  0x2b   :  { %868 = vmatprep.mubr.bf16.mxu0 %v956_v16  ;;  %900 = vmatprep.mubr.bf16.mxu1 %v957_v17 }
  0x32   :  { %869 = vmatmul.mubr.bf16.gmra.mrb[8].mxu0 %v958_v18  ;;  %901 = vmatmul.mubr.bf16.gmra.mrb[8].mxu1 %v959_v19 }
  0x33   :  { %872 = vmatprep.mubr.bf16.mxu0 %v960_v20  ;;  %904 = vmatprep.mubr.bf16.mxu1 %v961_v21 }
  0x3a   :  { %873 = vmatmul.mubr.bf16.gmra.mrb[12].mxu0 %v962_v22  ;;  %905 = vmatmul.mubr.bf16.gmra.mrb[12].mxu1 %v963_v23 }
  0x3b   :  { %876 = vmatprep.mubr.bf16.mxu0 %v964_v24  ;;  %908 = vmatprep.mubr.bf16.mxu1 %v965_v25 }
  0x42   :  { %877 = vmatmul.mubr.bf16.gmra.mrb[16].mxu0 %v966_v26  ;;  %909 = vmatmul.mubr.bf16.gmra.mrb[16].mxu1 %v967_v27 }
  0x43   :  { %880 = vmatprep.mubr.bf16.mxu0 %v968_v28  ;;  %912 = vmatprep.mubr.bf16.mxu1 %v969_v29 }
  0x4a   :  { %881 = vmatmul.mubr.bf16.gmra.mrb[20].mxu0 %v970_v30  ;;  %913 = vmatmul.mubr.bf16.gmra.mrb[20].mxu1 %v971_v31 }
  0x4b   :  { %884 = vmatprep.mubr.bf16.mxu0 %v972_v32  ;;  %916 = vmatprep.mubr.bf16.mxu1 %v973_v33 }
  0x52   :  { %885 = vmatmul.mubr.bf16.gmra.mrb[24].mxu0 %v974_v34  ;;  %917 = vmatmul.mubr.bf16.gmra.mrb[24].mxu1 %v975_v35 }
  0x53   :  { %888 = vmatprep.mubr.bf16.mxu0 %v976_v36  ;;  %920 = vmatprep.mubr.bf16.mxu1 %v977_v37 }
  0x5a   :  { %889 = vmatmul.mubr.bf16.gmra.mrb[28].mxu0 %v978_v38  ;;  %921 = vmatmul.mubr.bf16.gmra.mrb[28].mxu1 %v979_v39 }
  0xf5   :  { %v862_v41 = vpop.f32.mrb[0].mxu0  ;;  %v894_v42 = vpop.f32.mrb[0].mxu1 }
  0xf6   :  { %v385_v43 = vadd.f32 %v862_v41, %v1123_v40  ;;  %v513_v44 = vadd.f32 %v894_v42, %v1123_v40  ;;  %v376_v45 = vpop.f32.mrb[1].mxu0  ;;  %v504_v46 = vpop.f32.mrb[1].mxu1 }
  0xf7   :  { %v377_v47 = vadd.f32 %v1123_v40, %v376_v45  ;;  %v505_v48 = vadd.f32 %v1123_v40, %v504_v46  ;;  %v863_v49 = vpop.f32.mrb[2].mxu0  ;;  %v895_v50 = vpop.f32.mrb[2].mxu1 }
  0xf8   :  { %v633_v51 = vmax.f32 %v385_v43, 0.0  ;;  %v665_v52 = vmax.f32 %v513_v44, 0.0  ;;  %v388_v53 = vadd.f32 %v863_v49, %v1123_v40  ;;  %v516_v54 = vadd.f32 %v895_v50, %v1123_v40  ;;  %v379_v55 = vpop.f32.mrb[3].mxu0  ;;  %v507_v56 = vpop.f32.mrb[3].mxu1 }
  0xf9   :  { %v631_v57 = vmax.f32 %v377_v47, 0.0  ;;  %v663_v58 = vmax.f32 %v505_v48, 0.0  ;;  %v380_v59 = vadd.f32 %v1123_v40, %v379_v55  ;;  %v508_v60 = vadd.f32 %v1123_v40, %v507_v56 }
  0xfa   :  { %697 = vst [vmem:[%s1384_s3 + $0x10] sm:$0xff] %v633_v51  ;;  %729 = vst [vmem:[%s1384_s3 + $0x110] sm:$0xff] %v665_v52  ;;  %v634_v61 = vmax.f32 %v388_v53, 0.0  ;;  %v666_v62 = vmax.f32 %v516_v54, 0.0 }
  0xfb   :  { %695 = vst [vmem:[%s1384_s3] sm:$0xff] %v631_v57  ;;  %727 = vst [vmem:[%s1384_s3 + $0x100] sm:$0xff] %v663_v58  ;;  %v632_v63 = vmax.f32 %v380_v59, 0.0  ;;  %v664_v0 = vmax.f32 %v508_v60, 0.0 }
  0xfc   :  { %698 = vst [vmem:[%s1384_s3 + $0x18] sm:$0xff] %v634_v61  ;;  %730 = vst [vmem:[%s1384_s3 + $0x118] sm:$0xff] %v666_v62 }
  0xfd   :  { %696 = vst [vmem:[%s1384_s3 + $0x8] sm:$0xff] %v632_v63  ;;  %728 = vst [vmem:[%s1384_s3 + $0x108] sm:$0xff] %v664_v0  ;;  %v866_v1 = vpop.f32.mrb[4].mxu0  ;;  %v898_v2 = vpop.f32.mrb[4].mxu1 }
  0xfe   :  { %v401_v3 = vadd.f32 %v866_v1, %v1123_v40  ;;  %v529_v4 = vadd.f32 %v898_v2, %v1123_v40  ;;  %v392_v5 = vpop.f32.mrb[5].mxu0  ;;  %v520_v6 = vpop.f32.mrb[5].mxu1 }
  0xff   :  { %v393_v7 = vadd.f32 %v1123_v40, %v392_v5  ;;  %v521_v8 = vadd.f32 %v1123_v40, %v520_v6  ;;  %v867_v9 = vpop.f32.mrb[6].mxu0  ;;  %v899_v10 = vpop.f32.mrb[6].mxu1 }
 0x100   :  { %v637_v11 = vmax.f32 %v401_v3, 0.0  ;;  %v669_v12 = vmax.f32 %v529_v4, 0.0  ;;  %v404_v13 = vadd.f32 %v867_v9, %v1123_v40  ;;  %v532_v14 = vadd.f32 %v899_v10, %v1123_v40  ;;  %v395_v15 = vpop.f32.mrb[7].mxu0  ;;  %v523_v16 = vpop.f32.mrb[7].mxu1 }
 0x101   :  { %v635_v17 = vmax.f32 %v393_v7, 0.0  ;;  %v667_v18 = vmax.f32 %v521_v8, 0.0  ;;  %v396_v19 = vadd.f32 %v1123_v40, %v395_v15  ;;  %v524_v20 = vadd.f32 %v1123_v40, %v523_v16 }
 0x102   :  { %701 = vst [vmem:[%s1384_s3 + $0x30] sm:$0xff] %v637_v11  ;;  %733 = vst [vmem:[%s1384_s3 + $0x130] sm:$0xff] %v669_v12  ;;  %v638_v21 = vmax.f32 %v404_v13, 0.0  ;;  %v670_v22 = vmax.f32 %v532_v14, 0.0 }
 0x103   :  { %699 = vst [vmem:[%s1384_s3 + $0x20] sm:$0xff] %v635_v17  ;;  %731 = vst [vmem:[%s1384_s3 + $0x120] sm:$0xff] %v667_v18  ;;  %v636_v23 = vmax.f32 %v396_v19, 0.0  ;;  %v668_v24 = vmax.f32 %v524_v20, 0.0 }
 0x104   :  { %702 = vst [vmem:[%s1384_s3 + $0x38] sm:$0xff] %v638_v21  ;;  %734 = vst [vmem:[%s1384_s3 + $0x138] sm:$0xff] %v670_v22 }
 0x105   :  { %700 = vst [vmem:[%s1384_s3 + $0x28] sm:$0xff] %v636_v23  ;;  %732 = vst [vmem:[%s1384_s3 + $0x128] sm:$0xff] %v668_v24  ;;  %v870_v25 = vpop.f32.mrb[8].mxu0  ;;  %v902_v26 = vpop.f32.mrb[8].mxu1 }
 0x106   :  { %v417_v27 = vadd.f32 %v870_v25, %v1123_v40  ;;  %v545_v28 = vadd.f32 %v902_v26, %v1123_v40  ;;  %v408_v29 = vpop.f32.mrb[9].mxu0  ;;  %v536_v30 = vpop.f32.mrb[9].mxu1 }
 0x107   :  { %v409_v31 = vadd.f32 %v1123_v40, %v408_v29  ;;  %v537_v32 = vadd.f32 %v1123_v40, %v536_v30  ;;  %v871_v33 = vpop.f32.mrb[10].mxu0  ;;  %v903_v34 = vpop.f32.mrb[10].mxu1 }
 0x108   :  { %v641_v35 = vmax.f32 %v417_v27, 0.0  ;;  %v673_v36 = vmax.f32 %v545_v28, 0.0  ;;  %v420_v37 = vadd.f32 %v871_v33, %v1123_v40  ;;  %v548_v38 = vadd.f32 %v903_v34, %v1123_v40  ;;  %v411_v39 = vpop.f32.mrb[11].mxu0  ;;  %v539_v41 = vpop.f32.mrb[11].mxu1 }
 0x109   :  { %v639_v42 = vmax.f32 %v409_v31, 0.0  ;;  %v671_v43 = vmax.f32 %v537_v32, 0.0  ;;  %v412_v44 = vadd.f32 %v1123_v40, %v411_v39  ;;  %v540_v45 = vadd.f32 %v1123_v40, %v539_v41 }
 0x10a   :  { %705 = vst [vmem:[%s1384_s3 + $0x50] sm:$0xff] %v641_v35  ;;  %737 = vst [vmem:[%s1384_s3 + $0x150] sm:$0xff] %v673_v36  ;;  %v642_v46 = vmax.f32 %v420_v37, 0.0  ;;  %v674_v47 = vmax.f32 %v548_v38, 0.0 }
 0x10b   :  { %703 = vst [vmem:[%s1384_s3 + $0x40] sm:$0xff] %v639_v42  ;;  %735 = vst [vmem:[%s1384_s3 + $0x140] sm:$0xff] %v671_v43  ;;  %v640_v48 = vmax.f32 %v412_v44, 0.0  ;;  %v672_v49 = vmax.f32 %v540_v45, 0.0 }
 0x10c   :  { %706 = vst [vmem:[%s1384_s3 + $0x58] sm:$0xff] %v642_v46  ;;  %738 = vst [vmem:[%s1384_s3 + $0x158] sm:$0xff] %v674_v47 }
 0x10d   :  { %704 = vst [vmem:[%s1384_s3 + $0x48] sm:$0xff] %v640_v48  ;;  %736 = vst [vmem:[%s1384_s3 + $0x148] sm:$0xff] %v672_v49  ;;  %v874_v50 = vpop.f32.mrb[12].mxu0  ;;  %v906_v51 = vpop.f32.mrb[12].mxu1 }
 0x10e   :  { %v433_v52 = vadd.f32 %v874_v50, %v1123_v40  ;;  %v561_v53 = vadd.f32 %v906_v51, %v1123_v40  ;;  %v424_v54 = vpop.f32.mrb[13].mxu0  ;;  %v552_v55 = vpop.f32.mrb[13].mxu1 }
 0x10f   :  { %v425_v56 = vadd.f32 %v1123_v40, %v424_v54  ;;  %v553_v57 = vadd.f32 %v1123_v40, %v552_v55  ;;  %v875_v58 = vpop.f32.mrb[14].mxu0  ;;  %v907_v59 = vpop.f32.mrb[14].mxu1 }
 0x110   :  { %v645_v60 = vmax.f32 %v433_v52, 0.0  ;;  %v677_v61 = vmax.f32 %v561_v53, 0.0  ;;  %v436_v62 = vadd.f32 %v875_v58, %v1123_v40  ;;  %v564_v63 = vadd.f32 %v907_v59, %v1123_v40  ;;  %v427_v0 = vpop.f32.mrb[15].mxu0  ;;  %v555_v1 = vpop.f32.mrb[15].mxu1 }
 0x111   :  { %v643_v2 = vmax.f32 %v425_v56, 0.0  ;;  %v675_v3 = vmax.f32 %v553_v57, 0.0  ;;  %v428_v4 = vadd.f32 %v1123_v40, %v427_v0  ;;  %v556_v5 = vadd.f32 %v1123_v40, %v555_v1 }
 0x112   :  { %709 = vst [vmem:[%s1384_s3 + $0x70] sm:$0xff] %v645_v60  ;;  %741 = vst [vmem:[%s1384_s3 + $0x170] sm:$0xff] %v677_v61  ;;  %v646_v6 = vmax.f32 %v436_v62, 0.0  ;;  %v678_v7 = vmax.f32 %v564_v63, 0.0 }
 0x113   :  { %707 = vst [vmem:[%s1384_s3 + $0x60] sm:$0xff] %v643_v2  ;;  %739 = vst [vmem:[%s1384_s3 + $0x160] sm:$0xff] %v675_v3  ;;  %v644_v8 = vmax.f32 %v428_v4, 0.0  ;;  %v676_v9 = vmax.f32 %v556_v5, 0.0 }
 0x114   :  { %710 = vst [vmem:[%s1384_s3 + $0x78] sm:$0xff] %v646_v6  ;;  %742 = vst [vmem:[%s1384_s3 + $0x178] sm:$0xff] %v678_v7 }
 0x115   :  { %708 = vst [vmem:[%s1384_s3 + $0x68] sm:$0xff] %v644_v8  ;;  %740 = vst [vmem:[%s1384_s3 + $0x168] sm:$0xff] %v676_v9  ;;  %v878_v10 = vpop.f32.mrb[16].mxu0  ;;  %v910_v11 = vpop.f32.mrb[16].mxu1 }
 0x116   :  { %v449_v12 = vadd.f32 %v878_v10, %v1123_v40  ;;  %v577_v13 = vadd.f32 %v910_v11, %v1123_v40  ;;  %v440_v14 = vpop.f32.mrb[17].mxu0  ;;  %v568_v15 = vpop.f32.mrb[17].mxu1 }
 0x117   :  { %v441_v16 = vadd.f32 %v1123_v40, %v440_v14  ;;  %v569_v17 = vadd.f32 %v1123_v40, %v568_v15  ;;  %v879_v18 = vpop.f32.mrb[18].mxu0  ;;  %v911_v19 = vpop.f32.mrb[18].mxu1 }
 0x118   :  { %v649_v20 = vmax.f32 %v449_v12, 0.0  ;;  %v681_v21 = vmax.f32 %v577_v13, 0.0  ;;  %v452_v22 = vadd.f32 %v879_v18, %v1123_v40  ;;  %v580_v23 = vadd.f32 %v911_v19, %v1123_v40  ;;  %v443_v24 = vpop.f32.mrb[19].mxu0  ;;  %v571_v25 = vpop.f32.mrb[19].mxu1 }
 0x119   :  { %v647_v26 = vmax.f32 %v441_v16, 0.0  ;;  %v679_v27 = vmax.f32 %v569_v17, 0.0  ;;  %v444_v28 = vadd.f32 %v1123_v40, %v443_v24  ;;  %v572_v29 = vadd.f32 %v1123_v40, %v571_v25 }
 0x11a   :  { %713 = vst [vmem:[%s1384_s3 + $0x90] sm:$0xff] %v649_v20  ;;  %745 = vst [vmem:[%s1384_s3 + $0x190] sm:$0xff] %v681_v21  ;;  %v650_v30 = vmax.f32 %v452_v22, 0.0  ;;  %v682_v31 = vmax.f32 %v580_v23, 0.0 }
 0x11b   :  { %711 = vst [vmem:[%s1384_s3 + $0x80] sm:$0xff] %v647_v26  ;;  %743 = vst [vmem:[%s1384_s3 + $0x180] sm:$0xff] %v679_v27  ;;  %v648_v32 = vmax.f32 %v444_v28, 0.0  ;;  %v680_v33 = vmax.f32 %v572_v29, 0.0 }
 0x11c   :  { %714 = vst [vmem:[%s1384_s3 + $0x98] sm:$0xff] %v650_v30  ;;  %746 = vst [vmem:[%s1384_s3 + $0x198] sm:$0xff] %v682_v31 }
 0x11d   :  { %712 = vst [vmem:[%s1384_s3 + $0x88] sm:$0xff] %v648_v32  ;;  %744 = vst [vmem:[%s1384_s3 + $0x188] sm:$0xff] %v680_v33  ;;  %v882_v34 = vpop.f32.mrb[20].mxu0  ;;  %v914_v35 = vpop.f32.mrb[20].mxu1 }
 0x11e   :  { %v465_v36 = vadd.f32 %v882_v34, %v1123_v40  ;;  %v593_v37 = vadd.f32 %v914_v35, %v1123_v40  ;;  %v456_v38 = vpop.f32.mrb[21].mxu0  ;;  %v584_v39 = vpop.f32.mrb[21].mxu1 }
 0x11f   :  { %v457_v41 = vadd.f32 %v1123_v40, %v456_v38  ;;  %v585_v42 = vadd.f32 %v1123_v40, %v584_v39  ;;  %v883_v43 = vpop.f32.mrb[22].mxu0  ;;  %v915_v44 = vpop.f32.mrb[22].mxu1 }
 0x120   :  { %v653_v45 = vmax.f32 %v465_v36, 0.0  ;;  %v685_v46 = vmax.f32 %v593_v37, 0.0  ;;  %v468_v47 = vadd.f32 %v883_v43, %v1123_v40  ;;  %v596_v48 = vadd.f32 %v915_v44, %v1123_v40  ;;  %v459_v49 = vpop.f32.mrb[23].mxu0  ;;  %v587_v50 = vpop.f32.mrb[23].mxu1 }
 0x121   :  { %v651_v51 = vmax.f32 %v457_v41, 0.0  ;;  %v683_v52 = vmax.f32 %v585_v42, 0.0  ;;  %v460_v53 = vadd.f32 %v1123_v40, %v459_v49  ;;  %v588_v54 = vadd.f32 %v1123_v40, %v587_v50 }
 0x122   :  { %717 = vst [vmem:[%s1384_s3 + $0xb0] sm:$0xff] %v653_v45  ;;  %749 = vst [vmem:[%s1384_s3 + $0x1b0] sm:$0xff] %v685_v46  ;;  %v654_v55 = vmax.f32 %v468_v47, 0.0  ;;  %v686_v56 = vmax.f32 %v596_v48, 0.0 }
 0x123   :  { %715 = vst [vmem:[%s1384_s3 + $0xa0] sm:$0xff] %v651_v51  ;;  %747 = vst [vmem:[%s1384_s3 + $0x1a0] sm:$0xff] %v683_v52  ;;  %v652_v57 = vmax.f32 %v460_v53, 0.0  ;;  %v684_v58 = vmax.f32 %v588_v54, 0.0 }
 0x124   :  { %718 = vst [vmem:[%s1384_s3 + $0xb8] sm:$0xff] %v654_v55  ;;  %750 = vst [vmem:[%s1384_s3 + $0x1b8] sm:$0xff] %v686_v56 }
 0x125   :  { %716 = vst [vmem:[%s1384_s3 + $0xa8] sm:$0xff] %v652_v57  ;;  %748 = vst [vmem:[%s1384_s3 + $0x1a8] sm:$0xff] %v684_v58  ;;  %v886_v59 = vpop.f32.mrb[24].mxu0  ;;  %v918_v60 = vpop.f32.mrb[24].mxu1 }
 0x126   :  { %v481_v61 = vadd.f32 %v886_v59, %v1123_v40  ;;  %v609_v62 = vadd.f32 %v918_v60, %v1123_v40  ;;  %v472_v63 = vpop.f32.mrb[25].mxu0  ;;  %v600_v0 = vpop.f32.mrb[25].mxu1 }
 0x127   :  { %v473_v1 = vadd.f32 %v1123_v40, %v472_v63  ;;  %v601_v2 = vadd.f32 %v1123_v40, %v600_v0  ;;  %v887_v3 = vpop.f32.mrb[26].mxu0  ;;  %v919_v4 = vpop.f32.mrb[26].mxu1 }
 0x128   :  { %v657_v5 = vmax.f32 %v481_v61, 0.0  ;;  %v689_v6 = vmax.f32 %v609_v62, 0.0  ;;  %v484_v7 = vadd.f32 %v887_v3, %v1123_v40  ;;  %v612_v8 = vadd.f32 %v919_v4, %v1123_v40  ;;  %v475_v9 = vpop.f32.mrb[27].mxu0  ;;  %v603_v10 = vpop.f32.mrb[27].mxu1 }
 0x129   :  { %v655_v11 = vmax.f32 %v473_v1, 0.0  ;;  %v687_v12 = vmax.f32 %v601_v2, 0.0  ;;  %v476_v13 = vadd.f32 %v1123_v40, %v475_v9  ;;  %v604_v14 = vadd.f32 %v1123_v40, %v603_v10 }
 0x12a   :  { %721 = vst [vmem:[%s1384_s3 + $0xd0] sm:$0xff] %v657_v5  ;;  %753 = vst [vmem:[%s1384_s3 + $0x1d0] sm:$0xff] %v689_v6  ;;  %v658_v15 = vmax.f32 %v484_v7, 0.0  ;;  %v690_v16 = vmax.f32 %v612_v8, 0.0 }
 0x12b   :  { %719 = vst [vmem:[%s1384_s3 + $0xc0] sm:$0xff] %v655_v11  ;;  %751 = vst [vmem:[%s1384_s3 + $0x1c0] sm:$0xff] %v687_v12  ;;  %v656_v17 = vmax.f32 %v476_v13, 0.0  ;;  %v688_v18 = vmax.f32 %v604_v14, 0.0 }
 0x12c   :  { %722 = vst [vmem:[%s1384_s3 + $0xd8] sm:$0xff] %v658_v15  ;;  %754 = vst [vmem:[%s1384_s3 + $0x1d8] sm:$0xff] %v690_v16 }
 0x12d   :  { %720 = vst [vmem:[%s1384_s3 + $0xc8] sm:$0xff] %v656_v17  ;;  %752 = vst [vmem:[%s1384_s3 + $0x1c8] sm:$0xff] %v688_v18  ;;  %v890_v19 = vpop.f32.mrb[28].mxu0  ;;  %v922_v20 = vpop.f32.mrb[28].mxu1 }
 0x12e   :  { %v497_v21 = vadd.f32 %v890_v19, %v1123_v40  ;;  %v625_v22 = vadd.f32 %v922_v20, %v1123_v40  ;;  %v488_v23 = vpop.f32.mrb[29].mxu0  ;;  %v616_v24 = vpop.f32.mrb[29].mxu1 }
 0x12f   :  { %v489_v25 = vadd.f32 %v1123_v40, %v488_v23  ;;  %v617_v26 = vadd.f32 %v1123_v40, %v616_v24  ;;  %v891_v27 = vpop.f32.mrb[30].mxu0  ;;  %v923_v28 = vpop.f32.mrb[30].mxu1 }
 0x130   :  { %v661_v29 = vmax.f32 %v497_v21, 0.0  ;;  %v693_v30 = vmax.f32 %v625_v22, 0.0  ;;  %v500_v31 = vadd.f32 %v891_v27, %v1123_v40  ;;  %v628_v32 = vadd.f32 %v923_v28, %v1123_v40  ;;  %v491_v33 = vpop.f32.mrb[31].mxu0  ;;  %v619_v34 = vpop.f32.mrb[31].mxu1 }
 0x131   :  { %v659_v35 = vmax.f32 %v489_v25, 0.0  ;;  %v691_v36 = vmax.f32 %v617_v26, 0.0  ;;  %v492_v37 = vadd.f32 %v1123_v40, %v491_v33  ;;  %v620_v38 = vadd.f32 %v1123_v40, %v619_v34 }
 0x132   :  { %725 = vst [vmem:[%s1384_s3 + $0xf0] sm:$0xff] %v661_v29  ;;  %757 = vst [vmem:[%s1384_s3 + $0x1f0] sm:$0xff] %v693_v30  ;;  %v662_v39 = vmax.f32 %v500_v31, 0.0  ;;  %v694_v41 = vmax.f32 %v628_v32, 0.0 }
 0x133   :  { %723 = vst [vmem:[%s1384_s3 + $0xe0] sm:$0xff] %v659_v35  ;;  %755 = vst [vmem:[%s1384_s3 + $0x1e0] sm:$0xff] %v691_v36  ;;  %v660_v42 = vmax.f32 %v492_v37, 0.0  ;;  %v692_v40 = vmax.f32 %v620_v38, 0.0 }
 0x134   :  { %726 = vst [vmem:[%s1384_s3 + $0xf8] sm:$0xff] %v662_v39  ;;  %758 = vst [vmem:[%s1384_s3 + $0x1f8] sm:$0xff] %v694_v41 }
 0x135   :  { %724 = vst [vmem:[%s1384_s3 + $0xe8] sm:$0xff] %v660_v42  ;;  %756 = vst [vmem:[%s1384_s3 + $0x1e8] sm:$0xff] %v692_v40 }

// kernel: enet_forward.177
= control target key start
LH: loop header
LB: loop body
LE: loop exit
PB: predicated region body
PF: predicated region fallthrough
CT: control target
= control target key end

     0   :  { %s1382_s12 = smov 0   ;;  %s1687_s0 = inlined_call_operand.vmem [shape: bf16[2048,256], index: 0, kind: input, shape index: {}]   ;;  %s1688_s1 = inlined_call_operand.vmem [shape: bf16[256,128], index: 1, kind: input, shape index: {}]   ;;  %s1689_s2 = inlined_call_operand.vmem [shape: f32[1,128], index: 2, kind: input, shape index: {}]   ;;  %s1690_s3 = inlined_call_operand.vmem [shape: f32[2048,128], index: 3, kind: output, shape index: {}]  }
   0x1 LB: > { %s1106_s13 = sadd.s32 4294967295, %s1359_s12   ;;  %p1110_p0 = scmp.ge.s32.totalorder %s1359_s12, 1  ;;  %s1359_s12 = sphi %s1382_s12, %s13_s12  }
   0x2   : > { %p139_p1 = scmp.lt.s32.totalorder %s1359_s12, 5 }
   0x4   : > { %p140_p2 = pnand %p1110_p0, %p139_p1 }
   0x5   : > { %v1241_v0 = vld [vmem:[%s1688_s1] sm:$0xff] (!%p140_p2)   ;;  %v1361_v1 = vmov (!%p140_p2), 0   ;;  %s1111_s16 = sshll.u32 (!%p140_p2), %s1106_s13, 6  ;;  %v1242_v2 = vld [vmem:[%s1688_s1 + $0x8] sm:$0xff] (!%p140_p2)   ;;  %v1243_v3 = vld [vmem:[%s1688_s1 + $0x10] sm:$0xff] (!%p140_p2)  }
   0x6   : > { %143 = sbr.rel (%p140_p2) target bundleno = 407 (0x197), region = 32  ;;  %697 = vmatprep.subr.bf16.mxu0 (!%p140_p2), %v1361_v1  ;;  %1200 = vmatprep.subr.bf16.mxu1 (!%p140_p2), %v1361_v1  ;;  %p165_p3 = scmp.lt.s32.totalorder (!%p140_p2), %s1111_s16, 255  ;;  %v1244_v4 = vld [vmem:[%s1688_s1 + $0x18] sm:$0xff] (!%p140_p2)   ;;  %v1245_v5 = vld [vmem:[%s1688_s1 + $0x20] sm:$0xff] (!%p140_p2)   ;;  %v1246_v7 = vld [vmem:[%s1688_s1 + $0x28] sm:$0xff] (!%p140_p2)  }
   0x7   : > { %698 = vmatpush1.bf16.msra.mxu0 (!%p140_p2), %v1241_v0  ;;  %1216 = vmatpush1.bf16.msra.mxu1 (!%p140_p2), %v1241_v0  ;;  %v1247_v9 = vld [vmem:[%s1688_s1 + $0x30] sm:$0xff] (!%p140_p2)   ;;  %v1248_v10 = vld [vmem:[%s1688_s1 + $0x38] sm:$0xff] (!%p140_p2)   ;;  %v1249_v11 = vld [vmem:[%s1688_s1 + $0x40] sm:$0xff] (!%p140_p2)  }
   0x8   : > { %699 = vmatprep.subr.bf16.mxu0 (!%p140_p2), %v1361_v1  ;;  %1201 = vmatprep.subr.bf16.mxu1 (!%p140_p2), %v1361_v1  ;;  %v1250_v12 = vld [vmem:[%s1688_s1 + $0x48] sm:$0xff] (!%p140_p2)   ;;  %v1251_v13 = vld [vmem:[%s1688_s1 + $0x50] sm:$0xff] (!%p140_p2)   ;;  %v1252_v14 = vld [vmem:[%s1688_s1 + $0x58] sm:$0xff] (!%p140_p2)  }
   0x9   : > { %v1253_v15 = vld [vmem:[%s1688_s1 + $0x60] sm:$0xff] (!%p140_p2)   ;;  %v1254_v16 = vld [vmem:[%s1688_s1 + $0x68] sm:$0xff] (!%p140_p2)   ;;  %v1255_v17 = vld [vmem:[%s1688_s1 + $0x70] sm:$0xff] (!%p140_p2)  }
   0xa   : > { %v1256_v18 = vld [vmem:[%s1688_s1 + $0x78] sm:$0xff] (!%p140_p2)  }
   0xb   : > { %700 = vmatpush1.bf16.msra.mxu0 (!%p140_p2), %v1242_v2  ;;  %1217 = vmatpush1.bf16.msra.mxu1 (!%p140_p2), %v1242_v2 }
   0xc   : > { %701 = vmatprep.subr.bf16.mxu0 (!%p140_p2), %v1361_v1  ;;  %1202 = vmatprep.subr.bf16.mxu1 (!%p140_p2), %v1361_v1 }
   0xd   : > { %s1692_s16 = smov (!%p165_p3, %s1111_s16), 255 }
   0xe   : > { %s1199_s23 = sshll.u32 %s1692_s16, 3 }
   0xf   : > { %702 = vmatpush1.bf16.msra.mxu0 %v1243_v3  ;;  %1218 = vmatpush1.bf16.msra.mxu1 %v1243_v3  ;;  %s1421_s28 = scalar_lea.vmem %s1687_s0, %s1199_s23  ;;  %s1554_s5 = scalar_lea.vmem %s1690_s3, %s1199_s23 }
  0x10   : > { %703 = vmatprep.subr.bf16.mxu0 %v1361_v1  ;;  %1203 = vmatprep.subr.bf16.mxu1 %v1361_v1  ;;  %v1259_v6 = vld [vmem:[%s1421_s28 + $0x4] ss:$8 sps:$4 sm:$0xff]   ;;  %v1257_v19 = vld [vmem:[%s1421_s28] ss:$8 sps:$4 sm:$0xff]   ;;  %v1263_v21 = vld [vmem:[%s1421_s28 + $0x14] ss:$8 sps:$4 sm:$0xff]  }
  0x11   : > { %v1262_v8 = vld [vmem:[%s1421_s28 + $0x104] ss:$8 sps:$4 sm:$0xff]   ;;  %729 = vmatprep.mubr.bf16.mxu0 %v1259_v6  ;;  %v1260_v20 = vld [vmem:[%s1421_s28 + $0x100] ss:$8 sps:$4 sm:$0xff]   ;;  %v1265_v22 = vld [vmem:[%s1421_s28 + $0x114] ss:$8 sps:$4 sm:$0xff]  }
  0x12   : > { %857 = vmatprep.mubr.bf16.mxu1 %v1262_v8  ;;  %v1267_v23 = vld [vmem:[%s1421_s28 + $0x10] ss:$8 sps:$4 sm:$0xff]   ;;  %v1269_v25 = vld [vmem:[%s1421_s28 + $0x24] ss:$8 sps:$4 sm:$0xff]   ;;  %v1273_v27 = vld [vmem:[%s1421_s28 + $0x20] ss:$8 sps:$4 sm:$0xff]  }
  0x13   : > { %704 = vmatpush1.bf16.msra.mxu0 %v1244_v4  ;;  %1219 = vmatpush1.bf16.msra.mxu1 %v1244_v4  ;;  %v1268_v24 = vld [vmem:[%s1421_s28 + $0x110] ss:$8 sps:$4 sm:$0xff]   ;;  %v1271_v26 = vld [vmem:[%s1421_s28 + $0x124] ss:$8 sps:$4 sm:$0xff]   ;;  %v1274_v28 = vld [vmem:[%s1421_s28 + $0x120] ss:$8 sps:$4 sm:$0xff]  }
  0x14   : > { %705 = vmatprep.subr.bf16.mxu0 %v1361_v1  ;;  %1204 = vmatprep.subr.bf16.mxu1 %v1361_v1  ;;  %v1275_v29 = vld [vmem:[%s1421_s28 + $0x34] ss:$8 sps:$4 sm:$0xff]   ;;  %v1279_v31 = vld [vmem:[%s1421_s28 + $0x30] ss:$8 sps:$4 sm:$0xff]   ;;  %v1281_v33 = vld [vmem:[%s1421_s28 + $0x44] ss:$8 sps:$4 sm:$0xff]  }
  0x15   : > { %v1277_v30 = vld [vmem:[%s1421_s28 + $0x134] ss:$8 sps:$4 sm:$0xff]   ;;  %v1280_v32 = vld [vmem:[%s1421_s28 + $0x130] ss:$8 sps:$4 sm:$0xff]   ;;  %v1283_v34 = vld [vmem:[%s1421_s28 + $0x144] ss:$8 sps:$4 sm:$0xff]  }
  0x16   : > { %v1285_v35 = vld [vmem:[%s1421_s28 + $0x40] ss:$8 sps:$4 sm:$0xff]   ;;  %v1287_v37 = vld [vmem:[%s1421_s28 + $0x54] ss:$8 sps:$4 sm:$0xff]   ;;  %v1291_v39 = vld [vmem:[%s1421_s28 + $0x50] ss:$8 sps:$4 sm:$0xff]  }
  0x17   : > { %706 = vmatpush1.bf16.msra.mxu0 %v1245_v5  ;;  %1220 = vmatpush1.bf16.msra.mxu1 %v1245_v5  ;;  %v1286_v36 = vld [vmem:[%s1421_s28 + $0x140] ss:$8 sps:$4 sm:$0xff]   ;;  %v1289_v38 = vld [vmem:[%s1421_s28 + $0x154] ss:$8 sps:$4 sm:$0xff]   ;;  %v1292_v40 = vld [vmem:[%s1421_s28 + $0x150] ss:$8 sps:$4 sm:$0xff]  }
  0x18   : > { %707 = vmatprep.subr.bf16.mxu0 %v1361_v1  ;;  %1205 = vmatprep.subr.bf16.mxu1 %v1361_v1  ;;  %v1293_v41 = vld [vmem:[%s1421_s28 + $0x64] ss:$8 sps:$4 sm:$0xff]   ;;  %v1297_v43 = vld [vmem:[%s1421_s28 + $0x60] ss:$8 sps:$4 sm:$0xff]   ;;  %v1299_v45 = vld [vmem:[%s1421_s28 + $0x74] ss:$8 sps:$4 sm:$0xff]  }
  0x19   : > { %v1295_v42 = vld [vmem:[%s1421_s28 + $0x164] ss:$8 sps:$4 sm:$0xff]   ;;  %v1298_v44 = vld [vmem:[%s1421_s28 + $0x160] ss:$8 sps:$4 sm:$0xff]   ;;  %v1301_v46 = vld [vmem:[%s1421_s28 + $0x174] ss:$8 sps:$4 sm:$0xff]  }
  0x1a   : > { %v1303_v47 = vld [vmem:[%s1421_s28 + $0x70] ss:$8 sps:$4 sm:$0xff]   ;;  %v1305_v49 = vld [vmem:[%s1421_s28 + $0x84] ss:$8 sps:$4 sm:$0xff]   ;;  %v1309_v51 = vld [vmem:[%s1421_s28 + $0x80] ss:$8 sps:$4 sm:$0xff]  }
  0x1b   : > { %708 = vmatpush1.bf16.msra.mxu0 %v1246_v7  ;;  %1221 = vmatpush1.bf16.msra.mxu1 %v1246_v7  ;;  %v1304_v48 = vld [vmem:[%s1421_s28 + $0x170] ss:$8 sps:$4 sm:$0xff]   ;;  %v1307_v50 = vld [vmem:[%s1421_s28 + $0x184] ss:$8 sps:$4 sm:$0xff]   ;;  %v1310_v52 = vld [vmem:[%s1421_s28 + $0x180] ss:$8 sps:$4 sm:$0xff]  }
  0x1c   : > { %709 = vmatprep.subr.bf16.mxu0 %v1361_v1  ;;  %1206 = vmatprep.subr.bf16.mxu1 %v1361_v1  ;;  %v1311_v53 = vld [vmem:[%s1421_s28 + $0x94] ss:$8 sps:$4 sm:$0xff]   ;;  %v1315_v55 = vld [vmem:[%s1421_s28 + $0x90] ss:$8 sps:$4 sm:$0xff]   ;;  %v1317_v57 = vld [vmem:[%s1421_s28 + $0xa4] ss:$8 sps:$4 sm:$0xff]  }
  0x1d   : > { %v1313_v54 = vld [vmem:[%s1421_s28 + $0x194] ss:$8 sps:$4 sm:$0xff]   ;;  %v1316_v56 = vld [vmem:[%s1421_s28 + $0x190] ss:$8 sps:$4 sm:$0xff]   ;;  %v1319_v58 = vld [vmem:[%s1421_s28 + $0x1a4] ss:$8 sps:$4 sm:$0xff]  }
  0x1e   : > { %v1321_v59 = vld [vmem:[%s1421_s28 + $0xa0] ss:$8 sps:$4 sm:$0xff]   ;;  %v1323_v61 = vld [vmem:[%s1421_s28 + $0xb4] ss:$8 sps:$4 sm:$0xff]   ;;  %v1327_v63 = vld [vmem:[%s1421_s28 + $0xb0] ss:$8 sps:$4 sm:$0xff]  }
  0x1f   : > { %710 = vmatpush1.bf16.msra.mxu0 %v1247_v9  ;;  %1222 = vmatpush1.bf16.msra.mxu1 %v1247_v9  ;;  %v1322_v60 = vld [vmem:[%s1421_s28 + $0x1a0] ss:$8 sps:$4 sm:$0xff]   ;;  %v1325_v62 = vld [vmem:[%s1421_s28 + $0x1b4] ss:$8 sps:$4 sm:$0xff]   ;;  %v1328_v0 = vld [vmem:[%s1421_s28 + $0x1b0] ss:$8 sps:$4 sm:$0xff]  }
  0x20   : > { %711 = vmatprep.subr.bf16.mxu0 %v1361_v1  ;;  %1207 = vmatprep.subr.bf16.mxu1 %v1361_v1  ;;  %v1331_v2 = vld [vmem:[%s1421_s28 + $0x1c4] ss:$8 sps:$4 sm:$0xff]   ;;  %v1333_v3 = vld [vmem:[%s1421_s28 + $0xc0] ss:$8 sps:$4 sm:$0xff]   ;;  %v1335_v5 = vld [vmem:[%s1421_s28 + $0xd4] ss:$8 sps:$4 sm:$0xff]  }
  0x21   : > { %v1334_v4 = vld [vmem:[%s1421_s28 + $0x1c0] ss:$8 sps:$4 sm:$0xff]   ;;  %v1337_v6 = vld [vmem:[%s1421_s28 + $0x1d4] ss:$8 sps:$4 sm:$0xff]   ;;  %v1339_v7 = vld [vmem:[%s1421_s28 + $0xd0] ss:$8 sps:$4 sm:$0xff]  }
  0x22   : > { %v1340_v8 = vld [vmem:[%s1421_s28 + $0x1d0] ss:$8 sps:$4 sm:$0xff]   ;;  %v1341_v9 = vld [vmem:[%s1421_s28 + $0xe4] ss:$8 sps:$4 sm:$0xff]  }
  0x23   : > { %712 = vmatpush1.bf16.msra.mxu0 %v1248_v10  ;;  %1223 = vmatpush1.bf16.msra.mxu1 %v1248_v10  ;;  %v1343_v10 = vld [vmem:[%s1421_s28 + $0x1e4] ss:$8 sps:$4 sm:$0xff]  }
  0x24   : > { %713 = vmatprep.subr.bf16.mxu0 %v1361_v1  ;;  %1208 = vmatprep.subr.bf16.mxu1 %v1361_v1 }
  0x27   : > { %714 = vmatpush1.bf16.msra.mxu0 %v1249_v11  ;;  %1224 = vmatpush1.bf16.msra.mxu1 %v1249_v11  ;;  %v1345_v11 = vld [vmem:[%s1421_s28 + $0xe0] ss:$8 sps:$4 sm:$0xff]  }
  0x28   : > { %715 = vmatprep.subr.bf16.mxu0 %v1361_v1  ;;  %1209 = vmatprep.subr.bf16.mxu1 %v1361_v1 }
  0x2b   : > { %716 = vmatpush1.bf16.msra.mxu0 %v1250_v12  ;;  %1225 = vmatpush1.bf16.msra.mxu1 %v1250_v12  ;;  %v1346_v12 = vld [vmem:[%s1421_s28 + $0x1e0] ss:$8 sps:$4 sm:$0xff]  }
  0x2c   : > { %717 = vmatprep.subr.bf16.mxu0 %v1361_v1  ;;  %1210 = vmatprep.subr.bf16.mxu1 %v1361_v1 }
  0x2f   : > { %718 = vmatpush1.bf16.msra.mxu0 %v1251_v13  ;;  %1226 = vmatpush1.bf16.msra.mxu1 %v1251_v13  ;;  %v1347_v13 = vld [vmem:[%s1421_s28 + $0xf4] ss:$8 sps:$4 sm:$0xff]  }
  0x30   : > { %719 = vmatprep.subr.bf16.mxu0 %v1361_v1  ;;  %1211 = vmatprep.subr.bf16.mxu1 %v1361_v1 }
  0x33   : > { %720 = vmatpush1.bf16.msra.mxu0 %v1252_v14  ;;  %1227 = vmatpush1.bf16.msra.mxu1 %v1252_v14  ;;  %v1349_v14 = vld [vmem:[%s1421_s28 + $0x1f4] ss:$8 sps:$4 sm:$0xff]  }
  0x34   : > { %721 = vmatprep.subr.bf16.mxu0 %v1361_v1  ;;  %1212 = vmatprep.subr.bf16.mxu1 %v1361_v1 }
  0x37   : > { %722 = vmatpush1.bf16.msra.mxu0 %v1253_v15  ;;  %1228 = vmatpush1.bf16.msra.mxu1 %v1253_v15  ;;  %v1351_v15 = vld [vmem:[%s1421_s28 + $0xf0] ss:$8 sps:$4 sm:$0xff]  }
  0x38   : > { %723 = vmatprep.subr.bf16.mxu0 %v1361_v1  ;;  %1213 = vmatprep.subr.bf16.mxu1 %v1361_v1 }
  0x3b   : > { %724 = vmatpush1.bf16.msra.mxu0 %v1254_v16  ;;  %1229 = vmatpush1.bf16.msra.mxu1 %v1254_v16  ;;  %v1352_v16 = vld [vmem:[%s1421_s28 + $0x1f0] ss:$8 sps:$4 sm:$0xff]  }
  0x3c   : > { %725 = vmatprep.subr.bf16.mxu0 %v1361_v1  ;;  %1214 = vmatprep.subr.bf16.mxu1 %v1361_v1 }
  0x3f   : > { %726 = vmatpush1.bf16.msra.mxu0 %v1255_v17  ;;  %1230 = vmatpush1.bf16.msra.mxu1 %v1255_v17  ;;  %v1547_v17 = vld [vmem:[%s1689_s2] ss:$0 sm:$0xff] }
  0x40   : > { %727 = vmatprep.subr.bf16.mxu0 %v1361_v1  ;;  %1215 = vmatprep.subr.bf16.mxu1 %v1361_v1  ;;  %v1329_v1 = vld [vmem:[%s1421_s28 + $0xc4] ss:$8 sps:$4 sm:$0xff]  }
  0x43   : > { %728 = vmatpush1.bf16.msra.mxu0 %v1256_v18  ;;  %1231 = vmatpush1.bf16.msra.mxu1 %v1256_v18 }
  0x46   : > { %730 = vmatmul.mubr.bf16.vlgmr.msra.gmra.mrb[0].mxu0 %v1257_v19  ;;  %858 = vmatmul.mubr.bf16.vlgmr.msra.gmra.mrb[0].mxu1 %v1260_v20 }
  0x47   : > { %737 = vmatprep.mubr.bf16.mxu0 %v1263_v21  ;;  %865 = vmatprep.mubr.bf16.mxu1 %v1265_v22 }
  0x4e   : > { %738 = vmatmul.mubr.bf16.gmra.mrb[4].mxu0 %v1267_v23  ;;  %866 = vmatmul.mubr.bf16.gmra.mrb[4].mxu1 %v1268_v24 }
  0x4f   : > { %745 = vmatprep.mubr.bf16.mxu0 %v1269_v25  ;;  %873 = vmatprep.mubr.bf16.mxu1 %v1271_v26 }
  0x56   : > { %746 = vmatmul.mubr.bf16.gmra.mrb[8].mxu0 %v1273_v27  ;;  %874 = vmatmul.mubr.bf16.gmra.mrb[8].mxu1 %v1274_v28 }
  0x57   : > { %753 = vmatprep.mubr.bf16.mxu0 %v1275_v29  ;;  %881 = vmatprep.mubr.bf16.mxu1 %v1277_v30 }
  0x5e   : > { %754 = vmatmul.mubr.bf16.gmra.mrb[12].mxu0 %v1279_v31  ;;  %882 = vmatmul.mubr.bf16.gmra.mrb[12].mxu1 %v1280_v32 }
  0x5f   : > { %761 = vmatprep.mubr.bf16.mxu0 %v1281_v33  ;;  %889 = vmatprep.mubr.bf16.mxu1 %v1283_v34 }
  0x66   : > { %762 = vmatmul.mubr.bf16.gmra.mrb[16].mxu0 %v1285_v35  ;;  %890 = vmatmul.mubr.bf16.gmra.mrb[16].mxu1 %v1286_v36 }
  0x67   : > { %769 = vmatprep.mubr.bf16.mxu0 %v1287_v37  ;;  %897 = vmatprep.mubr.bf16.mxu1 %v1289_v38 }
  0x6e   : > { %770 = vmatmul.mubr.bf16.gmra.mrb[20].mxu0 %v1291_v39  ;;  %898 = vmatmul.mubr.bf16.gmra.mrb[20].mxu1 %v1292_v40 }
  0x6f   : > { %777 = vmatprep.mubr.bf16.mxu0 %v1293_v41  ;;  %905 = vmatprep.mubr.bf16.mxu1 %v1295_v42 }
  0x76   : > { %778 = vmatmul.mubr.bf16.gmra.mrb[24].mxu0 %v1297_v43  ;;  %906 = vmatmul.mubr.bf16.gmra.mrb[24].mxu1 %v1298_v44 }
  0x77   : > { %785 = vmatprep.mubr.bf16.mxu0 %v1299_v45  ;;  %913 = vmatprep.mubr.bf16.mxu1 %v1301_v46 }
  0x7e   : > { %786 = vmatmul.mubr.bf16.gmra.mrb[28].mxu0 %v1303_v47  ;;  %914 = vmatmul.mubr.bf16.gmra.mrb[28].mxu1 %v1304_v48 }
  0x7f   : > { %793 = vmatprep.mubr.bf16.mxu0 %v1305_v49  ;;  %921 = vmatprep.mubr.bf16.mxu1 %v1307_v50 }
  0x86   : > { %794 = vmatmul.mubr.bf16.gmra.mrb[32].mxu0 %v1309_v51  ;;  %922 = vmatmul.mubr.bf16.gmra.mrb[32].mxu1 %v1310_v52 }
  0x87   : > { %801 = vmatprep.mubr.bf16.mxu0 %v1311_v53  ;;  %929 = vmatprep.mubr.bf16.mxu1 %v1313_v54 }
  0x8e   : > { %802 = vmatmul.mubr.bf16.gmra.mrb[36].mxu0 %v1315_v55  ;;  %930 = vmatmul.mubr.bf16.gmra.mrb[36].mxu1 %v1316_v56 }
  0x8f   : > { %809 = vmatprep.mubr.bf16.mxu0 %v1317_v57  ;;  %937 = vmatprep.mubr.bf16.mxu1 %v1319_v58 }
  0x96   : > { %810 = vmatmul.mubr.bf16.gmra.mrb[40].mxu0 %v1321_v59  ;;  %938 = vmatmul.mubr.bf16.gmra.mrb[40].mxu1 %v1322_v60 }
  0x97   : > { %817 = vmatprep.mubr.bf16.mxu0 %v1323_v61  ;;  %945 = vmatprep.mubr.bf16.mxu1 %v1325_v62 }
  0x9e   : > { %818 = vmatmul.mubr.bf16.gmra.mrb[44].mxu0 %v1327_v63  ;;  %946 = vmatmul.mubr.bf16.gmra.mrb[44].mxu1 %v1328_v0 }
  0x9f   : > { %825 = vmatprep.mubr.bf16.mxu0 %v1329_v1  ;;  %953 = vmatprep.mubr.bf16.mxu1 %v1331_v2 }
  0xa6   : > { %826 = vmatmul.mubr.bf16.gmra.mrb[48].mxu0 %v1333_v3  ;;  %954 = vmatmul.mubr.bf16.gmra.mrb[48].mxu1 %v1334_v4 }
  0xa7   : > { %833 = vmatprep.mubr.bf16.mxu0 %v1335_v5  ;;  %961 = vmatprep.mubr.bf16.mxu1 %v1337_v6 }
  0xae   : > { %834 = vmatmul.mubr.bf16.gmra.mrb[52].mxu0 %v1339_v7  ;;  %962 = vmatmul.mubr.bf16.gmra.mrb[52].mxu1 %v1340_v8 }
  0xaf   : > { %841 = vmatprep.mubr.bf16.mxu0 %v1341_v9  ;;  %969 = vmatprep.mubr.bf16.mxu1 %v1343_v10 }
  0xb6   : > { %842 = vmatmul.mubr.bf16.gmra.mrb[56].mxu0 %v1345_v11  ;;  %970 = vmatmul.mubr.bf16.gmra.mrb[56].mxu1 %v1346_v12 }
  0xb7   : > { %849 = vmatprep.mubr.bf16.mxu0 %v1347_v13  ;;  %977 = vmatprep.mubr.bf16.mxu1 %v1349_v14 }
  0xbe   : > { %850 = vmatmul.mubr.bf16.gmra.mrb[60].mxu0 %v1351_v15  ;;  %978 = vmatmul.mubr.bf16.gmra.mrb[60].mxu1 %v1352_v16 }
 0x119   : > { %v731_v18 = vpop.f32.mrb[0].mxu0  ;;  %v859_v19 = vpop.f32.mrb[0].mxu1 }
 0x11a   : > { %v732_v20 = vadd.f32 %v1547_v17, %v731_v18  ;;  %v860_v21 = vadd.f32 %v1547_v17, %v859_v19  ;;  %v733_v22 = vpop.f32.mrb[1].mxu0  ;;  %v861_v23 = vpop.f32.mrb[1].mxu1 }
 0x11b   : > { %v734_v24 = vpop.f32.mrb[2].mxu0  ;;  %v862_v25 = vpop.f32.mrb[2].mxu1 }
 0x11c   : > { %986 = vst [vmem:[%s1554_s5] sm:$0xff] %v732_v20  ;;  %1018 = vst [vmem:[%s1554_s5 + $0x100] sm:$0xff] %v860_v21  ;;  %v735_v26 = vadd.f32 %v1547_v17, %v734_v24  ;;  %v863_v27 = vadd.f32 %v1547_v17, %v862_v25  ;;  %v736_v28 = vpop.f32.mrb[3].mxu0  ;;  %v864_v29 = vpop.f32.mrb[3].mxu1 }
 0x11e   : > { %987 = vst [vmem:[%s1554_s5 + $0x8] sm:$0xff] %v735_v26  ;;  %1019 = vst [vmem:[%s1554_s5 + $0x108] sm:$0xff] %v863_v27 }
 0x121   : > { %v739_v30 = vpop.f32.mrb[4].mxu0  ;;  %v867_v31 = vpop.f32.mrb[4].mxu1 }
 0x122   : > { %v740_v32 = vadd.f32 %v1547_v17, %v739_v30  ;;  %v868_v33 = vadd.f32 %v1547_v17, %v867_v31  ;;  %v741_v34 = vpop.f32.mrb[5].mxu0  ;;  %v869_v35 = vpop.f32.mrb[5].mxu1 }
 0x123   : > { %v742_v36 = vpop.f32.mrb[6].mxu0  ;;  %v870_v37 = vpop.f32.mrb[6].mxu1 }
 0x124   : > { %988 = vst [vmem:[%s1554_s5 + $0x10] sm:$0xff] %v740_v32  ;;  %1020 = vst [vmem:[%s1554_s5 + $0x110] sm:$0xff] %v868_v33  ;;  %v743_v38 = vadd.f32 %v1547_v17, %v742_v36  ;;  %v871_v39 = vadd.f32 %v1547_v17, %v870_v37  ;;  %v744_v40 = vpop.f32.mrb[7].mxu0  ;;  %v872_v41 = vpop.f32.mrb[7].mxu1 }
 0x126   : > { %989 = vst [vmem:[%s1554_s5 + $0x18] sm:$0xff] %v743_v38  ;;  %1021 = vst [vmem:[%s1554_s5 + $0x118] sm:$0xff] %v871_v39 }
 0x129   : > { %v747_v42 = vpop.f32.mrb[8].mxu0  ;;  %v875_v43 = vpop.f32.mrb[8].mxu1 }
 0x12a   : > { %v748_v44 = vadd.f32 %v1547_v17, %v747_v42  ;;  %v876_v45 = vadd.f32 %v1547_v17, %v875_v43  ;;  %v749_v46 = vpop.f32.mrb[9].mxu0  ;;  %v877_v47 = vpop.f32.mrb[9].mxu1 }
 0x12b   : > { %v750_v48 = vpop.f32.mrb[10].mxu0  ;;  %v878_v49 = vpop.f32.mrb[10].mxu1 }
 0x12c   : > { %990 = vst [vmem:[%s1554_s5 + $0x20] sm:$0xff] %v748_v44  ;;  %1022 = vst [vmem:[%s1554_s5 + $0x120] sm:$0xff] %v876_v45  ;;  %v751_v50 = vadd.f32 %v1547_v17, %v750_v48  ;;  %v879_v51 = vadd.f32 %v1547_v17, %v878_v49  ;;  %v752_v52 = vpop.f32.mrb[11].mxu0  ;;  %v880_v53 = vpop.f32.mrb[11].mxu1 }
 0x12e   : > { %991 = vst [vmem:[%s1554_s5 + $0x28] sm:$0xff] %v751_v50  ;;  %1023 = vst [vmem:[%s1554_s5 + $0x128] sm:$0xff] %v879_v51 }
 0x131   : > { %v755_v54 = vpop.f32.mrb[12].mxu0  ;;  %v883_v55 = vpop.f32.mrb[12].mxu1 }
 0x132   : > { %v756_v56 = vadd.f32 %v1547_v17, %v755_v54  ;;  %v884_v57 = vadd.f32 %v1547_v17, %v883_v55  ;;  %v757_v58 = vpop.f32.mrb[13].mxu0  ;;  %v885_v59 = vpop.f32.mrb[13].mxu1 }
 0x133   : > { %v758_v60 = vpop.f32.mrb[14].mxu0  ;;  %v886_v61 = vpop.f32.mrb[14].mxu1 }
 0x134   : > { %992 = vst [vmem:[%s1554_s5 + $0x30] sm:$0xff] %v756_v56  ;;  %1024 = vst [vmem:[%s1554_s5 + $0x130] sm:$0xff] %v884_v57  ;;  %v759_v62 = vadd.f32 %v1547_v17, %v758_v60  ;;  %v887_v63 = vadd.f32 %v1547_v17, %v886_v61  ;;  %v760_v0 = vpop.f32.mrb[15].mxu0  ;;  %v888_v1 = vpop.f32.mrb[15].mxu1 }
 0x136   : > { %993 = vst [vmem:[%s1554_s5 + $0x38] sm:$0xff] %v759_v62  ;;  %1025 = vst [vmem:[%s1554_s5 + $0x138] sm:$0xff] %v887_v63 }
 0x139   : > { %v763_v2 = vpop.f32.mrb[16].mxu0  ;;  %v891_v3 = vpop.f32.mrb[16].mxu1 }
 0x13a   : > { %v764_v4 = vadd.f32 %v1547_v17, %v763_v2  ;;  %v892_v5 = vadd.f32 %v1547_v17, %v891_v3  ;;  %v765_v6 = vpop.f32.mrb[17].mxu0  ;;  %v893_v7 = vpop.f32.mrb[17].mxu1 }
 0x13b   : > { %v766_v8 = vpop.f32.mrb[18].mxu0  ;;  %v894_v9 = vpop.f32.mrb[18].mxu1 }
 0x13c   : > { %994 = vst [vmem:[%s1554_s5 + $0x40] sm:$0xff] %v764_v4  ;;  %1026 = vst [vmem:[%s1554_s5 + $0x140] sm:$0xff] %v892_v5  ;;  %v767_v10 = vadd.f32 %v1547_v17, %v766_v8  ;;  %v895_v11 = vadd.f32 %v1547_v17, %v894_v9  ;;  %v768_v12 = vpop.f32.mrb[19].mxu0  ;;  %v896_v13 = vpop.f32.mrb[19].mxu1 }
 0x13e   : > { %995 = vst [vmem:[%s1554_s5 + $0x48] sm:$0xff] %v767_v10  ;;  %1027 = vst [vmem:[%s1554_s5 + $0x148] sm:$0xff] %v895_v11 }
 0x141   : > { %v771_v14 = vpop.f32.mrb[20].mxu0  ;;  %v899_v15 = vpop.f32.mrb[20].mxu1 }
 0x142   : > { %v772_v16 = vadd.f32 %v1547_v17, %v771_v14  ;;  %v900_v18 = vadd.f32 %v1547_v17, %v899_v15  ;;  %v773_v19 = vpop.f32.mrb[21].mxu0  ;;  %v901_v20 = vpop.f32.mrb[21].mxu1 }
 0x143   : > { %v774_v21 = vpop.f32.mrb[22].mxu0  ;;  %v902_v22 = vpop.f32.mrb[22].mxu1 }
 0x144   : > { %996 = vst [vmem:[%s1554_s5 + $0x50] sm:$0xff] %v772_v16  ;;  %1028 = vst [vmem:[%s1554_s5 + $0x150] sm:$0xff] %v900_v18  ;;  %v775_v23 = vadd.f32 %v1547_v17, %v774_v21  ;;  %v903_v24 = vadd.f32 %v1547_v17, %v902_v22  ;;  %v776_v25 = vpop.f32.mrb[23].mxu0  ;;  %v904_v26 = vpop.f32.mrb[23].mxu1 }
 0x146   : > { %997 = vst [vmem:[%s1554_s5 + $0x58] sm:$0xff] %v775_v23  ;;  %1029 = vst [vmem:[%s1554_s5 + $0x158] sm:$0xff] %v903_v24 }
 0x149   : > { %v779_v27 = vpop.f32.mrb[24].mxu0  ;;  %v907_v28 = vpop.f32.mrb[24].mxu1 }
 0x14a   : > { %v780_v29 = vadd.f32 %v1547_v17, %v779_v27  ;;  %v908_v30 = vadd.f32 %v1547_v17, %v907_v28  ;;  %v781_v31 = vpop.f32.mrb[25].mxu0  ;;  %v909_v32 = vpop.f32.mrb[25].mxu1 }
 0x14b   : > { %v782_v33 = vpop.f32.mrb[26].mxu0  ;;  %v910_v34 = vpop.f32.mrb[26].mxu1 }
 0x14c   : > { %998 = vst [vmem:[%s1554_s5 + $0x60] sm:$0xff] %v780_v29  ;;  %1030 = vst [vmem:[%s1554_s5 + $0x160] sm:$0xff] %v908_v30  ;;  %v783_v35 = vadd.f32 %v1547_v17, %v782_v33  ;;  %v911_v36 = vadd.f32 %v1547_v17, %v910_v34  ;;  %v784_v37 = vpop.f32.mrb[27].mxu0  ;;  %v912_v38 = vpop.f32.mrb[27].mxu1 }
 0x14e   : > { %999 = vst [vmem:[%s1554_s5 + $0x68] sm:$0xff] %v783_v35  ;;  %1031 = vst [vmem:[%s1554_s5 + $0x168] sm:$0xff] %v911_v36 }
 0x151   : > { %v787_v39 = vpop.f32.mrb[28].mxu0  ;;  %v915_v40 = vpop.f32.mrb[28].mxu1 }
 0x152   : > { %v788_v41 = vadd.f32 %v1547_v17, %v787_v39  ;;  %v916_v42 = vadd.f32 %v1547_v17, %v915_v40  ;;  %v789_v43 = vpop.f32.mrb[29].mxu0  ;;  %v917_v44 = vpop.f32.mrb[29].mxu1 }
 0x153   : > { %v790_v45 = vpop.f32.mrb[30].mxu0  ;;  %v918_v46 = vpop.f32.mrb[30].mxu1 }
 0x154   : > { %1000 = vst [vmem:[%s1554_s5 + $0x70] sm:$0xff] %v788_v41  ;;  %1032 = vst [vmem:[%s1554_s5 + $0x170] sm:$0xff] %v916_v42  ;;  %v791_v47 = vadd.f32 %v1547_v17, %v790_v45  ;;  %v919_v48 = vadd.f32 %v1547_v17, %v918_v46  ;;  %v792_v49 = vpop.f32.mrb[31].mxu0  ;;  %v920_v50 = vpop.f32.mrb[31].mxu1 }
 0x156   : > { %1001 = vst [vmem:[%s1554_s5 + $0x78] sm:$0xff] %v791_v47  ;;  %1033 = vst [vmem:[%s1554_s5 + $0x178] sm:$0xff] %v919_v48 }
 0x159   : > { %v795_v51 = vpop.f32.mrb[32].mxu0  ;;  %v923_v52 = vpop.f32.mrb[32].mxu1 }
 0x15a   : > { %v796_v53 = vadd.f32 %v1547_v17, %v795_v51  ;;  %v924_v54 = vadd.f32 %v1547_v17, %v923_v52  ;;  %v797_v55 = vpop.f32.mrb[33].mxu0  ;;  %v925_v56 = vpop.f32.mrb[33].mxu1 }
 0x15b   : > { %v798_v57 = vpop.f32.mrb[34].mxu0  ;;  %v926_v58 = vpop.f32.mrb[34].mxu1 }
 0x15c   : > { %1002 = vst [vmem:[%s1554_s5 + $0x80] sm:$0xff] %v796_v53  ;;  %1034 = vst [vmem:[%s1554_s5 + $0x180] sm:$0xff] %v924_v54  ;;  %v799_v59 = vadd.f32 %v1547_v17, %v798_v57  ;;  %v927_v60 = vadd.f32 %v1547_v17, %v926_v58  ;;  %v800_v61 = vpop.f32.mrb[35].mxu0  ;;  %v928_v62 = vpop.f32.mrb[35].mxu1 }
 0x15e   : > { %1003 = vst [vmem:[%s1554_s5 + $0x88] sm:$0xff] %v799_v59  ;;  %1035 = vst [vmem:[%s1554_s5 + $0x188] sm:$0xff] %v927_v60 }
 0x161   : > { %v803_v63 = vpop.f32.mrb[36].mxu0  ;;  %v931_v0 = vpop.f32.mrb[36].mxu1 }
 0x162   : > { %v804_v1 = vadd.f32 %v1547_v17, %v803_v63  ;;  %v932_v2 = vadd.f32 %v1547_v17, %v931_v0  ;;  %v805_v3 = vpop.f32.mrb[37].mxu0  ;;  %v933_v4 = vpop.f32.mrb[37].mxu1 }
 0x163   : > { %v806_v5 = vpop.f32.mrb[38].mxu0  ;;  %v934_v6 = vpop.f32.mrb[38].mxu1 }
 0x164   : > { %1004 = vst [vmem:[%s1554_s5 + $0x90] sm:$0xff] %v804_v1  ;;  %1036 = vst [vmem:[%s1554_s5 + $0x190] sm:$0xff] %v932_v2  ;;  %v807_v7 = vadd.f32 %v1547_v17, %v806_v5  ;;  %v935_v8 = vadd.f32 %v1547_v17, %v934_v6  ;;  %v808_v9 = vpop.f32.mrb[39].mxu0  ;;  %v936_v10 = vpop.f32.mrb[39].mxu1 }
 0x166   : > { %1005 = vst [vmem:[%s1554_s5 + $0x98] sm:$0xff] %v807_v7  ;;  %1037 = vst [vmem:[%s1554_s5 + $0x198] sm:$0xff] %v935_v8 }
 0x169   : > { %v811_v11 = vpop.f32.mrb[40].mxu0  ;;  %v939_v12 = vpop.f32.mrb[40].mxu1 }
 0x16a   : > { %v812_v13 = vadd.f32 %v1547_v17, %v811_v11  ;;  %v940_v14 = vadd.f32 %v1547_v17, %v939_v12  ;;  %v813_v15 = vpop.f32.mrb[41].mxu0  ;;  %v941_v16 = vpop.f32.mrb[41].mxu1 }
 0x16b   : > { %v814_v18 = vpop.f32.mrb[42].mxu0  ;;  %v942_v19 = vpop.f32.mrb[42].mxu1 }
 0x16c   : > { %1006 = vst [vmem:[%s1554_s5 + $0xa0] sm:$0xff] %v812_v13  ;;  %1038 = vst [vmem:[%s1554_s5 + $0x1a0] sm:$0xff] %v940_v14  ;;  %v815_v20 = vadd.f32 %v1547_v17, %v814_v18  ;;  %v943_v21 = vadd.f32 %v1547_v17, %v942_v19  ;;  %v816_v22 = vpop.f32.mrb[43].mxu0  ;;  %v944_v23 = vpop.f32.mrb[43].mxu1 }
 0x16e   : > { %1007 = vst [vmem:[%s1554_s5 + $0xa8] sm:$0xff] %v815_v20  ;;  %1039 = vst [vmem:[%s1554_s5 + $0x1a8] sm:$0xff] %v943_v21 }
 0x171   : > { %v819_v24 = vpop.f32.mrb[44].mxu0  ;;  %v947_v25 = vpop.f32.mrb[44].mxu1 }
 0x172   : > { %v820_v26 = vadd.f32 %v1547_v17, %v819_v24  ;;  %v948_v27 = vadd.f32 %v1547_v17, %v947_v25  ;;  %v821_v28 = vpop.f32.mrb[45].mxu0  ;;  %v949_v29 = vpop.f32.mrb[45].mxu1 }
 0x173   : > { %v822_v30 = vpop.f32.mrb[46].mxu0  ;;  %v950_v31 = vpop.f32.mrb[46].mxu1 }
 0x174   : > { %1008 = vst [vmem:[%s1554_s5 + $0xb0] sm:$0xff] %v820_v26  ;;  %1040 = vst [vmem:[%s1554_s5 + $0x1b0] sm:$0xff] %v948_v27  ;;  %v823_v32 = vadd.f32 %v1547_v17, %v822_v30  ;;  %v951_v33 = vadd.f32 %v1547_v17, %v950_v31  ;;  %v824_v34 = vpop.f32.mrb[47].mxu0  ;;  %v952_v35 = vpop.f32.mrb[47].mxu1 }
 0x176   : > { %1009 = vst [vmem:[%s1554_s5 + $0xb8] sm:$0xff] %v823_v32  ;;  %1041 = vst [vmem:[%s1554_s5 + $0x1b8] sm:$0xff] %v951_v33 }
 0x179   : > { %v827_v36 = vpop.f32.mrb[48].mxu0  ;;  %v955_v37 = vpop.f32.mrb[48].mxu1 }
 0x17a   : > { %v828_v38 = vadd.f32 %v1547_v17, %v827_v36  ;;  %v956_v39 = vadd.f32 %v1547_v17, %v955_v37  ;;  %v829_v40 = vpop.f32.mrb[49].mxu0  ;;  %v957_v41 = vpop.f32.mrb[49].mxu1 }
 0x17b   : > { %v830_v42 = vpop.f32.mrb[50].mxu0  ;;  %v958_v43 = vpop.f32.mrb[50].mxu1 }
 0x17c   : > { %1010 = vst [vmem:[%s1554_s5 + $0xc0] sm:$0xff] %v828_v38  ;;  %1042 = vst [vmem:[%s1554_s5 + $0x1c0] sm:$0xff] %v956_v39  ;;  %v831_v44 = vadd.f32 %v1547_v17, %v830_v42  ;;  %v959_v45 = vadd.f32 %v1547_v17, %v958_v43  ;;  %v832_v46 = vpop.f32.mrb[51].mxu0  ;;  %v960_v47 = vpop.f32.mrb[51].mxu1 }
 0x17e   : > { %1011 = vst [vmem:[%s1554_s5 + $0xc8] sm:$0xff] %v831_v44  ;;  %1043 = vst [vmem:[%s1554_s5 + $0x1c8] sm:$0xff] %v959_v45 }
 0x181   : > { %v835_v48 = vpop.f32.mrb[52].mxu0  ;;  %v963_v49 = vpop.f32.mrb[52].mxu1 }
 0x182   : > { %v836_v50 = vadd.f32 %v1547_v17, %v835_v48  ;;  %v964_v51 = vadd.f32 %v1547_v17, %v963_v49  ;;  %v837_v52 = vpop.f32.mrb[53].mxu0  ;;  %v965_v53 = vpop.f32.mrb[53].mxu1 }
 0x183   : > { %v838_v54 = vpop.f32.mrb[54].mxu0  ;;  %v966_v55 = vpop.f32.mrb[54].mxu1 }
 0x184   : > { %1012 = vst [vmem:[%s1554_s5 + $0xd0] sm:$0xff] %v836_v50  ;;  %1044 = vst [vmem:[%s1554_s5 + $0x1d0] sm:$0xff] %v964_v51  ;;  %v839_v56 = vadd.f32 %v1547_v17, %v838_v54  ;;  %v967_v57 = vadd.f32 %v1547_v17, %v966_v55  ;;  %v840_v58 = vpop.f32.mrb[55].mxu0  ;;  %v968_v59 = vpop.f32.mrb[55].mxu1 }
 0x186   : > { %1013 = vst [vmem:[%s1554_s5 + $0xd8] sm:$0xff] %v839_v56  ;;  %1045 = vst [vmem:[%s1554_s5 + $0x1d8] sm:$0xff] %v967_v57 }
 0x189   : > { %v843_v60 = vpop.f32.mrb[56].mxu0  ;;  %v971_v61 = vpop.f32.mrb[56].mxu1 }
 0x18a   : > { %v844_v62 = vadd.f32 %v1547_v17, %v843_v60  ;;  %v972_v63 = vadd.f32 %v1547_v17, %v971_v61  ;;  %v845_v0 = vpop.f32.mrb[57].mxu0  ;;  %v973_v1 = vpop.f32.mrb[57].mxu1 }
 0x18b   : > { %v846_v2 = vpop.f32.mrb[58].mxu0  ;;  %v974_v3 = vpop.f32.mrb[58].mxu1 }
 0x18c   : > { %1014 = vst [vmem:[%s1554_s5 + $0xe0] sm:$0xff] %v844_v62  ;;  %1046 = vst [vmem:[%s1554_s5 + $0x1e0] sm:$0xff] %v972_v63  ;;  %v847_v4 = vadd.f32 %v1547_v17, %v846_v2  ;;  %v975_v5 = vadd.f32 %v1547_v17, %v974_v3  ;;  %v848_v6 = vpop.f32.mrb[59].mxu0  ;;  %v976_v7 = vpop.f32.mrb[59].mxu1 }
 0x18e   : > { %1015 = vst [vmem:[%s1554_s5 + $0xe8] sm:$0xff] %v847_v4  ;;  %1047 = vst [vmem:[%s1554_s5 + $0x1e8] sm:$0xff] %v975_v5 }
 0x191   : > { %v851_v8 = vpop.f32.mrb[60].mxu0  ;;  %v979_v9 = vpop.f32.mrb[60].mxu1 }
 0x192   : > { %v852_v10 = vadd.f32 %v1547_v17, %v851_v8  ;;  %v980_v11 = vadd.f32 %v1547_v17, %v979_v9  ;;  %v853_v12 = vpop.f32.mrb[61].mxu0  ;;  %v981_v13 = vpop.f32.mrb[61].mxu1 }
 0x193   : > { %v854_v14 = vpop.f32.mrb[62].mxu0  ;;  %v982_v15 = vpop.f32.mrb[62].mxu1 }
 0x194   : > { %1016 = vst [vmem:[%s1554_s5 + $0xf0] sm:$0xff] %v852_v10  ;;  %1048 = vst [vmem:[%s1554_s5 + $0x1f0] sm:$0xff] %v980_v11  ;;  %v855_v16 = vadd.f32 %v1547_v17, %v854_v14  ;;  %v983_v18 = vadd.f32 %v1547_v17, %v982_v15  ;;  %v856_v19 = vpop.f32.mrb[63].mxu0  ;;  %v984_v20 = vpop.f32.mrb[63].mxu1 }
 0x196   : > { %1017 = vst [vmem:[%s1554_s5 + $0xf8] sm:$0xff] %v855_v16  ;;  %1049 = vst [vmem:[%s1554_s5 + $0x1f8] sm:$0xff] %v983_v18 }
 0x197 PF: > { %s13_s12 = sadd.s32 1, %s1359_s12  }
 0x198   : > { %p10_p4 = scmp.ge.s32.totalorder %s13_s12, 6  }
 0x19a   :  { %12 = sbr.rel (!%p10_p4) target bundleno = 1 (0x1), region = 62 }

</bundles_post_ra>
